<compile_context>
chip_gen: v7x
topology: tpu7x:2x2x1
jax: 0.10.0
libtpu: 0.0.40
codegen_flags: <defaults>
</compile_context>

<pallas_src>
import math

import jax
import jax.numpy as jnp
from jax import lax
from jax.experimental import pallas as pl
from jax.experimental.pallas import tpu as pltpu  # noqa: F401  (imported for parity)

# ---- small synthetic BERT config (weights are random, not a checkpoint) ----
VOCAB = 100
HIDDEN = 32
N_HEADS = 2
HEAD_DIM = HIDDEN // N_HEADS
INTERMEDIATE = 64
N_LAYERS = 2
MAX_POS = 64
LN_EPS = 1e-12
INIT_STD = 0.02


def _layernorm(x, g, b):
    mu = jnp.mean(x, axis=-1, keepdims=True)
    var = jnp.mean((x - mu) ** 2, axis=-1, keepdims=True)
    return (x - mu) * lax.rsqrt(var + LN_EPS) * g + b


def _gelu(x):
    # TODO(synk): HF BERT uses the exact erf-based GELU; tanh approximation used here.
    return 0.5 * x * (1.0 + jnp.tanh(0.7978845608028654 * (x + 0.044715 * x * x * x)))


# --------------------------- fused Pallas kernel ------------------------------

def _make_kernel(B, S):
    """Full forward for B sequences of length S as one kernel (weights in VMEM)."""
    BS = B * S
    H, HD = HIDDEN, HEAD_DIM

    def kernel(ids_ref, pos_ref, wtab_ref, ptab_ref, embln_ref,
               wqkv_ref, bqkv_ref, wo_ref, bo_ref, ln1_ref,
               w1_ref, b1_ref, w2_ref, b2_ref, ln2_ref,
               wp_ref, bp_ref, wc_ref, bc_ref, o_ref):
        # ---- embeddings: word + (position + token_type) as one-hot MXU dots ----
        word_oh = (ids_ref[...] ==
                   lax.broadcasted_iota(jnp.int32, (BS, VOCAB), 1)).astype(jnp.float32)
        pos_oh = (pos_ref[...] ==
                  lax.broadcasted_iota(jnp.int32, (BS, MAX_POS), 1)).astype(jnp.float32)
        emb = (jnp.dot(word_oh, wtab_ref[...], preferred_element_type=jnp.float32)
               + jnp.dot(pos_oh, ptab_ref[...], preferred_element_type=jnp.float32))
        eln = embln_ref[...]
        x = _layernorm(emb, eln[0:1], eln[1:2])                     # (BS, H) f32

        for l in range(N_LAYERS):                                   # static unroll
            # fused QKV: one (BS,H)x(H,3H) matmul; Q pre-scaled host-side
            xb = x.astype(jnp.bfloat16)
            qkv = jnp.dot(xb, wqkv_ref[l],
                          preferred_element_type=jnp.float32) + bqkv_ref[l]
            qkv3 = qkv.astype(jnp.bfloat16).reshape(B, S, 3 * H)    # single reshape

            ctx = []
            for h in range(N_HEADS):                                # static unroll
                qh = qkv3[:, :, h * HD:(h + 1) * HD]                # lane slices
                kh = qkv3[:, :, H + h * HD:H + (h + 1) * HD]
                vh = qkv3[:, :, 2 * H + h * HD:2 * H + (h + 1) * HD]
                s = lax.dot_general(qh, kh, (((2,), (2,)), ((0,), (0,))),
                                    preferred_element_type=jnp.float32)   # (B,S,S)
                s = s - jnp.max(s, axis=-1, keepdims=True)
                p = jnp.exp(s)
                p = p * pl.reciprocal(jnp.sum(p, axis=-1, keepdims=True), approx=True)
                ctx.append(lax.dot_general(p.astype(jnp.bfloat16), vh,
                                           (((2,), (1,)), ((0,), (0,))),
                                           preferred_element_type=jnp.float32))
            # heads concatenated on lanes -> one (BS,H)x(H,H) output projection
            ctx_all = jnp.concatenate(ctx, axis=-1).reshape(BS, H)  # single reshape
            attn = jnp.dot(ctx_all.astype(jnp.bfloat16), wo_ref[l],
                           preferred_element_type=jnp.float32) + bo_ref[l]
            ln1 = ln1_ref[l]
            h1 = _layernorm(x + attn, ln1[0:1], ln1[1:2])

            inter = _gelu(jnp.dot(h1.astype(jnp.bfloat16), w1_ref[l],
                                  preferred_element_type=jnp.float32) + b1_ref[l])
            ffn = jnp.dot(inter.astype(jnp.bfloat16), w2_ref[l],
                          preferred_element_type=jnp.float32) + b2_ref[l]
            ln2 = ln2_ref[l]
            x = _layernorm(h1 + ffn, ln2[0:1], ln2[1:2])

        # ---- pooler on the CLS token + single-logit classifier ----
        cls = x.reshape(B, S, H)[:, 0, :]                           # (B, H)
        pooled = jnp.tanh(jnp.dot(cls.astype(jnp.bfloat16), wp_ref[...],
                                  preferred_element_type=jnp.float32) + bp_ref[...])
        o_ref[...] = (jnp.sum(pooled * wc_ref[...], axis=-1, keepdims=True)
                      + bc_ref[...])                                # (B, 1)

    return kernel


# --------------------------- params & packing --------------------------------

def init_params(key):
    keys = iter(jax.random.split(key, 8 + N_LAYERS * 8))

    def normal(shape):
        return (INIT_STD * jax.random.normal(next(keys), shape)).astype(jnp.float32)

    params = {
        "word_emb": normal((VOCAB, HIDDEN)),
        "pos_emb": normal((MAX_POS, HIDDEN)),
        "type_emb": normal((2, HIDDEN)),
        "emb_ln_g": jnp.ones((1, HIDDEN), jnp.float32),
        "emb_ln_b": jnp.zeros((1, HIDDEN), jnp.float32),
        "pooler_w": normal((HIDDEN, HIDDEN)),
        "pooler_b": jnp.zeros((1, HIDDEN), jnp.float32),
        "cls_w": normal((HIDDEN, 1)),
        "cls_b": jnp.zeros((1, 1), jnp.float32),
        "layers": [],
    }
    for _ in range(N_LAYERS):
        params["layers"].append({
            "wq": normal((HIDDEN, HIDDEN)), "bq": jnp.zeros((1, HIDDEN), jnp.float32),
            "wk": normal((HIDDEN, HIDDEN)), "bk": jnp.zeros((1, HIDDEN), jnp.float32),
            "wv": normal((HIDDEN, HIDDEN)), "bv": jnp.zeros((1, HIDDEN), jnp.float32),
            "wo": normal((HIDDEN, HIDDEN)), "bo": jnp.zeros((1, HIDDEN), jnp.float32),
            "ln1g": jnp.ones((1, HIDDEN), jnp.float32),
            "ln1b": jnp.zeros((1, HIDDEN), jnp.float32),
            "w1": normal((HIDDEN, INTERMEDIATE)),
            "b1": jnp.zeros((1, INTERMEDIATE), jnp.float32),
            "w2": normal((INTERMEDIATE, HIDDEN)),
            "b2": jnp.zeros((1, HIDDEN), jnp.float32),
            "ln2g": jnp.ones((1, HIDDEN), jnp.float32),
            "ln2b": jnp.zeros((1, HIDDEN), jnp.float32),
        })
    return params


def pack_params(params):
    """One-time host-side packing: layer-stacked slabs, fused QKV, bf16 MXU weights."""
    layers = params["layers"]
    scale = 1.0 / math.sqrt(HEAD_DIM)

    def stack(name):
        return jnp.stack([lp[name] for lp in layers])

    # [Wq*scale | Wk | Wv] along output columns -> per head h, q = cols h*HD:(h+1)*HD
    wqkv = jnp.stack([jnp.concatenate([lp["wq"] * scale, lp["wk"], lp["wv"]], axis=1)
                      for lp in layers]).astype(jnp.bfloat16)            # (L, H, 3H)
    bqkv = jnp.stack([jnp.concatenate([lp["bq"] * scale, lp["bk"], lp["bv"]], axis=1)
                      for lp in layers])                                 # (L, 1, 3H)
    wo = stack("wo").astype(jnp.bfloat16)                                # (L, H, H)
    bo = stack("bo")                                                     # (L, 1, H)
    ln1 = jnp.stack([jnp.concatenate([lp["ln1g"], lp["ln1b"]], 0) for lp in layers])
    w1 = stack("w1").astype(jnp.bfloat16)                                # (L, H, I)
    b1 = stack("b1")                                                     # (L, 1, I)
    w2 = stack("w2").astype(jnp.bfloat16)                                # (L, I, H)
    b2 = stack("b2")                                                     # (L, 1, H)
    ln2 = jnp.stack([jnp.concatenate([lp["ln2g"], lp["ln2b"]], 0) for lp in layers])

    wtab = params["word_emb"]                                            # (VOCAB, H)
    ptab = params["pos_emb"] + params["type_emb"][0:1]                   # (MAX_POS, H)
    embln = jnp.concatenate([params["emb_ln_g"], params["emb_ln_b"]], 0)  # (2, H)
    wp = params["pooler_w"].astype(jnp.bfloat16)
    bp = params["pooler_b"]
    wc = params["cls_w"].reshape(1, HIDDEN)     # classifier column as lane row-vector
    bc = params["cls_b"]
    return [wtab, ptab, embln, wqkv, bqkv, wo, bo, ln1,
            w1, b1, w2, b2, ln2, wp, bp, wc, bc]


# --------------------------- forward --------------------------------

@jax.jit
def bertqa_forward(packed, que, answers):
    """que: int32 [bsz, n_dim] token ids; answers: int32 [bsz, choices, n_dim]."""
    bsz, choices, n_dim = answers.shape
    # que.unsqueeze(-2).repeat(1, choices, 1); cat((que, answers), dim=-1)
    que_rep = jnp.broadcast_to(que[:, None, :], (bsz, choices, n_dim))
    paired = jnp.concatenate([que_rep, answers], axis=-1)     # (bsz, choices, 2*n_dim)
    seq = paired.shape[-1]
    assert seq <= MAX_POS, "sequence length exceeds position embedding table"
    B = bsz * choices

    ids = paired.reshape(B * seq, 1).astype(jnp.int32)
    # position ids are a compile-time constant under jit
    pos = jnp.tile(jnp.arange(seq, dtype=jnp.int32), B).reshape(B * seq, 1)
    # TODO(synk): dropout is identity in eval mode, so it is omitted.

    logits = pl.pallas_call(
        _make_kernel(B, seq),
        out_shape=jax.ShapeDtypeStruct((B, 1), jnp.float32),
    )(ids, pos, *packed)

    return logits.reshape(bsz, choices)   # scores, like embedder(paired)[0]


if __name__ == "__main__":
    key = jax.random.PRNGKey(0)
    pkey, qkey, akey = jax.random.split(key, 3)
    params = init_params(pkey)
    packed = pack_params(params)          # one-time packing (not on the forward path)

    bsz, choices, n_dim = 2, 5, 8
    que = jax.random.randint(qkey, (bsz, n_dim), 0, VOCAB, dtype=jnp.int32)
    answers = jax.random.randint(akey, (bsz, choices, n_dim), 0, VOCAB, dtype=jnp.int32)

    scores = bertqa_forward(packed, que, answers)
    jax.block_until_ready(scores)
    assert scores.shape == (bsz, choices), scores.shape
    assert bool(jnp.all(jnp.isfinite(scores)))
    print("KERNEL_OK")
</pallas_src>

<mosaic_0001>
module attributes {stable_mosaic.version = 11 : i64} {
  func.func @kernel(%arg0: memref<160x1xi32, #tpu.memory_space<vmem>>, %arg1: memref<160x1xi32, #tpu.memory_space<vmem>>, %arg2: memref<100x32xf32, #tpu.memory_space<vmem>>, %arg3: memref<64x32xf32, #tpu.memory_space<vmem>>, %arg4: memref<2x32xf32, #tpu.memory_space<vmem>>, %arg5: memref<2x32x96xbf16, #tpu.memory_space<vmem>>, %arg6: memref<2x1x96xf32, #tpu.memory_space<vmem>>, %arg7: memref<2x32x32xbf16, #tpu.memory_space<vmem>>, %arg8: memref<2x1x32xf32, #tpu.memory_space<vmem>>, %arg9: memref<2x2x32xf32, #tpu.memory_space<vmem>>, %arg10: memref<2x32x64xbf16, #tpu.memory_space<vmem>>, %arg11: memref<2x1x64xf32, #tpu.memory_space<vmem>>, %arg12: memref<2x64x32xbf16, #tpu.memory_space<vmem>>, %arg13: memref<2x1x32xf32, #tpu.memory_space<vmem>>, %arg14: memref<2x2x32xf32, #tpu.memory_space<vmem>>, %arg15: memref<32x32xbf16, #tpu.memory_space<vmem>>, %arg16: memref<1x32xf32, #tpu.memory_space<vmem>>, %arg17: memref<1x32xf32, #tpu.memory_space<vmem>>, %arg18: memref<1x1xf32, #tpu.memory_space<vmem>>, %arg19: memref<10x1xf32, #tpu.memory_space<vmem>>) attributes {dimension_semantics = [], scalar_prefetch = 0 : i64, scratch_operands = 0 : i64, tpu.core_type = #tpu.core_type<tc>} {
    %c0 = arith.constant 0 : index
    %c0_0 = arith.constant 0 : index
    %0 = vector.load %arg0[%c0, %c0_0] : memref<160x1xi32, #tpu.memory_space<vmem>>, vector<160x1xi32>
    %1 = tpu.iota {dimensions = array<i32: 1>} : vector<160x100xi32>
    %2 = vector.broadcast %0 : vector<160x1xi32> to vector<160x100xi32>
    %3 = arith.cmpi eq, %2, %1 : vector<160x100xi32>
    %4 = arith.extui %3 : vector<160x100xi1> to vector<160x100xi32>
    %5 = arith.sitofp %4 : vector<160x100xi32> to vector<160x100xf32>
    %c0_1 = arith.constant 0 : index
    %c0_2 = arith.constant 0 : index
    %6 = vector.load %arg1[%c0_1, %c0_2] : memref<160x1xi32, #tpu.memory_space<vmem>>, vector<160x1xi32>
    %7 = tpu.iota {dimensions = array<i32: 1>} : vector<160x64xi32>
    %8 = vector.broadcast %6 : vector<160x1xi32> to vector<160x64xi32>
    %9 = arith.cmpi eq, %8, %7 : vector<160x64xi32>
    %10 = arith.extui %9 : vector<160x64xi1> to vector<160x64xi32>
    %11 = arith.sitofp %10 : vector<160x64xi32> to vector<160x64xf32>
    %c0_3 = arith.constant 0 : index
    %c0_4 = arith.constant 0 : index
    %12 = vector.load %arg2[%c0_3, %c0_4] : memref<100x32xf32, #tpu.memory_space<vmem>>, vector<100x32xf32>
    %cst = arith.constant dense<0.000000e+00> : vector<160x32xf32>
    %13 = tpu.matmul %5, %12, %cst {dimension_numbers = #tpu.dot_dimension_numbers<[1], [0], [0], [1], [0, 0, 1, 1], [], []>} : vector<160x100xf32>, vector<100x32xf32>, vector<160x32xf32> -> vector<160x32xf32>
    %c0_5 = arith.constant 0 : index
    %c0_6 = arith.constant 0 : index
    %14 = vector.load %arg3[%c0_5, %c0_6] : memref<64x32xf32, #tpu.memory_space<vmem>>, vector<64x32xf32>
    %cst_7 = arith.constant dense<0.000000e+00> : vector<160x32xf32>
    %15 = tpu.matmul %11, %14, %cst_7 {dimension_numbers = #tpu.dot_dimension_numbers<[1], [0], [0], [1], [0, 0, 1, 1], [], []>} : vector<160x64xf32>, vector<64x32xf32>, vector<160x32xf32> -> vector<160x32xf32>
    %16 = arith.addf %13, %15 : vector<160x32xf32>
    %c0_8 = arith.constant 0 : index
    %c0_9 = arith.constant 0 : index
    %17 = vector.load %arg4[%c0_8, %c0_9] : memref<2x32xf32, #tpu.memory_space<vmem>>, vector<2x32xf32>
    %18 = vector.extract_strided_slice %17 {offsets = [0, 0], sizes = [1, 32], strides = [1, 1]} : vector<2x32xf32> to vector<1x32xf32>
    %19 = vector.extract_strided_slice %17 {offsets = [1, 0], sizes = [1, 32], strides = [1, 1]} : vector<2x32xf32> to vector<1x32xf32>
    %cst_10 = arith.constant dense<0.000000e+00> : vector<160xf32>
    %20 = vector.multi_reduction <add>, %16, %cst_10 [1] : vector<160x32xf32> to vector<160xf32>
    %21 = vector.shape_cast %20 : vector<160xf32> to vector<160x1xf32>
    %cst_11 = arith.constant 3.200000e+01 : f32
    %22 = vector.broadcast %cst_11 : f32 to vector<160x1xf32>
    %23 = arith.divf %21, %22 : vector<160x1xf32>
    %24 = vector.broadcast %23 : vector<160x1xf32> to vector<160x32xf32>
    %25 = arith.subf %16, %24 : vector<160x32xf32>
    %26 = arith.mulf %25, %25 : vector<160x32xf32>
    %cst_12 = arith.constant dense<0.000000e+00> : vector<160xf32>
    %27 = vector.multi_reduction <add>, %26, %cst_12 [1] : vector<160x32xf32> to vector<160xf32>
    %28 = vector.shape_cast %27 : vector<160xf32> to vector<160x1xf32>
    %cst_13 = arith.constant 3.200000e+01 : f32
    %29 = vector.broadcast %cst_13 : f32 to vector<160x1xf32>
    %30 = arith.divf %28, %29 : vector<160x1xf32>
    %31 = vector.broadcast %23 : vector<160x1xf32> to vector<160x32xf32>
    %32 = arith.subf %16, %31 : vector<160x32xf32>
    %cst_14 = arith.constant 9.99999996E-13 : f32
    %33 = vector.broadcast %cst_14 : f32 to vector<160x1xf32>
    %34 = arith.addf %30, %33 : vector<160x1xf32>
    %35 = math.rsqrt %34 : vector<160x1xf32>
    %36 = vector.broadcast %35 : vector<160x1xf32> to vector<160x32xf32>
    %37 = arith.mulf %32, %36 : vector<160x32xf32>
    %38 = vector.broadcast %18 : vector<1x32xf32> to vector<160x32xf32>
    %39 = arith.mulf %37, %38 : vector<160x32xf32>
    %40 = vector.broadcast %19 : vector<1x32xf32> to vector<160x32xf32>
    %41 = arith.addf %39, %40 : vector<160x32xf32>
    %42 = arith.truncf %41 : vector<160x32xf32> to vector<160x32xbf16>
    %c0_15 = arith.constant 0 : index
    %c0_16 = arith.constant 0 : index
    %c0_17 = arith.constant 0 : index
    %43 = vector.load %arg5[%c0_15, %c0_16, %c0_17] : memref<2x32x96xbf16, #tpu.memory_space<vmem>>, vector<1x32x96xbf16>
    %44 = vector.shape_cast %43 : vector<1x32x96xbf16> to vector<32x96xbf16>
    %cst_18 = arith.constant dense<0.000000e+00> : vector<160x96xf32>
    %45 = tpu.matmul %42, %44, %cst_18 {dimension_numbers = #tpu.dot_dimension_numbers<[1], [0], [0], [1], [0, 0, 1, 1], [], []>} : vector<160x32xbf16>, vector<32x96xbf16>, vector<160x96xf32> -> vector<160x96xf32>
    %c0_19 = arith.constant 0 : index
    %c0_20 = arith.constant 0 : index
    %c0_21 = arith.constant 0 : index
    %46 = vector.load %arg6[%c0_19, %c0_20, %c0_21] : memref<2x1x96xf32, #tpu.memory_space<vmem>>, vector<1x1x96xf32>
    %47 = vector.shape_cast %46 : vector<1x1x96xf32> to vector<1x96xf32>
    %48 = vector.broadcast %47 : vector<1x96xf32> to vector<160x96xf32>
    %49 = arith.addf %45, %48 : vector<160x96xf32>
    %50 = arith.truncf %49 : vector<160x96xf32> to vector<160x96xbf16>
    %51 = vector.shape_cast %50 : vector<160x96xbf16> to vector<10x16x96xbf16>
    %52 = vector.extract_strided_slice %51 {offsets = [0, 0, 0], sizes = [10, 16, 16], strides = [1, 1, 1]} : vector<10x16x96xbf16> to vector<10x16x16xbf16>
    %53 = vector.extract_strided_slice %51 {offsets = [0, 0, 32], sizes = [10, 16, 16], strides = [1, 1, 1]} : vector<10x16x96xbf16> to vector<10x16x16xbf16>
    %54 = vector.extract_strided_slice %51 {offsets = [0, 0, 64], sizes = [10, 16, 16], strides = [1, 1, 1]} : vector<10x16x96xbf16> to vector<10x16x16xbf16>
    %cst_22 = arith.constant dense<0.000000e+00> : vector<10x16x16xf32>
    %55 = tpu.matmul %52, %53, %cst_22 {dimension_numbers = #tpu.dot_dimension_numbers<[2], [2], [1], [1], [0, 0, 0, 1, 1, 1], [0], [0]>} : vector<10x16x16xbf16>, vector<10x16x16xbf16>, vector<10x16x16xf32> -> vector<10x16x16xf32>
    %cst_23 = arith.constant dense<0xFF800000> : vector<10x16xf32>
    %56 = vector.multi_reduction <maximumf>, %55, %cst_23 [2] : vector<10x16x16xf32> to vector<10x16xf32>
    %57 = vector.shape_cast %56 : vector<10x16xf32> to vector<10x16x1xf32>
    %58 = vector.broadcast %57 : vector<10x16x1xf32> to vector<10x16x16xf32>
    %59 = arith.subf %55, %58 : vector<10x16x16xf32>
    %60 = math.exp %59 : vector<10x16x16xf32>
    %cst_24 = arith.constant dense<0.000000e+00> : vector<10x16xf32>
    %61 = vector.multi_reduction <add>, %60, %cst_24 [2] : vector<10x16x16xf32> to vector<10x16xf32>
    %62 = vector.shape_cast %61 : vector<10x16xf32> to vector<10x16x1xf32>
    %63 = tpu.reciprocal %62 {approx = true} : vector<10x16x1xf32> -> vector<10x16x1xf32>
    %64 = vector.broadcast %63 : vector<10x16x1xf32> to vector<10x16x16xf32>
    %65 = arith.mulf %60, %64 : vector<10x16x16xf32>
    %66 = arith.truncf %65 : vector<10x16x16xf32> to vector<10x16x16xbf16>
    %cst_25 = arith.constant dense<0.000000e+00> : vector<10x16x16xf32>
    %67 = tpu.matmul %66, %54, %cst_25 {dimension_numbers = #tpu.dot_dimension_numbers<[2], [1], [1], [2], [0, 0, 0, 1, 1, 2], [0], [0]>} : vector<10x16x16xbf16>, vector<10x16x16xbf16>, vector<10x16x16xf32> -> vector<10x16x16xf32>
    %68 = vector.extract_strided_slice %51 {offsets = [0, 0, 16], sizes = [10, 16, 16], strides = [1, 1, 1]} : vector<10x16x96xbf16> to vector<10x16x16xbf16>
    %69 = vector.extract_strided_slice %51 {offsets = [0, 0, 48], sizes = [10, 16, 16], strides = [1, 1, 1]} : vector<10x16x96xbf16> to vector<10x16x16xbf16>
    %70 = vector.extract_strided_slice %51 {offsets = [0, 0, 80], sizes = [10, 16, 16], strides = [1, 1, 1]} : vector<10x16x96xbf16> to vector<10x16x16xbf16>
    %cst_26 = arith.constant dense<0.000000e+00> : vector<10x16x16xf32>
    %71 = tpu.matmul %68, %69, %cst_26 {dimension_numbers = #tpu.dot_dimension_numbers<[2], [2], [1], [1], [0, 0, 0, 1, 1, 1], [0], [0]>} : vector<10x16x16xbf16>, vector<10x16x16xbf16>, vector<10x16x16xf32> -> vector<10x16x16xf32>
    %cst_27 = arith.constant dense<0xFF800000> : vector<10x16xf32>
    %72 = vector.multi_reduction <maximumf>, %71, %cst_27 [2] : vector<10x16x16xf32> to vector<10x16xf32>
    %73 = vector.shape_cast %72 : vector<10x16xf32> to vector<10x16x1xf32>
    %74 = vector.broadcast %73 : vector<10x16x1xf32> to vector<10x16x16xf32>
    %75 = arith.subf %71, %74 : vector<10x16x16xf32>
    %76 = math.exp %75 : vector<10x16x16xf32>
    %cst_28 = arith.constant dense<0.000000e+00> : vector<10x16xf32>
    %77 = vector.multi_reduction <add>, %76, %cst_28 [2] : vector<10x16x16xf32> to vector<10x16xf32>
    %78 = vector.shape_cast %77 : vector<10x16xf32> to vector<10x16x1xf32>
    %79 = tpu.reciprocal %78 {approx = true} : vector<10x16x1xf32> -> vector<10x16x1xf32>
    %80 = vector.broadcast %79 : vector<10x16x1xf32> to vector<10x16x16xf32>
    %81 = arith.mulf %76, %80 : vector<10x16x16xf32>
    %82 = arith.truncf %81 : vector<10x16x16xf32> to vector<10x16x16xbf16>
    %cst_29 = arith.constant dense<0.000000e+00> : vector<10x16x16xf32>
    %83 = tpu.matmul %82, %70, %cst_29 {dimension_numbers = #tpu.dot_dimension_numbers<[2], [1], [1], [2], [0, 0, 0, 1, 1, 2], [0], [0]>} : vector<10x16x16xbf16>, vector<10x16x16xbf16>, vector<10x16x16xf32> -> vector<10x16x16xf32>
    %84 = tpu.concatenate %67, %83 in 2 : vector<10x16x16xf32>, vector<10x16x16xf32> -> vector<10x16x32xf32>
    %85 = vector.shape_cast %84 : vector<10x16x32xf32> to vector<160x32xf32>
    %86 = arith.truncf %85 : vector<160x32xf32> to vector<160x32xbf16>
    %c0_30 = arith.constant 0 : index
    %c0_31 = arith.constant 0 : index
    %c0_32 = arith.constant 0 : index
    %87 = vector.load %arg7[%c0_30, %c0_31, %c0_32] : memref<2x32x32xbf16, #tpu.memory_space<vmem>>, vector<1x32x32xbf16>
    %88 = vector.shape_cast %87 : vector<1x32x32xbf16> to vector<32x32xbf16>
    %cst_33 = arith.constant dense<0.000000e+00> : vector<160x32xf32>
    %89 = tpu.matmul %86, %88, %cst_33 {dimension_numbers = #tpu.dot_dimension_numbers<[1], [0], [0], [1], [0, 0, 1, 1], [], []>} : vector<160x32xbf16>, vector<32x32xbf16>, vector<160x32xf32> -> vector<160x32xf32>
    %c0_34 = arith.constant 0 : index
    %c0_35 = arith.constant 0 : index
    %c0_36 = arith.constant 0 : index
    %90 = vector.load %arg8[%c0_34, %c0_35, %c0_36] : memref<2x1x32xf32, #tpu.memory_space<vmem>>, vector<1x1x32xf32>
    %91 = vector.shape_cast %90 : vector<1x1x32xf32> to vector<1x32xf32>
    %92 = vector.broadcast %91 : vector<1x32xf32> to vector<160x32xf32>
    %93 = arith.addf %89, %92 : vector<160x32xf32>
    %c0_37 = arith.constant 0 : index
    %c0_38 = arith.constant 0 : index
    %c0_39 = arith.constant 0 : index
    %94 = vector.load %arg9[%c0_37, %c0_38, %c0_39] : memref<2x2x32xf32, #tpu.memory_space<vmem>>, vector<1x2x32xf32>
    %95 = vector.shape_cast %94 : vector<1x2x32xf32> to vector<2x32xf32>
    %96 = arith.addf %41, %93 : vector<160x32xf32>
    %97 = vector.extract_strided_slice %95 {offsets = [0, 0], sizes = [1, 32], strides = [1, 1]} : vector<2x32xf32> to vector<1x32xf32>
    %98 = vector.extract_strided_slice %95 {offsets = [1, 0], sizes = [1, 32], strides = [1, 1]} : vector<2x32xf32> to vector<1x32xf32>
    %cst_40 = arith.constant dense<0.000000e+00> : vector<160xf32>
    %99 = vector.multi_reduction <add>, %96, %cst_40 [1] : vector<160x32xf32> to vector<160xf32>
    %100 = vector.shape_cast %99 : vector<160xf32> to vector<160x1xf32>
    %cst_41 = arith.constant 3.200000e+01 : f32
    %101 = vector.broadcast %cst_41 : f32 to vector<160x1xf32>
    %102 = arith.divf %100, %101 : vector<160x1xf32>
    %103 = vector.broadcast %102 : vector<160x1xf32> to vector<160x32xf32>
    %104 = arith.subf %96, %103 : vector<160x32xf32>
    %105 = arith.mulf %104, %104 : vector<160x32xf32>
    %cst_42 = arith.constant dense<0.000000e+00> : vector<160xf32>
    %106 = vector.multi_reduction <add>, %105, %cst_42 [1] : vector<160x32xf32> to vector<160xf32>
    %107 = vector.shape_cast %106 : vector<160xf32> to vector<160x1xf32>
    %cst_43 = arith.constant 3.200000e+01 : f32
    %108 = vector.broadcast %cst_43 : f32 to vector<160x1xf32>
    %109 = arith.divf %107, %108 : vector<160x1xf32>
    %110 = vector.broadcast %102 : vector<160x1xf32> to vector<160x32xf32>
    %111 = arith.subf %96, %110 : vector<160x32xf32>
    %cst_44 = arith.constant 9.99999996E-13 : f32
    %112 = vector.broadcast %cst_44 : f32 to vector<160x1xf32>
    %113 = arith.addf %109, %112 : vector<160x1xf32>
    %114 = math.rsqrt %113 : vector<160x1xf32>
    %115 = vector.broadcast %114 : vector<160x1xf32> to vector<160x32xf32>
    %116 = arith.mulf %111, %115 : vector<160x32xf32>
    %117 = vector.broadcast %97 : vector<1x32xf32> to vector<160x32xf32>
    %118 = arith.mulf %116, %117 : vector<160x32xf32>
    %119 = vector.broadcast %98 : vector<1x32xf32> to vector<160x32xf32>
    %120 = arith.addf %118, %119 : vector<160x32xf32>
    %121 = arith.truncf %120 : vector<160x32xf32> to vector<160x32xbf16>
    %c0_45 = arith.constant 0 : index
    %c0_46 = arith.constant 0 : index
    %c0_47 = arith.constant 0 : index
    %122 = vector.load %arg10[%c0_45, %c0_46, %c0_47] : memref<2x32x64xbf16, #tpu.memory_space<vmem>>, vector<1x32x64xbf16>
    %123 = vector.shape_cast %122 : vector<1x32x64xbf16> to vector<32x64xbf16>
    %cst_48 = arith.constant dense<0.000000e+00> : vector<160x64xf32>
    %124 = tpu.matmul %121, %123, %cst_48 {dimension_numbers = #tpu.dot_dimension_numbers<[1], [0], [0], [1], [0, 0, 1, 1], [], []>} : vector<160x32xbf16>, vector<32x64xbf16>, vector<160x64xf32> -> vector<160x64xf32>
    %c0_49 = arith.constant 0 : index
    %c0_50 = arith.constant 0 : index
    %c0_51 = arith.constant 0 : index
    %125 = vector.load %arg11[%c0_49, %c0_50, %c0_51] : memref<2x1x64xf32, #tpu.memory_space<vmem>>, vector<1x1x64xf32>
    %126 = vector.shape_cast %125 : vector<1x1x64xf32> to vector<1x64xf32>
    %127 = vector.broadcast %126 : vector<1x64xf32> to vector<160x64xf32>
    %128 = arith.addf %124, %127 : vector<160x64xf32>
    %cst_52 = arith.constant 5.000000e-01 : f32
    %129 = vector.broadcast %cst_52 : f32 to vector<160x64xf32>
    %130 = arith.mulf %129, %128 : vector<160x64xf32>
    %cst_53 = arith.constant 4.471500e-02 : f32
    %131 = vector.broadcast %cst_53 : f32 to vector<160x64xf32>
    %132 = arith.mulf %131, %128 : vector<160x64xf32>
    %133 = arith.mulf %132, %128 : vector<160x64xf32>
    %134 = arith.mulf %133, %128 : vector<160x64xf32>
    %135 = arith.addf %128, %134 : vector<160x64xf32>
    %cst_54 = arith.constant 0.797884583 : f32
    %136 = vector.broadcast %cst_54 : f32 to vector<160x64xf32>
    %137 = arith.mulf %136, %135 : vector<160x64xf32>
    %138 = math.tanh %137 : vector<160x64xf32>
    %cst_55 = arith.constant 1.000000e+00 : f32
    %139 = vector.broadcast %cst_55 : f32 to vector<160x64xf32>
    %140 = arith.addf %139, %138 : vector<160x64xf32>
    %141 = arith.mulf %130, %140 : vector<160x64xf32>
    %142 = arith.truncf %141 : vector<160x64xf32> to vector<160x64xbf16>
    %c0_56 = arith.constant 0 : index
    %c0_57 = arith.constant 0 : index
    %c0_58 = arith.constant 0 : index
    %143 = vector.load %arg12[%c0_56, %c0_57, %c0_58] : memref<2x64x32xbf16, #tpu.memory_space<vmem>>, vector<1x64x32xbf16>
    %144 = vector.shape_cast %143 : vector<1x64x32xbf16> to vector<64x32xbf16>
    %cst_59 = arith.constant dense<0.000000e+00> : vector<160x32xf32>
    %145 = tpu.matmul %142, %144, %cst_59 {dimension_numbers = #tpu.dot_dimension_numbers<[1], [0], [0], [1], [0, 0, 1, 1], [], []>} : vector<160x64xbf16>, vector<64x32xbf16>, vector<160x32xf32> -> vector<160x32xf32>
    %c0_60 = arith.constant 0 : index
    %c0_61 = arith.constant 0 : index
    %c0_62 = arith.constant 0 : index
    %146 = vector.load %arg13[%c0_60, %c0_61, %c0_62] : memref<2x1x32xf32, #tpu.memory_space<vmem>>, vector<1x1x32xf32>
    %147 = vector.shape_cast %146 : vector<1x1x32xf32> to vector<1x32xf32>
    %148 = vector.broadcast %147 : vector<1x32xf32> to vector<160x32xf32>
    %149 = arith.addf %145, %148 : vector<160x32xf32>
    %c0_63 = arith.constant 0 : index
    %c0_64 = arith.constant 0 : index
    %c0_65 = arith.constant 0 : index
    %150 = vector.load %arg14[%c0_63, %c0_64, %c0_65] : memref<2x2x32xf32, #tpu.memory_space<vmem>>, vector<1x2x32xf32>
    %151 = vector.shape_cast %150 : vector<1x2x32xf32> to vector<2x32xf32>
    %152 = arith.addf %120, %149 : vector<160x32xf32>
    %153 = vector.extract_strided_slice %151 {offsets = [0, 0], sizes = [1, 32], strides = [1, 1]} : vector<2x32xf32> to vector<1x32xf32>
    %154 = vector.extract_strided_slice %151 {offsets = [1, 0], sizes = [1, 32], strides = [1, 1]} : vector<2x32xf32> to vector<1x32xf32>
    %cst_66 = arith.constant dense<0.000000e+00> : vector<160xf32>
    %155 = vector.multi_reduction <add>, %152, %cst_66 [1] : vector<160x32xf32> to vector<160xf32>
    %156 = vector.shape_cast %155 : vector<160xf32> to vector<160x1xf32>
    %cst_67 = arith.constant 3.200000e+01 : f32
    %157 = vector.broadcast %cst_67 : f32 to vector<160x1xf32>
    %158 = arith.divf %156, %157 : vector<160x1xf32>
    %159 = vector.broadcast %158 : vector<160x1xf32> to vector<160x32xf32>
    %160 = arith.subf %152, %159 : vector<160x32xf32>
    %161 = arith.mulf %160, %160 : vector<160x32xf32>
    %cst_68 = arith.constant dense<0.000000e+00> : vector<160xf32>
    %162 = vector.multi_reduction <add>, %161, %cst_68 [1] : vector<160x32xf32> to vector<160xf32>
    %163 = vector.shape_cast %162 : vector<160xf32> to vector<160x1xf32>
    %cst_69 = arith.constant 3.200000e+01 : f32
    %164 = vector.broadcast %cst_69 : f32 to vector<160x1xf32>
    %165 = arith.divf %163, %164 : vector<160x1xf32>
    %166 = vector.broadcast %158 : vector<160x1xf32> to vector<160x32xf32>
    %167 = arith.subf %152, %166 : vector<160x32xf32>
    %cst_70 = arith.constant 9.99999996E-13 : f32
    %168 = vector.broadcast %cst_70 : f32 to vector<160x1xf32>
    %169 = arith.addf %165, %168 : vector<160x1xf32>
    %170 = math.rsqrt %169 : vector<160x1xf32>
    %171 = vector.broadcast %170 : vector<160x1xf32> to vector<160x32xf32>
    %172 = arith.mulf %167, %171 : vector<160x32xf32>
    %173 = vector.broadcast %153 : vector<1x32xf32> to vector<160x32xf32>
    %174 = arith.mulf %172, %173 : vector<160x32xf32>
    %175 = vector.broadcast %154 : vector<1x32xf32> to vector<160x32xf32>
    %176 = arith.addf %174, %175 : vector<160x32xf32>
    %177 = arith.truncf %176 : vector<160x32xf32> to vector<160x32xbf16>
    %c1 = arith.constant 1 : index
    %c0_71 = arith.constant 0 : index
    %c0_72 = arith.constant 0 : index
    %178 = vector.load %arg5[%c1, %c0_71, %c0_72] : memref<2x32x96xbf16, #tpu.memory_space<vmem>>, vector<1x32x96xbf16>
    %179 = vector.shape_cast %178 : vector<1x32x96xbf16> to vector<32x96xbf16>
    %cst_73 = arith.constant dense<0.000000e+00> : vector<160x96xf32>
    %180 = tpu.matmul %177, %179, %cst_73 {dimension_numbers = #tpu.dot_dimension_numbers<[1], [0], [0], [1], [0, 0, 1, 1], [], []>} : vector<160x32xbf16>, vector<32x96xbf16>, vector<160x96xf32> -> vector<160x96xf32>
    %c1_74 = arith.constant 1 : index
    %c0_75 = arith.constant 0 : index
    %c0_76 = arith.constant 0 : index
    %181 = vector.load %arg6[%c1_74, %c0_75, %c0_76] : memref<2x1x96xf32, #tpu.memory_space<vmem>>, vector<1x1x96xf32>
    %182 = vector.shape_cast %181 : vector<1x1x96xf32> to vector<1x96xf32>
    %183 = vector.broadcast %182 : vector<1x96xf32> to vector<160x96xf32>
    %184 = arith.addf %180, %183 : vector<160x96xf32>
    %185 = arith.truncf %184 : vector<160x96xf32> to vector<160x96xbf16>
    %186 = vector.shape_cast %185 : vector<160x96xbf16> to vector<10x16x96xbf16>
    %187 = vector.extract_strided_slice %186 {offsets = [0, 0, 0], sizes = [10, 16, 16], strides = [1, 1, 1]} : vector<10x16x96xbf16> to vector<10x16x16xbf16>
    %188 = vector.extract_strided_slice %186 {offsets = [0, 0, 32], sizes = [10, 16, 16], strides = [1, 1, 1]} : vector<10x16x96xbf16> to vector<10x16x16xbf16>
    %189 = vector.extract_strided_slice %186 {offsets = [0, 0, 64], sizes = [10, 16, 16], strides = [1, 1, 1]} : vector<10x16x96xbf16> to vector<10x16x16xbf16>
    %cst_77 = arith.constant dense<0.000000e+00> : vector<10x16x16xf32>
    %190 = tpu.matmul %187, %188, %cst_77 {dimension_numbers = #tpu.dot_dimension_numbers<[2], [2], [1], [1], [0, 0, 0, 1, 1, 1], [0], [0]>} : vector<10x16x16xbf16>, vector<10x16x16xbf16>, vector<10x16x16xf32> -> vector<10x16x16xf32>
    %cst_78 = arith.constant dense<0xFF800000> : vector<10x16xf32>
    %191 = vector.multi_reduction <maximumf>, %190, %cst_78 [2] : vector<10x16x16xf32> to vector<10x16xf32>
    %192 = vector.shape_cast %191 : vector<10x16xf32> to vector<10x16x1xf32>
    %193 = vector.broadcast %192 : vector<10x16x1xf32> to vector<10x16x16xf32>
    %194 = arith.subf %190, %193 : vector<10x16x16xf32>
    %195 = math.exp %194 : vector<10x16x16xf32>
    %cst_79 = arith.constant dense<0.000000e+00> : vector<10x16xf32>
    %196 = vector.multi_reduction <add>, %195, %cst_79 [2] : vector<10x16x16xf32> to vector<10x16xf32>
    %197 = vector.shape_cast %196 : vector<10x16xf32> to vector<10x16x1xf32>
    %198 = tpu.reciprocal %197 {approx = true} : vector<10x16x1xf32> -> vector<10x16x1xf32>
    %199 = vector.broadcast %198 : vector<10x16x1xf32> to vector<10x16x16xf32>
    %200 = arith.mulf %195, %199 : vector<10x16x16xf32>
    %201 = arith.truncf %200 : vector<10x16x16xf32> to vector<10x16x16xbf16>
    %cst_80 = arith.constant dense<0.000000e+00> : vector<10x16x16xf32>
    %202 = tpu.matmul %201, %189, %cst_80 {dimension_numbers = #tpu.dot_dimension_numbers<[2], [1], [1], [2], [0, 0, 0, 1, 1, 2], [0], [0]>} : vector<10x16x16xbf16>, vector<10x16x16xbf16>, vector<10x16x16xf32> -> vector<10x16x16xf32>
    %203 = vector.extract_strided_slice %186 {offsets = [0, 0, 16], sizes = [10, 16, 16], strides = [1, 1, 1]} : vector<10x16x96xbf16> to vector<10x16x16xbf16>
    %204 = vector.extract_strided_slice %186 {offsets = [0, 0, 48], sizes = [10, 16, 16], strides = [1, 1, 1]} : vector<10x16x96xbf16> to vector<10x16x16xbf16>
    %205 = vector.extract_strided_slice %186 {offsets = [0, 0, 80], sizes = [10, 16, 16], strides = [1, 1, 1]} : vector<10x16x96xbf16> to vector<10x16x16xbf16>
    %cst_81 = arith.constant dense<0.000000e+00> : vector<10x16x16xf32>
    %206 = tpu.matmul %203, %204, %cst_81 {dimension_numbers = #tpu.dot_dimension_numbers<[2], [2], [1], [1], [0, 0, 0, 1, 1, 1], [0], [0]>} : vector<10x16x16xbf16>, vector<10x16x16xbf16>, vector<10x16x16xf32> -> vector<10x16x16xf32>
    %cst_82 = arith.constant dense<0xFF800000> : vector<10x16xf32>
    %207 = vector.multi_reduction <maximumf>, %206, %cst_82 [2] : vector<10x16x16xf32> to vector<10x16xf32>
    %208 = vector.shape_cast %207 : vector<10x16xf32> to vector<10x16x1xf32>
    %209 = vector.broadcast %208 : vector<10x16x1xf32> to vector<10x16x16xf32>
    %210 = arith.subf %206, %209 : vector<10x16x16xf32>
    %211 = math.exp %210 : vector<10x16x16xf32>
    %cst_83 = arith.constant dense<0.000000e+00> : vector<10x16xf32>
    %212 = vector.multi_reduction <add>, %211, %cst_83 [2] : vector<10x16x16xf32> to vector<10x16xf32>
    %213 = vector.shape_cast %212 : vector<10x16xf32> to vector<10x16x1xf32>
    %214 = tpu.reciprocal %213 {approx = true} : vector<10x16x1xf32> -> vector<10x16x1xf32>
    %215 = vector.broadcast %214 : vector<10x16x1xf32> to vector<10x16x16xf32>
    %216 = arith.mulf %211, %215 : vector<10x16x16xf32>
    %217 = arith.truncf %216 : vector<10x16x16xf32> to vector<10x16x16xbf16>
    %cst_84 = arith.constant dense<0.000000e+00> : vector<10x16x16xf32>
    %218 = tpu.matmul %217, %205, %cst_84 {dimension_numbers = #tpu.dot_dimension_numbers<[2], [1], [1], [2], [0, 0, 0, 1, 1, 2], [0], [0]>} : vector<10x16x16xbf16>, vector<10x16x16xbf16>, vector<10x16x16xf32> -> vector<10x16x16xf32>
    %219 = tpu.concatenate %202, %218 in 2 : vector<10x16x16xf32>, vector<10x16x16xf32> -> vector<10x16x32xf32>
    %220 = vector.shape_cast %219 : vector<10x16x32xf32> to vector<160x32xf32>
    %221 = arith.truncf %220 : vector<160x32xf32> to vector<160x32xbf16>
    %c1_85 = arith.constant 1 : index
    %c0_86 = arith.constant 0 : index
    %c0_87 = arith.constant 0 : index
    %222 = vector.load %arg7[%c1_85, %c0_86, %c0_87] : memref<2x32x32xbf16, #tpu.memory_space<vmem>>, vector<1x32x32xbf16>
    %223 = vector.shape_cast %222 : vector<1x32x32xbf16> to vector<32x32xbf16>
    %cst_88 = arith.constant dense<0.000000e+00> : vector<160x32xf32>
    %224 = tpu.matmul %221, %223, %cst_88 {dimension_numbers = #tpu.dot_dimension_numbers<[1], [0], [0], [1], [0, 0, 1, 1], [], []>} : vector<160x32xbf16>, vector<32x32xbf16>, vector<160x32xf32> -> vector<160x32xf32>
    %c1_89 = arith.constant 1 : index
    %c0_90 = arith.constant 0 : index
    %c0_91 = arith.constant 0 : index
    %225 = vector.load %arg8[%c1_89, %c0_90, %c0_91] : memref<2x1x32xf32, #tpu.memory_space<vmem>>, vector<1x1x32xf32>
    %226 = vector.shape_cast %225 : vector<1x1x32xf32> to vector<1x32xf32>
    %227 = vector.broadcast %226 : vector<1x32xf32> to vector<160x32xf32>
    %228 = arith.addf %224, %227 : vector<160x32xf32>
    %c1_92 = arith.constant 1 : index
    %c0_93 = arith.constant 0 : index
    %c0_94 = arith.constant 0 : index
    %229 = vector.load %arg9[%c1_92, %c0_93, %c0_94] : memref<2x2x32xf32, #tpu.memory_space<vmem>>, vector<1x2x32xf32>
    %230 = vector.shape_cast %229 : vector<1x2x32xf32> to vector<2x32xf32>
    %231 = arith.addf %176, %228 : vector<160x32xf32>
    %232 = vector.extract_strided_slice %230 {offsets = [0, 0], sizes = [1, 32], strides = [1, 1]} : vector<2x32xf32> to vector<1x32xf32>
    %233 = vector.extract_strided_slice %230 {offsets = [1, 0], sizes = [1, 32], strides = [1, 1]} : vector<2x32xf32> to vector<1x32xf32>
    %cst_95 = arith.constant dense<0.000000e+00> : vector<160xf32>
    %234 = vector.multi_reduction <add>, %231, %cst_95 [1] : vector<160x32xf32> to vector<160xf32>
    %235 = vector.shape_cast %234 : vector<160xf32> to vector<160x1xf32>
    %cst_96 = arith.constant 3.200000e+01 : f32
    %236 = vector.broadcast %cst_96 : f32 to vector<160x1xf32>
    %237 = arith.divf %235, %236 : vector<160x1xf32>
    %238 = vector.broadcast %237 : vector<160x1xf32> to vector<160x32xf32>
    %239 = arith.subf %231, %238 : vector<160x32xf32>
    %240 = arith.mulf %239, %239 : vector<160x32xf32>
    %cst_97 = arith.constant dense<0.000000e+00> : vector<160xf32>
    %241 = vector.multi_reduction <add>, %240, %cst_97 [1] : vector<160x32xf32> to vector<160xf32>
    %242 = vector.shape_cast %241 : vector<160xf32> to vector<160x1xf32>
    %cst_98 = arith.constant 3.200000e+01 : f32
    %243 = vector.broadcast %cst_98 : f32 to vector<160x1xf32>
    %244 = arith.divf %242, %243 : vector<160x1xf32>
    %245 = vector.broadcast %237 : vector<160x1xf32> to vector<160x32xf32>
    %246 = arith.subf %231, %245 : vector<160x32xf32>
    %cst_99 = arith.constant 9.99999996E-13 : f32
    %247 = vector.broadcast %cst_99 : f32 to vector<160x1xf32>
    %248 = arith.addf %244, %247 : vector<160x1xf32>
    %249 = math.rsqrt %248 : vector<160x1xf32>
    %250 = vector.broadcast %249 : vector<160x1xf32> to vector<160x32xf32>
    %251 = arith.mulf %246, %250 : vector<160x32xf32>
    %252 = vector.broadcast %232 : vector<1x32xf32> to vector<160x32xf32>
    %253 = arith.mulf %251, %252 : vector<160x32xf32>
    %254 = vector.broadcast %233 : vector<1x32xf32> to vector<160x32xf32>
    %255 = arith.addf %253, %254 : vector<160x32xf32>
    %256 = arith.truncf %255 : vector<160x32xf32> to vector<160x32xbf16>
    %c1_100 = arith.constant 1 : index
    %c0_101 = arith.constant 0 : index
    %c0_102 = arith.constant 0 : index
    %257 = vector.load %arg10[%c1_100, %c0_101, %c0_102] : memref<2x32x64xbf16, #tpu.memory_space<vmem>>, vector<1x32x64xbf16>
    %258 = vector.shape_cast %257 : vector<1x32x64xbf16> to vector<32x64xbf16>
    %cst_103 = arith.constant dense<0.000000e+00> : vector<160x64xf32>
    %259 = tpu.matmul %256, %258, %cst_103 {dimension_numbers = #tpu.dot_dimension_numbers<[1], [0], [0], [1], [0, 0, 1, 1], [], []>} : vector<160x32xbf16>, vector<32x64xbf16>, vector<160x64xf32> -> vector<160x64xf32>
    %c1_104 = arith.constant 1 : index
    %c0_105 = arith.constant 0 : index
    %c0_106 = arith.constant 0 : index
    %260 = vector.load %arg11[%c1_104, %c0_105, %c0_106] : memref<2x1x64xf32, #tpu.memory_space<vmem>>, vector<1x1x64xf32>
    %261 = vector.shape_cast %260 : vector<1x1x64xf32> to vector<1x64xf32>
    %262 = vector.broadcast %261 : vector<1x64xf32> to vector<160x64xf32>
    %263 = arith.addf %259, %262 : vector<160x64xf32>
    %cst_107 = arith.constant 5.000000e-01 : f32
    %264 = vector.broadcast %cst_107 : f32 to vector<160x64xf32>
    %265 = arith.mulf %264, %263 : vector<160x64xf32>
    %cst_108 = arith.constant 4.471500e-02 : f32
    %266 = vector.broadcast %cst_108 : f32 to vector<160x64xf32>
    %267 = arith.mulf %266, %263 : vector<160x64xf32>
    %268 = arith.mulf %267, %263 : vector<160x64xf32>
    %269 = arith.mulf %268, %263 : vector<160x64xf32>
    %270 = arith.addf %263, %269 : vector<160x64xf32>
    %cst_109 = arith.constant 0.797884583 : f32
    %271 = vector.broadcast %cst_109 : f32 to vector<160x64xf32>
    %272 = arith.mulf %271, %270 : vector<160x64xf32>
    %273 = math.tanh %272 : vector<160x64xf32>
    %cst_110 = arith.constant 1.000000e+00 : f32
    %274 = vector.broadcast %cst_110 : f32 to vector<160x64xf32>
    %275 = arith.addf %274, %273 : vector<160x64xf32>
    %276 = arith.mulf %265, %275 : vector<160x64xf32>
    %277 = arith.truncf %276 : vector<160x64xf32> to vector<160x64xbf16>
    %c1_111 = arith.constant 1 : index
    %c0_112 = arith.constant 0 : index
    %c0_113 = arith.constant 0 : index
    %278 = vector.load %arg12[%c1_111, %c0_112, %c0_113] : memref<2x64x32xbf16, #tpu.memory_space<vmem>>, vector<1x64x32xbf16>
    %279 = vector.shape_cast %278 : vector<1x64x32xbf16> to vector<64x32xbf16>
    %cst_114 = arith.constant dense<0.000000e+00> : vector<160x32xf32>
    %280 = tpu.matmul %277, %279, %cst_114 {dimension_numbers = #tpu.dot_dimension_numbers<[1], [0], [0], [1], [0, 0, 1, 1], [], []>} : vector<160x64xbf16>, vector<64x32xbf16>, vector<160x32xf32> -> vector<160x32xf32>
    %c1_115 = arith.constant 1 : index
    %c0_116 = arith.constant 0 : index
    %c0_117 = arith.constant 0 : index
    %281 = vector.load %arg13[%c1_115, %c0_116, %c0_117] : memref<2x1x32xf32, #tpu.memory_space<vmem>>, vector<1x1x32xf32>
    %282 = vector.shape_cast %281 : vector<1x1x32xf32> to vector<1x32xf32>
    %283 = vector.broadcast %282 : vector<1x32xf32> to vector<160x32xf32>
    %284 = arith.addf %280, %283 : vector<160x32xf32>
    %c1_118 = arith.constant 1 : index
    %c0_119 = arith.constant 0 : index
    %c0_120 = arith.constant 0 : index
    %285 = vector.load %arg14[%c1_118, %c0_119, %c0_120] : memref<2x2x32xf32, #tpu.memory_space<vmem>>, vector<1x2x32xf32>
    %286 = vector.shape_cast %285 : vector<1x2x32xf32> to vector<2x32xf32>
    %287 = arith.addf %255, %284 : vector<160x32xf32>
    %288 = vector.extract_strided_slice %286 {offsets = [0, 0], sizes = [1, 32], strides = [1, 1]} : vector<2x32xf32> to vector<1x32xf32>
    %289 = vector.extract_strided_slice %286 {offsets = [1, 0], sizes = [1, 32], strides = [1, 1]} : vector<2x32xf32> to vector<1x32xf32>
    %cst_121 = arith.constant dense<0.000000e+00> : vector<160xf32>
    %290 = vector.multi_reduction <add>, %287, %cst_121 [1] : vector<160x32xf32> to vector<160xf32>
    %291 = vector.shape_cast %290 : vector<160xf32> to vector<160x1xf32>
    %cst_122 = arith.constant 3.200000e+01 : f32
    %292 = vector.broadcast %cst_122 : f32 to vector<160x1xf32>
    %293 = arith.divf %291, %292 : vector<160x1xf32>
    %294 = vector.broadcast %293 : vector<160x1xf32> to vector<160x32xf32>
    %295 = arith.subf %287, %294 : vector<160x32xf32>
    %296 = arith.mulf %295, %295 : vector<160x32xf32>
    %cst_123 = arith.constant dense<0.000000e+00> : vector<160xf32>
    %297 = vector.multi_reduction <add>, %296, %cst_123 [1] : vector<160x32xf32> to vector<160xf32>
    %298 = vector.shape_cast %297 : vector<160xf32> to vector<160x1xf32>
    %cst_124 = arith.constant 3.200000e+01 : f32
    %299 = vector.broadcast %cst_124 : f32 to vector<160x1xf32>
    %300 = arith.divf %298, %299 : vector<160x1xf32>
    %301 = vector.broadcast %293 : vector<160x1xf32> to vector<160x32xf32>
    %302 = arith.subf %287, %301 : vector<160x32xf32>
    %cst_125 = arith.constant 9.99999996E-13 : f32
    %303 = vector.broadcast %cst_125 : f32 to vector<160x1xf32>
    %304 = arith.addf %300, %303 : vector<160x1xf32>
    %305 = math.rsqrt %304 : vector<160x1xf32>
    %306 = vector.broadcast %305 : vector<160x1xf32> to vector<160x32xf32>
    %307 = arith.mulf %302, %306 : vector<160x32xf32>
    %308 = vector.broadcast %288 : vector<1x32xf32> to vector<160x32xf32>
    %309 = arith.mulf %307, %308 : vector<160x32xf32>
    %310 = vector.broadcast %289 : vector<1x32xf32> to vector<160x32xf32>
    %311 = arith.addf %309, %310 : vector<160x32xf32>
    %312 = vector.shape_cast %311 : vector<160x32xf32> to vector<10x16x32xf32>
    %313 = vector.extract_strided_slice %312 {offsets = [0, 0, 0], sizes = [10, 1, 32], strides = [1, 1, 1]} : vector<10x16x32xf32> to vector<10x1x32xf32>
    %314 = vector.shape_cast %313 : vector<10x1x32xf32> to vector<10x32xf32>
    %315 = arith.truncf %314 : vector<10x32xf32> to vector<10x32xbf16>
    %c0_126 = arith.constant 0 : index
    %c0_127 = arith.constant 0 : index
    %316 = vector.load %arg15[%c0_126, %c0_127] : memref<32x32xbf16, #tpu.memory_space<vmem>>, vector<32x32xbf16>
    %cst_128 = arith.constant dense<0.000000e+00> : vector<10x32xf32>
    %317 = tpu.matmul %315, %316, %cst_128 {dimension_numbers = #tpu.dot_dimension_numbers<[1], [0], [0], [1], [0, 0, 1, 1], [], []>} : vector<10x32xbf16>, vector<32x32xbf16>, vector<10x32xf32> -> vector<10x32xf32>
    %c0_129 = arith.constant 0 : index
    %c0_130 = arith.constant 0 : index
    %318 = vector.load %arg16[%c0_129, %c0_130] : memref<1x32xf32, #tpu.memory_space<vmem>>, vector<1x32xf32>
    %319 = vector.broadcast %318 : vector<1x32xf32> to vector<10x32xf32>
    %320 = arith.addf %317, %319 : vector<10x32xf32>
    %321 = math.tanh %320 : vector<10x32xf32>
    %c0_131 = arith.constant 0 : index
    %c0_132 = arith.constant 0 : index
    %322 = vector.load %arg17[%c0_131, %c0_132] : memref<1x32xf32, #tpu.memory_space<vmem>>, vector<1x32xf32>
    %323 = vector.broadcast %322 : vector<1x32xf32> to vector<10x32xf32>
    %324 = arith.mulf %321, %323 : vector<10x32xf32>
    %cst_133 = arith.constant dense<0.000000e+00> : vector<10xf32>
    %325 = vector.multi_reduction <add>, %324, %cst_133 [1] : vector<10x32xf32> to vector<10xf32>
    %326 = vector.shape_cast %325 : vector<10xf32> to vector<10x1xf32>
    %c0_134 = arith.constant 0 : index
    %c0_135 = arith.constant 0 : index
    %327 = vector.load %arg18[%c0_134, %c0_135] : memref<1x1xf32, #tpu.memory_space<vmem>>, vector<1x1xf32>
    %328 = vector.broadcast %327 : vector<1x1xf32> to vector<10x1xf32>
    %329 = arith.addf %326, %328 : vector<10x1xf32>
    %c0_136 = arith.constant 0 : index
    %c0_137 = arith.constant 0 : index
    %330 = vector.load %arg19[%c0_136, %c0_137] : memref<10x1xf32, #tpu.memory_space<vmem>>, vector<10x1xf32>
    tpu.vector_store %arg19[%c0_136, %c0_137], %329 {strides = array<i32>} : memref<10x1xf32, #tpu.memory_space<vmem>>, vector<10x1xf32>,
    return
  }
}

</mosaic_0001>

<bundles_post_ra>
// kernel: tile.0
= control target key start
LH: loop header
LB: loop body
LE: loop exit
PB: predicated region body
PF: predicated region fallthrough
CT: control target
= control target key end

     0   :  { %vm3_vm0 = vcmask 7168   ;;  %s405_s8 = smov 126   ;;  %s406_s9 = smov 127   ;;  %s822_s0 = inlined_call_operand.vmem [shape: s32[10,16], index: 0, kind: input, shape index: {}]   ;;  %s823_s1 = inlined_call_operand.vmem [shape: s32[160,1], index: 1, kind: output, shape index: {}]  }
   0x1   :  { %v433_v0 = vld [vmem:[%s822_s0] sm:$0xff]   ;;  %v310_v1 = vld [vmem:[%s822_s0 + $0x8] sm:$0x3]   ;;  %s407_s24 = smov 125   ;;  %s408_s27 = smov 124  }
   0x2   :  { %33 = vrot.lane.b32.xlu1 %v433_v0, %s405_s8  ;;  %14 = vrot.lane.b32.xlu0 %v433_v0, %s406_s9  ;;  %4 = vst.msk [vmem:[%s823_s1] ss:$16 sm:$0x3] %vm3_vm0, %v433_v0   ;;  %5 = vst.msk [vmem:[%s823_s1] ss:$16 sm:$0xc] %vm3_vm0, %v433_v0  }
   0x3   :  { %6 = vst.msk [vmem:[%s823_s1] ss:$16 sm:$0x30] %vm3_vm0, %v433_v0   ;;  %7 = vst.msk [vmem:[%s823_s1] ss:$16 sm:$0xc0] %vm3_vm0, %v433_v0  }
   0x4   :  { %v304_v2 = vld [vmem:[%s822_s0 + $0x8] sm:$0x3]   ;;  %s409_s30 = smov 123   ;;  %s410_s4 = smov 122  }
   0x5   :  { %v316_v3 = vld [vmem:[%s822_s0 + $0x8] sm:$0x3]   ;;  %s411_s7 = smov 121   ;;  %s412_s10 = smov 120  }
   0x6   :  { %46 = vrot.lane.b32.xlu1 %v310_v1, %s405_s8  ;;  %27 = vrot.lane.b32.xlu0 %v304_v2, %s406_s9  ;;  %v322_v4 = vld [vmem:[%s822_s0 + $0x8] sm:$0x3]   ;;  %s413_s13 = smov 119   ;;  %s414_s16 = smov 118  }
   0x7   :  { %v328_v5 = vld [vmem:[%s822_s0 + $0x8] sm:$0x3]   ;;  %s415_s19 = smov 117   ;;  %s416_s26 = smov 116  }
   0x8   :  { %v334_v6 = vld [vmem:[%s822_s0 + $0x8] sm:$0x3]   ;;  %s417_s29 = smov 115   ;;  %s418_s3 = smov 114  }
   0x9   :  { %v340_v7 = vld [vmem:[%s822_s0 + $0x8] sm:$0x3]  }
   0xa   :  { %65 = vrot.lane.b32.xlu1 %v316_v3, %s407_s24  ;;  %52 = vrot.lane.b32.xlu0 %v433_v0, %s407_s24  ;;  %v346_v8 = vld [vmem:[%s822_s0 + $0x8] sm:$0x3]  }
   0xb   :  { %v352_v9 = vld [vmem:[%s822_s0 + $0x8] sm:$0x3]  }
   0xc   :  { %v358_v10 = vld [vmem:[%s822_s0 + $0x8] sm:$0x3]  }
   0xd   :  { %v364_v11 = vld [vmem:[%s822_s0 + $0x8] sm:$0x3]  }
   0xe   :  { %84 = vrot.lane.b32.xlu1 %v322_v4, %s408_s27  ;;  %71 = vrot.lane.b32.xlu0 %v433_v0, %s408_s27  ;;  %v370_v12 = vld [vmem:[%s822_s0 + $0x8] sm:$0x3]  }
   0xf   :  { %v298_v13 = vld [vmem:[%s822_s0 + $0x8] sm:$0x3]  }
  0x10   :  { %299 = vst.msk [vmem:[%s823_s1 + $0x80] ss:$16 sm:$0x3] %vm3_vm0, %v298_v13   ;;  %v376_v14 = vld [vmem:[%s822_s0 + $0x8] sm:$0x3]  }
  0x11   :  { %v382_v15 = vld [vmem:[%s822_s0 + $0x8] sm:$0x3]  }
  0x12   :  { %103 = vrot.lane.b32.xlu1 %v328_v5, %s409_s30  ;;  %90 = vrot.lane.b32.xlu0 %v433_v0, %s409_s30  ;;  %v388_v16 = vld [vmem:[%s822_s0 + $0x8] sm:$0x3]   ;;  %s419_s0 = smov 113  }
  0x16   :  { %122 = vrot.lane.b32.xlu1 %v334_v6, %s410_s4  ;;  %109 = vrot.lane.b32.xlu0 %v433_v0, %s410_s4 }
  0x1a   :  { %141 = vrot.lane.b32.xlu1 %v340_v7, %s411_s7  ;;  %128 = vrot.lane.b32.xlu0 %v433_v0, %s411_s7 }
  0x1e   :  { %160 = vrot.lane.b32.xlu1 %v346_v8, %s412_s10  ;;  %147 = vrot.lane.b32.xlu0 %v433_v0, %s412_s10 }
  0x22   :  { %179 = vrot.lane.b32.xlu1 %v352_v9, %s413_s13  ;;  %166 = vrot.lane.b32.xlu0 %v433_v0, %s413_s13 }
  0x26   :  { %198 = vrot.lane.b32.xlu1 %v358_v10, %s414_s16  ;;  %185 = vrot.lane.b32.xlu0 %v433_v0, %s414_s16 }
  0x2a   :  { %217 = vrot.lane.b32.xlu1 %v364_v11, %s415_s19  ;;  %204 = vrot.lane.b32.xlu0 %v433_v0, %s415_s19 }
  0x2e   :  { %236 = vrot.lane.b32.xlu1 %v370_v12, %s416_s26  ;;  %223 = vrot.lane.b32.xlu0 %v433_v0, %s416_s26 }
  0x32   :  { %255 = vrot.lane.b32.xlu1 %v376_v14, %s417_s29  ;;  %242 = vrot.lane.b32.xlu0 %v433_v0, %s417_s29 }
  0x36   :  { %274 = vrot.lane.b32.xlu1 %v382_v15, %s418_s3  ;;  %261 = vrot.lane.b32.xlu0 %v433_v0, %s418_s3 }
  0x3a   :  { %293 = vrot.lane.b32.xlu1 %v388_v16, %s419_s0  ;;  %280 = vrot.lane.b32.xlu0 %v433_v0, %s419_s0 }
  0x74   :  { %v34_v17 = vpop.permute.xlu1 %33   ;;  %v15_v18 = vpop.permute.xlu0 %14  }
  0x75   :  { %306 = vst.msk [vmem:[%s823_s1 + $0x2] ss:$16 sm:$0x3] %vm3_vm0, %v34_v17   ;;  %307 = vst.msk [vmem:[%s823_s1 + $0x2] ss:$16 sm:$0xc] %vm3_vm0, %v34_v17  }
  0x76   :  { %308 = vst.msk [vmem:[%s823_s1 + $0x2] ss:$16 sm:$0x30] %vm3_vm0, %v34_v17   ;;  %309 = vst.msk [vmem:[%s823_s1 + $0x2] ss:$16 sm:$0xc0] %vm3_vm0, %v34_v17  }
  0x77   :  { %300 = vst.msk [vmem:[%s823_s1 + $0x1] ss:$16 sm:$0x3] %vm3_vm0, %v15_v18   ;;  %301 = vst.msk [vmem:[%s823_s1 + $0x1] ss:$16 sm:$0xc] %vm3_vm0, %v15_v18  }
  0x78   :  { %302 = vst.msk [vmem:[%s823_s1 + $0x1] ss:$16 sm:$0x30] %vm3_vm0, %v15_v18   ;;  %303 = vst.msk [vmem:[%s823_s1 + $0x1] ss:$16 sm:$0xc0] %vm3_vm0, %v15_v18   ;;  %v47_v19 = vpop.permute.xlu1 %46   ;;  %v28_v20 = vpop.permute.xlu0 %27  }
  0x79   :  { %311 = vst.msk [vmem:[%s823_s1 + $0x82] ss:$16 sm:$0x3] %vm3_vm0, %v47_v19   ;;  %305 = vst.msk [vmem:[%s823_s1 + $0x81] ss:$16 sm:$0x3] %vm3_vm0, %v28_v20  }
  0x7c   :  { %v66_v21 = vpop.permute.xlu1 %65   ;;  %v53_v22 = vpop.permute.xlu0 %52  }
  0x7d   :  { %317 = vst.msk [vmem:[%s823_s1 + $0x83] ss:$16 sm:$0x3] %vm3_vm0, %v66_v21   ;;  %312 = vst.msk [vmem:[%s823_s1 + $0x3] ss:$16 sm:$0x3] %vm3_vm0, %v53_v22  }
  0x7e   :  { %313 = vst.msk [vmem:[%s823_s1 + $0x3] ss:$16 sm:$0xc] %vm3_vm0, %v53_v22   ;;  %314 = vst.msk [vmem:[%s823_s1 + $0x3] ss:$16 sm:$0x30] %vm3_vm0, %v53_v22  }
  0x7f   :  { %315 = vst.msk [vmem:[%s823_s1 + $0x3] ss:$16 sm:$0xc0] %vm3_vm0, %v53_v22  }
  0x80   :  { %v85_v23 = vpop.permute.xlu1 %84   ;;  %v72_v24 = vpop.permute.xlu0 %71  }
  0x81   :  { %323 = vst.msk [vmem:[%s823_s1 + $0x84] ss:$16 sm:$0x3] %vm3_vm0, %v85_v23   ;;  %318 = vst.msk [vmem:[%s823_s1 + $0x4] ss:$16 sm:$0x3] %vm3_vm0, %v72_v24  }
  0x82   :  { %319 = vst.msk [vmem:[%s823_s1 + $0x4] ss:$16 sm:$0xc] %vm3_vm0, %v72_v24   ;;  %320 = vst.msk [vmem:[%s823_s1 + $0x4] ss:$16 sm:$0x30] %vm3_vm0, %v72_v24  }
  0x83   :  { %321 = vst.msk [vmem:[%s823_s1 + $0x4] ss:$16 sm:$0xc0] %vm3_vm0, %v72_v24  }
  0x84   :  { %v104_v25 = vpop.permute.xlu1 %103   ;;  %v91_v26 = vpop.permute.xlu0 %90  }
  0x85   :  { %329 = vst.msk [vmem:[%s823_s1 + $0x85] ss:$16 sm:$0x3] %vm3_vm0, %v104_v25   ;;  %324 = vst.msk [vmem:[%s823_s1 + $0x5] ss:$16 sm:$0x3] %vm3_vm0, %v91_v26  }
  0x86   :  { %325 = vst.msk [vmem:[%s823_s1 + $0x5] ss:$16 sm:$0xc] %vm3_vm0, %v91_v26   ;;  %326 = vst.msk [vmem:[%s823_s1 + $0x5] ss:$16 sm:$0x30] %vm3_vm0, %v91_v26  }
  0x87   :  { %327 = vst.msk [vmem:[%s823_s1 + $0x5] ss:$16 sm:$0xc0] %vm3_vm0, %v91_v26  }
  0x88   :  { %v123_v27 = vpop.permute.xlu1 %122   ;;  %v110_v28 = vpop.permute.xlu0 %109  }
  0x89   :  { %335 = vst.msk [vmem:[%s823_s1 + $0x86] ss:$16 sm:$0x3] %vm3_vm0, %v123_v27   ;;  %330 = vst.msk [vmem:[%s823_s1 + $0x6] ss:$16 sm:$0x3] %vm3_vm0, %v110_v28  }
  0x8a   :  { %331 = vst.msk [vmem:[%s823_s1 + $0x6] ss:$16 sm:$0xc] %vm3_vm0, %v110_v28   ;;  %332 = vst.msk [vmem:[%s823_s1 + $0x6] ss:$16 sm:$0x30] %vm3_vm0, %v110_v28  }
  0x8b   :  { %333 = vst.msk [vmem:[%s823_s1 + $0x6] ss:$16 sm:$0xc0] %vm3_vm0, %v110_v28  }
  0x8c   :  { %v142_v29 = vpop.permute.xlu1 %141   ;;  %v129_v30 = vpop.permute.xlu0 %128  }
  0x8d   :  { %341 = vst.msk [vmem:[%s823_s1 + $0x87] ss:$16 sm:$0x3] %vm3_vm0, %v142_v29   ;;  %336 = vst.msk [vmem:[%s823_s1 + $0x7] ss:$16 sm:$0x3] %vm3_vm0, %v129_v30  }
  0x8e   :  { %337 = vst.msk [vmem:[%s823_s1 + $0x7] ss:$16 sm:$0xc] %vm3_vm0, %v129_v30   ;;  %338 = vst.msk [vmem:[%s823_s1 + $0x7] ss:$16 sm:$0x30] %vm3_vm0, %v129_v30  }
  0x8f   :  { %339 = vst.msk [vmem:[%s823_s1 + $0x7] ss:$16 sm:$0xc0] %vm3_vm0, %v129_v30  }
  0x90   :  { %v161_v31 = vpop.permute.xlu1 %160   ;;  %v148_v32 = vpop.permute.xlu0 %147  }
  0x91   :  { %347 = vst.msk [vmem:[%s823_s1 + $0x88] ss:$16 sm:$0x3] %vm3_vm0, %v161_v31   ;;  %342 = vst.msk [vmem:[%s823_s1 + $0x8] ss:$16 sm:$0x3] %vm3_vm0, %v148_v32  }
  0x92   :  { %343 = vst.msk [vmem:[%s823_s1 + $0x8] ss:$16 sm:$0xc] %vm3_vm0, %v148_v32   ;;  %344 = vst.msk [vmem:[%s823_s1 + $0x8] ss:$16 sm:$0x30] %vm3_vm0, %v148_v32  }
  0x93   :  { %345 = vst.msk [vmem:[%s823_s1 + $0x8] ss:$16 sm:$0xc0] %vm3_vm0, %v148_v32  }
  0x94   :  { %v180_v33 = vpop.permute.xlu1 %179   ;;  %v167_v34 = vpop.permute.xlu0 %166  }
  0x95   :  { %353 = vst.msk [vmem:[%s823_s1 + $0x89] ss:$16 sm:$0x3] %vm3_vm0, %v180_v33   ;;  %348 = vst.msk [vmem:[%s823_s1 + $0x9] ss:$16 sm:$0x3] %vm3_vm0, %v167_v34  }
  0x96   :  { %349 = vst.msk [vmem:[%s823_s1 + $0x9] ss:$16 sm:$0xc] %vm3_vm0, %v167_v34   ;;  %350 = vst.msk [vmem:[%s823_s1 + $0x9] ss:$16 sm:$0x30] %vm3_vm0, %v167_v34  }
  0x97   :  { %351 = vst.msk [vmem:[%s823_s1 + $0x9] ss:$16 sm:$0xc0] %vm3_vm0, %v167_v34  }
  0x98   :  { %v199_v35 = vpop.permute.xlu1 %198   ;;  %v186_v36 = vpop.permute.xlu0 %185  }
  0x99   :  { %359 = vst.msk [vmem:[%s823_s1 + $0x8a] ss:$16 sm:$0x3] %vm3_vm0, %v199_v35   ;;  %354 = vst.msk [vmem:[%s823_s1 + $0xa] ss:$16 sm:$0x3] %vm3_vm0, %v186_v36  }
  0x9a   :  { %355 = vst.msk [vmem:[%s823_s1 + $0xa] ss:$16 sm:$0xc] %vm3_vm0, %v186_v36   ;;  %356 = vst.msk [vmem:[%s823_s1 + $0xa] ss:$16 sm:$0x30] %vm3_vm0, %v186_v36  }
  0x9b   :  { %357 = vst.msk [vmem:[%s823_s1 + $0xa] ss:$16 sm:$0xc0] %vm3_vm0, %v186_v36  }
  0x9c   :  { %v218_v37 = vpop.permute.xlu1 %217   ;;  %v205_v38 = vpop.permute.xlu0 %204  }
  0x9d   :  { %365 = vst.msk [vmem:[%s823_s1 + $0x8b] ss:$16 sm:$0x3] %vm3_vm0, %v218_v37   ;;  %360 = vst.msk [vmem:[%s823_s1 + $0xb] ss:$16 sm:$0x3] %vm3_vm0, %v205_v38  }
  0x9e   :  { %361 = vst.msk [vmem:[%s823_s1 + $0xb] ss:$16 sm:$0xc] %vm3_vm0, %v205_v38   ;;  %362 = vst.msk [vmem:[%s823_s1 + $0xb] ss:$16 sm:$0x30] %vm3_vm0, %v205_v38  }
  0x9f   :  { %363 = vst.msk [vmem:[%s823_s1 + $0xb] ss:$16 sm:$0xc0] %vm3_vm0, %v205_v38  }
  0xa0   :  { %v237_v39 = vpop.permute.xlu1 %236   ;;  %v224_v40 = vpop.permute.xlu0 %223  }
  0xa1   :  { %371 = vst.msk [vmem:[%s823_s1 + $0x8c] ss:$16 sm:$0x3] %vm3_vm0, %v237_v39   ;;  %366 = vst.msk [vmem:[%s823_s1 + $0xc] ss:$16 sm:$0x3] %vm3_vm0, %v224_v40  }
  0xa2   :  { %367 = vst.msk [vmem:[%s823_s1 + $0xc] ss:$16 sm:$0xc] %vm3_vm0, %v224_v40   ;;  %368 = vst.msk [vmem:[%s823_s1 + $0xc] ss:$16 sm:$0x30] %vm3_vm0, %v224_v40  }
  0xa3   :  { %369 = vst.msk [vmem:[%s823_s1 + $0xc] ss:$16 sm:$0xc0] %vm3_vm0, %v224_v40  }
  0xa4   :  { %v256_v41 = vpop.permute.xlu1 %255   ;;  %v243_v42 = vpop.permute.xlu0 %242  }
  0xa5   :  { %377 = vst.msk [vmem:[%s823_s1 + $0x8d] ss:$16 sm:$0x3] %vm3_vm0, %v256_v41   ;;  %372 = vst.msk [vmem:[%s823_s1 + $0xd] ss:$16 sm:$0x3] %vm3_vm0, %v243_v42  }
  0xa6   :  { %373 = vst.msk [vmem:[%s823_s1 + $0xd] ss:$16 sm:$0xc] %vm3_vm0, %v243_v42   ;;  %374 = vst.msk [vmem:[%s823_s1 + $0xd] ss:$16 sm:$0x30] %vm3_vm0, %v243_v42  }
  0xa7   :  { %375 = vst.msk [vmem:[%s823_s1 + $0xd] ss:$16 sm:$0xc0] %vm3_vm0, %v243_v42  }
  0xa8   :  { %v275_v43 = vpop.permute.xlu1 %274   ;;  %v262_v44 = vpop.permute.xlu0 %261  }
  0xa9   :  { %383 = vst.msk [vmem:[%s823_s1 + $0x8e] ss:$16 sm:$0x3] %vm3_vm0, %v275_v43   ;;  %378 = vst.msk [vmem:[%s823_s1 + $0xe] ss:$16 sm:$0x3] %vm3_vm0, %v262_v44  }
  0xaa   :  { %379 = vst.msk [vmem:[%s823_s1 + $0xe] ss:$16 sm:$0xc] %vm3_vm0, %v262_v44   ;;  %380 = vst.msk [vmem:[%s823_s1 + $0xe] ss:$16 sm:$0x30] %vm3_vm0, %v262_v44  }
  0xab   :  { %381 = vst.msk [vmem:[%s823_s1 + $0xe] ss:$16 sm:$0xc0] %vm3_vm0, %v262_v44  }
  0xac   :  { %v294_v45 = vpop.permute.xlu1 %293   ;;  %v281_v46 = vpop.permute.xlu0 %280  }
  0xad   :  { %389 = vst.msk [vmem:[%s823_s1 + $0x8f] ss:$16 sm:$0x3] %vm3_vm0, %v294_v45   ;;  %384 = vst.msk [vmem:[%s823_s1 + $0xf] ss:$16 sm:$0x3] %vm3_vm0, %v281_v46  }
  0xae   :  { %385 = vst.msk [vmem:[%s823_s1 + $0xf] ss:$16 sm:$0xc] %vm3_vm0, %v281_v46   ;;  %386 = vst.msk [vmem:[%s823_s1 + $0xf] ss:$16 sm:$0x30] %vm3_vm0, %v281_v46  }
  0xaf   :  { %387 = vst.msk [vmem:[%s823_s1 + $0xf] ss:$16 sm:$0xc0] %vm3_vm0, %v281_v46  }

// kernel: bertqa_forward.1
= control target key start
LH: loop header
LB: loop body
LE: loop exit
PB: predicated region body
PF: predicated region fallthrough
CT: control target
= control target key end

     0   :  { %v11484_v0 = vmov 0   ;;  %v85_v56 = vlaneseq  ;;  %vm368_vm0 = vcmask 523264   ;;  %v15587_v60 = vmov 0.0   ;;  %s11488_s27 = smov 64   ;;  %s11490_s28 = smov 112   ;;  %s15563_s1 = inlined_call_operand.vmem [shape: s32[160,1], index: 1, kind: input, shape index: {}]   ;;  %s15564_s3 = inlined_call_operand.vmem [shape: f32[64,32], index: 3, kind: input, shape index: {}]   ;;  %s15565_s2 = inlined_call_operand.vmem [shape: f32[100,32], index: 2, kind: input, shape index: {}]   ;;  %s15566_s0 = inlined_call_operand.vmem [shape: s32[160,1], index: 0, kind: input, shape index: {}]   ;;  %s15567_s5 = inlined_call_operand.vmem [shape: bf16[2,32,96], index: 5, kind: input, shape index: {}]   ;;  %s15568_s4 = inlined_call_operand.vmem [shape: f32[2,32], index: 4, kind: input, shape index: {}]   ;;  %s15569_s6 = inlined_call_operand.vmem [shape: f32[2,1,96], index: 6, kind: input, shape index: {}]   ;;  %s15570_s7 = inlined_call_operand.vmem [shape: bf16[2,32,32], index: 7, kind: input, shape index: {}]   ;;  %s15571_s8 = inlined_call_operand.vmem [shape: f32[2,1,32], index: 8, kind: input, shape index: {}]   ;;  %s15572_s10 = inlined_call_operand.vmem [shape: bf16[2,32,64], index: 10, kind: input, shape index: {}]   ;;  %s15573_s9 = inlined_call_operand.vmem [shape: f32[2,2,32], index: 9, kind: input, shape index: {}]   ;;  %s15574_s12 = inlined_call_operand.vmem [shape: bf16[2,64,32], index: 12, kind: input, shape index: {}]   ;;  %s15575_s11 = inlined_call_operand.vmem [shape: f32[2,1,64], index: 11, kind: input, shape index: {}]   ;;  %s15576_s13 = inlined_call_operand.vmem [shape: f32[2,1,32], index: 13, kind: input, shape index: {}]   ;;  %s15577_s14 = inlined_call_operand.vmem [shape: f32[2,2,32], index: 14, kind: input, shape index: {}]   ;;  %s15578_s15 = inlined_call_operand.vmem [shape: bf16[32,32], index: 15, kind: input, shape index: {}]   ;;  %s15579_s18 = inlined_call_operand.<no memory space> [shape: f32[1,1], index: 18, kind: input, shape index: {}]   ;;  %s15580_s16 = inlined_call_operand.vmem [shape: f32[1,32], index: 16, kind: input, shape index: {}]   ;;  %s15581_s17 = inlined_call_operand.vmem [shape: f32[1,32], index: 17, kind: input, shape index: {}]   ;;  %s15582_s19 = inlined_call_operand.vmem [shape: f32[10,1], index: 19, kind: output, shape index: {}]  }
   0x1   :  { %15630 = sst [smem:[#allocation23_spill]] %s15563_s1  ;;  %10777 = vset.pattern.permute.xlu1 %v11484_v0  ;;  %10776 = vset.pattern.permute.xlu0 %v11484_v0  ;;  %vm655_vm14 = vcmask 1043456   ;;  %s11491_s29 = smov 48  }
   0x2   :  { %15631 = sst [smem:[#allocation24_spill]] %s15564_s3  ;;  %s15634_s20 = sld [smem:[#allocation23_spill]]  ;;  %v11747_v57 = vand.u32 127, %v85_v56 }
   0x3   :  { %15632 = sst [smem:[#allocation25_spill]] %s15565_s2  ;;  %s15635_s23 = sld [smem:[#allocation24_spill]] }
   0x4   :  { %15633 = sst [smem:[#allocation26_spill]] %s15566_s0  ;;  %s15636_s24 = sld [smem:[#allocation25_spill]] }
   0x5   :  { %s15637_s26 = sld [smem:[#allocation26_spill]]  ;;  %s11492_s21 = smov 16  }
   0x8   :  { %v209_v1 = vld [vmem:[%s15634_s20 + $0x10] sm:$0xff]  ;;  %v207_v2 = vld [vmem:[%s15634_s20] sm:$0xff]  ;;  %v210_v3 = vld [vmem:[%s15634_s20 + $0x18] sm:$0xff] }
   0x9   :  { %234 = vperm.xlu1 %10777, %v209_v1   ;;  %228 = vperm.xlu0 %10776, %v207_v2   ;;  %v208_v4 = vld [vmem:[%s15634_s20 + $0x8] sm:$0xff]  ;;  %v211_v6 = vld [vmem:[%s15634_s20 + $0x20] sm:$0xff]  ;;  %v214_v7 = vld [vmem:[%s15634_s20 + $0x38] sm:$0xff] }
   0xa   :  { %v212_v5 = vld [vmem:[%s15634_s20 + $0x28] sm:$0xff]  ;;  %v213_v8 = vld [vmem:[%s15634_s20 + $0x30] sm:$0xff]  ;;  %v360_v10 = vld [vmem:[%s15635_s23] sm:$0xff] }
   0xb   :  { %v216_v9 = vld [vmem:[%s15634_s20 + $0x48] sm:$0xff]  ;;  %v215_v12 = vld [vmem:[%s15634_s20 + $0x40] sm:$0xff]  ;;  %v362_v14 = vld [vmem:[%s15635_s23 + $0x10] sm:$0xff] }
   0xc   :  { %v361_v11 = vld [vmem:[%s15635_s23 + $0x8] sm:$0xff]  ;;  %v363_v15 = vld [vmem:[%s15635_s23 + $0x18] sm:$0xff]  ;;  %v364_v17 = vld [vmem:[%s15635_s23 + $0x20] sm:$0xff] }
   0xd   :  { %237 = vperm.xlu1 %10777, %v210_v3   ;;  %231 = vperm.xlu0 %10776, %v208_v4   ;;  %v10703_v13 = vpack.c.bf16 %v361_v11, %v360_v10  ;;  %v10707_v16 = vpack.c.bf16 %v363_v15, %v362_v14  ;;  %v365_v18 = vld [vmem:[%s15635_s23 + $0x28] sm:$0xff]  ;;  %v218_v19 = vld [vmem:[%s15634_s20 + $0x58] sm:$0xff]  ;;  %v217_v20 = vld [vmem:[%s15634_s20 + $0x50] sm:$0xff] }
   0xe   :  { %v10711_v21 = vpack.c.bf16 %v365_v18, %v364_v17  ;;  %v366_v22 = vld [vmem:[%s15635_s23 + $0x30] sm:$0xff]  ;;  %v367_v23 = vld [vmem:[%s15635_s23 + $0x38] sm:$0xff]  ;;  %v220_v24 = vld [vmem:[%s15634_s20 + $0x68] sm:$0xff]  ;;  %s11487_s23 = smov 96  }
   0xf   :  { %10704 = vmatprep.subr.bf16.mxu0 %v10703_v13  ;;  %v219_v25 = vld [vmem:[%s15634_s20 + $0x60] sm:$0xff]  ;;  %v10715_v26 = vpack.c.bf16 %v367_v23, %v366_v22  ;;  %v348_v28 = vld [vmem:[%s15636_s24 + $0x8] sm:$0xff]  ;;  %v222_v29 = vld [vmem:[%s15634_s20 + $0x78] sm:$0xff] }
  0x10   :  { %10706 = vmatpush3.bf16.msra.mxu0 %v10703_v13  ;;  %v347_v27 = vld [vmem:[%s15636_s24] sm:$0xff]  ;;  %v221_v30 = vld [vmem:[%s15634_s20 + $0x70] sm:$0xff]  ;;  %v224_v32 = vld [vmem:[%s15634_s20 + $0x88] sm:$0xff] }
  0x11   :  { %243 = vperm.xlu1 %10777, %v212_v5   ;;  %240 = vperm.xlu0 %10776, %v211_v6   ;;  %v11671_v31 = vpack.c.bf16 %v348_v28, %v347_v27  ;;  %v223_v33 = vld [vmem:[%s15634_s20 + $0x80] sm:$0xff]  ;;  %v226_v34 = vld [vmem:[%s15634_s20 + $0x98] sm:$0xff]  ;;  %v225_v35 = vld [vmem:[%s15634_s20 + $0x90] sm:$0xff] }
  0x12   :  { %10708 = vmatprep.subr.bf16.mxu0 %v10707_v16  ;;  %v66_v36 = vld [vmem:[%s15637_s26 + $0x8] sm:$0xff]  ;;  %v65_v37 = vld [vmem:[%s15637_s26] sm:$0xff]  ;;  %v68_v38 = vld [vmem:[%s15637_s26 + $0x18] sm:$0xff] }
  0x13   :  { %v67_v39 = vld [vmem:[%s15637_s26 + $0x10] sm:$0xff]  ;;  %v70_v40 = vld [vmem:[%s15637_s26 + $0x28] sm:$0xff]  ;;  %v69_v41 = vld [vmem:[%s15637_s26 + $0x20] sm:$0xff] }
  0x14   :  { %10710 = vmatpush3.bf16.msra.mxu0 %v10707_v16  ;;  %v72_v42 = vld [vmem:[%s15637_s26 + $0x38] sm:$0xff]  ;;  %v71_v43 = vld [vmem:[%s15637_s26 + $0x30] sm:$0xff]  ;;  %v74_v44 = vld [vmem:[%s15637_s26 + $0x48] sm:$0xff] }
  0x15   :  { %249 = vperm.xlu1 %10777, %v214_v7   ;;  %246 = vperm.xlu0 %10776, %v213_v8   ;;  %v73_v45 = vld [vmem:[%s15637_s26 + $0x40] sm:$0xff]  ;;  %v76_v46 = vld [vmem:[%s15637_s26 + $0x58] sm:$0xff]  ;;  %v75_v47 = vld [vmem:[%s15637_s26 + $0x50] sm:$0xff] }
  0x16   :  { %10712 = vmatprep.subr.bf16.mxu0 %v10711_v21  ;;  %v78_v48 = vld [vmem:[%s15637_s26 + $0x68] sm:$0xff]  ;;  %v77_v49 = vld [vmem:[%s15637_s26 + $0x60] sm:$0xff]  ;;  %v80_v50 = vld [vmem:[%s15637_s26 + $0x78] sm:$0xff] }
  0x17   :  { %v79_v51 = vld [vmem:[%s15637_s26 + $0x70] sm:$0xff]  ;;  %v82_v52 = vld [vmem:[%s15637_s26 + $0x88] sm:$0xff]  ;;  %v81_v53 = vld [vmem:[%s15637_s26 + $0x80] sm:$0xff] }
  0x18   :  { %10714 = vmatpush3.bf16.msra.mxu0 %v10711_v21  ;;  %v84_v54 = vld [vmem:[%s15637_s26 + $0x98] sm:$0xff]  ;;  %v83_v55 = vld [vmem:[%s15637_s26 + $0x90] sm:$0xff]  ;;  %v351_v5 = vld [vmem:[%s15636_s24 + $0x20] sm:$0xff]  ;;  %s11489_s26 = smov 80  }
  0x19   :  { %255 = vperm.xlu1 %10777, %v216_v9   ;;  %252 = vperm.xlu0 %10776, %v215_v12   ;;  %v349_v62 = vld [vmem:[%s15636_s24 + $0x10] sm:$0xff]  ;;  %v350_v63 = vld [vmem:[%s15636_s24 + $0x18] sm:$0xff]  ;;  %v352_v6 = vld [vmem:[%s15636_s24 + $0x28] sm:$0xff] }
  0x1a   :  { %10716 = vmatprep.subr.bf16.mxu0 %v10715_v26  ;;  %v10723_v3 = vpack.c.bf16 %v350_v63, %v349_v62  ;;  %v10727_v9 = vpack.c.bf16 %v352_v6, %v351_v5  ;;  %v353_v12 = vld [vmem:[%s15636_s24 + $0x30] sm:$0xff]  ;;  %v354_v13 = vld [vmem:[%s15636_s24 + $0x38] sm:$0xff] }
  0x1b   :  { %v10731_v16 = vpack.c.bf16 %v354_v13, %v353_v12  ;;  %v358_v27 = vld [vmem:[%s15636_s24 + $0x58] sm:$0xff] }
  0x1c   :  { %10718 = vmatpush3.bf16.msra.mxu0 %v10715_v26  ;;  %v357_v26 = vld [vmem:[%s15636_s24 + $0x50] sm:$0xff] }
  0x1d   :  { %261 = vperm.xlu1 %10777, %v218_v19   ;;  %258 = vperm.xlu0 %10776, %v217_v20   ;;  %v355_v19 = vld [vmem:[%s15636_s24 + $0x40] sm:$0xff]  ;;  %v356_v20 = vld [vmem:[%s15636_s24 + $0x48] sm:$0xff] }
  0x1e   :  { %10720 = vmatprep.subr.bf16.mxu0 %v11671_v31  ;;  %v10735_v23 = vpack.c.bf16 %v356_v20, %v355_v19 }
  0x21   :  { %267 = vperm.xlu1 %10777, %v220_v24   ;;  %264 = vperm.xlu0 %10776, %v219_v25  }
  0x25   :  { %273 = vperm.xlu1 %10777, %v222_v29   ;;  %270 = vperm.xlu0 %10776, %v221_v30   ;;  %v10739_v30 = vpack.c.bf16 %v358_v27, %v357_v26 }
  0x29   :  { %279 = vperm.xlu1 %10777, %v224_v32   ;;  %276 = vperm.xlu0 %10776, %v223_v33  }
  0x2d   :  { %285 = vperm.xlu1 %10777, %v226_v34   ;;  %282 = vperm.xlu0 %10776, %v225_v35  }
  0x31   :  { %91 = vperm.xlu1 %10777, %v66_v36   ;;  %88 = vperm.xlu0 %10776, %v65_v37   ;;  %v359_v37 = vld [vmem:[%s15636_s24 + $0x60] sm:$0xf] }
  0x35   :  { %97 = vperm.xlu1 %10777, %v68_v38   ;;  %94 = vperm.xlu0 %10776, %v67_v39  }
  0x39   :  { %103 = vperm.xlu1 %10777, %v70_v40   ;;  %100 = vperm.xlu0 %10776, %v69_v41  }
  0x3d   :  { %109 = vperm.xlu1 %10777, %v72_v42   ;;  %106 = vperm.xlu0 %10776, %v71_v43  }
  0x41   :  { %115 = vperm.xlu1 %10777, %v74_v44   ;;  %112 = vperm.xlu0 %10776, %v73_v45  }
  0x45   :  { %121 = vperm.xlu1 %10777, %v76_v46   ;;  %118 = vperm.xlu0 %10776, %v75_v47  }
  0x49   :  { %127 = vperm.xlu1 %10777, %v78_v48   ;;  %124 = vperm.xlu0 %10776, %v77_v49  }
  0x4d   :  { %133 = vperm.xlu1 %10777, %v80_v50   ;;  %130 = vperm.xlu0 %10776, %v79_v51  }
  0x51   :  { %139 = vperm.xlu1 %10777, %v82_v52   ;;  %136 = vperm.xlu0 %10776, %v81_v53  }
  0x55   :  { %145 = vperm.xlu1 %10777, %v84_v54   ;;  %142 = vperm.xlu0 %10776, %v83_v55  }
  0x88   :  { %v235_v58 = vpop.permute.xlu1 %234  ;;  %v229_v59 = vpop.permute.xlu0 %228 }
  0x89   :  { %vm287_vm1 = vcmp.eq.s32.totalorder %v229_v59, %v11747_v57  ;;  %vm289_vm2 = vcmp.eq.s32.totalorder %v235_v58, %v11747_v57 }
  0x8a   :  { %v9308_v61 = vsel %vm287_vm1, 1.0, %v15587_v60  ;;  %v9310_v2 = vsel %vm289_vm2, 1.0, %v15587_v60 }
  0x8b   :  { %9929 = vmatprep.mubr.msk.f32.mxu0 %vm368_vm0, %v9308_v61 }
  0x8c   :  { %v238_v0 = vpop.permute.xlu1 %237  ;;  %v232_v1 = vpop.permute.xlu0 %231 }
  0x8d   :  { %vm288_vm3 = vcmp.eq.s32.totalorder %v232_v1, %v11747_v57  ;;  %vm290_vm4 = vcmp.eq.s32.totalorder %v238_v0, %v11747_v57 }
  0x8e   :  { %v9309_v4 = vsel %vm288_vm3, 1.0, %v15587_v60  ;;  %v9311_v10 = vsel %vm290_vm4, 1.0, %v15587_v60 }
  0x8f   :  { %9930 = vmatmul.mubr.msk.f32.vlgmr.msra.gmra.mrb[0].mxu0 %vm368_vm0, %v9309_v4 }
  0x90   :  { %v244_v7 = vpop.permute.xlu1 %243  ;;  %9932 = vmatprep.mubr.msk.f32.mxu0 %vm368_vm0, %v9310_v2  ;;  %v241_v8 = vpop.permute.xlu0 %240  ;;  %10722 = vmatpush3.bf16.msra.mxu0 %v11671_v31 }
  0x91   :  { %vm291_vm5 = vcmp.eq.s32.totalorder %v241_v8, %v11747_v57  ;;  %10724 = vmatprep.subr.bf16.mxu0 %v10723_v3  ;;  %vm292_vm6 = vcmp.eq.s32.totalorder %v244_v7, %v11747_v57 }
  0x92   :  { %v9312_v11 = vsel %vm291_vm5, 1.0, %v15587_v60  ;;  %v9313_v17 = vsel %vm292_vm6, 1.0, %v15587_v60 }
  0x93   :  { %9933 = vmatmul.mubr.msk.f32.gmra.mrb[2].mxu0 %vm368_vm0, %v9311_v10 }
  0x94   :  { %v250_v14 = vpop.permute.xlu1 %249  ;;  %9935 = vmatprep.mubr.msk.f32.mxu0 %vm368_vm0, %v9312_v11  ;;  %v247_v15 = vpop.permute.xlu0 %246  ;;  %10726 = vmatpush3.bf16.msra.mxu0 %v10723_v3 }
  0x95   :  { %vm293_vm7 = vcmp.eq.s32.totalorder %v247_v15, %v11747_v57  ;;  %10728 = vmatprep.subr.bf16.mxu0 %v10727_v9  ;;  %vm294_vm8 = vcmp.eq.s32.totalorder %v250_v14, %v11747_v57 }
  0x96   :  { %v9314_v18 = vsel %vm293_vm7, 1.0, %v15587_v60  ;;  %v9315_v24 = vsel %vm294_vm8, 1.0, %v15587_v60  ;;  %vm594_vm8 = vcmask 818176  }
  0x97   :  { %9936 = vmatmul.mubr.msk.f32.gmra.mrb[4].mxu0 %vm368_vm0, %v9313_v17 }
  0x98   :  { %v256_v21 = vpop.permute.xlu1 %255  ;;  %9938 = vmatprep.mubr.msk.f32.mxu0 %vm368_vm0, %v9314_v18  ;;  %v253_v22 = vpop.permute.xlu0 %252  ;;  %10730 = vmatpush3.bf16.msra.mxu0 %v10727_v9 }
  0x99   :  { %vm295_vm9 = vcmp.eq.s32.totalorder %v253_v22, %v11747_v57  ;;  %10732 = vmatprep.subr.bf16.mxu0 %v10731_v16  ;;  %vm296_vm10 = vcmp.eq.s32.totalorder %v256_v21, %v11747_v57 }
  0x9a   :  { %v9316_v25 = vsel %vm295_vm9, 1.0, %v15587_v60  ;;  %v9317_v31 = vsel %vm296_vm10, 1.0, %v15587_v60 }
  0x9b   :  { %9939 = vmatmul.mubr.msk.f32.gmra.mrb[6].mxu0 %vm368_vm0, %v9315_v24 }
  0x9c   :  { %v262_v28 = vpop.permute.xlu1 %261  ;;  %9941 = vmatprep.mubr.msk.f32.mxu0 %vm368_vm0, %v9316_v25  ;;  %v259_v29 = vpop.permute.xlu0 %258  ;;  %10734 = vmatpush3.bf16.msra.mxu0 %v10731_v16 }
  0x9d   :  { %vm297_vm11 = vcmp.eq.s32.totalorder %v259_v29, %v11747_v57  ;;  %10736 = vmatprep.subr.bf16.mxu0 %v10735_v23  ;;  %vm298_vm12 = vcmp.eq.s32.totalorder %v262_v28, %v11747_v57 }
  0x9e   :  { %v9318_v32 = vsel %vm297_vm11, 1.0, %v15587_v60  ;;  %v9319_v35 = vsel %vm298_vm12, 1.0, %v15587_v60 }
  0x9f   :  { %9942 = vmatmul.mubr.msk.f32.gmra.mrb[8].mxu0 %vm368_vm0, %v9317_v31 }
  0xa0   :  { %v268_v33 = vpop.permute.xlu1 %267  ;;  %9944 = vmatprep.mubr.msk.f32.mxu0 %vm368_vm0, %v9318_v32  ;;  %v265_v34 = vpop.permute.xlu0 %264  ;;  %10738 = vmatpush3.bf16.msra.mxu0 %v10735_v23 }
  0xa1   :  { %vm299_vm13 = vcmp.eq.s32.totalorder %v265_v34, %v11747_v57  ;;  %10740 = vmatprep.subr.bf16.mxu0 %v10739_v30  ;;  %vm300_vm15 = vcmp.eq.s32.totalorder %v268_v33, %v11747_v57 }
  0xa2   :  { %v9320_v36 = vsel %vm299_vm13, 1.0, %v15587_v60  ;;  %v9321_v40 = vsel %vm300_vm15, 1.0, %v15587_v60 }
  0xa3   :  { %9945 = vmatmul.mubr.msk.f32.gmra.mrb[10].mxu0 %vm368_vm0, %v9319_v35 }
  0xa4   :  { %v274_v38 = vpop.permute.xlu1 %273  ;;  %9947 = vmatprep.mubr.msk.f32.mxu0 %vm368_vm0, %v9320_v36  ;;  %v271_v39 = vpop.permute.xlu0 %270  ;;  %10742 = vmatpush3.bf16.msra.mxu0 %v10739_v30 }
  0xa5   :  { %vm301_vm1 = vcmp.eq.s32.totalorder %v271_v39, %v11747_v57  ;;  %9983 = vmatprep.subr.msk.mxu0 %vm655_vm14, %v359_v37  ;;  %vm302_vm2 = vcmp.eq.s32.totalorder %v274_v38, %v11747_v57 }
  0xa6   :  { %v9322_v41 = vsel %vm301_vm1, 1.0, %v15587_v60  ;;  %v9323_v44 = vsel %vm302_vm2, 1.0, %v15587_v60 }
  0xa7   :  { %9948 = vmatmul.mubr.msk.f32.gmra.mrb[12].mxu0 %vm368_vm0, %v9321_v40 }
  0xa8   :  { %v280_v42 = vpop.permute.xlu1 %279  ;;  %9950 = vmatprep.mubr.msk.f32.mxu0 %vm368_vm0, %v9322_v41  ;;  %v277_v43 = vpop.permute.xlu0 %276  ;;  %9984 = vmatpush3.msk.msra.mxu0 %vm655_vm14, %v359_v37 }
  0xa9   :  { %vm303_vm3 = vcmp.eq.s32.totalorder %v277_v43, %v11747_v57  ;;  %10075 = vmatprep.subr.bf16.mxu0 %v15587_v60  ;;  %vm304_vm4 = vcmp.eq.s32.totalorder %v280_v42, %v11747_v57 }
  0xaa   :  { %v9324_v45 = vsel %vm303_vm3, 1.0, %v15587_v60  ;;  %v9325_v48 = vsel %vm304_vm4, 1.0, %v15587_v60 }
  0xab   :  { %9951 = vmatmul.mubr.msk.f32.gmra.mrb[14].mxu0 %vm368_vm0, %v9323_v44 }
  0xac   :  { %v286_v46 = vpop.permute.xlu1 %285  ;;  %9953 = vmatprep.mubr.msk.f32.mxu0 %vm368_vm0, %v9324_v45  ;;  %v283_v47 = vpop.permute.xlu0 %282 }
  0xad   :  { %vm305_vm5 = vcmp.eq.s32.totalorder %v283_v47, %v11747_v57  ;;  %vm306_vm6 = vcmp.eq.s32.totalorder %v286_v46, %v11747_v57 }
  0xae   :  { %v9326_v49 = vsel %vm305_vm5, 1.0, %v15587_v60  ;;  %v9327_v52 = vsel %vm306_vm6, 1.0, %v15587_v60 }
  0xaf   :  { %9954 = vmatmul.mubr.msk.f32.gmra.mrb[16].mxu0 %vm368_vm0, %v9325_v48 }
  0xb0   :  { %9956 = vmatprep.mubr.msk.f32.mxu0 %vm368_vm0, %v9326_v49  ;;  %v92_v50 = vpop.permute.xlu1 %91  ;;  %v89_v51 = vpop.permute.xlu0 %88 }
  0xb1   :  { %vm147_vm7 = vcmp.eq.s32.totalorder %v89_v51, %v11747_v57  ;;  %vm148_vm9 = vcmp.eq.s32.totalorder %v92_v50, %v11747_v57 }
  0xb2   :  { %v9288_v53 = vsel %vm147_vm7, 1.0, %v15587_v60  ;;  %v9289_v58 = vsel %vm148_vm9, 1.0, %v15587_v60 }
  0xb3   :  { %9957 = vmatmul.mubr.msk.f32.gmra.mrb[18].mxu0 %vm368_vm0, %v9327_v52 }
  0xb4   :  { %v98_v54 = vpop.permute.xlu1 %97  ;;  %9985 = vmatprep.mubr.msk.f32.mxu0 %vm594_vm8, %v9288_v53  ;;  %v95_v55 = vpop.permute.xlu0 %94 }
  0xb5   :  { %vm149_vm10 = vcmp.eq.s32.totalorder %v95_v55, %v11747_v57  ;;  %vm150_vm11 = vcmp.eq.s32.totalorder %v98_v54, %v11747_v57 }
  0xb6   :  { %v9290_v59 = vsel %vm149_vm10, 1.0, %v15587_v60  ;;  %v9291_v63 = vsel %vm150_vm11, 1.0, %v15587_v60 }
  0xb7   :  { %9986 = vmatmul.mubr.msk.f32.vlgmr.msra.gmra.mrb[0].mxu0 %vm594_vm8, %v9289_v58 }
  0xb8   :  { %v104_v61 = vpop.permute.xlu1 %103  ;;  %9988 = vmatprep.mubr.msk.f32.mxu0 %vm594_vm8, %v9290_v59  ;;  %v101_v62 = vpop.permute.xlu0 %100 }
  0xb9   :  { %vm151_vm12 = vcmp.eq.s32.totalorder %v101_v62, %v11747_v57  ;;  %vm152_vm13 = vcmp.eq.s32.totalorder %v104_v61, %v11747_v57 }
  0xba   :  { %v9292_v0 = vsel %vm151_vm12, 1.0, %v15587_v60  ;;  %v9293_v3 = vsel %vm152_vm13, 1.0, %v15587_v60 }
  0xbb   :  { %9989 = vmatmul.mubr.msk.f32.gmra.mrb[2].mxu0 %vm594_vm8, %v9291_v63 }
  0xbc   :  { %v110_v1 = vpop.permute.xlu1 %109  ;;  %9991 = vmatprep.mubr.msk.f32.mxu0 %vm594_vm8, %v9292_v0  ;;  %v107_v2 = vpop.permute.xlu0 %106 }
  0xbd   :  { %vm153_vm14 = vcmp.eq.s32.totalorder %v107_v2, %v11747_v57  ;;  %vm154_vm15 = vcmp.eq.s32.totalorder %v110_v1, %v11747_v57 }
  0xbe   :  { %v9294_v4 = vsel %vm153_vm14, 1.0, %v15587_v60  ;;  %v9295_v7 = vsel %vm154_vm15, 1.0, %v15587_v60  ;;  %vm825_vm14 = vcmask 261120   ;;  %vm1324_vm15 = vcmask 130048  }
  0xbf   :  { %9992 = vmatmul.mubr.msk.f32.gmra.mrb[4].mxu0 %vm594_vm8, %v9293_v3 }
  0xc0   :  { %v116_v5 = vpop.permute.xlu1 %115  ;;  %9994 = vmatprep.mubr.msk.f32.mxu0 %vm594_vm8, %v9294_v4  ;;  %v113_v6 = vpop.permute.xlu0 %112 }
  0xc1   :  { %vm155_vm1 = vcmp.eq.s32.totalorder %v113_v6, %v11747_v57  ;;  %vm156_vm2 = vcmp.eq.s32.totalorder %v116_v5, %v11747_v57 }
  0xc2   :  { %v9296_v8 = vsel %vm155_vm1, 1.0, %v15587_v60  ;;  %v9297_v11 = vsel %vm156_vm2, 1.0, %v15587_v60  ;;  %vm9177_vm1 = vcmask 1042434   ;;  %vm9180_vm2 = vcmask 1043459  }
  0xc3   :  { %9995 = vmatmul.mubr.msk.f32.gmra.mrb[6].mxu0 %vm594_vm8, %v9295_v7 }
  0xc4   :  { %v122_v9 = vpop.permute.xlu1 %121  ;;  %9997 = vmatprep.mubr.msk.f32.mxu0 %vm594_vm8, %v9296_v8  ;;  %v119_v10 = vpop.permute.xlu0 %118 }
  0xc5   :  { %vm157_vm3 = vcmp.eq.s32.totalorder %v119_v10, %v11747_v57  ;;  %vm158_vm4 = vcmp.eq.s32.totalorder %v122_v9, %v11747_v57 }
  0xc6   :  { %v9298_v12 = vsel %vm157_vm3, 1.0, %v15587_v60  ;;  %v9299_v15 = vsel %vm158_vm4, 1.0, %v15587_v60  ;;  %vm9183_vm3 = vcmask 1044484   ;;  %vm9186_vm4 = vcmask 1045509  }
  0xc7   :  { %9998 = vmatmul.mubr.msk.f32.gmra.mrb[8].mxu0 %vm594_vm8, %v9297_v11 }
  0xc8   :  { %v128_v13 = vpop.permute.xlu1 %127  ;;  %10000 = vmatprep.mubr.msk.f32.mxu0 %vm594_vm8, %v9298_v12  ;;  %v125_v14 = vpop.permute.xlu0 %124 }
  0xc9   :  { %vm159_vm5 = vcmp.eq.s32.totalorder %v125_v14, %v11747_v57  ;;  %vm160_vm6 = vcmp.eq.s32.totalorder %v128_v13, %v11747_v57 }
  0xca   :  { %v9300_v16 = vsel %vm159_vm5, 1.0, %v15587_v60  ;;  %v9301_v19 = vsel %vm160_vm6, 1.0, %v15587_v60  ;;  %vm9189_vm5 = vcmask 1046534   ;;  %vm9192_vm6 = vcmask 1047559  }
  0xcb   :  { %10001 = vmatmul.mubr.msk.f32.gmra.mrb[10].mxu0 %vm594_vm8, %v9299_v15 }
  0xcc   :  { %v134_v17 = vpop.permute.xlu1 %133  ;;  %10003 = vmatprep.mubr.msk.f32.mxu0 %vm594_vm8, %v9300_v16  ;;  %v131_v18 = vpop.permute.xlu0 %130 }
  0xcd   :  { %vm161_vm7 = vcmp.eq.s32.totalorder %v131_v18, %v11747_v57  ;;  %vm162_vm9 = vcmp.eq.s32.totalorder %v134_v17, %v11747_v57 }
  0xce   :  { %v9302_v20 = vsel %vm161_vm7, 1.0, %v15587_v60  ;;  %v9303_v23 = vsel %vm162_vm9, 1.0, %v15587_v60  ;;  %vm9267_vm7 = vcmask 254976   ;;  %vm9280_vm9 = vcmask 7168  }
  0xcf   :  { %10004 = vmatmul.mubr.msk.f32.gmra.mrb[12].mxu0 %vm594_vm8, %v9301_v19 }
  0xd0   :  { %v140_v21 = vpop.permute.xlu1 %139  ;;  %10006 = vmatprep.mubr.msk.f32.mxu0 %vm594_vm8, %v9302_v20  ;;  %v137_v22 = vpop.permute.xlu0 %136 }
  0xd1   :  { %vm163_vm10 = vcmp.eq.s32.totalorder %v137_v22, %v11747_v57  ;;  %vm164_vm11 = vcmp.eq.s32.totalorder %v140_v21, %v11747_v57 }
  0xd2   :  { %v9304_v24 = vsel %vm163_vm10, 1.0, %v15587_v60  ;;  %v9305_v27 = vsel %vm164_vm11, 1.0, %v15587_v60  ;;  %vm9282_vm10 = vcmask 1024  }
  0xd3   :  { %10007 = vmatmul.mubr.msk.f32.gmra.mrb[14].mxu0 %vm594_vm8, %v9303_v23 }
  0xd4   :  { %v146_v25 = vpop.permute.xlu1 %145  ;;  %10009 = vmatprep.mubr.msk.f32.mxu0 %vm594_vm8, %v9304_v24  ;;  %v143_v26 = vpop.permute.xlu0 %142 }
  0xd5   :  { %vm165_vm12 = vcmp.eq.s32.totalorder %v143_v26, %v11747_v57  ;;  %vm166_vm13 = vcmp.eq.s32.totalorder %v146_v25, %v11747_v57 }
  0xd6   :  { %v9306_v28 = vsel %vm165_vm12, 1.0, %v15587_v60  ;;  %v9307_v29 = vsel %vm166_vm13, 1.0, %v15587_v60 }
  0xd7   :  { %10010 = vmatmul.mubr.msk.f32.gmra.mrb[16].mxu0 %vm594_vm8, %v9305_v27 }
  0xd8   :  { %10012 = vmatprep.mubr.msk.f32.mxu0 %vm594_vm8, %v9306_v28 }
  0xdb   :  { %10013 = vmatmul.mubr.msk.f32.gmra.mrb[18].mxu0 %vm594_vm8, %v9307_v29  ;;  %vm11486_vm8 = vmmov 0  }
  0xdc   :  { %10077 = vmatprep.mubr.msk.bf16.mxu0 %vm11486_vm8, %v15587_v60 }
 0x18a   :  { %v11906_v30 = vpop.f32.mrb[0].mxu0 }
 0x18b   :  { %v11908_v31 = vpop.f32.mrb[1].mxu0  ;;  %v829_v32 = vsel %vm825_vm14, %v11906_v30, 0.0 }
 0x18c   :  { %830 = vadd.xlane.f32.xlu1 %v829_v32  ;;  %v826_v57 = vsel %vm825_vm14, %v11908_v31, 0.0 }
 0x18d   :  { %827 = vadd.xlane.f32.xlu0 %v826_v57 }
 0x18e   :  { %v11914_v33 = vpop.f32.mrb[2].mxu0 }
 0x18f   :  { %v11916_v34 = vpop.f32.mrb[3].mxu0  ;;  %v835_v38 = vsel %vm825_vm14, %v11914_v33, 0.0 }
 0x190   :  { %v832_v35 = vsel %vm825_vm14, %v11916_v34, 0.0 }
 0x191   :  { %833 = vadd.xlane.f32.xlu0 %v832_v35 }
 0x192   :  { %v11920_v36 = vpop.f32.mrb[4].mxu0 }
 0x193   :  { %v11922_v37 = vpop.f32.mrb[5].mxu0  ;;  %v841_v42 = vsel %vm825_vm14, %v11920_v36, 0.0 }
 0x194   :  { %v838_v39 = vsel %vm825_vm14, %v11922_v37, 0.0 }
 0x195   :  { %836 = vadd.xlane.f32.xlu0 %v835_v38  ;;  %839 = vadd.xlane.f32.xlu1 %v838_v39 }
 0x196   :  { %v11928_v40 = vpop.f32.mrb[6].mxu0 }
 0x197   :  { %v11930_v41 = vpop.f32.mrb[7].mxu0  ;;  %v847_v46 = vsel %vm825_vm14, %v11928_v40, 0.0 }
 0x198   :  { %v844_v43 = vsel %vm825_vm14, %v11930_v41, 0.0 }
 0x199   :  { %842 = vadd.xlane.f32.xlu0 %v841_v42  ;;  %845 = vadd.xlane.f32.xlu1 %v844_v43 }
 0x19a   :  { %v11936_v44 = vpop.f32.mrb[8].mxu0 }
 0x19b   :  { %v11938_v45 = vpop.f32.mrb[9].mxu0  ;;  %v853_v50 = vsel %vm825_vm14, %v11936_v44, 0.0 }
 0x19c   :  { %v850_v47 = vsel %vm825_vm14, %v11938_v45, 0.0 }
 0x19d   :  { %848 = vadd.xlane.f32.xlu0 %v847_v46  ;;  %851 = vadd.xlane.f32.xlu1 %v850_v47 }
 0x19e   :  { %v11944_v48 = vpop.f32.mrb[10].mxu0 }
 0x19f   :  { %v11946_v49 = vpop.f32.mrb[11].mxu0  ;;  %v859_v54 = vsel %vm825_vm14, %v11944_v48, 0.0 }
 0x1a0   :  { %v856_v51 = vsel %vm825_vm14, %v11946_v49, 0.0 }
 0x1a1   :  { %854 = vadd.xlane.f32.xlu0 %v853_v50  ;;  %857 = vadd.xlane.f32.xlu1 %v856_v51 }
 0x1a2   :  { %v11952_v52 = vpop.f32.mrb[12].mxu0 }
 0x1a3   :  { %v11954_v53 = vpop.f32.mrb[13].mxu0  ;;  %v865_v61 = vsel %vm825_vm14, %v11952_v52, 0.0 }
 0x1a4   :  { %v862_v55 = vsel %vm825_vm14, %v11954_v53, 0.0 }
 0x1a5   :  { %860 = vadd.xlane.f32.xlu0 %v859_v54  ;;  %863 = vadd.xlane.f32.xlu1 %v862_v55 }
 0x1a6   :  { %v11960_v58 = vpop.f32.mrb[14].mxu0 }
 0x1a7   :  { %v11962_v59 = vpop.f32.mrb[15].mxu0  ;;  %v871_v1 = vsel %vm825_vm14, %v11960_v58, 0.0 }
 0x1a8   :  { %v868_v62 = vsel %vm825_vm14, %v11962_v59, 0.0 }
 0x1a9   :  { %866 = vadd.xlane.f32.xlu0 %v865_v61  ;;  %869 = vadd.xlane.f32.xlu1 %v868_v62 }
 0x1aa   :  { %v11968_v63 = vpop.f32.mrb[16].mxu0 }
 0x1ab   :  { %v11970_v0 = vpop.f32.mrb[17].mxu0  ;;  %v877_v5 = vsel %vm825_vm14, %v11968_v63, 0.0 }
 0x1ac   :  { %v874_v2 = vsel %vm825_vm14, %v11970_v0, 0.0 }
 0x1ad   :  { %872 = vadd.xlane.f32.xlu0 %v871_v1  ;;  %875 = vadd.xlane.f32.xlu1 %v874_v2 }
 0x1ae   :  { %v11976_v3 = vpop.f32.mrb[18].mxu0 }
 0x1af   :  { %v11978_v4 = vpop.f32.mrb[19].mxu0  ;;  %v883_v7 = vsel %vm825_vm14, %v11976_v3, 0.0 }
 0x1b0   :  { %v880_v6 = vsel %vm825_vm14, %v11978_v4, 0.0 }
 0x1b1   :  { %878 = vadd.xlane.f32.xlu0 %v877_v5  ;;  %881 = vadd.xlane.f32.xlu1 %v880_v6 }
 0x1b5   :  { %884 = vadd.xlane.f32.xlu0 %v883_v7 }
 0x219   :  { %v831_v8 = vpop.xlane.xlu1 %830 }
 0x21a   :  { %v888_v9 = vmul.f32 0.03125, %v831_v8  ;;  %v828_v10 = vpop.xlane.xlu0 %827 }
 0x21b   :  { %v887_v11 = vmul.f32 0.03125, %v828_v10 }
 0x21c   :  { %v11987_v12 = vsub.f32 %v11906_v30, %v888_v9 }
 0x21d   :  { %v11990_v13 = vsub.f32 %v11908_v31, %v887_v11 }
 0x21e   :  { %v834_v14 = vpop.xlane.xlu0 %833  ;;  %v928_v15 = vmul.f32 %v11987_v12, %v11987_v12 }
 0x21f   :  { %v889_v16 = vmul.f32 0.03125, %v834_v14  ;;  %v927_v17 = vmul.f32 %v11990_v13, %v11990_v13 }
 0x220   :  { %v950_v18 = vsel %vm825_vm14, %v928_v15, 0.0 }
 0x221   :  { %v11998_v19 = vsub.f32 %v11916_v34, %v889_v16  ;;  %951 = vadd.xlane.f32.xlu0 %v950_v18  ;;  %v947_v20 = vsel %vm825_vm14, %v927_v17, 0.0 }
 0x222   :  { %v840_v21 = vpop.xlane.xlu1 %839  ;;  %948 = vadd.xlane.f32.xlu1 %v947_v20  ;;  %v837_v22 = vpop.xlane.xlu0 %836 }
 0x223   :  { %v891_v23 = vmul.f32 0.03125, %v840_v21  ;;  %v890_v24 = vmul.f32 0.03125, %v837_v22  ;;  %v929_v25 = vmul.f32 %v11998_v19, %v11998_v19 }
 0x225   :  { %v12004_v26 = vsub.f32 %v11922_v37, %v891_v23  ;;  %v12007_v27 = vsub.f32 %v11914_v33, %v890_v24  ;;  %v953_v28 = vsel %vm825_vm14, %v929_v25, 0.0 }
 0x226   :  { %v846_v29 = vpop.xlane.xlu1 %845  ;;  %954 = vadd.xlane.f32.xlu1 %v953_v28  ;;  %v843_v30 = vpop.xlane.xlu0 %842 }
 0x227   :  { %v893_v31 = vmul.f32 0.03125, %v846_v29  ;;  %v892_v32 = vmul.f32 0.03125, %v843_v30  ;;  %v931_v57 = vmul.f32 %v12004_v26, %v12004_v26  ;;  %v930_v34 = vmul.f32 %v12007_v27, %v12007_v27 }
 0x229   :  { %v12015_v35 = vsub.f32 %v11930_v41, %v893_v31  ;;  %v12018_v37 = vsub.f32 %v11920_v36, %v892_v32  ;;  %v959_v33 = vsel %vm825_vm14, %v931_v57, 0.0  ;;  %v956_v38 = vsel %vm825_vm14, %v930_v34, 0.0 }
 0x22a   :  { %v852_v39 = vpop.xlane.xlu1 %851  ;;  %960 = vadd.xlane.f32.xlu1 %v959_v33  ;;  %957 = vadd.xlane.f32.xlu0 %v956_v38  ;;  %v849_v42 = vpop.xlane.xlu0 %848 }
 0x22b   :  { %v895_v43 = vmul.f32 0.03125, %v852_v39  ;;  %v894_v46 = vmul.f32 0.03125, %v849_v42  ;;  %v933_v47 = vmul.f32 %v12015_v35, %v12015_v35  ;;  %v932_v41 = vmul.f32 %v12018_v37, %v12018_v37 }
 0x22d   :  { %v12027_v50 = vsub.f32 %v11938_v45, %v895_v43  ;;  %v12030_v36 = vsub.f32 %v11928_v40, %v894_v46  ;;  %v965_v51 = vsel %vm825_vm14, %v933_v47, 0.0  ;;  %v962_v54 = vsel %vm825_vm14, %v932_v41, 0.0 }
 0x22e   :  { %v858_v55 = vpop.xlane.xlu1 %857  ;;  %966 = vadd.xlane.f32.xlu1 %v965_v51  ;;  %963 = vadd.xlane.f32.xlu0 %v962_v54  ;;  %v855_v61 = vpop.xlane.xlu0 %854 }
 0x22f   :  { %v897_v62 = vmul.f32 0.03125, %v858_v55  ;;  %v896_v1 = vmul.f32 0.03125, %v855_v61  ;;  %v935_v2 = vmul.f32 %v12027_v50, %v12027_v50  ;;  %v934_v45 = vmul.f32 %v12030_v36, %v12030_v36 }
 0x231   :  { %v12039_v5 = vsub.f32 %v11946_v49, %v897_v62  ;;  %v12042_v40 = vsub.f32 %v11936_v44, %v896_v1  ;;  %v971_v6 = vsel %vm825_vm14, %v935_v2, 0.0  ;;  %v968_v7 = vsel %vm825_vm14, %v934_v45, 0.0  ;;  %v10878_v45 = vld [vmem:[%s15567_s5] sm:$0xff]  }
 0x232   :  { %v864_v8 = vpop.xlane.xlu1 %863  ;;  %972 = vadd.xlane.f32.xlu1 %v971_v6  ;;  %969 = vadd.xlane.f32.xlu0 %v968_v7  ;;  %v861_v9 = vpop.xlane.xlu0 %860 }
 0x233   :  { %v899_v10 = vmul.f32 0.03125, %v864_v8  ;;  %v898_v11 = vmul.f32 0.03125, %v861_v9  ;;  %v937_v14 = vmul.f32 %v12039_v5, %v12039_v5  ;;  %v936_v49 = vmul.f32 %v12042_v40, %v12042_v40  ;;  %10015 = vmatprep.subr.bf16.mxu1 %v10878_v45 }
 0x234   :  { %10016 = vmatpush3.bf16.msra.mxu1 %v10878_v45 }
 0x235   :  { %v12051_v15 = vsub.f32 %v11954_v53, %v899_v10  ;;  %v12054_v44 = vsub.f32 %v11944_v48, %v898_v11  ;;  %v977_v16 = vsel %vm825_vm14, %v937_v14, 0.0  ;;  %v974_v17 = vsel %vm825_vm14, %v936_v49, 0.0 }
 0x236   :  { %v870_v18 = vpop.xlane.xlu1 %869  ;;  %978 = vadd.xlane.f32.xlu1 %v977_v16  ;;  %975 = vadd.xlane.f32.xlu0 %v974_v17  ;;  %v867_v20 = vpop.xlane.xlu0 %866 }
 0x237   :  { %v901_v21 = vmul.f32 0.03125, %v870_v18  ;;  %v900_v22 = vmul.f32 0.03125, %v867_v20  ;;  %v939_v23 = vmul.f32 %v12051_v15, %v12051_v15  ;;  %v938_v53 = vmul.f32 %v12054_v44, %v12054_v44 }
 0x238   :  { %v1088_v18 = vshrl.u32 %v85_v56, 7 }
 0x239   :  { %v12063_v24 = vsub.f32 %v11962_v59, %v901_v21  ;;  %v12066_v48 = vsub.f32 %v11952_v52, %v900_v22  ;;  %v983_v25 = vsel %vm825_vm14, %v939_v23, 0.0  ;;  %v980_v28 = vsel %vm825_vm14, %v938_v53, 0.0 }
 0x23a   :  { %v876_v29 = vpop.xlane.xlu1 %875  ;;  %984 = vadd.xlane.f32.xlu1 %v983_v25  ;;  %981 = vadd.xlane.f32.xlu0 %v980_v28  ;;  %v873_v30 = vpop.xlane.xlu0 %872  ;;  %v12114_v25 = vsub.s32 0, %v1088_v18  ;;  %v824_v28 = vld [vmem:[%s15568_s4] sm:$0x3] }
 0x23b   :  { %v903_v31 = vmul.f32 0.03125, %v876_v29  ;;  %v902_v32 = vmul.f32 0.03125, %v873_v30  ;;  %v941_v57 = vmul.f32 %v12063_v24, %v12063_v24  ;;  %v940_v59 = vmul.f32 %v12066_v48, %v12066_v48 }
 0x23c   :  { %15638 = vst [vmem:[#allocation3_spill] sm:$0xff] %v12114_v25 }
 0x23d   :  { %v12075_v34 = vsub.f32 %v11970_v0, %v903_v31  ;;  %v12078_v52 = vsub.f32 %v11960_v58, %v902_v32  ;;  %v989_v33 = vsel %vm825_vm14, %v941_v57, 0.0  ;;  %v986_v38 = vsel %vm825_vm14, %v940_v59, 0.0 }
 0x23e   :  { %v882_v39 = vpop.xlane.xlu1 %881  ;;  %990 = vadd.xlane.f32.xlu1 %v989_v33  ;;  %987 = vadd.xlane.f32.xlu0 %v986_v38  ;;  %v879_v42 = vpop.xlane.xlu0 %878  ;;  %v12119_v31 = vsub.s32 1, %v1088_v18  ;;  %v12122_v33 = vrot.slane %v824_v28, %v12114_v25 }
 0x23f   :  { %v905_v43 = vmul.f32 0.03125, %v882_v39  ;;  %v904_v46 = vmul.f32 0.03125, %v879_v42  ;;  %v943_v47 = vmul.f32 %v12075_v34, %v12075_v34  ;;  %v942_v0 = vmul.f32 %v12078_v52, %v12078_v52 }
 0x240   :  { %15639 = vst [vmem:[#allocation4_spill] sm:$0xff] %v12119_v31 }
 0x241   :  { %v12087_v41 = vsub.f32 %v11978_v4, %v905_v43  ;;  %v12090_v58 = vsub.f32 %v11968_v63, %v904_v46  ;;  %v995_v51 = vsel %vm825_vm14, %v943_v47, 0.0  ;;  %v992_v54 = vsel %vm825_vm14, %v942_v0, 0.0 }
 0x242   :  { %996 = vadd.xlane.f32.xlu1 %v995_v51  ;;  %993 = vadd.xlane.f32.xlu0 %v992_v54  ;;  %v885_v55 = vpop.xlane.xlu0 %884  ;;  %v12126_v47 = vrot.slane %v824_v28, %v12119_v31 }
 0x243   :  { %v906_v61 = vmul.f32 0.03125, %v885_v55  ;;  %v945_v62 = vmul.f32 %v12087_v41, %v12087_v41  ;;  %v944_v1 = vmul.f32 %v12090_v58, %v12090_v58 }
 0x245   :  { %v12099_v4 = vsub.f32 %v11976_v3, %v906_v61  ;;  %v1001_v63 = vsel %vm825_vm14, %v945_v62, 0.0  ;;  %v998_v2 = vsel %vm825_vm14, %v944_v1, 0.0  ;;  %v10879_v3 = vld [vmem:[%s15567_s5 + $0x8] sm:$0xff]  }
 0x246   :  { %1002 = vadd.xlane.f32.xlu1 %v1001_v63  ;;  %999 = vadd.xlane.f32.xlu0 %v998_v2 }
 0x247   :  { %v946_v6 = vmul.f32 %v12099_v4, %v12099_v4  ;;  %10017 = vmatprep.subr.bf16.mxu1 %v10879_v3 }
 0x248   :  { %10018 = vmatpush3.bf16.msra.mxu1 %v10879_v3 }
 0x249   :  { %v1004_v7 = vsel %vm825_vm14, %v946_v6, 0.0  ;;  %10039 = vmatprep.subr.bf16.mxu1 %v15587_v60 }
 0x24a   :  { %1005 = vadd.xlane.f32.xlu0 %v1004_v7 }
 0x2ae   :  { %v952_v8 = vpop.xlane.xlu0 %951 }
 0x2af   :  { %v1008_v9 = vmul.f32 0.03125, %v952_v8  ;;  %v949_v10 = vpop.xlane.xlu1 %948 }
 0x2b0   :  { %v1007_v11 = vmul.f32 0.03125, %v949_v10 }
 0x2b1   :  { %v1028_v14 = vadd.f32 1e-12, %v1008_v9 }
 0x2b2   :  { %v1027_v49 = vadd.f32 1e-12, %v1007_v11 }
 0x2b3   :  { %10900 = vrsqrt.f32 %v1028_v14  ;;  %v955_v16 = vpop.xlane.xlu1 %954 }
 0x2b4   :  { %10902 = vrsqrt.f32 %v1027_v49  ;;  %v1009_v17 = vmul.f32 0.03125, %v955_v16 }
 0x2b6   :  { %v1029_v20 = vadd.f32 1e-12, %v1009_v17 }
 0x2b7   :  { %v961_v21 = vpop.xlane.xlu1 %960  ;;  %v958_v22 = vpop.xlane.xlu0 %957 }
 0x2b8   :  { %10904 = vrsqrt.f32 %v1029_v20  ;;  %v1011_v23 = vmul.f32 0.03125, %v961_v21  ;;  %v1010_v53 = vmul.f32 0.03125, %v958_v22 }
 0x2ba   :  { %v1031_v29 = vadd.f32 1e-12, %v1011_v23  ;;  %v1030_v30 = vadd.f32 1e-12, %v1010_v53 }
 0x2bb   :  { %v967_v32 = vpop.xlane.xlu1 %966  ;;  %v964_v57 = vpop.xlane.xlu0 %963 }
 0x2bc   :  { %10906 = vrsqrt.f32 %v1031_v29  ;;  %v1013_v56 = vmul.f32 0.03125, %v967_v32  ;;  %v1012_v59 = vmul.f32 0.03125, %v964_v57 }
 0x2bd   :  { %v10901_v38 = vpop.eup %10900  ;;  %10908 = vrsqrt.f32 %v1030_v30 }
 0x2be   :  { %v10903_v39 = vpop.eup %10902  ;;  %v1033_v42 = vadd.f32 1e-12, %v1013_v56  ;;  %v1032_v43 = vadd.f32 1e-12, %v1012_v59  ;;  %v1068_v46 = vmul.f32 %v10901_v38, %v11987_v12 }
 0x2bf   :  { %v973_v0 = vpop.xlane.xlu1 %972  ;;  %v970_v51 = vpop.xlane.xlu0 %969  ;;  %v1067_v54 = vmul.f32 %v10903_v39, %v11990_v13 }
 0x2c0   :  { %10910 = vrsqrt.f32 %v1033_v42  ;;  %v1015_v55 = vmul.f32 0.03125, %v973_v0  ;;  %v1014_v61 = vmul.f32 0.03125, %v970_v51  ;;  %v1092_v62 = vmul.f32 %v12122_v33, %v1068_v46 }
 0x2c1   :  { %10912 = vrsqrt.f32 %v1032_v43  ;;  %v1091_v1 = vmul.f32 %v12122_v33, %v1067_v54 }
 0x2c2   :  { %v10905_v63 = vpop.eup %10904  ;;  %v1035_v2 = vadd.f32 1e-12, %v1015_v55  ;;  %v1034_v45 = vadd.f32 1e-12, %v1014_v61  ;;  %v12132_v12 = vadd.f32 %v12126_v47, %v1092_v62 }
 0x2c3   :  { %v979_v6 = vpop.xlane.xlu1 %978  ;;  %v976_v7 = vpop.xlane.xlu0 %975  ;;  %v12135_v3 = vadd.f32 %v12126_v47, %v1091_v1  ;;  %v1069_v13 = vmul.f32 %v10905_v63, %v11998_v19 }
 0x2c4   :  { %10914 = vrsqrt.f32 %v1035_v2  ;;  %v1017_v8 = vmul.f32 0.03125, %v979_v6  ;;  %v1016_v9 = vmul.f32 0.03125, %v976_v7 }
 0x2c5   :  { %10916 = vrsqrt.f32 %v1034_v45  ;;  %v1135_v10 = vpack.c.bf16 %v12132_v12, %v12135_v3  ;;  %v1093_v20 = vmul.f32 %v12122_v33, %v1069_v13 }
 0x2c6   :  { %v10907_v11 = vpop.eup %10906  ;;  %v1037_v14 = vadd.f32 1e-12, %v1017_v8  ;;  %v1036_v49 = vadd.f32 1e-12, %v1016_v9 }
 0x2c7   :  { %v10909_v16 = vpop.eup %10908  ;;  %v985_v17 = vpop.xlane.xlu1 %984  ;;  %10019 = vmatprep.mubr.msk.bf16.mxu1 %vm825_vm14, %v1135_v10  ;;  %v1071_v23 = vmul.f32 %v10907_v11, %v12004_v26  ;;  %v12146_v59 = vadd.f32 %v12126_v47, %v1093_v20 }
 0x2c8   :  { %v982_v18 = vpop.xlane.xlu0 %981  ;;  %10918 = vrsqrt.f32 %v1037_v14  ;;  %v1019_v21 = vmul.f32 0.03125, %v985_v17  ;;  %v1070_v22 = vmul.f32 %v10909_v16, %v12007_v27 }
 0x2c9   :  { %v1018_v19 = vmul.f32 0.03125, %v982_v18  ;;  %10920 = vrsqrt.f32 %v1036_v49  ;;  %v1095_v43 = vmul.f32 %v12122_v33, %v1071_v23 }
 0x2ca   :  { %v10911_v53 = vpop.eup %10910  ;;  %v1039_v28 = vadd.f32 1e-12, %v1019_v21  ;;  %v1094_v30 = vmul.f32 %v12122_v33, %v1070_v22 }
 0x2cb   :  { %v1038_v29 = vadd.f32 1e-12, %v1018_v19  ;;  %v10913_v32 = vpop.eup %10912  ;;  %v991_v57 = vpop.xlane.xlu1 %990  ;;  %v1073_v38 = vmul.f32 %v10911_v53, %v12015_v35  ;;  %v12161_v45 = vadd.f32 %v12126_v47, %v1095_v43 }
 0x2cc   :  { %v988_v56 = vpop.xlane.xlu0 %987  ;;  %10922 = vrsqrt.f32 %v1039_v28  ;;  %v1021_v39 = vmul.f32 0.03125, %v991_v57  ;;  %v12150_v27 = vadd.f32 %v12126_v47, %v1094_v30  ;;  %v1072_v26 = vmul.f32 %v10913_v32, %v12018_v37 }
 0x2cd   :  { %v1020_v42 = vmul.f32 0.03125, %v988_v56  ;;  %10924 = vrsqrt.f32 %v1038_v29  ;;  %v1097_v1 = vmul.f32 %v12122_v33, %v1073_v38  ;;  %15641 = vst [vmem:[#allocation6_spill] sm:$0xff] %v12161_v45 }
 0x2ce   :  { %15640 = vst [vmem:[#allocation5_spill] sm:$0xff] %v12150_v27  ;;  %v10915_v46 = vpop.eup %10914  ;;  %v1041_v0 = vadd.f32 1e-12, %v1021_v39  ;;  %v1136_v54 = vpack.c.bf16 %v12150_v27, %v12146_v59  ;;  %v1096_v62 = vmul.f32 %v12122_v33, %v1072_v26 }
 0x2cf   :  { %v1040_v51 = vadd.f32 1e-12, %v1020_v42  ;;  %v10917_v55 = vpop.eup %10916  ;;  %v997_v61 = vpop.xlane.xlu1 %996  ;;  %v1075_v7 = vmul.f32 %v10915_v46, %v12027_v50  ;;  %v12171_v16 = vadd.f32 %v12126_v47, %v1097_v1 }
 0x2d0   :  { %v994_v35 = vpop.xlane.xlu0 %993  ;;  %10926 = vrsqrt.f32 %v1041_v0  ;;  %v1023_v63 = vmul.f32 0.03125, %v997_v61  ;;  %10020 = vmatmul.mubr.msk.bf16.vlgmr.msra.gmra.mrb[0].mxu1 %vm825_vm14, %v1136_v54  ;;  %v1074_v2 = vmul.f32 %v10917_v55, %v12030_v36  ;;  %v12164_v6 = vadd.f32 %v12126_v47, %v1096_v62 }
 0x2d1   :  { %v1022_v37 = vmul.f32 0.03125, %v994_v35  ;;  %10928 = vrsqrt.f32 %v1040_v51  ;;  %15643 = vst [vmem:[#allocation8_spill] sm:$0xff] %v12171_v16  ;;  %v1099_v19 = vmul.f32 %v12122_v33, %v1075_v7 }
 0x2d2   :  { %15642 = vst [vmem:[#allocation7_spill] sm:$0xff] %v12164_v6  ;;  %v10919_v13 = vpop.eup %10918  ;;  %v1043_v8 = vadd.f32 1e-12, %v1023_v63  ;;  %v1098_v10 = vmul.f32 %v12122_v33, %v1074_v2  ;;  %v1137_v49 = vpack.c.bf16 %v12164_v6, %v12161_v45 }
 0x2d3   :  { %v1042_v9 = vadd.f32 1e-12, %v1022_v37  ;;  %v10921_v11 = vpop.eup %10920  ;;  %v1003_v14 = vpop.xlane.xlu1 %1002  ;;  %v1077_v17 = vmul.f32 %v10919_v13, %v12039_v5  ;;  %v12188_v38 = vadd.f32 %v12126_v47, %v1099_v19 }
 0x2d4   :  { %v1000_v36 = vpop.xlane.xlu0 %999  ;;  %10930 = vrsqrt.f32 %v1043_v8  ;;  %v1025_v18 = vmul.f32 0.03125, %v1003_v14  ;;  %v12175_v50 = vadd.f32 %v12126_v47, %v1098_v10  ;;  %10023 = vmatprep.mubr.msk.bf16.mxu1 %vm825_vm14, %v1137_v49  ;;  %v1076_v21 = vmul.f32 %v10921_v11, %v12042_v40 }
 0x2d5   :  { %v1024_v20 = vmul.f32 0.03125, %v1000_v36  ;;  %10932 = vrsqrt.f32 %v1042_v9  ;;  %v1101_v32 = vmul.f32 %v12122_v33, %v1077_v17  ;;  %15645 = vst [vmem:[#allocation10_spill] sm:$0xff] %v12188_v38 }
 0x2d6   :  { %15644 = vst [vmem:[#allocation9_spill] sm:$0xff] %v12175_v50  ;;  %v10923_v22 = vpop.eup %10922  ;;  %v1045_v23 = vadd.f32 1e-12, %v1025_v18  ;;  %v1138_v28 = vpack.c.bf16 %v12175_v50, %v12171_v16  ;;  %v1100_v30 = vmul.f32 %v12122_v33, %v1076_v21 }
 0x2d7   :  { %v1044_v53 = vadd.f32 1e-12, %v1024_v20  ;;  %v10925_v5 = vpop.eup %10924  ;;  %v1079_v57 = vmul.f32 %v10923_v22, %v12051_v15  ;;  %v12197_v0 = vadd.f32 %v12126_v47, %v1101_v32 }
 0x2d8   :  { %v1006_v29 = vpop.xlane.xlu0 %1005  ;;  %10934 = vrsqrt.f32 %v1045_v23  ;;  %10024 = vmatmul.mubr.msk.bf16.gmra.mrb[4].mxu1 %vm825_vm14, %v1138_v28  ;;  %v1078_v56 = vmul.f32 %v10925_v5, %v12054_v44  ;;  %v12191_v39 = vadd.f32 %v12126_v47, %v1100_v30 }
 0x2d9   :  { %v1026_v40 = vmul.f32 0.03125, %v1006_v29  ;;  %10936 = vrsqrt.f32 %v1044_v53  ;;  %15647 = vst [vmem:[#allocation12_spill] sm:$0xff] %v12197_v0  ;;  %v1103_v44 = vmul.f32 %v12122_v33, %v1079_v57 }
 0x2da   :  { %15646 = vst [vmem:[#allocation11_spill] sm:$0xff] %v12191_v39  ;;  %v10927_v42 = vpop.eup %10926  ;;  %v1102_v43 = vmul.f32 %v12122_v33, %v1078_v56  ;;  %v1139_v15 = vpack.c.bf16 %v12191_v39, %v12188_v38 }
 0x2db   :  { %v1046_v26 = vadd.f32 1e-12, %v1026_v40  ;;  %v10929_v46 = vpop.eup %10928  ;;  %v1081_v55 = vmul.f32 %v10927_v42, %v12063_v24  ;;  %v12210_v63 = vadd.f32 %v12126_v47, %v1103_v44 }
 0x2dc   :  { %v12201_v51 = vadd.f32 %v12126_v47, %v1102_v43  ;;  %v1080_v54 = vmul.f32 %v10929_v46, %v12066_v48  ;;  %10027 = vmatprep.mubr.msk.bf16.mxu1 %vm825_vm14, %v1139_v15 }
 0x2dd   :  { %10938 = vrsqrt.f32 %v1046_v26  ;;  %15649 = vst [vmem:[#allocation14_spill] sm:$0xff] %v12210_v63  ;;  %v1105_v24 = vmul.f32 %v12122_v33, %v1081_v55 }
 0x2de   :  { %15648 = vst [vmem:[#allocation13_spill] sm:$0xff] %v12201_v51  ;;  %v10931_v61 = vpop.eup %10930  ;;  %v1140_v35 = vpack.c.bf16 %v12201_v51, %v12197_v0  ;;  %v1104_v62 = vmul.f32 %v12122_v33, %v1080_v54 }
 0x2df   :  { %v10933_v1 = vpop.eup %10932  ;;  %v1083_v2 = vmul.f32 %v10931_v61, %v12075_v34  ;;  %v12225_v11 = vadd.f32 %v12126_v47, %v1105_v24 }
 0x2e0   :  { %10028 = vmatmul.mubr.msk.bf16.gmra.mrb[8].mxu1 %vm825_vm14, %v1140_v35  ;;  %v12214_v37 = vadd.f32 %v12126_v47, %v1104_v62  ;;  %v1082_v48 = vmul.f32 %v10933_v1, %v12078_v52 }
 0x2e1   :  { %15651 = vst [vmem:[#allocation16_spill] sm:$0xff] %v12225_v11  ;;  %v1107_v34 = vmul.f32 %v12122_v33, %v1083_v2 }
 0x2e2   :  { %15650 = vst [vmem:[#allocation15_spill] sm:$0xff] %v12214_v37  ;;  %v10935_v7 = vpop.eup %10934  ;;  %v1141_v13 = vpack.c.bf16 %v12214_v37, %v12210_v63  ;;  %v1106_v8 = vmul.f32 %v12122_v33, %v1082_v48 }
 0x2e3   :  { %v10937_v9 = vpop.eup %10936  ;;  %v1085_v10 = vmul.f32 %v10935_v7, %v12087_v41  ;;  %v12239_v20 = vadd.f32 %v12126_v47, %v1107_v34 }
 0x2e4   :  { %10031 = vmatprep.mubr.msk.bf16.mxu1 %vm825_vm14, %v1141_v13  ;;  %v12228_v52 = vadd.f32 %v12126_v47, %v1106_v8  ;;  %v1084_v14 = vmul.f32 %v10937_v9, %v12090_v58 }
 0x2e5   :  { %v1109_v18 = vmul.f32 %v12122_v33, %v1085_v10  ;;  %15653 = vst [vmem:[#allocation18_spill] sm:$0xff] %v12239_v20 }
 0x2e6   :  { %15652 = vst [vmem:[#allocation17_spill] sm:$0xff] %v12228_v52  ;;  %v1142_v36 = vpack.c.bf16 %v12228_v52, %v12225_v11  ;;  %v1108_v17 = vmul.f32 %v12122_v33, %v1084_v14 }
 0x2e7   :  { %v10939_v49 = vpop.eup %10938  ;;  %v12248_v22 = vadd.f32 %v12126_v47, %v1109_v18 }
 0x2e8   :  { %v1086_v41 = vmul.f32 %v10939_v49, %v12099_v4  ;;  %10032 = vmatmul.mubr.msk.bf16.gmra.mrb[12].mxu1 %vm825_vm14, %v1142_v36  ;;  %v12242_v21 = vadd.f32 %v12126_v47, %v1108_v17 }
 0x2e9   :  { %15655 = vst [vmem:[#allocation20_spill] sm:$0xff] %v12248_v22 }
 0x2ea   :  { %15654 = vst [vmem:[#allocation19_spill] sm:$0xff] %v12242_v21  ;;  %v1110_v58 = vmul.f32 %v12122_v33, %v1086_v41  ;;  %v1143_v19 = vpack.c.bf16 %v12242_v21, %v12239_v20  ;;  %v9369_v33 = vld [vmem:[%s15569_s6] ss:$0 sm:$0xff] }
 0x2ec   :  { %v12251_v4 = vadd.f32 %v12126_v47, %v1110_v58  ;;  %10035 = vmatprep.mubr.msk.bf16.mxu1 %vm825_vm14, %v1143_v19 }
 0x2ee   :  { %15656 = vst [vmem:[#allocation21_spill] sm:$0xff] %v12251_v4  ;;  %v1144_v23 = vpack.c.bf16 %v12251_v4, %v12248_v22 }
 0x2f0   :  { %10036 = vmatmul.mubr.msk.bf16.gmra.mrb[16].mxu1 %vm825_vm14, %v1144_v23 }
 0x2f1   :  { %10041 = vmatprep.mubr.msk.bf16.mxu1 %vm11486_vm8, %v15587_v60 }
 0x3a3   :  { %v10021_v53 = vpop.f32.mrb[0].mxu1 }
 0x3a4   :  { %v1232_v28 = vpop.f32.mrb[1].mxu1  ;;  %v1241_v29 = vadd.f32 %v10021_v53, %v9369_v33 }
 0x3a5   :  { %v10022_v5 = vpop.f32.mrb[2].mxu1  ;;  %v1233_v47 = vadd.f32 %v9369_v33, %v1232_v28 }
 0x3a6   :  { %v1244_v30 = vadd.f32 %v10022_v5, %v9369_v33  ;;  %v1235_v32 = vpop.f32.mrb[3].mxu1 }
 0x3a7   :  { %v1236_v57 = vadd.f32 %v9369_v33, %v1235_v32 }
 0x3a8   :  { %v12264_v40 = vpack.c.bf16 %v1244_v30, %v1241_v29 }
 0x3a9   :  { %v12266_v56 = vpack.c.bf16 %v1236_v57, %v1233_v47 }
 0x3aa   :  { %1373 = vrot.lane.b32.xlu0 %v12264_v40, %s11487_s23 }
 0x3ab   :  { %1322 = vrot.lane.b32.xlu1 %v12266_v56, %s11487_s23  ;;  %v10025_v42 = vpop.f32.mrb[4].mxu1 }
 0x3ac   :  { %v1248_v26 = vpop.f32.mrb[5].mxu1  ;;  %v1257_v46 = vadd.f32 %v10025_v42, %v9369_v33 }
 0x3ad   :  { %v10026_v43 = vpop.f32.mrb[6].mxu1  ;;  %v1249_v54 = vadd.f32 %v9369_v33, %v1248_v26 }
 0x3ae   :  { %v1260_v15 = vadd.f32 %v10026_v43, %v9369_v33  ;;  %v1251_v44 = vpop.f32.mrb[7].mxu1 }
 0x3af   :  { %v1252_v55 = vadd.f32 %v9369_v33, %v1251_v44 }
 0x3b0   :  { %v12272_v61 = vpack.c.bf16 %v1260_v15, %v1257_v46 }
 0x3b1   :  { %v12274_v35 = vpack.c.bf16 %v1252_v55, %v1249_v54 }
 0x3b3   :  { %1423 = vrot.lane.b32.xlu1 %v12274_v35, %s11487_s23  ;;  %v10029_v62 = vpop.f32.mrb[8].mxu1 }
 0x3b4   :  { %v1264_v1 = vpop.f32.mrb[9].mxu1  ;;  %v1273_v24 = vadd.f32 %v10029_v62, %v9369_v33 }
 0x3b5   :  { %v10030_v48 = vpop.f32.mrb[10].mxu1  ;;  %v1265_v13 = vadd.f32 %v9369_v33, %v1264_v1 }
 0x3b6   :  { %v1276_v2 = vadd.f32 %v10030_v48, %v9369_v33  ;;  %v1267_v7 = vpop.f32.mrb[11].mxu1 }
 0x3b7   :  { %v1268_v8 = vadd.f32 %v9369_v33, %v1267_v7  ;;  %1473 = vrot.lane.b32.xlu1 %v12272_v61, %s11487_s23 }
 0x3b8   :  { %v12280_v9 = vpack.c.bf16 %v1276_v2, %v1273_v24 }
 0x3b9   :  { %v12282_v10 = vpack.c.bf16 %v1268_v8, %v1265_v13 }
 0x3bb   :  { %1573 = vrot.lane.b32.xlu1 %v12280_v9, %s11487_s23  ;;  %1523 = vrot.lane.b32.xlu0 %v12282_v10, %s11487_s23  ;;  %v10033_v14 = vpop.f32.mrb[12].mxu1 }
 0x3bc   :  { %v1280_v34 = vpop.f32.mrb[13].mxu1  ;;  %v1289_v36 = vadd.f32 %v10033_v14, %v9369_v33 }
 0x3bd   :  { %v10034_v49 = vpop.f32.mrb[14].mxu1  ;;  %v1281_v18 = vadd.f32 %v9369_v33, %v1280_v34 }
 0x3be   :  { %v1292_v17 = vadd.f32 %v10034_v49, %v9369_v33  ;;  %v1283_v41 = vpop.f32.mrb[15].mxu1 }
 0x3bf   :  { %v1284_v58 = vadd.f32 %v9369_v33, %v1283_v41 }
 0x3c0   :  { %v12288_v19 = vpack.c.bf16 %v1292_v17, %v1289_v36 }
 0x3c1   :  { %v12290_v23 = vpack.c.bf16 %v1284_v58, %v1281_v18 }
 0x3c2   :  { %1673 = vrot.lane.b32.xlu1 %v12288_v19, %s11487_s23 }
 0x3c3   :  { %1623 = vrot.lane.b32.xlu0 %v12290_v23, %s11487_s23  ;;  %v10037_v53 = vpop.f32.mrb[16].mxu1 }
 0x3c4   :  { %v1296_v28 = vpop.f32.mrb[17].mxu1  ;;  %v1305_v29 = vadd.f32 %v10037_v53, %v9369_v33 }
 0x3c5   :  { %v10038_v5 = vpop.f32.mrb[18].mxu1  ;;  %v1297_v47 = vadd.f32 %v9369_v33, %v1296_v28 }
 0x3c6   :  { %v1308_v30 = vadd.f32 %v10038_v5, %v9369_v33  ;;  %v1299_v32 = vpop.f32.mrb[19].mxu1 }
 0x3c7   :  { %v1300_v57 = vadd.f32 %v9369_v33, %v1299_v32 }
 0x3c8   :  { %v12296_v42 = vpack.c.bf16 %v1308_v30, %v1305_v29 }
 0x3c9   :  { %v12298_v26 = vpack.c.bf16 %v1300_v57, %v1297_v47 }
 0x3ca   :  { %1773 = vrot.lane.b32.xlu1 %v12296_v42, %s11487_s23 }
 0x3cb   :  { %1723 = vrot.lane.b32.xlu0 %v12298_v26, %s11487_s23 }
 0x3ce   :  { %2052 = vrot.lane.b32.xlu1 %v12266_v56, %s11488_s27 }
 0x3cf   :  { %2099 = vrot.lane.b32.xlu0 %v12264_v40, %s11488_s27 }
 0x3d2   :  { %2146 = vrot.lane.b32.xlu1 %v12274_v35, %s11488_s27 }
 0x3d3   :  { %2193 = vrot.lane.b32.xlu0 %v12272_v61, %s11488_s27 }
 0x3d6   :  { %2240 = vrot.lane.b32.xlu1 %v12282_v10, %s11488_s27 }
 0x3da   :  { %2287 = vrot.lane.b32.xlu1 %v12280_v9, %s11488_s27 }
 0x41c   :  { %v1374_v46 = vpop.permute.xlu0 %1373 }
 0x41d   :  { %v1323_v33 = vpop.permute.xlu1 %1322  ;;  %v1379_v15 = vsel %vm1324_vm15, %v1374_v46, 0 }
 0x41e   :  { %v1329_v43 = vsel %vm1324_vm15, %v1323_v33, 0 }
 0x41f   :  { %10040 = vmatpush3.bf16.xpose.msra.mxu1 %v1329_v43 }
 0x420   :  { %10045 = vmatprep.subr.bf16.mxu1 %v15587_v60 }
 0x425   :  { %v1424_v44 = vpop.permute.xlu1 %1423 }
 0x426   :  { %10042 = vmatmul.mubr.msk.bf16.vlgmr.msra.gmra.mrb[20].mxu1 %vm1324_vm15, %v12266_v56  ;;  %v1429_v54 = vsel %vm1324_vm15, %v1424_v44, 0 }
 0x427   :  { %10046 = vmatpush3.bf16.xpose.msra.mxu1 %v1379_v15  ;;  %10047 = vmatprep.mubr.msk.bf16.mxu1 %vm11486_vm8, %v15587_v60 }
 0x428   :  { %10051 = vmatprep.subr.bf16.mxu1 %v15587_v60 }
 0x429   :  { %v1474_v62 = vpop.permute.xlu1 %1473 }
 0x42a   :  { %v1479_v48 = vsel %vm1324_vm15, %v1474_v62, 0 }
 0x42d   :  { %v1524_v55 = vpop.permute.xlu0 %1523  ;;  %v1574_v2 = vpop.permute.xlu1 %1573 }
 0x42e   :  { %10048 = vmatmul.mubr.msk.bf16.vlgmr.msra.gmra.mrb[24].mxu1 %vm1324_vm15, %v12264_v40  ;;  %v1529_v8 = vsel %vm1324_vm15, %v1524_v55, 0  ;;  %v1579_v49 = vsel %vm1324_vm15, %v1574_v2, 0 }
 0x42f   :  { %10052 = vmatpush3.bf16.xpose.msra.mxu1 %v1429_v54  ;;  %10053 = vmatprep.mubr.msk.bf16.mxu1 %vm11486_vm8, %v15587_v60 }
 0x430   :  { %10057 = vmatprep.subr.bf16.mxu1 %v15587_v60 }
 0x434   :  { %v1674_v7 = vpop.permute.xlu1 %1673 }
 0x435   :  { %v1624_v1 = vpop.permute.xlu0 %1623  ;;  %v1679_v17 = vsel %vm1324_vm15, %v1674_v7, 0 }
 0x436   :  { %v1629_v24 = vsel %vm1324_vm15, %v1624_v1, 0  ;;  %10054 = vmatmul.mubr.msk.bf16.vlgmr.msra.gmra.mrb[28].mxu1 %vm1324_vm15, %v12274_v35 }
 0x437   :  { %10058 = vmatpush3.bf16.xpose.msra.mxu1 %v1479_v48  ;;  %10076 = vmatpush3.bf16.xpose.msra.mxu0 %v1629_v24 }
 0x438   :  { %10059 = vmatprep.mubr.msk.bf16.mxu1 %vm11486_vm8, %v15587_v60  ;;  %10063 = vmatprep.subr.bf16.mxu1 %v15587_v60 }
 0x439   :  { %10087 = vmatprep.subr.bf16.mxu0 %v15587_v60 }
 0x43c   :  { %v1774_v34 = vpop.permute.xlu1 %1773 }
 0x43d   :  { %v1724_v13 = vpop.permute.xlu0 %1723  ;;  %v1779_v41 = vsel %vm1324_vm15, %v1774_v34, 0 }
 0x43e   :  { %v1729_v14 = vsel %vm1324_vm15, %v1724_v13, 0  ;;  %10060 = vmatmul.mubr.msk.bf16.vlgmr.msra.gmra.mrb[32].mxu1 %vm1324_vm15, %v12272_v61  ;;  %10078 = vmatmul.mubr.msk.bf16.vlgmr.msra.gmra.mrb[20].mxu0 %vm1324_vm15, %v12290_v23 }
 0x43f   :  { %10064 = vmatpush3.bf16.xpose.msra.mxu1 %v1529_v8  ;;  %10088 = vmatpush3.bf16.xpose.msra.mxu0 %v1729_v14 }
 0x440   :  { %10065 = vmatprep.mubr.msk.bf16.mxu1 %vm11486_vm8, %v15587_v60  ;;  %10089 = vmatprep.mubr.msk.bf16.mxu0 %vm11486_vm8, %v15587_v60  ;;  %v2053_v36 = vpop.permute.xlu1 %2052 }
 0x441   :  { %10069 = vmatprep.subr.bf16.mxu1 %v15587_v60  ;;  %10099 = vmatprep.subr.bf16.mxu0 %v15587_v60  ;;  %v2100_v18 = vpop.permute.xlu0 %2099 }
 0x446   :  { %10066 = vmatmul.mubr.msk.bf16.vlgmr.msra.gmra.mrb[36].mxu1 %vm1324_vm15, %v12282_v10  ;;  %10090 = vmatmul.mubr.msk.bf16.vlgmr.msra.gmra.mrb[24].mxu0 %vm1324_vm15, %v12298_v26 }
 0x447   :  { %10070 = vmatpush3.bf16.xpose.msra.mxu1 %v1579_v49  ;;  %10100 = vmatpush3.bf16.msra.mxu0 %v2053_v36 }
 0x448   :  { %10071 = vmatprep.mubr.msk.bf16.mxu1 %vm11486_vm8, %v15587_v60  ;;  %10081 = vmatprep.subr.bf16.mxu1 %v15587_v60 }
 0x449   :  { %10101 = vmatprep.mubr.msk.bf16.mxu0 %vm11486_vm8, %v15587_v60  ;;  %10111 = vmatprep.subr.bf16.mxu0 %v15587_v60 }
 0x44e   :  { %10072 = vmatmul.mubr.msk.bf16.vlgmr.msra.gmra.mrb[40].mxu1 %vm1324_vm15, %v12280_v9 }
 0x44f   :  { %10082 = vmatpush3.bf16.xpose.msra.mxu1 %v1679_v17  ;;  %10083 = vmatprep.mubr.msk.bf16.mxu1 %vm11486_vm8, %v15587_v60 }
 0x450   :  { %10093 = vmatprep.subr.bf16.mxu1 %v15587_v60 }
 0x456   :  { %10084 = vmatmul.mubr.msk.bf16.vlgmr.msra.gmra.mrb[44].mxu1 %vm1324_vm15, %v12288_v19 }
 0x457   :  { %10094 = vmatpush3.bf16.xpose.msra.mxu1 %v1779_v41  ;;  %10095 = vmatprep.mubr.msk.bf16.mxu1 %vm11486_vm8, %v15587_v60 }
 0x458   :  { %10105 = vmatprep.subr.bf16.mxu1 %v15587_v60 }
 0x45e   :  { %10096 = vmatmul.mubr.msk.bf16.vlgmr.msra.gmra.mrb[48].mxu1 %vm1324_vm15, %v12296_v42 }
 0x45f   :  { %10106 = vmatpush3.bf16.msra.mxu1 %v2100_v18  ;;  %10107 = vmatprep.mubr.msk.bf16.mxu1 %vm11486_vm8, %v15587_v60 }
 0x460   :  { %10117 = vmatprep.subr.bf16.mxu1 %v15587_v60 }
 0x4f9   :  { %v12378_v58 = vpop.f32.mrb[20].mxu1 }
 0x4fa   :  { %v10043_v53 = vpop.f32.mrb[21].mxu1  ;;  %v1822_v28 = vsel %vm1324_vm15, %v12378_v58, -inf }
 0x4fb   :  { %v12382_v5 = vpop.f32.mrb[22].mxu1  ;;  %1823 = vmax.xlane.f32.xlu0 %v1822_v28 }
 0x4fc   :  { %v10044_v29 = vpop.f32.mrb[23].mxu1  ;;  %v1825_v30 = vsel %vm1324_vm15, %v12382_v5, -inf }
 0x4fd   :  { %1826 = vmax.xlane.f32.xlu1 %v1825_v30 }
 0x501   :  { %v12386_v32 = vpop.f32.mrb[24].mxu1 }
 0x502   :  { %v10049_v47 = vpop.f32.mrb[25].mxu1  ;;  %v1828_v57 = vsel %vm1324_vm15, %v12386_v32, -inf }
 0x503   :  { %1829 = vmax.xlane.f32.xlu0 %v1828_v57  ;;  %v12390_v33 = vpop.f32.mrb[26].mxu1 }
 0x504   :  { %v10050_v43 = vpop.f32.mrb[27].mxu1  ;;  %v1831_v46 = vsel %vm1324_vm15, %v12390_v33, -inf }
 0x507   :  { %1832 = vmax.xlane.f32.xlu0 %v1831_v46 }
 0x509   :  { %v12394_v15 = vpop.f32.mrb[28].mxu1 }
 0x50a   :  { %v10055_v44 = vpop.f32.mrb[29].mxu1  ;;  %v1834_v54 = vsel %vm1324_vm15, %v12394_v15, -inf }
 0x50b   :  { %1835 = vmax.xlane.f32.xlu1 %v1834_v54  ;;  %v12398_v55 = vpop.f32.mrb[30].mxu1 }
 0x50c   :  { %v10056_v62 = vpop.f32.mrb[31].mxu1  ;;  %v1837_v1 = vsel %vm1324_vm15, %v12398_v55, -inf }
 0x50d   :  { %1838 = vmax.xlane.f32.xlu0 %v1837_v1 }
 0x511   :  { %v12402_v48 = vpop.f32.mrb[32].mxu1  ;;  %v12404_v24 = vpop.f32.mrb[20].mxu0 }
 0x512   :  { %v10061_v2 = vpop.f32.mrb[33].mxu1  ;;  %v10079_v7 = vpop.f32.mrb[21].mxu0  ;;  %v1840_v13 = vsel %vm1324_vm15, %v12402_v48, -inf  ;;  %v1858_v17 = vsel %vm1324_vm15, %v12404_v24, -inf }
 0x513   :  { %1841 = vmax.xlane.f32.xlu1 %v1840_v13  ;;  %v12408_v8 = vpop.f32.mrb[34].mxu1  ;;  %v12410_v14 = vpop.f32.mrb[22].mxu0 }
 0x514   :  { %v10062_v34 = vpop.f32.mrb[35].mxu1  ;;  %v10080_v49 = vpop.f32.mrb[23].mxu0  ;;  %v1843_v36 = vsel %vm1324_vm15, %v12408_v8, -inf  ;;  %v1861_v41 = vsel %vm1324_vm15, %v12410_v14, -inf }
 0x515   :  { %1844 = vmax.xlane.f32.xlu0 %v1843_v36 }
 0x517   :  { %1859 = vmax.xlane.f32.xlu1 %v1858_v17 }
 0x519   :  { %v12418_v18 = vpop.f32.mrb[36].mxu1  ;;  %1862 = vmax.xlane.f32.xlu0 %v1861_v41  ;;  %v12420_v53 = vpop.f32.mrb[24].mxu0 }
 0x51a   :  { %v10067_v28 = vpop.f32.mrb[37].mxu1  ;;  %v10091_v29 = vpop.f32.mrb[25].mxu0  ;;  %v1846_v30 = vsel %vm1324_vm15, %v12418_v18, -inf  ;;  %v1870_v54 = vsel %vm1324_vm15, %v12420_v53, -inf }
 0x51b   :  { %v12424_v47 = vpop.f32.mrb[38].mxu1  ;;  %1847 = vmax.xlane.f32.xlu1 %v1846_v30  ;;  %v12426_v57 = vpop.f32.mrb[26].mxu0 }
 0x51c   :  { %v10068_v43 = vpop.f32.mrb[39].mxu1  ;;  %v10092_v46 = vpop.f32.mrb[27].mxu0  ;;  %v1849_v44 = vsel %vm1324_vm15, %v12424_v47, -inf  ;;  %v1873_v62 = vsel %vm1324_vm15, %v12426_v57, -inf }
 0x51d   :  { %1850 = vmax.xlane.f32.xlu0 %v1849_v44 }
 0x51f   :  { %1871 = vmax.xlane.f32.xlu1 %v1870_v54 }
 0x521   :  { %v12434_v1 = vpop.f32.mrb[40].mxu1  ;;  %1874 = vmax.xlane.f32.xlu0 %v1873_v62 }
 0x522   :  { %v10073_v2 = vpop.f32.mrb[41].mxu1  ;;  %v1852_v7 = vsel %vm1324_vm15, %v12434_v1, -inf }
 0x523   :  { %v12438_v13 = vpop.f32.mrb[42].mxu1  ;;  %1853 = vmax.xlane.f32.xlu1 %v1852_v7  ;;  %v12462_v7 = vpop.permute.xlu1 %2146 }
 0x524   :  { %v10074_v34 = vpop.f32.mrb[43].mxu1  ;;  %v1855_v49 = vsel %vm1324_vm15, %v12438_v13, -inf }
 0x525   :  { %1856 = vmax.xlane.f32.xlu0 %v1855_v49  ;;  %v12466_v49 = vpop.permute.xlu0 %2193 }
 0x527   :  { %v12464_v34 = vpop.permute.xlu1 %2240 }
 0x529   :  { %v12442_v36 = vpop.f32.mrb[44].mxu1 }
 0x52a   :  { %v10085_v17 = vpop.f32.mrb[45].mxu1  ;;  %v1864_v44 = vsel %vm1324_vm15, %v12442_v36, -inf }
 0x52b   :  { %v12444_v41 = vpop.f32.mrb[46].mxu1  ;;  %v12468_v17 = vpop.permute.xlu1 %2287 }
 0x52c   :  { %v10086_v28 = vpop.f32.mrb[47].mxu1  ;;  %v1867_v54 = vsel %vm1324_vm15, %v12444_v41, -inf }
 0x531   :  { %v12446_v29 = vpop.f32.mrb[48].mxu1 }
 0x532   :  { %v10097_v30 = vpop.f32.mrb[49].mxu1  ;;  %v1876_v62 = vsel %vm1324_vm15, %v12446_v29, -inf }
 0x533   :  { %v12448_v43 = vpop.f32.mrb[50].mxu1 }
 0x534   :  { %v10098_v46 = vpop.f32.mrb[51].mxu1  ;;  %2381 = vrot.lane.b32.xlu1 %v12288_v19, %s11488_s27  ;;  %v1879_v2 = vsel %vm1324_vm15, %v12448_v43, -inf }
 0x53b   :  { %2334 = vrot.lane.b32.xlu0 %v12290_v23, %s11488_s27 }
 0x558   :  { %1865 = vmax.xlane.f32.xlu1 %v1864_v44 }
 0x55a   :  { %1868 = vmax.xlane.f32.xlu0 %v1867_v54 }
 0x55c   :  { %1877 = vmax.xlane.f32.xlu1 %v1876_v62 }
 0x55e   :  { %1880 = vmax.xlane.f32.xlu0 %v1879_v2 }
 0x588   :  { %v1824_v28 = vpop.xlane.xlu0 %1823 }
 0x589   :  { %v1882_v30 = vsub.f32 %v12378_v58, %v1824_v28 }
 0x58a   :  { %v1827_v46 = vpop.xlane.xlu1 %1826 }
 0x58b   :  { %v1902_v44 = vmul.f32 1.442695, %v1882_v30  ;;  %v1883_v54 = vsub.f32 %v12382_v5, %v1827_v46 }
 0x58d   :  { %10940 = vpow2.f32 %v1902_v44  ;;  %v1904_v62 = vmul.f32 1.442695, %v1883_v54 }
 0x58f   :  { %10942 = vpow2.f32 %v1904_v62 }
 0x590   :  { %v1830_v60 = vpop.xlane.xlu0 %1829 }
 0x591   :  { %v1884_v2 = vsub.f32 %v12386_v32, %v1830_v60 }
 0x593   :  { %v1906_v31 = vmul.f32 1.442695, %v1884_v2 }
 0x594   :  { %v1833_v25 = vpop.xlane.xlu0 %1832 }
 0x595   :  { %10944 = vpow2.f32 %v1906_v31  ;;  %v1885_v4 = vsub.f32 %v12390_v33, %v1833_v25 }
 0x597   :  { %v12474_v21 = vpop.eup %10940  ;;  %v1908_v22 = vmul.f32 1.442695, %v1885_v4 }
 0x598   :  { %v1836_v20 = vpop.xlane.xlu1 %1835  ;;  %v1942_v58 = vsel %vm1324_vm15, %v12474_v21, 0.0 }
 0x599   :  { %v12478_v28 = vpop.eup %10942  ;;  %10946 = vpow2.f32 %v1908_v22  ;;  %v1886_v5 = vsub.f32 %v12394_v15, %v1836_v20  ;;  %1943 = vadd.xlane.f32.xlu1 %v1942_v58 }
 0x59a   :  { %v1839_v30 = vpop.xlane.xlu0 %1838  ;;  %v1945_v60 = vsel %vm1324_vm15, %v12478_v28, 0.0 }
 0x59b   :  { %v1910_v31 = vmul.f32 1.442695, %v1886_v5  ;;  %v1887_v25 = vsub.f32 %v12398_v55, %v1839_v30  ;;  %1946 = vadd.xlane.f32.xlu0 %v1945_v60 }
 0x59d   :  { %10948 = vpow2.f32 %v1910_v31  ;;  %v1912_v4 = vmul.f32 1.442695, %v1887_v25 }
 0x59f   :  { %v12484_v32 = vpop.eup %10944  ;;  %10950 = vpow2.f32 %v1912_v4 }
 0x5a0   :  { %v1842_v33 = vpop.xlane.xlu1 %1841  ;;  %v1948_v22 = vsel %vm1324_vm15, %v12484_v32, 0.0 }
 0x5a1   :  { %v1888_v20 = vsub.f32 %v12402_v48, %v1842_v33  ;;  %1949 = vadd.xlane.f32.xlu1 %v1948_v22 }
 0x5a2   :  { %v1845_v15 = vpop.xlane.xlu0 %1844 }
 0x5a3   :  { %v12489_v46 = vpop.eup %10946  ;;  %v1914_v44 = vmul.f32 1.442695, %v1888_v20  ;;  %v1889_v54 = vsub.f32 %v12408_v8, %v1845_v15 }
 0x5a4   :  { %v1860_v55 = vpop.xlane.xlu1 %1859  ;;  %v1951_v62 = vsel %vm1324_vm15, %v12489_v46, 0.0 }
 0x5a5   :  { %10952 = vpow2.f32 %v1914_v44  ;;  %v1916_v2 = vmul.f32 1.442695, %v1889_v54  ;;  %v1894_v58 = vsub.f32 %v12404_v24, %v1860_v55  ;;  %1952 = vadd.xlane.f32.xlu0 %v1951_v62 }
 0x5a6   :  { %v1863_v5 = vpop.xlane.xlu0 %1862 }
 0x5a7   :  { %v12495_v30 = vpop.eup %10948  ;;  %10954 = vpow2.f32 %v1916_v2  ;;  %v1926_v48 = vmul.f32 1.442695, %v1894_v58  ;;  %v1895_v60 = vsub.f32 %v12410_v14, %v1863_v5 }
 0x5a8   :  { %v1848_v31 = vpop.xlane.xlu1 %1847  ;;  %v1954_v8 = vsel %vm1324_vm15, %v12495_v30, 0.0 }
 0x5a9   :  { %v12500_v25 = vpop.eup %10950  ;;  %10956 = vpow2.f32 %v1926_v48  ;;  %v1928_v4 = vmul.f32 1.442695, %v1895_v60  ;;  %v1890_v33 = vsub.f32 %v12418_v18, %v1848_v31  ;;  %1955 = vadd.xlane.f32.xlu1 %v1954_v8 }
 0x5aa   :  { %v1851_v24 = vpop.xlane.xlu0 %1850  ;;  %v1957_v22 = vsel %vm1324_vm15, %v12500_v25, 0.0 }
 0x5ab   :  { %10958 = vpow2.f32 %v1928_v4  ;;  %v1918_v20 = vmul.f32 1.442695, %v1890_v33  ;;  %v1891_v15 = vsub.f32 %v12424_v47, %v1851_v24  ;;  %1958 = vadd.xlane.f32.xlu0 %v1957_v22 }
 0x5ac   :  { %v1872_v14 = vpop.xlane.xlu1 %1871 }
 0x5ad   :  { %10960 = vpow2.f32 %v1918_v20  ;;  %v1920_v44 = vmul.f32 1.442695, %v1891_v15  ;;  %v1898_v54 = vsub.f32 %v12420_v53, %v1872_v14 }
 0x5ae   :  { %v1875_v55 = vpop.xlane.xlu0 %1874 }
 0x5af   :  { %v12507_v62 = vpop.eup %10952  ;;  %10962 = vpow2.f32 %v1920_v44  ;;  %v1934_v18 = vmul.f32 1.442695, %v1898_v54  ;;  %v1899_v2 = vsub.f32 %v12426_v57, %v1875_v55 }
 0x5b0   :  { %v1854_v58 = vpop.xlane.xlu1 %1853  ;;  %v1960_v5 = vsel %vm1324_vm15, %v12507_v62, 0.0 }
 0x5b1   :  { %v12512_v48 = vpop.eup %10954  ;;  %10964 = vpow2.f32 %v1934_v18  ;;  %v1936_v47 = vmul.f32 1.442695, %v1899_v2  ;;  %v1892_v60 = vsub.f32 %v12434_v1, %v1854_v58  ;;  %1961 = vadd.xlane.f32.xlu1 %v1960_v5 }
 0x5b2   :  { %v1857_v31 = vpop.xlane.xlu0 %1856  ;;  %v1963_v53 = vsel %vm1324_vm15, %v12512_v48, 0.0 }
 0x5b3   :  { %v12517_v8 = vpop.eup %10956  ;;  %10966 = vpow2.f32 %v1936_v47  ;;  %v1922_v4 = vmul.f32 1.442695, %v1892_v60  ;;  %v1893_v57 = vsub.f32 %v12438_v13, %v1857_v31  ;;  %1964 = vadd.xlane.f32.xlu0 %v1963_v53 }
 0x5b4   :  { %v1978_v33 = vsel %vm1324_vm15, %v12517_v8, 0.0  ;;  %v12550_v60 = vpop.permute.xlu1 %2381 }
 0x5b5   :  { %v12522_v24 = vpop.eup %10958  ;;  %10968 = vpow2.f32 %v1922_v4  ;;  %v1924_v22 = vmul.f32 1.442695, %v1893_v57  ;;  %1979 = vadd.xlane.f32.xlu1 %v1978_v33 }
 0x5b6   :  { %v1981_v1 = vsel %vm1324_vm15, %v12522_v24, 0.0  ;;  %v12552_v31 = vpop.permute.xlu0 %2334 }
 0x5b7   :  { %v12526_v20 = vpop.eup %10960  ;;  %10970 = vpow2.f32 %v1924_v22  ;;  %1982 = vadd.xlane.f32.xlu0 %v1981_v1 }
 0x5b8   :  { %v1966_v15 = vsel %vm1324_vm15, %v12526_v20, 0.0 }
 0x5b9   :  { %v12530_v13 = vpop.eup %10962  ;;  %1967 = vadd.xlane.f32.xlu1 %v1966_v15 }
 0x5ba   :  { %v1969_v14 = vsel %vm1324_vm15, %v12530_v13, 0.0 }
 0x5bb   :  { %v12534_v44 = vpop.eup %10964  ;;  %1970 = vadd.xlane.f32.xlu0 %v1969_v14 }
 0x5bc   :  { %v1990_v54 = vsel %vm1324_vm15, %v12534_v44, 0.0 }
 0x5bd   :  { %v12538_v55 = vpop.eup %10966  ;;  %1991 = vadd.xlane.f32.xlu1 %v1990_v54 }
 0x5be   :  { %v1993_v18 = vsel %vm1324_vm15, %v12538_v55, 0.0 }
 0x5bf   :  { %v12542_v2 = vpop.eup %10968  ;;  %1994 = vadd.xlane.f32.xlu0 %v1993_v18 }
 0x5c0   :  { %v1972_v58 = vsel %vm1324_vm15, %v12542_v2, 0.0 }
 0x5c1   :  { %v12546_v5 = vpop.eup %10970  ;;  %1973 = vadd.xlane.f32.xlu1 %v1972_v58 }
 0x5c2   :  { %v1975_v47 = vsel %vm1324_vm15, %v12546_v5, 0.0 }
 0x5c3   :  { %1976 = vadd.xlane.f32.xlu0 %v1975_v47 }
 0x5e5   :  { %v1866_v53 = vpop.xlane.xlu1 %1865 }
 0x5e6   :  { %v1896_v4 = vsub.f32 %v12442_v36, %v1866_v53 }
 0x5e7   :  { %v1869_v57 = vpop.xlane.xlu0 %1868 }
 0x5e8   :  { %v1930_v33 = vmul.f32 1.442695, %v1896_v4  ;;  %v1897_v22 = vsub.f32 %v12444_v41, %v1869_v57 }
 0x5e9   :  { %v1878_v36 = vpop.xlane.xlu1 %1877 }
 0x5ea   :  { %10972 = vpow2.f32 %v1930_v33  ;;  %v1932_v1 = vmul.f32 1.442695, %v1897_v22  ;;  %v1900_v58 = vsub.f32 %v12446_v29, %v1878_v36 }
 0x5eb   :  { %v1881_v41 = vpop.xlane.xlu0 %1880 }
 0x5ec   :  { %10974 = vpow2.f32 %v1932_v1  ;;  %v1901_v47 = vsub.f32 %v12448_v43, %v1881_v41  ;;  %v1938_v53 = vmul.f32 1.442695, %v1900_v58 }
 0x5ee   :  { %v1940_v4 = vmul.f32 1.442695, %v1901_v47  ;;  %10976 = vpow2.f32 %v1938_v53 }
 0x5f0   :  { %10978 = vpow2.f32 %v1940_v4 }
 0x5f4   :  { %v12556_v15 = vpop.eup %10972 }
 0x5f5   :  { %v1984_v14 = vsel %vm1324_vm15, %v12556_v15, 0.0 }
 0x5f6   :  { %v12560_v54 = vpop.eup %10974  ;;  %1985 = vadd.xlane.f32.xlu1 %v1984_v14 }
 0x5f7   :  { %v1987_v18 = vsel %vm1324_vm15, %v12560_v54, 0.0 }
 0x5f8   :  { %1988 = vadd.xlane.f32.xlu0 %v1987_v18  ;;  %v12570_v33 = vpop.eup %10976 }
 0x5f9   :  { %v1996_v14 = vsel %vm1324_vm15, %v12570_v33, 0.0 }
 0x5fa   :  { %v12572_v1 = vpop.eup %10978 }
 0x5fb   :  { %v1999_v29 = vsel %vm1324_vm15, %v12572_v1, 0.0 }
 0x607   :  { %2475 = vrot.lane.b32.xlu1 %v12296_v42, %s11488_s27 }
 0x60e   :  { %2428 = vrot.lane.b32.xlu0 %v12298_v26, %s11488_s27 }
 0x626   :  { %v1944_v57 = vpop.xlane.xlu1 %1943 }
 0x627   :  { %10980 = vrcp.f32 %v1944_v57 }
 0x628   :  { %v1947_v22 = vpop.xlane.xlu0 %1946 }
 0x629   :  { %10982 = vrcp.f32 %v1947_v22  ;;  %v15657_v22 = vmov 0.0  }
 0x62b   :  { %1997 = vadd.xlane.f32.xlu1 %v1996_v14 }
 0x62d   :  { %2000 = vadd.xlane.f32.xlu0 %v1999_v29 }
 0x62e   :  { %v1950_v43 = vpop.xlane.xlu1 %1949 }
 0x62f   :  { %10984 = vrcp.f32 %v1950_v43 }
 0x631   :  { %v10981_v18 = vpop.eup %10980 }
 0x632   :  { %v1953_v36 = vpop.xlane.xlu0 %1952  ;;  %v2022_v58 = vmul.f32 %v10981_v18, %v12474_v21 }
 0x633   :  { %v10983_v41 = vpop.eup %10982  ;;  %10986 = vrcp.f32 %v1953_v36 }
 0x634   :  { %v2023_v47 = vmul.f32 %v10983_v41, %v12478_v28 }
 0x636   :  { %v1956_v53 = vpop.xlane.xlu1 %1955  ;;  %v2042_v4 = vpack.c.bf16 %v2023_v47, %v2022_v58 }
 0x637   :  { %10988 = vrcp.f32 %v1956_v53 }
 0x638   :  { %10102 = vmatmul.mubr.msk.bf16.vlgmr.msra.gmra.mrb[28].mxu0 %vm1324_vm15, %v2042_v4  ;;  %v1959_v57 = vpop.xlane.xlu0 %1958 }
 0x639   :  { %10112 = vmatpush3.bf16.msra.mxu0 %v12462_v7  ;;  %10990 = vrcp.f32 %v1959_v57  ;;  %10113 = vmatprep.mubr.msk.bf16.mxu0 %vm11486_vm8, %v15657_v22  ;;  %v10985_v14 = vpop.eup %10984 }
 0x63a   :  { %10123 = vmatprep.subr.bf16.mxu0 %v15657_v22  ;;  %v2024_v28 = vmul.f32 %v10985_v14, %v12484_v32 }
 0x63c   :  { %2575 = vrot.lane.b32.xlu1 %v12264_v40, %s11489_s26 }
 0x63d   :  { %v10987_v21 = vpop.eup %10986 }
 0x63e   :  { %v2025_v29 = vmul.f32 %v10987_v21, %v12489_v46  ;;  %v1962_v43 = vpop.xlane.xlu1 %1961 }
 0x63f   :  { %10992 = vrcp.f32 %v1962_v43 }
 0x640   :  { %2626 = vrot.lane.b32.xlu1 %v12274_v35, %s11489_s26  ;;  %v1965_v7 = vpop.xlane.xlu0 %1964  ;;  %v2043_v18 = vpack.c.bf16 %v2025_v29, %v2024_v28 }
 0x641   :  { %v10989_v36 = vpop.eup %10988  ;;  %10994 = vrcp.f32 %v1965_v7 }
 0x642   :  { %v1980_v41 = vpop.xlane.xlu1 %1979  ;;  %10108 = vmatmul.mubr.msk.bf16.vlgmr.msra.gmra.mrb[52].mxu1 %vm1324_vm15, %v2043_v18  ;;  %v2026_v32 = vmul.f32 %v10989_v36, %v12495_v30 }
 0x643   :  { %v10991_v58 = vpop.eup %10990  ;;  %10118 = vmatpush3.bf16.msra.mxu1 %v12466_v49  ;;  %2524 = vrot.lane.b32.xlu0 %v12266_v56, %s11489_s26 }
 0x644   :  { %v2027_v46 = vmul.f32 %v10991_v58, %v12500_v25  ;;  %2677 = vrot.lane.b32.xlu1 %v12272_v61, %s11489_s26  ;;  %v1983_v47 = vpop.xlane.xlu0 %1982  ;;  %10119 = vmatprep.mubr.msk.bf16.mxu1 %vm11486_vm8, %v15657_v22 }
 0x645   :  { %10129 = vmatprep.subr.bf16.mxu1 %v15657_v22 }
 0x646   :  { %v1968_v53 = vpop.xlane.xlu1 %1967  ;;  %v2044_v4 = vpack.c.bf16 %v2027_v46, %v2026_v32 }
 0x647   :  { %10996 = vrcp.f32 %v1968_v53  ;;  %2522 = vrot.lane.b32.xlu0 %v12266_v56, %s11490_s28 }
 0x648   :  { %2728 = vrot.lane.b32.xlu1 %v12282_v10, %s11489_s26  ;;  %10114 = vmatmul.mubr.msk.bf16.vlgmr.msra.gmra.mrb[32].mxu0 %vm1324_vm15, %v2044_v4  ;;  %v1971_v49 = vpop.xlane.xlu0 %1970 }
 0x649   :  { %v10993_v30 = vpop.eup %10992  ;;  %10124 = vmatpush3.bf16.msra.mxu0 %v12464_v34  ;;  %10998 = vrcp.f32 %v1971_v49  ;;  %10125 = vmatprep.mubr.msk.bf16.mxu0 %vm11486_vm8, %v15657_v22 }
 0x64a   :  { %v12610_v25 = vpop.xlane.xlu1 %1991  ;;  %10135 = vmatprep.subr.bf16.mxu0 %v15657_v22  ;;  %v2028_v14 = vmul.f32 %v10993_v30, %v12507_v62  ;;  %11000 = vrcp.f32 %v1983_v47 }
 0x64b   :  { %v10995_v57 = vpop.eup %10994  ;;  %2573 = vrot.lane.b32.xlu0 %v12264_v40, %s11490_s28 }
 0x64c   :  { %v2029_v21 = vmul.f32 %v10995_v57, %v12512_v48  ;;  %2779 = vrot.lane.b32.xlu1 %v12280_v9, %s11489_s26  ;;  %v1995_v34 = vpop.xlane.xlu0 %1994 }
 0x64e   :  { %v1974_v28 = vpop.xlane.xlu1 %1973  ;;  %v2045_v29 = vpack.c.bf16 %v2029_v21, %v2028_v14 }
 0x64f   :  { %11002 = vrcp.f32 %v1974_v28  ;;  %2624 = vrot.lane.b32.xlu0 %v12274_v35, %s11490_s28 }
 0x650   :  { %11004 = vrcp.f32 %v1980_v41  ;;  %2830 = vrot.lane.b32.xlu1 %v12290_v23, %s11489_s26  ;;  %10120 = vmatmul.mubr.msk.bf16.vlgmr.msra.gmra.mrb[56].mxu1 %vm1324_vm15, %v2045_v29  ;;  %v1977_v62 = vpop.xlane.xlu0 %1976 }
 0x651   :  { %v10997_v43 = vpop.eup %10996  ;;  %10130 = vmatpush3.bf16.msra.mxu1 %v12468_v17  ;;  %11006 = vrcp.f32 %v1977_v62  ;;  %10131 = vmatprep.mubr.msk.bf16.mxu1 %vm11486_vm8, %v15657_v22 }
 0x652   :  { %10141 = vmatprep.subr.bf16.mxu1 %v15657_v22  ;;  %v2030_v7 = vmul.f32 %v10997_v43, %v12526_v20  ;;  %11008 = vrcp.f32 %v1995_v34 }
 0x653   :  { %v10999_v48 = vpop.eup %10998  ;;  %2675 = vrot.lane.b32.xlu0 %v12272_v61, %s11490_s28  ;;  %11010 = vrcp.f32 %v12610_v25 }
 0x654   :  { %v2031_v18 = vmul.f32 %v10999_v48, %v12530_v13  ;;  %2881 = vrot.lane.b32.xlu1 %v12288_v19, %s11489_s26  ;;  %v11001_v17 = vpop.eup %11000 }
 0x655   :  { %v2035_v58 = vmul.f32 %v11001_v17, %v12522_v24 }
 0x656   :  { %v2046_v36 = vpack.c.bf16 %v2031_v18, %v2030_v7 }
 0x657   :  { %2726 = vrot.lane.b32.xlu0 %v12282_v10, %s11490_s28 }
 0x658   :  { %2932 = vrot.lane.b32.xlu1 %v12298_v26, %s11489_s26  ;;  %10126 = vmatmul.mubr.msk.bf16.vlgmr.msra.gmra.mrb[36].mxu0 %vm1324_vm15, %v2046_v36 }
 0x659   :  { %v11003_v41 = vpop.eup %11002  ;;  %10136 = vmatpush3.bf16.msra.mxu0 %v12552_v31  ;;  %10137 = vmatprep.mubr.msk.bf16.mxu0 %vm11486_vm8, %v15657_v22 }
 0x65a   :  { %v11005_v20 = vpop.eup %11004  ;;  %10147 = vmatprep.subr.bf16.mxu0 %v15657_v22  ;;  %v2032_v32 = vmul.f32 %v11003_v41, %v12542_v2 }
 0x65b   :  { %v11007_v13 = vpop.eup %11006  ;;  %2777 = vrot.lane.b32.xlu0 %v12280_v9, %s11490_s28  ;;  %v2034_v31 = vmul.f32 %v11005_v20, %v12517_v8 }
 0x65c   :  { %v2033_v46 = vmul.f32 %v11007_v13, %v12546_v5  ;;  %2983 = vrot.lane.b32.xlu1 %v12296_v42, %s11489_s26  ;;  %v11009_v8 = vpop.eup %11008 }
 0x65d   :  { %v2048_v53 = vpack.c.bf16 %v2035_v58, %v2034_v31 }
 0x65e   :  { %v2047_v47 = vpack.c.bf16 %v2033_v46, %v2032_v32 }
 0x65f   :  { %2828 = vrot.lane.b32.xlu0 %v12290_v23, %s11490_s28 }
 0x660   :  { %2981 = vrot.lane.b32.xlu1 %v12296_v42, %s11490_s28  ;;  %10132 = vmatmul.mubr.msk.bf16.vlgmr.msra.gmra.mrb[60].mxu1 %vm1324_vm15, %v2047_v47 }
 0x661   :  { %10138 = vmatmul.mubr.msk.bf16.vlgmr.msra.gmra.mrb[40].mxu0 %vm1324_vm15, %v2048_v53  ;;  %10142 = vmatpush3.bf16.msra.mxu1 %v12550_v60 }
 0x662   :  { %10149 = vmatprep.mubr.msk.bf16.mxu0 %vm11486_vm8, %v15657_v22  ;;  %10143 = vmatprep.mubr.msk.bf16.mxu1 %vm11486_vm8, %v15657_v22 }
 0x663   :  { %2879 = vrot.lane.b32.xlu0 %v12288_v19, %s11490_s28  ;;  %10153 = vmatprep.subr.bf16.mxu1 %v15657_v22 }
 0x664   :  { %3262 = vrot.lane.b32.xlu1 %v12266_v56, %s11491_s29 }
 0x667   :  { %2930 = vrot.lane.b32.xlu0 %v12298_v26, %s11490_s28 }
 0x668   :  { %3356 = vrot.lane.b32.xlu1 %v12274_v35, %s11491_s29  ;;  %v11011_v35 = vpop.eup %11010 }
 0x669   :  { %v2038_v2 = vmul.f32 %v11011_v35, %v12534_v44 }
 0x66b   :  { %3309 = vrot.lane.b32.xlu0 %v12264_v40, %s11491_s29  ;;  %v2039_v40 = vmul.f32 %v11009_v8, %v12538_v55 }
 0x66c   :  { %3450 = vrot.lane.b32.xlu1 %v12282_v10, %s11491_s29 }
 0x66d   :  { %v2050_v5 = vpack.c.bf16 %v2039_v40, %v2038_v2 }
 0x66f   :  { %3403 = vrot.lane.b32.xlu0 %v12272_v61, %s11491_s29 }
 0x670   :  { %3497 = vrot.lane.b32.xlu1 %v12280_v9, %s11491_s29 }
 0x683   :  { %v1986_v56 = vpop.xlane.xlu1 %1985 }
 0x684   :  { %11012 = vrcp.f32 %v1986_v56 }
 0x685   :  { %v1989_v24 = vpop.xlane.xlu0 %1988 }
 0x686   :  { %11014 = vrcp.f32 %v1989_v24 }
 0x687   :  { %v2476_v55 = vpop.permute.xlu1 %2475 }
 0x689   :  { %v2429_v10 = vpop.permute.xlu0 %2428 }
 0x68a   :  { %10148 = vmatpush3.bf16.msra.mxu0 %v2429_v10 }
 0x68b   :  { %10159 = vmatprep.subr.bf16.mxu0 %v15657_v22 }
 0x68d   :  { %10150 = vmatmul.mubr.msk.bf16.vlgmr.msra.gmra.mrb[44].mxu0 %vm1324_vm15, %v2050_v5 }
 0x68e   :  { %v11013_v61 = vpop.eup %11012  ;;  %10161 = vmatprep.mubr.msk.bf16.mxu0 %vm11486_vm8, %v15657_v22 }
 0x68f   :  { %v2036_v60 = vmul.f32 %v11013_v61, %v12556_v15 }
 0x690   :  { %v11015_v9 = vpop.eup %11014 }
 0x691   :  { %v2037_v4 = vmul.f32 %v11015_v9, %v12560_v54 }
 0x693   :  { %v2049_v49 = vpack.c.bf16 %v2037_v4, %v2036_v60 }
 0x695   :  { %10144 = vmatmul.mubr.msk.bf16.vlgmr.msra.gmra.mrb[64].mxu1 %vm1324_vm15, %v2049_v49 }
 0x696   :  { %10154 = vmatpush3.bf16.msra.mxu1 %v2476_v55  ;;  %10155 = vmatprep.mubr.msk.bf16.mxu1 %vm11486_vm8, %v15657_v22 }
 0x697   :  { %10165 = vmatprep.subr.bf16.mxu1 %v15657_v22 }
 0x6b8   :  { %v1998_v44 = vpop.xlane.xlu1 %1997 }
 0x6b9   :  { %11016 = vrcp.f32 %v1998_v44 }
 0x6ba   :  { %v2001_v30 = vpop.xlane.xlu0 %2000 }
 0x6bb   :  { %11018 = vrcp.f32 %v2001_v30 }
 0x6bc   :  { %v2576_v25 = vpop.permute.xlu1 %2575 }
 0x6bd   :  { %v2581_v36 = vsel %vm1324_vm15, %v2576_v25, 0 }
 0x6be   :  { %v2525_v57 = vpop.permute.xlu0 %2524 }
 0x6bf   :  { %v2530_v15 = vsel %vm1324_vm15, %v2525_v57, 0 }
 0x6c0   :  { %v2627_v14 = vpop.permute.xlu1 %2626  ;;  %10160 = vmatpush3.bf16.xpose.msra.mxu0 %v2530_v15 }
 0x6c1   :  { %10171 = vmatprep.subr.bf16.mxu0 %v15657_v22  ;;  %v2632_v48 = vsel %vm1324_vm15, %v2627_v14, 0 }
 0x6c2   :  { %v2523_v54 = vpop.permute.xlu0 %2522 }
 0x6c3   :  { %v11017_v21 = vpop.eup %11016 }
 0x6c4   :  { %v2678_v34 = vpop.permute.xlu1 %2677  ;;  %v2040_v29 = vmul.f32 %v11017_v21, %v12570_v33 }
 0x6c5   :  { %v11019_v28 = vpop.eup %11018  ;;  %v2683_v13 = vsel %vm1324_vm15, %v2678_v34, 0 }
 0x6c6   :  { %v2041_v62 = vmul.f32 %v11019_v28, %v12572_v1  ;;  %v2574_v43 = vpop.permute.xlu0 %2573 }
 0x6c7   :  { %10162 = vmatmul.mubr.msk.bf16.vlgmr.msra.gmra.mrb[48].mxu0 %vm1324_vm15, %v2523_v54 }
 0x6c8   :  { %v2729_v7 = vpop.permute.xlu1 %2728  ;;  %10172 = vmatpush3.bf16.xpose.msra.mxu0 %v2632_v48  ;;  %v2051_v18 = vpack.c.bf16 %v2041_v62, %v2040_v29  ;;  %10173 = vmatprep.mubr.msk.bf16.mxu0 %vm11486_vm8, %v15657_v22 }
 0x6c9   :  { %10183 = vmatprep.subr.bf16.mxu0 %v15657_v22  ;;  %v2734_v41 = vsel %vm1324_vm15, %v2729_v7, 0 }
 0x6ca   :  { %10156 = vmatmul.mubr.msk.bf16.vlgmr.msra.gmra.mrb[68].mxu1 %vm1324_vm15, %v2051_v18  ;;  %v2625_v33 = vpop.permute.xlu0 %2624 }
 0x6cb   :  { %10166 = vmatpush3.bf16.xpose.msra.mxu1 %v2581_v36  ;;  %10167 = vmatprep.mubr.msk.bf16.mxu1 %vm11486_vm8, %v15657_v22 }
 0x6cc   :  { %v2780_v1 = vpop.permute.xlu1 %2779  ;;  %10177 = vmatprep.subr.bf16.mxu1 %v15657_v22 }
 0x6cd   :  { %v2785_v53 = vsel %vm1324_vm15, %v2780_v1, 0 }
 0x6ce   :  { %v2676_v17 = vpop.permute.xlu0 %2675 }
 0x6cf   :  { %10174 = vmatmul.mubr.msk.bf16.vlgmr.msra.gmra.mrb[52].mxu0 %vm1324_vm15, %v2625_v33 }
 0x6d0   :  { %v2831_v20 = vpop.permute.xlu1 %2830  ;;  %10184 = vmatpush3.bf16.xpose.msra.mxu0 %v2734_v41  ;;  %10185 = vmatprep.mubr.msk.bf16.mxu0 %vm11486_vm8, %v15657_v22 }
 0x6d1   :  { %10195 = vmatprep.subr.bf16.mxu0 %v15657_v22  ;;  %v2836_v31 = vsel %vm1324_vm15, %v2831_v20, 0 }
 0x6d2   :  { %10168 = vmatmul.mubr.msk.bf16.vlgmr.msra.gmra.mrb[72].mxu1 %vm1324_vm15, %v2574_v43  ;;  %v2727_v58 = vpop.permute.xlu0 %2726 }
 0x6d3   :  { %10178 = vmatpush3.bf16.xpose.msra.mxu1 %v2683_v13  ;;  %10179 = vmatprep.mubr.msk.bf16.mxu1 %vm11486_vm8, %v15657_v22 }
 0x6d4   :  { %v2882_v32 = vpop.permute.xlu1 %2881  ;;  %10189 = vmatprep.subr.bf16.mxu1 %v15657_v22 }
 0x6d5   :  { %v2887_v2 = vsel %vm1324_vm15, %v2882_v32, 0 }
 0x6d6   :  { %v2778_v46 = vpop.permute.xlu0 %2777 }
 0x6d7   :  { %10186 = vmatmul.mubr.msk.bf16.vlgmr.msra.gmra.mrb[56].mxu0 %vm1324_vm15, %v2727_v58 }
 0x6d8   :  { %v2933_v47 = vpop.permute.xlu1 %2932  ;;  %10196 = vmatpush3.bf16.xpose.msra.mxu0 %v2836_v31  ;;  %10197 = vmatprep.mubr.msk.bf16.mxu0 %vm11486_vm8, %v15657_v22 }
 0x6d9   :  { %10207 = vmatprep.subr.bf16.mxu0 %v15657_v22  ;;  %v2938_v24 = vsel %vm1324_vm15, %v2933_v47, 0 }
 0x6da   :  { %10180 = vmatmul.mubr.msk.bf16.vlgmr.msra.gmra.mrb[76].mxu1 %vm1324_vm15, %v2676_v17  ;;  %v2829_v56 = vpop.permute.xlu0 %2828 }
 0x6db   :  { %10190 = vmatpush3.bf16.xpose.msra.mxu1 %v2785_v53  ;;  %10191 = vmatprep.mubr.msk.bf16.mxu1 %vm11486_vm8, %v15657_v22 }
 0x6dc   :  { %v2984_v8 = vpop.permute.xlu1 %2983  ;;  %10201 = vmatprep.subr.bf16.mxu1 %v15657_v22 }
 0x6dd   :  { %v2989_v61 = vsel %vm1324_vm15, %v2984_v8, 0 }
 0x6de   :  { %v2880_v35 = vpop.permute.xlu0 %2879 }
 0x6df   :  { %10198 = vmatmul.mubr.msk.bf16.vlgmr.msra.gmra.mrb[60].mxu0 %vm1324_vm15, %v2829_v56 }
 0x6e0   :  { %10208 = vmatpush3.bf16.xpose.msra.mxu0 %v2938_v24  ;;  %10209 = vmatprep.mubr.msk.bf16.mxu0 %vm11486_vm8, %v15657_v22  ;;  %v2982_v40 = vpop.permute.xlu1 %2981 }
 0x6e1   :  { %10219 = vmatprep.subr.bf16.mxu0 %v15657_v22 }
 0x6e2   :  { %10192 = vmatmul.mubr.msk.bf16.vlgmr.msra.gmra.mrb[80].mxu1 %vm1324_vm15, %v2778_v46  ;;  %v2931_v10 = vpop.permute.xlu0 %2930 }
 0x6e3   :  { %10202 = vmatpush3.bf16.xpose.msra.mxu1 %v2887_v2  ;;  %10203 = vmatprep.mubr.msk.bf16.mxu1 %vm11486_vm8, %v15657_v22 }
 0x6e4   :  { %10213 = vmatprep.subr.bf16.mxu1 %v15657_v22  ;;  %v3263_v5 = vpop.permute.xlu1 %3262 }
 0x6e6   :  { %v3310_v9 = vpop.permute.xlu0 %3309 }
 0x6e7   :  { %10210 = vmatmul.mubr.msk.bf16.vlgmr.msra.gmra.mrb[64].mxu0 %vm1324_vm15, %v2931_v10 }
 0x6e8   :  { %10220 = vmatpush3.bf16.msra.mxu0 %v3263_v5  ;;  %10221 = vmatprep.mubr.msk.bf16.mxu0 %vm11486_vm8, %v15657_v22 }
 0x6e9   :  { %10231 = vmatprep.subr.bf16.mxu0 %v15657_v22 }
 0x6ea   :  { %10204 = vmatmul.mubr.msk.bf16.vlgmr.msra.gmra.mrb[84].mxu1 %vm1324_vm15, %v2880_v35 }
 0x6eb   :  { %10214 = vmatpush3.bf16.xpose.msra.mxu1 %v2989_v61  ;;  %10215 = vmatprep.mubr.msk.bf16.mxu1 %vm11486_vm8, %v15657_v22 }
 0x6ec   :  { %10225 = vmatprep.subr.bf16.mxu1 %v15657_v22 }
 0x6f2   :  { %10216 = vmatmul.mubr.msk.bf16.vlgmr.msra.gmra.mrb[88].mxu1 %vm1324_vm15, %v2982_v40 }
 0x6f3   :  { %10226 = vmatpush3.bf16.msra.mxu1 %v3310_v9  ;;  %10227 = vmatprep.mubr.msk.bf16.mxu1 %vm11486_vm8, %v15657_v22 }
 0x6f4   :  { %10237 = vmatprep.subr.bf16.mxu1 %v15657_v22 }
 0x70b   :  { %v12749_v60 = vpop.f32.mrb[28].mxu0 }
 0x70c   :  { %v10103_v4 = vpop.f32.mrb[29].mxu0 }
 0x70d   :  { %v12751_v49 = vpop.f32.mrb[30].mxu0 }
 0x70e   :  { %v10104_v55 = vpop.f32.mrb[31].mxu0 }
 0x715   :  { %v12753_v44 = vpop.f32.mrb[52].mxu1 }
 0x716   :  { %v10109_v30 = vpop.f32.mrb[53].mxu1 }
 0x717   :  { %v12755_v25 = vpop.f32.mrb[54].mxu1 }
 0x718   :  { %v10110_v57 = vpop.f32.mrb[55].mxu1 }
 0x71b   :  { %v12757_v15 = vpop.f32.mrb[32].mxu0 }
 0x71c   :  { %v10115_v14 = vpop.f32.mrb[33].mxu0 }
 0x71d   :  { %v12759_v54 = vpop.f32.mrb[34].mxu0 }
 0x71e   :  { %v10116_v21 = vpop.f32.mrb[35].mxu0 }
 0x723   :  { %v12761_v34 = vpop.f32.mrb[56].mxu1 }
 0x724   :  { %v10121_v28 = vpop.f32.mrb[57].mxu1 }
 0x725   :  { %v12763_v29 = vpop.f32.mrb[58].mxu1 }
 0x726   :  { %v10122_v62 = vpop.f32.mrb[59].mxu1 }
 0x72b   :  { %v12765_v43 = vpop.f32.mrb[36].mxu0 }
 0x72c   :  { %v10127_v48 = vpop.f32.mrb[37].mxu0 }
 0x72d   :  { %v12767_v7 = vpop.f32.mrb[38].mxu0 }
 0x72e   :  { %v10128_v18 = vpop.f32.mrb[39].mxu0 }
 0x733   :  { %v12769_v36 = vpop.f32.mrb[60].mxu1 }
 0x734   :  { %v12771_v33 = vpop.f32.mrb[40].mxu0  ;;  %v10133_v1 = vpop.f32.mrb[61].mxu1 }
 0x735   :  { %v10139_v17 = vpop.f32.mrb[41].mxu0  ;;  %v12773_v41 = vpop.f32.mrb[62].mxu1 }
 0x736   :  { %v12775_v20 = vpop.f32.mrb[42].mxu0  ;;  %v10134_v13 = vpop.f32.mrb[63].mxu1 }
 0x737   :  { %v10140_v58 = vpop.f32.mrb[43].mxu0 }
 0x760   :  { %v12777_v32 = vpop.f32.mrb[44].mxu0 }
 0x761   :  { %v10151_v46 = vpop.f32.mrb[45].mxu0 }
 0x762   :  { %v12779_v31 = vpop.f32.mrb[46].mxu0 }
 0x763   :  { %v10152_v47 = vpop.f32.mrb[47].mxu0 }
 0x768   :  { %v12781_v53 = vpop.f32.mrb[64].mxu1 }
 0x769   :  { %v10145_v56 = vpop.f32.mrb[65].mxu1 }
 0x76a   :  { %v12783_v8 = vpop.f32.mrb[66].mxu1 }
 0x76b   :  { %v10146_v24 = vpop.f32.mrb[67].mxu1 }
 0x79a   :  { %v12785_v35 = vpop.f32.mrb[48].mxu0 }
 0x79b   :  { %v10163_v40 = vpop.f32.mrb[49].mxu0  ;;  %v3032_v2 = vsel %vm1324_vm15, %v12785_v35, -inf }
 0x79c   :  { %3033 = vmax.xlane.f32.xlu0 %v3032_v2  ;;  %v12789_v10 = vpop.f32.mrb[50].mxu0 }
 0x79d   :  { %v12791_v5 = vpop.f32.mrb[68].mxu1  ;;  %v10164_v61 = vpop.f32.mrb[51].mxu0  ;;  %v3035_v9 = vsel %vm1324_vm15, %v12789_v10, -inf }
 0x79e   :  { %v10157_v4 = vpop.f32.mrb[69].mxu1  ;;  %3036 = vmax.xlane.f32.xlu1 %v3035_v9 }
 0x79f   :  { %v12795_v55 = vpop.f32.mrb[70].mxu1 }
 0x7a0   :  { %v10158_v30 = vpop.f32.mrb[71].mxu1 }
 0x7a2   :  { %v12797_v57 = vpop.f32.mrb[52].mxu0 }
 0x7a3   :  { %v10175_v14 = vpop.f32.mrb[53].mxu0  ;;  %v3044_v21 = vsel %vm1324_vm15, %v12797_v57, -inf }
 0x7a4   :  { %3045 = vmax.xlane.f32.xlu1 %v3044_v21  ;;  %v12801_v28 = vpop.f32.mrb[54].mxu0 }
 0x7a5   :  { %v12803_v62 = vpop.f32.mrb[72].mxu1  ;;  %v10176_v48 = vpop.f32.mrb[55].mxu0  ;;  %v3047_v61 = vsel %vm1324_vm15, %v12801_v28, -inf }
 0x7a6   :  { %v10169_v18 = vpop.f32.mrb[73].mxu1  ;;  %v3038_v1 = vsel %vm1324_vm15, %v12803_v62, -inf }
 0x7a7   :  { %3039 = vmax.xlane.f32.xlu0 %v3038_v1  ;;  %v12807_v17 = vpop.f32.mrb[74].mxu1 }
 0x7a8   :  { %v10170_v13 = vpop.f32.mrb[75].mxu1  ;;  %v3041_v46 = vsel %vm1324_vm15, %v12807_v17, -inf }
 0x7aa   :  { %v12809_v58 = vpop.f32.mrb[56].mxu0 }
 0x7ab   :  { %3042 = vmax.xlane.f32.xlu0 %v3041_v46  ;;  %v10187_v47 = vpop.f32.mrb[57].mxu0  ;;  %v3056_v48 = vsel %vm1324_vm15, %v12809_v58, -inf }
 0x7ac   :  { %v12813_v56 = vpop.f32.mrb[58].mxu0 }
 0x7ad   :  { %v12815_v24 = vpop.f32.mrb[76].mxu1  ;;  %v10188_v40 = vpop.f32.mrb[59].mxu0 }
 0x7ae   :  { %v10181_v2 = vpop.f32.mrb[77].mxu1  ;;  %v3050_v9 = vsel %vm1324_vm15, %v12815_v24, -inf  ;;  %v3059_v40 = vsel %vm1324_vm15, %v12813_v56, -inf }
 0x7af   :  { %3048 = vmax.xlane.f32.xlu0 %v3047_v61  ;;  %3051 = vmax.xlane.f32.xlu1 %v3050_v9  ;;  %v12821_v4 = vpop.f32.mrb[78].mxu1 }
 0x7b0   :  { %v10182_v30 = vpop.f32.mrb[79].mxu1  ;;  %v3053_v21 = vsel %vm1324_vm15, %v12821_v4, -inf }
 0x7b2   :  { %v12823_v14 = vpop.f32.mrb[60].mxu0 }
 0x7b3   :  { %3054 = vmax.xlane.f32.xlu0 %v3053_v21  ;;  %3057 = vmax.xlane.f32.xlu1 %v3056_v48  ;;  %v10199_v18 = vpop.f32.mrb[61].mxu0  ;;  %v3068_v48 = vsel %vm1324_vm15, %v12823_v14, -inf }
 0x7b4   :  { %v12829_v1 = vpop.f32.mrb[62].mxu0 }
 0x7b5   :  { %v12831_v13 = vpop.f32.mrb[80].mxu1  ;;  %v10200_v46 = vpop.f32.mrb[63].mxu0 }
 0x7b6   :  { %v10193_v47 = vpop.f32.mrb[81].mxu1  ;;  %v3062_v2 = vsel %vm1324_vm15, %v12831_v13, -inf }
 0x7b7   :  { %3060 = vmax.xlane.f32.xlu0 %v3059_v40  ;;  %3063 = vmax.xlane.f32.xlu1 %v3062_v2  ;;  %v12837_v61 = vpop.f32.mrb[82].mxu1 }
 0x7b8   :  { %v10194_v9 = vpop.f32.mrb[83].mxu1  ;;  %v3065_v21 = vsel %vm1324_vm15, %v12837_v61, -inf }
 0x7b9   :  { %v3071_v9 = vsel %vm1324_vm15, %v12829_v1, -inf }
 0x7ba   :  { %v12839_v30 = vpop.f32.mrb[64].mxu0 }
 0x7bb   :  { %3066 = vmax.xlane.f32.xlu0 %v3065_v21  ;;  %3069 = vmax.xlane.f32.xlu1 %v3068_v48  ;;  %v10211_v18 = vpop.f32.mrb[65].mxu0  ;;  %v3080_v48 = vsel %vm1324_vm15, %v12839_v30, -inf }
 0x7bc   :  { %v12845_v46 = vpop.f32.mrb[66].mxu0 }
 0x7bd   :  { %v12847_v47 = vpop.f32.mrb[84].mxu1  ;;  %v10212_v40 = vpop.f32.mrb[67].mxu0 }
 0x7be   :  { %v10205_v2 = vpop.f32.mrb[85].mxu1  ;;  %v3074_v52 = vsel %vm1324_vm15, %v12847_v47, -inf }
 0x7bf   :  { %3072 = vmax.xlane.f32.xlu0 %v3071_v9  ;;  %3075 = vmax.xlane.f32.xlu1 %v3074_v52  ;;  %v12853_v37 = vpop.f32.mrb[86].mxu1  ;;  %v3083_v52 = vsel %vm1324_vm15, %v12845_v46, -inf }
 0x7c0   :  { %v10206_v11 = vpop.f32.mrb[87].mxu1  ;;  %v3077_v21 = vsel %vm1324_vm15, %v12853_v37, -inf }
 0x7c3   :  { %3078 = vmax.xlane.f32.xlu0 %v3077_v21  ;;  %3081 = vmax.xlane.f32.xlu1 %v3080_v48  ;;  %v12873_v21 = vpop.permute.xlu1 %3356 }
 0x7c5   :  { %v12859_v18 = vpop.f32.mrb[88].mxu1 }
 0x7c6   :  { %v10217_v40 = vpop.f32.mrb[89].mxu1  ;;  %v3086_v2 = vsel %vm1324_vm15, %v12859_v18, -inf }
 0x7c7   :  { %v12865_v9 = vpop.f32.mrb[90].mxu1  ;;  %3087 = vmax.xlane.f32.xlu1 %v3086_v2  ;;  %3084 = vmax.xlane.f32.xlu0 %v3083_v52  ;;  %v12875_v48 = vpop.permute.xlu1 %3450 }
 0x7c8   :  { %v10218_v11 = vpop.f32.mrb[91].mxu1  ;;  %v3089_v63 = vsel %vm1324_vm15, %v12865_v9, -inf  ;;  %v12877_v40 = vpop.permute.xlu0 %3403 }
 0x7cb   :  { %3090 = vmax.xlane.f32.xlu0 %v3089_v63  ;;  %v12879_v51 = vpop.permute.xlu1 %3497 }
 0x7d8   :  { %3591 = vrot.lane.b32.xlu1 %v12288_v19, %s11491_s29 }
 0x7e1   :  { %3544 = vrot.lane.b32.xlu0 %v12290_v23, %s11491_s29 }
 0x829   :  { %v3034_v2 = vpop.xlane.xlu0 %3033 }
 0x82a   :  { %v3092_v52 = vsub.f32 %v12785_v35, %v3034_v2 }
 0x82b   :  { %v3037_v11 = vpop.xlane.xlu1 %3036 }
 0x82c   :  { %v3112_v39 = vmul.f32 1.442695, %v3092_v52  ;;  %v3093_v63 = vsub.f32 %v12789_v10, %v3037_v11 }
 0x82e   :  { %11020 = vpow2.f32 %v3112_v39  ;;  %v3114_v19 = vmul.f32 1.442695, %v3093_v63 }
 0x830   :  { %11022 = vpow2.f32 %v3114_v19 }
 0x831   :  { %v3046_v0 = vpop.xlane.xlu1 %3045 }
 0x832   :  { %v3096_v23 = vsub.f32 %v12797_v57, %v3046_v0 }
 0x834   :  { %v3040_v38 = vpop.xlane.xlu0 %3039  ;;  %v3120_v6 = vmul.f32 1.442695, %v3096_v23 }
 0x835   :  { %v3094_v50 = vsub.f32 %v12803_v62, %v3040_v38 }
 0x837   :  { %v3116_v16 = vmul.f32 1.442695, %v3094_v50 }
 0x838   :  { %v12885_v45 = vpop.eup %11020  ;;  %v3043_v27 = vpop.xlane.xlu0 %3042 }
 0x839   :  { %11024 = vpow2.f32 %v3116_v16  ;;  %v3095_v35 = vsub.f32 %v12807_v17, %v3043_v27  ;;  %v3152_v10 = vsel %vm1324_vm15, %v12885_v45, 0.0 }
 0x83a   :  { %v12890_v39 = vpop.eup %11022  ;;  %3153 = vadd.xlane.f32.xlu1 %v3152_v10  ;;  %11026 = vpow2.f32 %v3120_v6 }
 0x83b   :  { %v3118_v2 = vmul.f32 1.442695, %v3095_v35  ;;  %v3155_v0 = vsel %vm1324_vm15, %v12890_v39, 0.0 }
 0x83c   :  { %v3052_v38 = vpop.xlane.xlu1 %3051  ;;  %3156 = vadd.xlane.f32.xlu0 %v3155_v0  ;;  %v3049_v50 = vpop.xlane.xlu0 %3048 }
 0x83d   :  { %11028 = vpow2.f32 %v3118_v2  ;;  %v3098_v57 = vsub.f32 %v12815_v24, %v3052_v38  ;;  %v3097_v16 = vsub.f32 %v12801_v28, %v3049_v50 }
 0x83f   :  { %v3124_v27 = vmul.f32 1.442695, %v3098_v57  ;;  %v3122_v62 = vmul.f32 1.442695, %v3097_v16 }
 0x840   :  { %v3058_v17 = vpop.xlane.xlu1 %3057  ;;  %v3055_v52 = vpop.xlane.xlu0 %3054 }
 0x841   :  { %11030 = vpow2.f32 %v3124_v27  ;;  %v3100_v11 = vsub.f32 %v12809_v58, %v3058_v17  ;;  %v3099_v6 = vsub.f32 %v12821_v4, %v3055_v52 }
 0x842   :  { %11032 = vpow2.f32 %v3122_v62 }
 0x843   :  { %v12898_v63 = vpop.eup %11024  ;;  %v3128_v19 = vmul.f32 1.442695, %v3100_v11  ;;  %v3126_v23 = vmul.f32 1.442695, %v3099_v6 }
 0x844   :  { %v3064_v35 = vpop.xlane.xlu1 %3063  ;;  %v3061_v10 = vpop.xlane.xlu0 %3060  ;;  %v3158_v24 = vsel %vm1324_vm15, %v12898_v63, 0.0 }
 0x845   :  { %v12902_v28 = vpop.eup %11026  ;;  %11034 = vpow2.f32 %v3128_v19  ;;  %v3102_v2 = vsub.f32 %v12831_v13, %v3064_v35  ;;  %v3101_v0 = vsub.f32 %v12813_v56, %v3061_v10  ;;  %3159 = vadd.xlane.f32.xlu1 %v3158_v24 }
 0x846   :  { %11036 = vpow2.f32 %v3126_v23  ;;  %v3164_v16 = vsel %vm1324_vm15, %v12902_v28, 0.0 }
 0x847   :  { %v12906_v58 = vpop.eup %11028  ;;  %v3132_v4 = vmul.f32 1.442695, %v3102_v2  ;;  %v3130_v38 = vmul.f32 1.442695, %v3101_v0 }
 0x848   :  { %v3070_v50 = vpop.xlane.xlu1 %3069  ;;  %v3067_v57 = vpop.xlane.xlu0 %3066  ;;  %v3161_v27 = vsel %vm1324_vm15, %v12906_v58, 0.0 }
 0x849   :  { %11038 = vpow2.f32 %v3132_v4  ;;  %v3104_v62 = vsub.f32 %v12823_v14, %v3070_v50  ;;  %v3103_v13 = vsub.f32 %v12837_v61, %v3067_v57  ;;  %3165 = vadd.xlane.f32.xlu1 %v3164_v16  ;;  %3162 = vadd.xlane.f32.xlu0 %v3161_v27 }
 0x84a   :  { %11040 = vpow2.f32 %v3130_v38 }
 0x84b   :  { %v12914_v56 = vpop.eup %11030  ;;  %v3136_v17 = vmul.f32 1.442695, %v3104_v62  ;;  %v3134_v52 = vmul.f32 1.442695, %v3103_v13 }
 0x84c   :  { %v12916_v11 = vpop.eup %11032  ;;  %v3076_v6 = vpop.xlane.xlu1 %3075  ;;  %v3170_v23 = vsel %vm1324_vm15, %v12914_v56, 0.0 }
 0x84d   :  { %v3073_v19 = vpop.xlane.xlu0 %3072  ;;  %11042 = vpow2.f32 %v3136_v17  ;;  %v3106_v35 = vsub.f32 %v12847_v47, %v3076_v6  ;;  %3171 = vadd.xlane.f32.xlu1 %v3170_v23  ;;  %v3167_v61 = vsel %vm1324_vm15, %v12916_v11, 0.0 }
 0x84e   :  { %v3105_v14 = vsub.f32 %v12829_v1, %v3073_v19  ;;  %11044 = vpow2.f32 %v3134_v52  ;;  %3168 = vadd.xlane.f32.xlu0 %v3167_v61 }
 0x84f   :  { %v12924_v10 = vpop.eup %11034  ;;  %v3140_v24 = vmul.f32 1.442695, %v3106_v35 }
 0x850   :  { %v3138_v2 = vmul.f32 1.442695, %v3105_v14  ;;  %v12926_v0 = vpop.eup %11036  ;;  %v3082_v4 = vpop.xlane.xlu1 %3081  ;;  %v3176_v50 = vsel %vm1324_vm15, %v12924_v10, 0.0 }
 0x851   :  { %v3079_v38 = vpop.xlane.xlu0 %3078  ;;  %11046 = vpow2.f32 %v3140_v24  ;;  %v3108_v1 = vsub.f32 %v12839_v30, %v3082_v4  ;;  %3177 = vadd.xlane.f32.xlu1 %v3176_v50  ;;  %v3173_v57 = vsel %vm1324_vm15, %v12926_v0, 0.0 }
 0x852   :  { %v3107_v47 = vsub.f32 %v12853_v37, %v3079_v38  ;;  %11048 = vpow2.f32 %v3138_v2  ;;  %3174 = vadd.xlane.f32.xlu0 %v3173_v57 }
 0x853   :  { %v12934_v16 = vpop.eup %11038  ;;  %v3144_v27 = vmul.f32 1.442695, %v3108_v1 }
 0x854   :  { %v3142_v62 = vmul.f32 1.442695, %v3107_v47  ;;  %v12936_v13 = vpop.eup %11040  ;;  %v3088_v17 = vpop.xlane.xlu1 %3087  ;;  %v3182_v6 = vsel %vm1324_vm15, %v12934_v16, 0.0 }
 0x855   :  { %v3085_v52 = vpop.xlane.xlu0 %3084  ;;  %11050 = vpow2.f32 %v3144_v27  ;;  %v3110_v37 = vsub.f32 %v12859_v18, %v3088_v17  ;;  %3183 = vadd.xlane.f32.xlu1 %v3182_v6  ;;  %v3179_v19 = vsel %vm1324_vm15, %v12936_v13, 0.0 }
 0x856   :  { %v3109_v30 = vsub.f32 %v12845_v46, %v3085_v52  ;;  %11052 = vpow2.f32 %v3142_v62  ;;  %3180 = vadd.xlane.f32.xlu0 %v3179_v19 }
 0x857   :  { %v12944_v23 = vpop.eup %11042  ;;  %v3148_v35 = vmul.f32 1.442695, %v3110_v37 }
 0x858   :  { %v3146_v14 = vmul.f32 1.442695, %v3109_v30  ;;  %v12946_v61 = vpop.eup %11044  ;;  %v3188_v2 = vsel %vm1324_vm15, %v12944_v23, 0.0 }
 0x859   :  { %v3091_v24 = vpop.xlane.xlu0 %3090  ;;  %11054 = vpow2.f32 %v3148_v35  ;;  %3189 = vadd.xlane.f32.xlu1 %v3188_v2  ;;  %v3185_v46 = vsel %vm1324_vm15, %v12946_v61, 0.0  ;;  %v12985_v35 = vpop.permute.xlu1 %3591 }
 0x85a   :  { %v3111_v18 = vsub.f32 %v12865_v9, %v3091_v24  ;;  %11056 = vpow2.f32 %v3146_v14  ;;  %3186 = vadd.xlane.f32.xlu0 %v3185_v46 }
 0x85b   :  { %v12953_v4 = vpop.eup %11046 }
 0x85c   :  { %v3150_v38 = vmul.f32 1.442695, %v3111_v18  ;;  %v12955_v50 = vpop.eup %11048  ;;  %v3194_v1 = vsel %vm1324_vm15, %v12953_v4, 0.0 }
 0x85d   :  { %3195 = vadd.xlane.f32.xlu1 %v3194_v1  ;;  %v3191_v47 = vsel %vm1324_vm15, %v12955_v50, 0.0  ;;  %v12987_v14 = vpop.permute.xlu0 %3544 }
 0x85e   :  { %11058 = vpow2.f32 %v3150_v38  ;;  %3192 = vadd.xlane.f32.xlu0 %v3191_v47 }
 0x85f   :  { %v12961_v9 = vpop.eup %11050 }
 0x860   :  { %v12963_v57 = vpop.eup %11052  ;;  %v3200_v27 = vsel %vm1324_vm15, %v12961_v9, 0.0 }
 0x861   :  { %3201 = vadd.xlane.f32.xlu1 %v3200_v27  ;;  %v3197_v62 = vsel %vm1324_vm15, %v12963_v57, 0.0 }
 0x862   :  { %3198 = vadd.xlane.f32.xlu0 %v3197_v62 }
 0x863   :  { %v12969_v17 = vpop.eup %11054 }
 0x864   :  { %v12971_v52 = vpop.eup %11056  ;;  %v3206_v6 = vsel %vm1324_vm15, %v12969_v17, 0.0 }
 0x865   :  { %3207 = vadd.xlane.f32.xlu1 %v3206_v6  ;;  %v3203_v37 = vsel %vm1324_vm15, %v12971_v52, 0.0 }
 0x866   :  { %3204 = vadd.xlane.f32.xlu0 %v3203_v37 }
 0x868   :  { %v12977_v30 = vpop.eup %11058 }
 0x869   :  { %v3209_v19 = vsel %vm1324_vm15, %v12977_v30, 0.0 }
 0x86a   :  { %3210 = vadd.xlane.f32.xlu0 %v3209_v19 }
 0x876   :  { %3685 = vrot.lane.b32.xlu1 %v12296_v42, %s11491_s29 }
 0x880   :  { %3638 = vrot.lane.b32.xlu0 %v12298_v26, %s11491_s29 }
 0x8c7   :  { %v3154_v24 = vpop.xlane.xlu1 %3153 }
 0x8c8   :  { %11060 = vrcp.f32 %v3154_v24 }
 0x8c9   :  { %v3157_v2 = vpop.xlane.xlu0 %3156 }
 0x8ca   :  { %11062 = vrcp.f32 %v3157_v2 }
 0x8d2   :  { %v11061_v18 = vpop.eup %11060  ;;  %v3160_v46 = vpop.xlane.xlu1 %3159 }
 0x8d3   :  { %v3232_v1 = vmul.f32 %v11061_v18, %v12885_v45  ;;  %11064 = vrcp.f32 %v3160_v46 }
 0x8d4   :  { %v11063_v38 = vpop.eup %11062 }
 0x8d5   :  { %v3233_v47 = vmul.f32 %v11063_v38, %v12890_v39 }
 0x8d6   :  { %v3166_v42 = vpop.xlane.xlu1 %3165  ;;  %v3163_v27 = vpop.xlane.xlu0 %3162 }
 0x8d7   :  { %v3252_v62 = vpack.c.bf16 %v3233_v47, %v3232_v1  ;;  %11066 = vrcp.f32 %v3163_v27 }
 0x8d8   :  { %11068 = vrcp.f32 %v3166_v42 }
 0x8d9   :  { %10222 = vmatmul.mubr.msk.bf16.vlgmr.msra.gmra.mrb[68].mxu0 %vm1324_vm15, %v3252_v62 }
 0x8da   :  { %10232 = vmatpush3.bf16.msra.mxu0 %v12873_v21  ;;  %v3172_v26 = vpop.xlane.xlu1 %3171  ;;  %10233 = vmatprep.mubr.msk.bf16.mxu0 %vm11486_vm8, %v15657_v22 }
 0x8db   :  { %v3169_v6 = vpop.xlane.xlu0 %3168  ;;  %10243 = vmatprep.subr.bf16.mxu0 %v15657_v22 }
 0x8dc   :  { %11070 = vrcp.f32 %v3169_v6 }
 0x8dd   :  { %11072 = vrcp.f32 %v3172_v26  ;;  %v11065_v37 = vpop.eup %11064 }
 0x8de   :  { %v3178_v45 = vpop.xlane.xlu1 %3177  ;;  %v3234_v2 = vmul.f32 %v11065_v37, %v12898_v63 }
 0x8df   :  { %v3175_v39 = vpop.xlane.xlu0 %3174 }
 0x8e0   :  { %11074 = vrcp.f32 %v3175_v39 }
 0x8e1   :  { %v11067_v19 = vpop.eup %11066  ;;  %11076 = vrcp.f32 %v3178_v45 }
 0x8e2   :  { %v3184_v24 = vpop.xlane.xlu1 %3183  ;;  %v3235_v21 = vmul.f32 %v11067_v19, %v12906_v58  ;;  %v11069_v46 = vpop.eup %11068 }
 0x8e3   :  { %v3181_v18 = vpop.xlane.xlu0 %3180  ;;  %v3236_v42 = vmul.f32 %v11069_v46, %v12902_v28 }
 0x8e4   :  { %11078 = vrcp.f32 %v3181_v18  ;;  %v3253_v38 = vpack.c.bf16 %v3235_v21, %v3234_v2 }
 0x8e5   :  { %11080 = vrcp.f32 %v3184_v24 }
 0x8e6   :  { %v11071_v1 = vpop.eup %11070  ;;  %v3190_v47 = vpop.xlane.xlu1 %3189  ;;  %10228 = vmatmul.mubr.msk.bf16.vlgmr.msra.gmra.mrb[92].mxu1 %vm1324_vm15, %v3253_v38 }
 0x8e7   :  { %v3237_v27 = vmul.f32 %v11071_v1, %v12916_v11  ;;  %v3187_v62 = vpop.xlane.xlu0 %3186  ;;  %v11073_v26 = vpop.eup %11072  ;;  %10238 = vmatpush3.bf16.msra.mxu1 %v12877_v40  ;;  %10239 = vmatprep.mubr.msk.bf16.mxu1 %vm11486_vm8, %v15657_v22 }
 0x8e8   :  { %11082 = vrcp.f32 %v3187_v62  ;;  %10249 = vmatprep.subr.bf16.mxu1 %v15657_v22  ;;  %v3238_v28 = vmul.f32 %v11073_v26, %v12914_v56 }
 0x8e9   :  { %v3254_v63 = vpack.c.bf16 %v3237_v27, %v3236_v42  ;;  %11084 = vrcp.f32 %v3190_v47 }
 0x8ea   :  { %v11075_v58 = vpop.eup %11074  ;;  %v3196_v6 = vpop.xlane.xlu1 %3195 }
 0x8eb   :  { %v3239_v11 = vmul.f32 %v11075_v58, %v12926_v0  ;;  %10234 = vmatmul.mubr.msk.bf16.vlgmr.msra.gmra.mrb[72].mxu0 %vm1324_vm15, %v3254_v63  ;;  %v3193_v45 = vpop.xlane.xlu0 %3192  ;;  %v11077_v39 = vpop.eup %11076 }
 0x8ec   :  { %10244 = vmatpush3.bf16.msra.mxu0 %v12875_v48  ;;  %11086 = vrcp.f32 %v3193_v45  ;;  %10245 = vmatprep.mubr.msk.bf16.mxu0 %vm11486_vm8, %v15657_v22  ;;  %v3240_v56 = vmul.f32 %v11077_v39, %v12924_v10 }
 0x8ed   :  { %v3255_v40 = vpack.c.bf16 %v3239_v11, %v3238_v28  ;;  %10255 = vmatprep.subr.bf16.mxu0 %v15657_v22  ;;  %11088 = vrcp.f32 %v3196_v6 }
 0x8ee   :  { %v11079_v37 = vpop.eup %11078  ;;  %v3202_v19 = vpop.xlane.xlu1 %3201 }
 0x8ef   :  { %v3241_v0 = vmul.f32 %v11079_v37, %v12936_v13  ;;  %10240 = vmatmul.mubr.msk.bf16.vlgmr.msra.gmra.mrb[96].mxu1 %vm1324_vm15, %v3255_v40  ;;  %v3199_v24 = vpop.xlane.xlu0 %3198  ;;  %v11081_v2 = vpop.eup %11080 }
 0x8f0   :  { %10250 = vmatpush3.bf16.msra.mxu1 %v12879_v51  ;;  %11090 = vrcp.f32 %v3199_v24  ;;  %10251 = vmatprep.mubr.msk.bf16.mxu1 %vm11486_vm8, %v15657_v22  ;;  %v3242_v18 = vmul.f32 %v11081_v2, %v12934_v16 }
 0x8f1   :  { %v3256_v48 = vpack.c.bf16 %v3241_v0, %v3240_v56  ;;  %10261 = vmatprep.subr.bf16.mxu1 %v15657_v22  ;;  %11092 = vrcp.f32 %v3202_v19 }
 0x8f2   :  { %v11083_v21 = vpop.eup %11082  ;;  %v3208_v13 = vpop.xlane.xlu1 %3207 }
 0x8f3   :  { %v3243_v10 = vmul.f32 %v11083_v21, %v12946_v61  ;;  %10246 = vmatmul.mubr.msk.bf16.vlgmr.msra.gmra.mrb[76].mxu0 %vm1324_vm15, %v3256_v48  ;;  %v3205_v46 = vpop.xlane.xlu0 %3204  ;;  %v11085_v38 = vpop.eup %11084 }
 0x8f4   :  { %10256 = vmatpush3.bf16.msra.mxu0 %v12987_v14  ;;  %11094 = vrcp.f32 %v3205_v46  ;;  %10257 = vmatprep.mubr.msk.bf16.mxu0 %vm11486_vm8, %v15657_v22  ;;  %v3244_v16 = vmul.f32 %v11085_v38, %v12944_v23 }
 0x8f5   :  { %v3257_v51 = vpack.c.bf16 %v3243_v10, %v3242_v18  ;;  %10267 = vmatprep.subr.bf16.mxu0 %v15657_v22  ;;  %11096 = vrcp.f32 %v3208_v13 }
 0x8f6   :  { %v11087_v1 = vpop.eup %11086  ;;  %v3686_v28 = vpop.permute.xlu1 %3685 }
 0x8f7   :  { %v3245_v61 = vmul.f32 %v11087_v1, %v12955_v50  ;;  %10252 = vmatmul.mubr.msk.bf16.vlgmr.msra.gmra.mrb[100].mxu1 %vm1324_vm15, %v3257_v51  ;;  %v3211_v47 = vpop.xlane.xlu0 %3210  ;;  %v11089_v42 = vpop.eup %11088 }
 0x8f8   :  { %10262 = vmatpush3.bf16.msra.mxu1 %v12985_v35  ;;  %11098 = vrcp.f32 %v3211_v47  ;;  %10263 = vmatprep.mubr.msk.bf16.mxu1 %vm11486_vm8, %v15657_v22  ;;  %v3246_v62 = vmul.f32 %v11089_v42, %v12953_v4 }
 0x8f9   :  { %v3258_v14 = vpack.c.bf16 %v3245_v61, %v3244_v16  ;;  %10273 = vmatprep.subr.bf16.mxu1 %v15657_v22 }
 0x8fa   :  { %v11091_v27 = vpop.eup %11090 }
 0x8fb   :  { %v3247_v23 = vmul.f32 %v11091_v27, %v12963_v57  ;;  %10258 = vmatmul.mubr.msk.bf16.vlgmr.msra.gmra.mrb[80].mxu0 %vm1324_vm15, %v3258_v14  ;;  %v3639_v50 = vpop.permute.xlu0 %3638  ;;  %v11093_v26 = vpop.eup %11092 }
 0x8fc   :  { %10268 = vmatpush3.bf16.msra.mxu0 %v3639_v50  ;;  %10269 = vmatprep.mubr.msk.bf16.mxu0 %vm11486_vm8, %v15657_v22  ;;  %v3248_v58 = vmul.f32 %v11093_v26, %v12961_v9  ;;  %v10880_v9 = vld [vmem:[%s15570_s7] sm:$0xff]  }
 0x8fd   :  { %v3259_v35 = vpack.c.bf16 %v3247_v23, %v3246_v62  ;;  %10279 = vmatprep.subr.bf16.mxu0 %v10880_v9 }
 0x8fe   :  { %v11095_v63 = vpop.eup %11094 }
 0x8ff   :  { %v3249_v6 = vmul.f32 %v11095_v63, %v12971_v52  ;;  %10264 = vmatmul.mubr.msk.bf16.vlgmr.msra.gmra.mrb[104].mxu1 %vm1324_vm15, %v3259_v35  ;;  %v11097_v4 = vpop.eup %11096 }
 0x900   :  { %10274 = vmatpush3.bf16.msra.mxu1 %v3686_v28  ;;  %10275 = vmatprep.mubr.msk.bf16.mxu1 %vm11486_vm8, %v15657_v22  ;;  %v3250_v45 = vmul.f32 %v11097_v4, %v12969_v17 }
 0x901   :  { %v3260_v57 = vpack.c.bf16 %v3249_v6, %v3248_v58  ;;  %10743 = vmatprep.subr.bf16.mxu1 %v10880_v9 }
 0x902   :  { %v11099_v11 = vpop.eup %11098 }
 0x903   :  { %v3251_v39 = vmul.f32 %v11099_v11, %v12977_v30  ;;  %10270 = vmatmul.mubr.msk.bf16.vlgmr.msra.gmra.mrb[84].mxu0 %vm1324_vm15, %v3260_v57  ;;  %v10881_v30 = vld [vmem:[%s15570_s7 + $0x8] sm:$0xff]  }
 0x904   :  { %10280 = vmatpush3.bf16.msra.mxu0 %v10880_v9 }
 0x905   :  { %v3261_v40 = vpack.c.bf16 %v3251_v39, %v3250_v45  ;;  %10281 = vmatprep.subr.bf16.mxu0 %v10881_v30 }
 0x907   :  { %10276 = vmatmul.mubr.msk.bf16.vlgmr.msra.gmra.mrb[108].mxu1 %vm1324_vm15, %v3261_v40 }
 0x908   :  { %10745 = vmatpush3.bf16.msra.mxu1 %v10880_v9  ;;  %10282 = vmatpush3.bf16.msra.mxu0 %v10881_v30 }
 0x909   :  { %10744 = vmatprep.subr.bf16.mxu1 %v10881_v30 }
 0x90c   :  { %10746 = vmatpush3.bf16.msra.mxu1 %v10881_v30 }
 0x9ac   :  { %v3302_v52 = vpop.f32.mrb[68].mxu0 }
 0x9ad   :  { %v10223_v37 = vpop.f32.mrb[69].mxu0 }
 0x9ae   :  { %v3305_v19 = vpop.f32.mrb[70].mxu0 }
 0x9af   :  { %v10778_v56 = vpack.i.bf16 %v3305_v19, %v3302_v52  ;;  %v10224_v17 = vpop.f32.mrb[71].mxu0 }
 0x9b1   :  { %10779 = vrot.lane.b32.xlu0 %v10778_v56, %s11492_s21 }
 0x9b9   :  { %v3349_v0 = vpop.f32.mrb[92].mxu1 }
 0x9ba   :  { %v10229_v24 = vpop.f32.mrb[93].mxu1 }
 0x9bb   :  { %v3352_v2 = vpop.f32.mrb[94].mxu1 }
 0x9bc   :  { %v10783_v48 = vpack.i.bf16 %v3352_v2, %v3349_v0  ;;  %v10230_v21 = vpop.f32.mrb[95].mxu1 }
 0x9be   :  { %v3396_v18 = vpop.f32.mrb[72].mxu0  ;;  %10784 = vrot.lane.b32.xlu1 %v10783_v48, %s11492_s21 }
 0x9bf   :  { %v10235_v10 = vpop.f32.mrb[73].mxu0 }
 0x9c0   :  { %v3399_v13 = vpop.f32.mrb[74].mxu0 }
 0x9c1   :  { %v10788_v46 = vpack.i.bf16 %v3399_v13, %v3396_v18  ;;  %v10236_v38 = vpop.f32.mrb[75].mxu0 }
 0x9c2   :  { %v3443_v51 = vpop.f32.mrb[96].mxu1 }
 0x9c3   :  { %10789 = vrot.lane.b32.xlu0 %v10788_v46, %s11492_s21  ;;  %v10241_v1 = vpop.f32.mrb[97].mxu1 }
 0x9c4   :  { %v3446_v16 = vpop.f32.mrb[98].mxu1 }
 0x9c5   :  { %v10793_v61 = vpack.i.bf16 %v3446_v16, %v3443_v51  ;;  %v10242_v47 = vpop.f32.mrb[99].mxu1 }
 0x9c6   :  { %v3490_v42 = vpop.f32.mrb[76].mxu0 }
 0x9c7   :  { %10794 = vrot.lane.b32.xlu1 %v10793_v61, %s11492_s21  ;;  %v10247_v14 = vpop.f32.mrb[77].mxu0 }
 0x9c8   :  { %v3493_v27 = vpop.f32.mrb[78].mxu0 }
 0x9c9   :  { %v10798_v62 = vpack.i.bf16 %v3493_v27, %v3490_v42  ;;  %v10248_v23 = vpop.f32.mrb[79].mxu0 }
 0x9ca   :  { %v3537_v50 = vpop.f32.mrb[100].mxu1 }
 0x9cb   :  { %10799 = vrot.lane.b32.xlu0 %v10798_v62, %s11492_s21  ;;  %v10253_v26 = vpop.f32.mrb[101].mxu1 }
 0x9cc   :  { %v3540_v35 = vpop.f32.mrb[102].mxu1 }
 0x9cd   :  { %v10803_v63 = vpack.i.bf16 %v3540_v35, %v3537_v50  ;;  %v10254_v58 = vpop.f32.mrb[103].mxu1 }
 0x9ce   :  { %v3584_v6 = vpop.f32.mrb[80].mxu0 }
 0x9cf   :  { %10804 = vrot.lane.b32.xlu1 %v10803_v63, %s11492_s21  ;;  %v10259_v28 = vpop.f32.mrb[81].mxu0 }
 0x9d0   :  { %v3587_v4 = vpop.f32.mrb[82].mxu0 }
 0x9d1   :  { %v10808_v57 = vpack.i.bf16 %v3587_v4, %v3584_v6  ;;  %v10260_v11 = vpop.f32.mrb[83].mxu0 }
 0x9d2   :  { %v3631_v45 = vpop.f32.mrb[104].mxu1 }
 0x9d3   :  { %10809 = vrot.lane.b32.xlu0 %v10808_v57, %s11492_s21  ;;  %v10265_v39 = vpop.f32.mrb[105].mxu1 }
 0x9d4   :  { %v3634_v40 = vpop.f32.mrb[106].mxu1 }
 0x9d5   :  { %v10813_v9 = vpack.i.bf16 %v3634_v40, %v3631_v45  ;;  %v10266_v52 = vpop.f32.mrb[107].mxu1 }
 0x9d6   :  { %v3678_v37 = vpop.f32.mrb[84].mxu0 }
 0x9d7   :  { %10814 = vrot.lane.b32.xlu1 %v10813_v9, %s11492_s21  ;;  %v10271_v19 = vpop.f32.mrb[85].mxu0 }
 0x9d8   :  { %v3681_v56 = vpop.f32.mrb[86].mxu0 }
 0x9d9   :  { %v10818_v17 = vpack.i.bf16 %v3681_v56, %v3678_v37  ;;  %v10272_v30 = vpop.f32.mrb[87].mxu0 }
 0x9da   :  { %v3725_v0 = vpop.f32.mrb[108].mxu1 }
 0x9db   :  { %v10277_v24 = vpop.f32.mrb[109].mxu1  ;;  %10819 = vrot.lane.b32.xlu0 %v10818_v17, %s11492_s21 }
 0x9dc   :  { %v3728_v2 = vpop.f32.mrb[110].mxu1 }
 0x9dd   :  { %v10823_v48 = vpack.i.bf16 %v3728_v2, %v3725_v0  ;;  %v10278_v21 = vpop.f32.mrb[111].mxu1 }
 0x9df   :  { %10824 = vrot.lane.b32.xlu1 %v10823_v48, %s11492_s21 }
 0xa23   :  { %v10780_v18 = vpop.permute.xlu0 %10779 }
 0xa24   :  { %v10782_v10 = vunpack.i.h.bf16 %v10780_v18  ;;  %v10781_v13 = vunpack.i.l.bf16 %v10780_v18 }
 0xa26   :  { %v3813_v46 = vsel %vm1324_vm15, %v12751_v49, %v10782_v10  ;;  %v3812_v38 = vsel %vm1324_vm15, %v12749_v60, %v10781_v13 }
 0xa27   :  { %v3832_v51 = vpack.c.bf16 %v3813_v46, %v3812_v38 }
 0xa29   :  { %10283 = vmatprep.mubr.msk.bf16.mxu0 %vm825_vm14, %v3832_v51 }
 0xa30   :  { %v10785_v1 = vpop.permute.xlu1 %10784 }
 0xa31   :  { %v10787_v16 = vunpack.i.h.bf16 %v10785_v1  ;;  %v10786_v61 = vunpack.i.l.bf16 %v10785_v1 }
 0xa33   :  { %v3815_v47 = vsel %vm1324_vm15, %v12755_v25, %v10787_v16  ;;  %v3814_v42 = vsel %vm1324_vm15, %v12753_v44, %v10786_v61 }
 0xa34   :  { %v3833_v14 = vpack.c.bf16 %v3815_v47, %v3814_v42 }
 0xa35   :  { %v10790_v27 = vpop.permute.xlu0 %10789 }
 0xa36   :  { %v10792_v62 = vunpack.i.h.bf16 %v10790_v27  ;;  %v10791_v23 = vunpack.i.l.bf16 %v10790_v27  ;;  %10284 = vmatmul.mubr.msk.bf16.vlgmr.msra.gmra.mrb[88].mxu0 %vm825_vm14, %v3833_v14 }
 0xa38   :  { %v3817_v60 = vsel %vm1324_vm15, %v12759_v54, %v10792_v62  ;;  %v3816_v49 = vsel %vm1324_vm15, %v12757_v15, %v10791_v23 }
 0xa39   :  { %v10795_v50 = vpop.permute.xlu1 %10794  ;;  %v3834_v26 = vpack.c.bf16 %v3817_v60, %v3816_v49  ;;  %v15658_v60 = vld [vmem:[#allocation5_spill] sm:$0xff] }
 0xa3a   :  { %v10797_v35 = vunpack.i.h.bf16 %v10795_v50  ;;  %v10796_v63 = vunpack.i.l.bf16 %v10795_v50 }
 0xa3b   :  { %10287 = vmatprep.mubr.msk.bf16.mxu0 %vm825_vm14, %v3834_v26 }
 0xa3c   :  { %v3819_v44 = vsel %vm1324_vm15, %v12763_v29, %v10797_v35  ;;  %v3818_v25 = vsel %vm1324_vm15, %v12761_v34, %v10796_v63  ;;  %v15659_v63 = vld [vmem:[#allocation6_spill] sm:$0xff] }
 0xa3d   :  { %v10800_v58 = vpop.permute.xlu0 %10799  ;;  %v3835_v6 = vpack.c.bf16 %v3819_v44, %v3818_v25 }
 0xa3e   :  { %v10802_v28 = vunpack.i.h.bf16 %v10800_v58  ;;  %v10801_v4 = vunpack.i.l.bf16 %v10800_v58 }
 0xa3f   :  { %10288 = vmatmul.mubr.msk.bf16.gmra.mrb[92].mxu0 %vm825_vm14, %v3835_v6  ;;  %v15660_v6 = vld [vmem:[#allocation8_spill] sm:$0xff] }
 0xa40   :  { %v3821_v15 = vsel %vm1324_vm15, %v12767_v7, %v10802_v28  ;;  %v3820_v54 = vsel %vm1324_vm15, %v12765_v43, %v10801_v4  ;;  %v15661_v4 = vld [vmem:[#allocation7_spill] sm:$0xff] }
 0xa41   :  { %v10805_v57 = vpop.permute.xlu1 %10804  ;;  %v3836_v11 = vpack.c.bf16 %v3821_v15, %v3820_v54 }
 0xa42   :  { %v10807_v45 = vunpack.i.h.bf16 %v10805_v57  ;;  %v10806_v39 = vunpack.i.l.bf16 %v10805_v57 }
 0xa43   :  { %10291 = vmatprep.mubr.msk.bf16.mxu0 %vm825_vm14, %v3836_v11 }
 0xa44   :  { %v3823_v34 = vsel %vm1324_vm15, %v12773_v41, %v10807_v45  ;;  %v3822_v29 = vsel %vm1324_vm15, %v12769_v36, %v10806_v39  ;;  %v15662_v45 = vld [vmem:[#allocation9_spill] sm:$0xff] }
 0xa45   :  { %v10810_v40 = vpop.permute.xlu0 %10809  ;;  %v3837_v9 = vpack.c.bf16 %v3823_v34, %v3822_v29 }
 0xa46   :  { %v10812_v52 = vunpack.i.h.bf16 %v10810_v40  ;;  %v10811_v37 = vunpack.i.l.bf16 %v10810_v40 }
 0xa47   :  { %10292 = vmatmul.mubr.msk.bf16.gmra.mrb[96].mxu0 %vm825_vm14, %v3837_v9 }
 0xa48   :  { %v3825_v43 = vsel %vm1324_vm15, %v12775_v20, %v10812_v52  ;;  %v3824_v7 = vsel %vm1324_vm15, %v12771_v33, %v10811_v37 }
 0xa49   :  { %v10815_v19 = vpop.permute.xlu1 %10814  ;;  %v3838_v56 = vpack.c.bf16 %v3825_v43, %v3824_v7  ;;  %v15663_v7 = vld [vmem:[#allocation10_spill] sm:$0xff] }
 0xa4a   :  { %v10817_v17 = vunpack.i.h.bf16 %v10815_v19  ;;  %v10816_v30 = vunpack.i.l.bf16 %v10815_v19 }
 0xa4b   :  { %10295 = vmatprep.mubr.msk.bf16.mxu1 %vm825_vm14, %v3838_v56 }
 0xa4c   :  { %v3827_v36 = vsel %vm1324_vm15, %v12783_v8, %v10817_v17  ;;  %v3826_v41 = vsel %vm1324_vm15, %v12781_v53, %v10816_v30  ;;  %v15664_v30 = vld [vmem:[#allocation12_spill] sm:$0xff] }
 0xa4d   :  { %v3839_v0 = vpack.c.bf16 %v3827_v36, %v3826_v41  ;;  %v10820_v24 = vpop.permute.xlu0 %10819  ;;  %v15665_v41 = vld [vmem:[#allocation11_spill] sm:$0xff] }
 0xa4e   :  { %v10822_v2 = vunpack.i.h.bf16 %v10820_v24  ;;  %v10821_v48 = vunpack.i.l.bf16 %v10820_v24 }
 0xa4f   :  { %10296 = vmatmul.mubr.msk.bf16.vlgmr.msra.gmra.mrb[112].mxu1 %vm825_vm14, %v3839_v0 }
 0xa50   :  { %v3829_v33 = vsel %vm1324_vm15, %v12779_v31, %v10822_v2  ;;  %v3828_v20 = vsel %vm1324_vm15, %v12777_v32, %v10821_v48  ;;  %v13116_v31 = vld [vmem:[%s15571_s8] ss:$0 sm:$0xff] }
 0xa51   :  { %v10825_v21 = vpop.permute.xlu1 %10824  ;;  %v3840_v18 = vpack.c.bf16 %v3829_v33, %v3828_v20  ;;  %v15666_v33 = vld [vmem:[#allocation13_spill] sm:$0xff] }
 0xa52   :  { %v10827_v10 = vunpack.i.h.bf16 %v10825_v21  ;;  %v10826_v13 = vunpack.i.l.bf16 %v10825_v21 }
 0xa53   :  { %10299 = vmatprep.mubr.msk.bf16.mxu1 %vm825_vm14, %v3840_v18 }
 0xa54   :  { %v3831_v53 = vsel %vm1324_vm15, %v12795_v55, %v10827_v10  ;;  %v3830_v8 = vsel %vm1324_vm15, %v12791_v5, %v10826_v13 }
 0xa55   :  { %v3841_v46 = vpack.c.bf16 %v3831_v53, %v3830_v8 }
 0xa57   :  { %10300 = vmatmul.mubr.msk.bf16.gmra.mrb[116].mxu1 %vm825_vm14, %v3841_v46 }
 0xb09   :  { %v10285_v32 = vpop.f32.mrb[88].mxu0 }
 0xb0a   :  { %v3929_v38 = vpop.f32.mrb[89].mxu0  ;;  %v3938_v51 = vadd.f32 %v10285_v32, %v13116_v31  ;;  %v15667_v32 = vld [vmem:[#allocation14_spill] sm:$0xff] }
 0xb0b   :  { %v3930_v1 = vadd.f32 %v13116_v31, %v3929_v38  ;;  %v10286_v16 = vpop.f32.mrb[90].mxu0 }
 0xb0c   :  { %v3932_v61 = vpop.f32.mrb[91].mxu0  ;;  %v13125_v47 = vadd.f32 %v3938_v51, %v12146_v59  ;;  %v3941_v42 = vadd.f32 %v10286_v16, %v13116_v31  ;;  %v15668_v16 = vld [vmem:[#allocation16_spill] sm:$0xff] }
 0xb0d   :  { %v13121_v55 = vadd.f32 %v3930_v1, %v12135_v3  ;;  %v3933_v5 = vadd.f32 %v13116_v31, %v3932_v61 }
 0xb0e   :  { %v13136_v49 = vadd.f32 %v3941_v42, %v15658_v60 }
 0xb0f   :  { %v13129_v14 = vadd.f32 %v3933_v5, %v12132_v12  ;;  %v4029_v27 = vsel %vm825_vm14, %v13121_v55, 0.0  ;;  %v4035_v12 = vsel %vm825_vm14, %v13125_v47, 0.0  ;;  %v15669_v5 = vld [vmem:[#allocation15_spill] sm:$0xff] }
 0xb10   :  { %4030 = vadd.xlane.f32.xlu0 %v4029_v27  ;;  %v4038_v57 = vsel %vm825_vm14, %v13136_v49, 0.0 }
 0xb11   :  { %v4032_v23 = vsel %vm825_vm14, %v13129_v14, 0.0 }
 0xb12   :  { %v10289_v62 = vpop.f32.mrb[92].mxu0  ;;  %4033 = vadd.xlane.f32.xlu1 %v4032_v23 }
 0xb13   :  { %v3945_v3 = vpop.f32.mrb[93].mxu0  ;;  %v3954_v59 = vadd.f32 %v10289_v62, %v13116_v31 }
 0xb14   :  { %v3946_v50 = vadd.f32 %v13116_v31, %v3945_v3  ;;  %v10290_v26 = vpop.f32.mrb[94].mxu0  ;;  %4036 = vadd.xlane.f32.xlu0 %v4035_v12  ;;  %v15670_v3 = vld [vmem:[#allocation17_spill] sm:$0xff] }
 0xb15   :  { %v3948_v35 = vpop.f32.mrb[95].mxu0  ;;  %v3957_v58 = vadd.f32 %v10290_v26, %v13116_v31  ;;  %v13148_v28 = vadd.f32 %v3954_v59, %v15660_v6 }
 0xb16   :  { %v13143_v44 = vadd.f32 %v3946_v50, %v15659_v63  ;;  %v3949_v25 = vadd.f32 %v13116_v31, %v3948_v35 }
 0xb17   :  { %v13158_v39 = vadd.f32 %v3957_v58, %v15662_v45  ;;  %v4047_v52 = vsel %vm825_vm14, %v13148_v28, 0.0  ;;  %v15671_v58 = vld [vmem:[#allocation18_spill] sm:$0xff] }
 0xb18   :  { %v13151_v15 = vadd.f32 %v3949_v25, %v15661_v4  ;;  %v4041_v54 = vsel %vm825_vm14, %v13143_v44, 0.0  ;;  %4039 = vadd.xlane.f32.xlu0 %v4038_v57  ;;  %v15672_v57 = vld [vmem:[#allocation20_spill] sm:$0xff] }
 0xb19   :  { %4042 = vadd.xlane.f32.xlu1 %v4041_v54  ;;  %v4050_v2 = vsel %vm825_vm14, %v13158_v39, 0.0 }
 0xb1a   :  { %v10293_v11 = vpop.f32.mrb[96].mxu0  ;;  %v4044_v37 = vsel %vm825_vm14, %v13151_v15, 0.0 }
 0xb1b   :  { %v3961_v34 = vpop.f32.mrb[97].mxu0  ;;  %v3970_v29 = vadd.f32 %v10293_v11, %v13116_v31 }
 0xb1c   :  { %v3962_v40 = vadd.f32 %v13116_v31, %v3961_v34  ;;  %v10294_v9 = vpop.f32.mrb[98].mxu0  ;;  %4045 = vadd.xlane.f32.xlu0 %v4044_v37  ;;  %v15673_v34 = vld [vmem:[#allocation19_spill] sm:$0xff] }
 0xb1d   :  { %v3964_v43 = vpop.f32.mrb[99].mxu0  ;;  %4048 = vadd.xlane.f32.xlu1 %v4047_v52  ;;  %v3973_v17 = vadd.f32 %v10294_v9, %v13116_v31  ;;  %v13172_v36 = vadd.f32 %v3970_v29, %v15664_v30  ;;  %v15674_v9 = vld [vmem:[#allocation21_spill] sm:$0xff] }
 0xb1e   :  { %v13167_v19 = vadd.f32 %v3962_v40, %v15663_v7  ;;  %v3965_v56 = vadd.f32 %v13116_v31, %v3964_v43 }
 0xb1f   :  { %v13182_v20 = vadd.f32 %v3973_v17, %v15666_v33  ;;  %v4059_v53 = vsel %vm825_vm14, %v13172_v36, 0.0 }
 0xb20   :  { %v13175_v0 = vadd.f32 %v3965_v56, %v15665_v41  ;;  %v4053_v24 = vsel %vm825_vm14, %v13167_v19, 0.0  ;;  %4051 = vadd.xlane.f32.xlu0 %v4050_v2 }
 0xb21   :  { %4054 = vadd.xlane.f32.xlu1 %v4053_v24  ;;  %v4062_v62 = vsel %vm825_vm14, %v13182_v20, 0.0 }
 0xb22   :  { %v10297_v48 = vpop.f32.mrb[112].mxu1  ;;  %v4056_v8 = vsel %vm825_vm14, %v13175_v0, 0.0 }
 0xb23   :  { %v3977_v21 = vpop.f32.mrb[113].mxu1  ;;  %v3986_v18 = vadd.f32 %v10297_v48, %v13116_v31 }
 0xb24   :  { %v3978_v10 = vadd.f32 %v13116_v31, %v3977_v21  ;;  %v10298_v13 = vpop.f32.mrb[114].mxu1  ;;  %4057 = vadd.xlane.f32.xlu0 %v4056_v8 }
 0xb25   :  { %v3980_v46 = vpop.f32.mrb[115].mxu1  ;;  %4060 = vadd.xlane.f32.xlu1 %v4059_v53  ;;  %v3989_v1 = vadd.f32 %v10298_v13, %v13116_v31  ;;  %v13196_v61 = vadd.f32 %v3986_v18, %v15668_v16 }
 0xb26   :  { %v13191_v38 = vadd.f32 %v3978_v10, %v15667_v32  ;;  %v3981_v51 = vadd.f32 %v13116_v31, %v3980_v46 }
 0xb27   :  { %v13206_v60 = vadd.f32 %v3989_v1, %v15670_v3  ;;  %v4071_v35 = vsel %vm825_vm14, %v13196_v61, 0.0 }
 0xb28   :  { %v13199_v42 = vadd.f32 %v3981_v51, %v15669_v5  ;;  %v4065_v27 = vsel %vm825_vm14, %v13191_v38, 0.0  ;;  %4063 = vadd.xlane.f32.xlu0 %v4062_v62 }
 0xb29   :  { %4066 = vadd.xlane.f32.xlu1 %v4065_v27  ;;  %v4074_v54 = vsel %vm825_vm14, %v13206_v60, 0.0 }
 0xb2a   :  { %v10301_v23 = vpop.f32.mrb[116].mxu1  ;;  %v4068_v63 = vsel %vm825_vm14, %v13199_v42, 0.0 }
 0xb2b   :  { %v3993_v59 = vpop.f32.mrb[117].mxu1  ;;  %v4002_v50 = vadd.f32 %v10301_v23, %v13116_v31 }
 0xb2c   :  { %v3994_v26 = vadd.f32 %v13116_v31, %v3993_v59  ;;  %v10302_v12 = vpop.f32.mrb[118].mxu1  ;;  %4069 = vadd.xlane.f32.xlu0 %v4068_v63 }
 0xb2d   :  { %v3996_v25 = vpop.f32.mrb[119].mxu1  ;;  %4072 = vadd.xlane.f32.xlu1 %v4071_v35  ;;  %v13221_v11 = vadd.f32 %v4002_v50, %v15672_v57  ;;  %v4005_v45 = vadd.f32 %v10302_v12, %v13116_v31 }
 0xb2e   :  { %v13215_v6 = vadd.f32 %v3994_v26, %v15671_v58  ;;  %v3997_v4 = vadd.f32 %v13116_v31, %v3996_v25 }
 0xb2f   :  { %v13230_v52 = vadd.f32 %v4005_v45, %v15674_v9  ;;  %v4083_v37 = vsel %vm825_vm14, %v13221_v11, 0.0 }
 0xb30   :  { %v13225_v29 = vadd.f32 %v3997_v4, %v15673_v34  ;;  %v4077_v40 = vsel %vm825_vm14, %v13215_v6, 0.0  ;;  %4075 = vadd.xlane.f32.xlu0 %v4074_v54 }
 0xb31   :  { %4078 = vadd.xlane.f32.xlu1 %v4077_v40  ;;  %v4086_v31 = vsel %vm825_vm14, %v13230_v52, 0.0 }
 0xb32   :  { %v4080_v43 = vsel %vm825_vm14, %v13225_v29, 0.0 }
 0xb34   :  { %4081 = vadd.xlane.f32.xlu0 %v4080_v43 }
 0xb35   :  { %4084 = vadd.xlane.f32.xlu1 %v4083_v37 }
 0xb38   :  { %4087 = vadd.xlane.f32.xlu0 %v4086_v31 }
 0xb9d   :  { %v4031_v7 = vpop.xlane.xlu0 %4030 }
 0xb9e   :  { %v4089_v56 = vmul.f32 0.03125, %v4031_v7 }
 0xb9f   :  { %v4034_v17 = vpop.xlane.xlu1 %4033 }
 0xba0   :  { %v13239_v30 = vsub.f32 %v13121_v55, %v4089_v56  ;;  %v4090_v41 = vmul.f32 0.03125, %v4034_v17 }
 0xba1   :  { %v4037_v24 = vpop.xlane.xlu0 %4036 }
 0xba2   :  { %v13242_v2 = vsub.f32 %v13129_v14, %v4090_v41  ;;  %v4091_v48 = vmul.f32 0.03125, %v4037_v24  ;;  %v4129_v33 = vmul.f32 %v13239_v30, %v13239_v30 }
 0xba4   :  { %v13247_v21 = vsub.f32 %v13125_v47, %v4091_v48  ;;  %v4149_v18 = vsel %vm825_vm14, %v4129_v33, 0.0  ;;  %v4130_v10 = vmul.f32 %v13242_v2, %v13242_v2 }
 0xba5   :  { %4150 = vadd.xlane.f32.xlu1 %v4149_v18  ;;  %v4040_v55 = vpop.xlane.xlu0 %4039 }
 0xba6   :  { %v4043_v13 = vpop.xlane.xlu1 %4042  ;;  %v4092_v8 = vmul.f32 0.03125, %v4040_v55  ;;  %v4152_v14 = vsel %vm825_vm14, %v4130_v10, 0.0  ;;  %v4131_v46 = vmul.f32 %v13247_v21, %v13247_v21 }
 0xba7   :  { %v4093_v53 = vmul.f32 0.03125, %v4043_v13  ;;  %4153 = vadd.xlane.f32.xlu0 %v4152_v14 }
 0xba8   :  { %v13259_v47 = vsub.f32 %v13136_v49, %v4092_v8  ;;  %v4155_v51 = vsel %vm825_vm14, %v4131_v46, 0.0 }
 0xba9   :  { %v13256_v32 = vsub.f32 %v13143_v44, %v4093_v53  ;;  %4156 = vadd.xlane.f32.xlu1 %v4155_v51  ;;  %v4046_v16 = vpop.xlane.xlu0 %4045 }
 0xbaa   :  { %v4049_v1 = vpop.xlane.xlu1 %4048  ;;  %v4094_v27 = vmul.f32 0.03125, %v4046_v16  ;;  %v4132_v23 = vmul.f32 %v13259_v47, %v13259_v47 }
 0xbab   :  { %v4095_v5 = vmul.f32 0.03125, %v4049_v1  ;;  %v4133_v62 = vmul.f32 %v13256_v32, %v13256_v32 }
 0xbac   :  { %v13270_v44 = vsub.f32 %v13151_v15, %v4094_v27  ;;  %v4158_v59 = vsel %vm825_vm14, %v4132_v23, 0.0 }
 0xbad   :  { %v13267_v3 = vsub.f32 %v13148_v28, %v4095_v5  ;;  %v4161_v49 = vsel %vm825_vm14, %v4133_v62, 0.0  ;;  %4159 = vadd.xlane.f32.xlu0 %v4158_v59  ;;  %v4052_v26 = vpop.xlane.xlu0 %4051 }
 0xbae   :  { %v4055_v50 = vpop.xlane.xlu1 %4054  ;;  %4162 = vadd.xlane.f32.xlu1 %v4161_v49  ;;  %v4096_v35 = vmul.f32 0.03125, %v4052_v26  ;;  %v4134_v28 = vmul.f32 %v13270_v44, %v13270_v44 }
 0xbaf   :  { %v4097_v12 = vmul.f32 0.03125, %v4055_v50  ;;  %v4135_v63 = vmul.f32 %v13267_v3, %v13267_v3 }
 0xbb0   :  { %v13282_v15 = vsub.f32 %v13158_v39, %v4096_v35  ;;  %v4164_v4 = vsel %vm825_vm14, %v4134_v28, 0.0 }
 0xbb1   :  { %v13279_v25 = vsub.f32 %v13167_v19, %v4097_v12  ;;  %v4167_v58 = vsel %vm825_vm14, %v4135_v63, 0.0  ;;  %4165 = vadd.xlane.f32.xlu0 %v4164_v4  ;;  %v4058_v57 = vpop.xlane.xlu0 %4057 }
 0xbb2   :  { %v4061_v54 = vpop.xlane.xlu1 %4060  ;;  %4168 = vadd.xlane.f32.xlu1 %v4167_v58  ;;  %v4098_v34 = vmul.f32 0.03125, %v4058_v57  ;;  %v4136_v19 = vmul.f32 %v13282_v15, %v13282_v15 }
 0xbb3   :  { %v4099_v45 = vmul.f32 0.03125, %v4061_v54  ;;  %v4137_v40 = vmul.f32 %v13279_v25, %v13279_v25 }
 0xbb4   :  { %v13294_v39 = vsub.f32 %v13175_v0, %v4098_v34  ;;  %v4170_v43 = vsel %vm825_vm14, %v4136_v19, 0.0 }
 0xbb5   :  { %v13291_v9 = vsub.f32 %v13172_v36, %v4099_v45  ;;  %v4173_v37 = vsel %vm825_vm14, %v4137_v40, 0.0  ;;  %4171 = vadd.xlane.f32.xlu0 %v4170_v43  ;;  %v4064_v7 = vpop.xlane.xlu0 %4063  ;;  %v10882_v40 = vld [vmem:[%s15572_s10] sm:$0xff]  }
 0xbb6   :  { %v4067_v31 = vpop.xlane.xlu1 %4066  ;;  %4174 = vadd.xlane.f32.xlu1 %v4173_v37  ;;  %v4100_v17 = vmul.f32 0.03125, %v4064_v7  ;;  %v4138_v36 = vmul.f32 %v13294_v39, %v13294_v39  ;;  %10303 = vmatprep.subr.bf16.mxu1 %v10882_v40 }
 0xbb7   :  { %v4101_v56 = vmul.f32 0.03125, %v4067_v31  ;;  %v4139_v41 = vmul.f32 %v13291_v9, %v13291_v9  ;;  %10304 = vmatpush3.bf16.msra.mxu1 %v10882_v40 }
 0xbb8   :  { %v13306_v0 = vsub.f32 %v13182_v20, %v4100_v17  ;;  %v4176_v33 = vsel %vm825_vm14, %v4138_v36, 0.0 }
 0xbb9   :  { %v13303_v24 = vsub.f32 %v13191_v38, %v4101_v56  ;;  %v4179_v48 = vsel %vm825_vm14, %v4139_v41, 0.0  ;;  %4177 = vadd.xlane.f32.xlu0 %v4176_v33  ;;  %v4070_v10 = vpop.xlane.xlu0 %4069 }
 0xbba   :  { %v4073_v18 = vpop.xlane.xlu1 %4072  ;;  %4180 = vadd.xlane.f32.xlu1 %v4179_v48  ;;  %v4102_v55 = vmul.f32 0.03125, %v4070_v10  ;;  %v4140_v38 = vmul.f32 %v13306_v0, %v13306_v0 }
 0xbbb   :  { %v4103_v13 = vmul.f32 0.03125, %v4073_v18  ;;  %v4141_v53 = vmul.f32 %v13303_v24, %v13303_v24 }
 0xbbc   :  { %v13318_v20 = vsub.f32 %v13199_v42, %v4102_v55  ;;  %v4182_v46 = vsel %vm825_vm14, %v4140_v38, 0.0 }
 0xbbd   :  { %v13315_v8 = vsub.f32 %v13196_v61, %v4103_v13  ;;  %v4185_v14 = vsel %vm825_vm14, %v4141_v53, 0.0  ;;  %4183 = vadd.xlane.f32.xlu0 %v4182_v46  ;;  %v4076_v1 = vpop.xlane.xlu0 %4075  ;;  %v4008_v53 = vld [vmem:[%s15573_s9] sm:$0x3] }
 0xbbe   :  { %v4079_v51 = vpop.xlane.xlu1 %4078  ;;  %4186 = vadd.xlane.f32.xlu1 %v4185_v14  ;;  %v4104_v5 = vmul.f32 0.03125, %v4076_v1  ;;  %v4142_v61 = vmul.f32 %v13318_v20, %v13318_v20 }
 0xbbf   :  { %v4105_v16 = vmul.f32 0.03125, %v4079_v51  ;;  %v4143_v27 = vmul.f32 %v13315_v8, %v13315_v8 }
 0xbc0   :  { %v13330_v42 = vsub.f32 %v13206_v60, %v4104_v5  ;;  %v4188_v49 = vsel %vm825_vm14, %v4142_v61, 0.0  ;;  %v15675_v5 = vld [vmem:[#allocation3_spill] sm:$0xff] }
 0xbc1   :  { %v13327_v62 = vsub.f32 %v13215_v6, %v4105_v16  ;;  %v4191_v23 = vsel %vm825_vm14, %v4143_v27, 0.0  ;;  %4189 = vadd.xlane.f32.xlu0 %v4188_v49  ;;  %v4082_v50 = vpop.xlane.xlu0 %4081  ;;  %v13368_v27 = vrot.slane %v4008_v53, %v15675_v5 }
 0xbc2   :  { %v4085_v59 = vpop.xlane.xlu1 %4084  ;;  %4192 = vadd.xlane.f32.xlu1 %v4191_v23  ;;  %v4106_v12 = vmul.f32 0.03125, %v4082_v50  ;;  %v4144_v6 = vmul.f32 %v13330_v42, %v13330_v42 }
 0xbc3   :  { %v4107_v26 = vmul.f32 0.03125, %v4085_v59  ;;  %v4145_v35 = vmul.f32 %v13327_v62, %v13327_v62 }
 0xbc4   :  { %v13342_v60 = vsub.f32 %v13225_v29, %v4106_v12  ;;  %v4194_v58 = vsel %vm825_vm14, %v4144_v6, 0.0 }
 0xbc5   :  { %v13339_v63 = vsub.f32 %v13221_v11, %v4107_v26  ;;  %v4197_v28 = vsel %vm825_vm14, %v4145_v35, 0.0  ;;  %4195 = vadd.xlane.f32.xlu0 %v4194_v58  ;;  %v4088_v4 = vpop.xlane.xlu0 %4087 }
 0xbc6   :  { %4198 = vadd.xlane.f32.xlu1 %v4197_v28  ;;  %v4108_v54 = vmul.f32 0.03125, %v4088_v4  ;;  %v4146_v45 = vmul.f32 %v13342_v60, %v13342_v60  ;;  %v15676_v28 = vld [vmem:[#allocation4_spill] sm:$0xff] }
 0xbc7   :  { %v4147_v57 = vmul.f32 %v13339_v63, %v13339_v63  ;;  %v13372_v58 = vrot.slane %v4008_v53, %v15676_v28 }
 0xbc8   :  { %v13351_v11 = vsub.f32 %v13230_v52, %v4108_v54  ;;  %v4200_v34 = vsel %vm825_vm14, %v4146_v45, 0.0  ;;  %v10883_v52 = vld [vmem:[%s15572_s10 + $0x8] sm:$0xff]  }
 0xbc9   :  { %v4203_v29 = vsel %vm825_vm14, %v4147_v57, 0.0  ;;  %4201 = vadd.xlane.f32.xlu0 %v4200_v34  ;;  %10305 = vmatprep.subr.bf16.mxu1 %v10883_v52 }
 0xbca   :  { %4204 = vadd.xlane.f32.xlu1 %v4203_v29  ;;  %v4148_v19 = vmul.f32 %v13351_v11, %v13351_v11  ;;  %10306 = vmatpush3.bf16.msra.mxu1 %v10883_v52 }
 0xbcc   :  { %v4206_v37 = vsel %vm825_vm14, %v4148_v19, 0.0 }
 0xbcd   :  { %4207 = vadd.xlane.f32.xlu0 %v4206_v37 }
 0xc32   :  { %v4151_v43 = vpop.xlane.xlu1 %4150 }
 0xc33   :  { %v4209_v31 = vmul.f32 0.03125, %v4151_v43 }
 0xc34   :  { %v4154_v7 = vpop.xlane.xlu0 %4153 }
 0xc35   :  { %v4229_v56 = vadd.f32 1e-12, %v4209_v31  ;;  %v4210_v17 = vmul.f32 0.03125, %v4154_v7 }
 0xc36   :  { %v4157_v41 = vpop.xlane.xlu1 %4156 }
 0xc37   :  { %11100 = vrsqrt.f32 %v4229_v56  ;;  %v4230_v36 = vadd.f32 1e-12, %v4210_v17  ;;  %v4211_v48 = vmul.f32 0.03125, %v4157_v41 }
 0xc39   :  { %11102 = vrsqrt.f32 %v4230_v36  ;;  %v4231_v33 = vadd.f32 1e-12, %v4211_v48 }
 0xc3a   :  { %v4160_v10 = vpop.xlane.xlu0 %4159 }
 0xc3b   :  { %v4163_v18 = vpop.xlane.xlu1 %4162  ;;  %11104 = vrsqrt.f32 %v4231_v33  ;;  %v4212_v55 = vmul.f32 0.03125, %v4160_v10 }
 0xc3c   :  { %v4213_v13 = vmul.f32 0.03125, %v4163_v18 }
 0xc3d   :  { %v4232_v14 = vadd.f32 1e-12, %v4212_v55 }
 0xc3e   :  { %v4233_v38 = vadd.f32 1e-12, %v4213_v13  ;;  %v4166_v51 = vpop.xlane.xlu0 %4165 }
 0xc3f   :  { %v4169_v46 = vpop.xlane.xlu1 %4168  ;;  %v4214_v16 = vmul.f32 0.03125, %v4166_v51 }
 0xc40   :  { %11106 = vrsqrt.f32 %v4233_v38  ;;  %v4215_v1 = vmul.f32 0.03125, %v4169_v46 }
 0xc41   :  { %11108 = vrsqrt.f32 %v4232_v14  ;;  %v11101_v61 = vpop.eup %11100  ;;  %v4234_v49 = vadd.f32 1e-12, %v4214_v16 }
 0xc42   :  { %v4235_v23 = vadd.f32 1e-12, %v4215_v1  ;;  %v4172_v50 = vpop.xlane.xlu0 %4171  ;;  %v4269_v26 = vmul.f32 %v11101_v61, %v13239_v30 }
 0xc43   :  { %v4175_v59 = vpop.xlane.xlu1 %4174  ;;  %v11103_v12 = vpop.eup %11102  ;;  %v4216_v6 = vmul.f32 0.03125, %v4172_v50 }
 0xc44   :  { %11110 = vrsqrt.f32 %v4235_v23  ;;  %v4217_v35 = vmul.f32 0.03125, %v4175_v59  ;;  %v4270_v4 = vmul.f32 %v11103_v12, %v13242_v2  ;;  %v4293_v54 = vmul.f32 %v13368_v27, %v4269_v26 }
 0xc45   :  { %11112 = vrsqrt.f32 %v4234_v49  ;;  %v11105_v57 = vpop.eup %11104  ;;  %v4236_v29 = vadd.f32 1e-12, %v4216_v6 }
 0xc46   :  { %v4237_v45 = vadd.f32 1e-12, %v4217_v35  ;;  %v4271_v34 = vmul.f32 %v11105_v57, %v13247_v21  ;;  %v4178_v19 = vpop.xlane.xlu0 %4177  ;;  %v4294_v30 = vmul.f32 %v13368_v27, %v4270_v4  ;;  %v13379_v43 = vadd.f32 %v13372_v58, %v4293_v54 }
 0xc47   :  { %v4181_v40 = vpop.xlane.xlu1 %4180  ;;  %v4218_v52 = vmul.f32 0.03125, %v4178_v19 }
 0xc48   :  { %11114 = vrsqrt.f32 %v4237_v45  ;;  %v4219_v37 = vmul.f32 0.03125, %v4181_v40  ;;  %v13382_v2 = vadd.f32 %v13372_v58, %v4294_v30  ;;  %v4295_v21 = vmul.f32 %v13368_v27, %v4271_v34 }
 0xc49   :  { %11116 = vrsqrt.f32 %v4236_v29  ;;  %v4238_v56 = vadd.f32 1e-12, %v4218_v52 }
 0xc4a   :  { %v11107_v31 = vpop.eup %11106  ;;  %v4239_v7 = vadd.f32 1e-12, %v4219_v37  ;;  %v4184_v36 = vpop.xlane.xlu0 %4183  ;;  %v4337_v48 = vpack.c.bf16 %v13382_v2, %v13379_v43  ;;  %v13392_v51 = vadd.f32 %v13372_v58, %v4295_v21 }
 0xc4b   :  { %v11109_v17 = vpop.eup %11108  ;;  %v4187_v41 = vpop.xlane.xlu1 %4186  ;;  %v4220_v10 = vmul.f32 0.03125, %v4184_v36  ;;  %v4273_v13 = vmul.f32 %v11107_v31, %v13256_v32 }
 0xc4c   :  { %v4272_v33 = vmul.f32 %v11109_v17, %v13259_v47  ;;  %11118 = vrsqrt.f32 %v4239_v7  ;;  %v4221_v18 = vmul.f32 0.03125, %v4187_v41  ;;  %10307 = vmatprep.mubr.msk.bf16.mxu1 %vm825_vm14, %v4337_v48 }
 0xc4d   :  { %11120 = vrsqrt.f32 %v4238_v56  ;;  %v4240_v14 = vadd.f32 1e-12, %v4220_v10  ;;  %v4297_v59 = vmul.f32 %v13368_v27, %v4273_v13 }
 0xc4e   :  { %v11111_v55 = vpop.eup %11110  ;;  %v4296_v53 = vmul.f32 %v13368_v27, %v4272_v33  ;;  %v4241_v38 = vadd.f32 1e-12, %v4221_v18  ;;  %v4190_v16 = vpop.xlane.xlu0 %4189 }
 0xc4f   :  { %v11113_v46 = vpop.eup %11112  ;;  %v4193_v1 = vpop.xlane.xlu1 %4192  ;;  %v4275_v47 = vmul.f32 %v11111_v55, %v13267_v3  ;;  %v4222_v49 = vmul.f32 0.03125, %v4190_v16  ;;  %v13407_v34 = vadd.f32 %v13372_v58, %v4297_v59 }
 0xc50   :  { %v13396_v61 = vadd.f32 %v13372_v58, %v4296_v53  ;;  %11122 = vrsqrt.f32 %v4241_v38  ;;  %v4223_v23 = vmul.f32 0.03125, %v4193_v1  ;;  %v4274_v32 = vmul.f32 %v11113_v46, %v13270_v44 }
 0xc51   :  { %11124 = vrsqrt.f32 %v4240_v14  ;;  %v4242_v12 = vadd.f32 1e-12, %v4222_v49  ;;  %v4299_v57 = vmul.f32 %v13368_v27, %v4275_v47 }
 0xc52   :  { %v11115_v50 = vpop.eup %11114  ;;  %v4243_v26 = vadd.f32 1e-12, %v4223_v23  ;;  %v4338_v35 = vpack.c.bf16 %v13396_v61, %v13392_v51  ;;  %v4196_v3 = vpop.xlane.xlu0 %4195  ;;  %v4298_v54 = vmul.f32 %v13368_v27, %v4274_v32 }
 0xc53   :  { %v11117_v6 = vpop.eup %11116  ;;  %v4199_v4 = vpop.xlane.xlu1 %4198  ;;  %v4224_v44 = vmul.f32 0.03125, %v4196_v3  ;;  %v4277_v19 = vmul.f32 %v11115_v50, %v13279_v25  ;;  %v13417_v21 = vadd.f32 %v13372_v58, %v4299_v57 }
 0xc54   :  { %11126 = vrsqrt.f32 %v4243_v26  ;;  %v4225_v45 = vmul.f32 0.03125, %v4199_v4  ;;  %10308 = vmatmul.mubr.msk.bf16.vlgmr.msra.gmra.mrb[120].mxu1 %vm825_vm14, %v4338_v35  ;;  %v4276_v29 = vmul.f32 %v11117_v6, %v13282_v15  ;;  %v13410_v40 = vadd.f32 %v13372_v58, %v4298_v54 }
 0xc55   :  { %11128 = vrsqrt.f32 %v4242_v12  ;;  %v4244_v52 = vadd.f32 1e-12, %v4224_v44  ;;  %v4301_v18 = vmul.f32 %v13368_v27, %v4277_v19 }
 0xc56   :  { %v11119_v30 = vpop.eup %11118  ;;  %v4245_v37 = vadd.f32 1e-12, %v4225_v45  ;;  %v4300_v31 = vmul.f32 %v13368_v27, %v4276_v29  ;;  %v4339_v17 = vpack.c.bf16 %v13410_v40, %v13407_v34  ;;  %v4202_v15 = vpop.xlane.xlu0 %4201 }
 0xc57   :  { %v11121_v7 = vpop.eup %11120  ;;  %v4205_v56 = vpop.xlane.xlu1 %4204  ;;  %v4279_v41 = vmul.f32 %v11119_v30, %v13291_v9  ;;  %v4226_v48 = vmul.f32 0.03125, %v4202_v15  ;;  %v13434_v47 = vadd.f32 %v13372_v58, %v4301_v18 }
 0xc58   :  { %11130 = vrsqrt.f32 %v4245_v37  ;;  %v4227_v36 = vmul.f32 0.03125, %v4205_v56  ;;  %v13421_v25 = vadd.f32 %v13372_v58, %v4300_v31  ;;  %10311 = vmatprep.mubr.msk.bf16.mxu1 %vm825_vm14, %v4339_v17  ;;  %v4278_v33 = vmul.f32 %v11121_v7, %v13294_v39 }
 0xc59   :  { %11132 = vrsqrt.f32 %v4244_v52  ;;  %v4246_v55 = vadd.f32 1e-12, %v4226_v48  ;;  %v4303_v46 = vmul.f32 %v13368_v27, %v4279_v41 }
 0xc5a   :  { %v11123_v10 = vpop.eup %11122  ;;  %v4247_v13 = vadd.f32 1e-12, %v4227_v36  ;;  %v4340_v53 = vpack.c.bf16 %v13421_v25, %v13417_v21  ;;  %v4208_v38 = vpop.xlane.xlu0 %4207  ;;  %v4302_v14 = vmul.f32 %v13368_v27, %v4278_v33 }
 0xc5b   :  { %v11125_v9 = vpop.eup %11124  ;;  %v4281_v1 = vmul.f32 %v11123_v10, %v13303_v24  ;;  %v4228_v39 = vmul.f32 0.03125, %v4208_v38  ;;  %v13443_v26 = vadd.f32 %v13372_v58, %v4303_v46 }
 0xc5c   :  { %11134 = vrsqrt.f32 %v4247_v13  ;;  %10312 = vmatmul.mubr.msk.bf16.gmra.mrb[124].mxu1 %vm825_vm14, %v4340_v53  ;;  %v4280_v16 = vmul.f32 %v11125_v9, %v13306_v0  ;;  %v13437_v23 = vadd.f32 %v13372_v58, %v4302_v14  ;;  %v10887_v53 = vld [vmem:[%s15574_s12 + $0x18] sm:$0xff]   ;;  %v13519_v9 = vld [vmem:[%s15575_s11] ss:$0 sm:$0xff] }
 0xc5d   :  { %11136 = vrsqrt.f32 %v4246_v55  ;;  %v4248_v32 = vadd.f32 1e-12, %v4228_v39  ;;  %v4305_v0 = vmul.f32 %v13368_v27, %v4281_v1  ;;  %v10885_v55 = vld [vmem:[%s15574_s12 + $0x8] sm:$0xff]  }
 0xc5e   :  { %v11127_v49 = vpop.eup %11126  ;;  %v4304_v59 = vmul.f32 %v13368_v27, %v4280_v16  ;;  %v4341_v24 = vpack.c.bf16 %v13437_v23, %v13434_v47 }
 0xc5f   :  { %v11129_v50 = vpop.eup %11128  ;;  %11138 = vrsqrt.f32 %v4248_v32  ;;  %v4283_v6 = vmul.f32 %v11127_v49, %v13315_v8  ;;  %v13456_v45 = vadd.f32 %v13372_v58, %v4305_v0 }
 0xc60   :  { %v13447_v12 = vadd.f32 %v13372_v58, %v4304_v59  ;;  %v4282_v35 = vmul.f32 %v11129_v50, %v13318_v20  ;;  %10315 = vmatprep.mubr.msk.bf16.mxu1 %vm825_vm14, %v4341_v24 }
 0xc61   :  { %v4307_v8 = vmul.f32 %v13368_v27, %v4283_v6 }
 0xc62   :  { %v11131_v4 = vpop.eup %11130  ;;  %v4342_v3 = vpack.c.bf16 %v13447_v12, %v13443_v26  ;;  %v4306_v54 = vmul.f32 %v13368_v27, %v4282_v35 }
 0xc63   :  { %v11133_v57 = vpop.eup %11132  ;;  %v4285_v29 = vmul.f32 %v11131_v4, %v13327_v62  ;;  %v13471_v7 = vadd.f32 %v13372_v58, %v4307_v8 }
 0xc64   :  { %10316 = vmatmul.mubr.msk.bf16.gmra.mrb[128].mxu1 %vm825_vm14, %v4342_v3  ;;  %v13460_v44 = vadd.f32 %v13372_v58, %v4306_v54  ;;  %v4284_v20 = vmul.f32 %v11133_v57, %v13330_v42 }
 0xc65   :  { %v4309_v62 = vmul.f32 %v13368_v27, %v4285_v29 }
 0xc66   :  { %v11135_v19 = vpop.eup %11134  ;;  %v4343_v30 = vpack.c.bf16 %v13460_v44, %v13456_v45  ;;  %v4308_v37 = vmul.f32 %v13368_v27, %v4284_v20 }
 0xc67   :  { %v11137_v52 = vpop.eup %11136  ;;  %v4287_v31 = vmul.f32 %v11135_v19, %v13339_v63  ;;  %v13485_v48 = vadd.f32 %v13372_v58, %v4309_v62 }
 0xc68   :  { %10319 = vmatprep.mubr.msk.bf16.mxu1 %vm825_vm14, %v4343_v30  ;;  %v13474_v42 = vadd.f32 %v13372_v58, %v4308_v37  ;;  %v4286_v56 = vmul.f32 %v11137_v52, %v13342_v60 }
 0xc69   :  { %v11139_v17 = vpop.eup %11138  ;;  %v4311_v36 = vmul.f32 %v13368_v27, %v4287_v31 }
 0xc6a   :  { %v4344_v15 = vpack.c.bf16 %v13474_v42, %v13471_v7  ;;  %v4310_v41 = vmul.f32 %v13368_v27, %v4286_v56  ;;  %v4288_v63 = vmul.f32 %v11139_v17, %v13351_v11 }
 0xc6b   :  { %v13494_v10 = vadd.f32 %v13372_v58, %v4311_v36 }
 0xc6c   :  { %10320 = vmatmul.mubr.msk.bf16.gmra.mrb[132].mxu1 %vm825_vm14, %v4344_v15  ;;  %v13488_v33 = vadd.f32 %v13372_v58, %v4310_v41  ;;  %v4312_v60 = vmul.f32 %v13368_v27, %v4288_v63  ;;  %v10884_v27 = vld [vmem:[%s15574_s12] sm:$0xff]  }
 0xc6d   :  { %10327 = vmatprep.subr.bf16.mxu0 %v10884_v27 }
 0xc6e   :  { %v4345_v18 = vpack.c.bf16 %v13488_v33, %v13485_v48  ;;  %v13497_v11 = vadd.f32 %v13372_v58, %v4312_v60  ;;  %10328 = vmatpush3.bf16.msra.mxu0 %v10884_v27  ;;  %v10886_v58 = vld [vmem:[%s15574_s12 + $0x10] sm:$0xff]  }
 0xc6f   :  { %10329 = vmatprep.subr.bf16.mxu0 %v10885_v55 }
 0xc70   :  { %10323 = vmatprep.mubr.msk.bf16.mxu1 %vm825_vm14, %v4345_v18  ;;  %v4346_v13 = vpack.c.bf16 %v13497_v11, %v13494_v10 }
 0xc72   :  { %10330 = vmatpush3.bf16.msra.mxu0 %v10885_v55 }
 0xc73   :  { %10331 = vmatprep.subr.bf16.mxu0 %v10886_v58 }
 0xc74   :  { %10324 = vmatmul.mubr.msk.bf16.gmra.mrb[136].mxu1 %vm825_vm14, %v4346_v13 }
 0xc76   :  { %10332 = vmatpush3.bf16.msra.mxu0 %v10886_v58 }
 0xc77   :  { %10333 = vmatprep.subr.bf16.mxu0 %v10887_v53 }
 0xc7a   :  { %10334 = vmatpush3.bf16.msra.mxu0 %v10887_v53 }
 0xc7b   :  { %10379 = vmatprep.subr.bf16.mxu0 %v15657_v22 }
 0xd27   :  { %v10309_v38 = vpop.f32.mrb[120].mxu1 }
 0xd28   :  { %v4443_v14 = vadd.f32 %v10309_v38, %v13519_v9  ;;  %v4434_v46 = vpop.f32.mrb[121].mxu1 }
 0xd29   :  { %v4435_v1 = vadd.f32 %v13519_v9, %v4434_v46  ;;  %v10310_v39 = vpop.f32.mrb[122].mxu1 }
 0xd2a   :  { %v4535_v16 = vmul.f32 0.044715, %v4443_v14  ;;  %v4446_v49 = vadd.f32 %v10310_v39, %v13519_v9  ;;  %v4437_v32 = vpop.f32.mrb[123].mxu1  ;;  %v13525_v54 = vmul.f32 0.5, %v4443_v14 }
 0xd2b   :  { %v4533_v59 = vmul.f32 0.044715, %v4435_v1  ;;  %v4438_v50 = vadd.f32 %v13519_v9, %v4437_v32  ;;  %v13527_v29 = vmul.f32 0.5, %v4435_v1 }
 0xd2c   :  { %v4555_v24 = vmul.f32 %v4535_v16, %v4443_v14  ;;  %v4536_v0 = vmul.f32 0.044715, %v4446_v49  ;;  %v13529_v30 = vmul.f32 0.5, %v4446_v49 }
 0xd2d   :  { %v4553_v35 = vmul.f32 %v4533_v59, %v4435_v1  ;;  %v4534_v6 = vmul.f32 0.044715, %v4438_v50  ;;  %v13533_v41 = vmul.f32 0.5, %v4438_v50 }
 0xd2e   :  { %v4575_v4 = vmul.f32 %v4555_v24, %v4443_v14  ;;  %v4556_v3 = vmul.f32 %v4536_v0, %v4446_v49 }
 0xd2f   :  { %v4573_v57 = vmul.f32 %v4553_v35, %v4435_v1  ;;  %v4554_v20 = vmul.f32 %v4534_v6, %v4438_v50  ;;  %v10313_v8 = vpop.f32.mrb[124].mxu1 }
 0xd30   :  { %v4595_v19 = vadd.f32 %v4575_v4, %v4443_v14  ;;  %v4576_v37 = vmul.f32 %v4556_v3, %v4446_v49  ;;  %v4459_v52 = vadd.f32 %v10313_v8, %v13519_v9  ;;  %v4450_v31 = vpop.f32.mrb[125].mxu1 }
 0xd31   :  { %v4593_v56 = vadd.f32 %v4573_v57, %v4435_v1  ;;  %v4574_v62 = vmul.f32 %v4554_v20, %v4438_v50  ;;  %v4451_v17 = vadd.f32 %v13519_v9, %v4450_v31  ;;  %v10314_v15 = vpop.f32.mrb[126].mxu1 }
 0xd32   :  { %v4615_v63 = vmul.f32 0.7978846, %v4595_v19  ;;  %v4596_v36 = vadd.f32 %v4576_v37, %v4446_v49  ;;  %v4539_v60 = vmul.f32 0.044715, %v4459_v52  ;;  %v4462_v18 = vadd.f32 %v10314_v15, %v13519_v9  ;;  %v4453_v13 = vpop.f32.mrb[127].mxu1 }
 0xd33   :  { %v4613_v27 = vmul.f32 0.7978846, %v4593_v56  ;;  %v4594_v55 = vadd.f32 %v4574_v62, %v4438_v50  ;;  %v4537_v58 = vmul.f32 0.044715, %v4451_v17  ;;  %v4454_v53 = vadd.f32 %v13519_v9, %v4453_v13 }
 0xd34   :  { %11140 = vtanh.f32 %v4615_v63  ;;  %v4616_v38 = vmul.f32 0.7978846, %v4596_v36  ;;  %v4559_v14 = vmul.f32 %v4539_v60, %v4459_v52  ;;  %v4540_v46 = vmul.f32 0.044715, %v4462_v18 }
 0xd35   :  { %11142 = vtanh.f32 %v4613_v27  ;;  %v4614_v1 = vmul.f32 0.7978846, %v4594_v55  ;;  %v4557_v39 = vmul.f32 %v4537_v58, %v4451_v17  ;;  %v4538_v16 = vmul.f32 0.044715, %v4454_v53 }
 0xd36   :  { %11144 = vtanh.f32 %v4616_v38  ;;  %v4579_v32 = vmul.f32 %v4559_v14, %v4459_v52  ;;  %v4560_v49 = vmul.f32 %v4540_v46, %v4462_v18  ;;  %v13537_v59 = vmul.f32 0.5, %v4451_v17 }
 0xd37   :  { %11146 = vtanh.f32 %v4614_v1  ;;  %v4577_v24 = vmul.f32 %v4557_v39, %v4451_v17  ;;  %v4558_v0 = vmul.f32 %v4538_v16, %v4454_v53  ;;  %v10317_v50 = vpop.f32.mrb[128].mxu1  ;;  %v13539_v35 = vmul.f32 0.5, %v4454_v53 }
 0xd38   :  { %v4599_v6 = vadd.f32 %v4579_v32, %v4459_v52  ;;  %v4580_v4 = vmul.f32 %v4560_v49, %v4462_v18  ;;  %v13542_v3 = vadd.f32 %v10317_v50, %v13519_v9  ;;  %v4466_v57 = vpop.f32.mrb[129].mxu1  ;;  %v13544_v20 = vmul.f32 0.5, %v4459_v52 }
 0xd39   :  { %v4597_v8 = vadd.f32 %v4577_v24, %v4451_v17  ;;  %v4578_v19 = vmul.f32 %v4558_v0, %v4454_v53  ;;  %v4467_v37 = vadd.f32 %v13519_v9, %v4466_v57  ;;  %v10318_v31 = vpop.f32.mrb[130].mxu1  ;;  %v13547_v56 = vmul.f32 0.5, %v4462_v18 }
 0xd3a   :  { %v4619_v62 = vmul.f32 0.7978846, %v4599_v6  ;;  %v4600_v15 = vadd.f32 %v4580_v4, %v4462_v18  ;;  %v4543_v63 = vmul.f32 0.044715, %v13542_v3  ;;  %v13551_v36 = vadd.f32 %v10318_v31, %v13519_v9  ;;  %v4469_v60 = vpop.f32.mrb[131].mxu1 }
 0xd3b   :  { %v4617_v13 = vmul.f32 0.7978846, %v4597_v8  ;;  %v4598_v27 = vadd.f32 %v4578_v19, %v4454_v53  ;;  %v4541_v55 = vmul.f32 0.044715, %v4467_v37  ;;  %v13554_v52 = vadd.f32 %v13519_v9, %v4469_v60 }
 0xd3c   :  { %11148 = vtanh.f32 %v4619_v62  ;;  %v4620_v17 = vmul.f32 0.7978846, %v4600_v15  ;;  %v4563_v58 = vmul.f32 %v4543_v63, %v13542_v3  ;;  %v4544_v38 = vmul.f32 0.044715, %v13551_v36 }
 0xd3d   :  { %11150 = vtanh.f32 %v4617_v13  ;;  %v4618_v18 = vmul.f32 0.7978846, %v4598_v27  ;;  %v4561_v14 = vmul.f32 %v4541_v55, %v4467_v37  ;;  %v4542_v46 = vmul.f32 0.044715, %v13554_v52 }
 0xd3e   :  { %v11141_v1 = vpop.eup %11140  ;;  %11152 = vtanh.f32 %v4620_v17  ;;  %v4583_v39 = vmul.f32 %v4563_v58, %v13542_v3  ;;  %v4564_v53 = vmul.f32 %v4544_v38, %v13551_v36  ;;  %v13561_v16 = vmul.f32 0.5, %v4467_v37 }
 0xd3f   :  { %v11143_v32 = vpop.eup %11142  ;;  %v4655_v49 = vadd.f32 1.0, %v11141_v1  ;;  %11154 = vtanh.f32 %v4618_v18  ;;  %v4581_v24 = vmul.f32 %v4561_v14, %v4467_v37  ;;  %v4562_v0 = vmul.f32 %v4542_v46, %v13554_v52  ;;  %v10321_v50 = vpop.f32.mrb[132].mxu1 }
 0xd40   :  { %v11145_v6 = vpop.eup %11144  ;;  %v4603_v4 = vadd.f32 %v4583_v39, %v13542_v3  ;;  %v4584_v57 = vmul.f32 %v4564_v53, %v13551_v36  ;;  %v13567_v8 = vadd.f32 %v10321_v50, %v13519_v9  ;;  %v4482_v19 = vpop.f32.mrb[133].mxu1  ;;  %v4653_v31 = vadd.f32 1.0, %v11143_v32 }
 0xd41   :  { %v11147_v62 = vpop.eup %11146  ;;  %v13570_v15 = vmul.f32 %v4655_v49, %v13525_v54  ;;  %v4656_v63 = vadd.f32 1.0, %v11145_v6  ;;  %v4601_v60 = vadd.f32 %v4581_v24, %v4467_v37  ;;  %v4582_v13 = vmul.f32 %v4562_v0, %v13554_v52  ;;  %v10322_v27 = vpop.f32.mrb[134].mxu1 }
 0xd42   :  { %v4623_v55 = vmul.f32 0.7978846, %v4603_v4  ;;  %v4604_v17 = vadd.f32 %v4584_v57, %v13551_v36  ;;  %v4547_v58 = vmul.f32 0.044715, %v13567_v8  ;;  %v13576_v38 = vadd.f32 %v13519_v9, %v4482_v19  ;;  %v4485_v18 = vpop.f32.mrb[135].mxu1 }
 0xd43   :  { %v4676_v14 = vmul.f32 %v4656_v63, %v13529_v30  ;;  %v4621_v46 = vmul.f32 0.7978846, %v4601_v60  ;;  %v4602_v54 = vadd.f32 %v4582_v13, %v13554_v52  ;;  %v13581_v1 = vadd.f32 %v10322_v27, %v13519_v9 }
 0xd44   :  { %11156 = vtanh.f32 %v4623_v55  ;;  %v4624_v37 = vmul.f32 0.7978846, %v4604_v17  ;;  %v4567_v39 = vmul.f32 %v4547_v58, %v13567_v8  ;;  %v4545_v53 = vmul.f32 0.044715, %v13576_v38 }
 0xd45   :  { %v4694_v32 = vpack.c.bf16 %v4676_v14, %v13570_v15  ;;  %11158 = vtanh.f32 %v4621_v46  ;;  %v4622_v49 = vmul.f32 0.7978846, %v4602_v54  ;;  %v4548_v24 = vmul.f32 0.044715, %v13581_v1 }
 0xd46   :  { %v11149_v0 = vpop.eup %11148  ;;  %11160 = vtanh.f32 %v4624_v37  ;;  %v4587_v30 = vmul.f32 %v4567_v39, %v13567_v8  ;;  %v4565_v50 = vmul.f32 %v4545_v53, %v13576_v38  ;;  %v13590_v6 = vadd.f32 %v13519_v9, %v4485_v18 }
 0xd47   :  { %v11151_v4 = vpop.eup %11150  ;;  %11162 = vtanh.f32 %v4622_v49  ;;  %v4568_v57 = vmul.f32 %v4548_v24, %v13581_v1  ;;  %v10325_v19 = vpop.f32.mrb[136].mxu1  ;;  %v4654_v63 = vadd.f32 1.0, %v11147_v62  ;;  %v4673_v15 = vmul.f32 %v4653_v31, %v13527_v29 }
 0xd48   :  { %v11153_v60 = vpop.eup %11152  ;;  %v4607_v13 = vadd.f32 %v4587_v30, %v13567_v8  ;;  %v4585_v27 = vmul.f32 %v4565_v50, %v13576_v38  ;;  %v4546_v55 = vmul.f32 0.044715, %v13590_v6  ;;  %v13598_v17 = vadd.f32 %v10325_v19, %v13519_v9  ;;  %v4498_v58 = vpop.f32.mrb[137].mxu1 }
 0xd49   :  { %v11155_v18 = vpop.eup %11154  ;;  %v4588_v14 = vmul.f32 %v4568_v57, %v13581_v1  ;;  %v13602_v46 = vadd.f32 %v13519_v9, %v4498_v58  ;;  %v4674_v62 = vmul.f32 %v4654_v63, %v13533_v41  ;;  %v10326_v29 = vpop.f32.mrb[138].mxu1  ;;  %v4657_v31 = vadd.f32 1.0, %v11151_v4 }
 0xd4a   :  { %v4627_v54 = vmul.f32 0.7978846, %v4607_v13  ;;  %v4605_v37 = vadd.f32 %v4585_v27, %v13576_v38  ;;  %v4566_v39 = vmul.f32 %v4546_v55, %v13590_v6  ;;  %v4551_v53 = vmul.f32 0.044715, %v13598_v17  ;;  %v4501_v49 = vpop.f32.mrb[139].mxu1 }
 0xd4b   :  { %v4608_v24 = vadd.f32 %v4588_v14, %v13581_v1  ;;  %v4549_v30 = vmul.f32 0.044715, %v13602_v46  ;;  %v4693_v50 = vpack.c.bf16 %v4674_v62, %v4673_v15  ;;  %v13611_v57 = vadd.f32 %v10326_v29, %v13519_v9 }
 0xd4c   :  { %11164 = vtanh.f32 %v4627_v54  ;;  %v4625_v41 = vmul.f32 0.7978846, %v4605_v37  ;;  %v4586_v4 = vmul.f32 %v4566_v39, %v13590_v6  ;;  %v4571_v19 = vmul.f32 %v4551_v53, %v13598_v17 }
 0xd4d   :  { %v4628_v63 = vmul.f32 0.7978846, %v4608_v24  ;;  %v4569_v13 = vmul.f32 %v4549_v30, %v13602_v46  ;;  %10335 = vmatprep.mubr.msk.bf16.mxu0 %vm368_vm0, %v4693_v50  ;;  %v4552_v27 = vmul.f32 0.044715, %v13611_v57  ;;  %v13619_v55 = vadd.f32 %v13519_v9, %v4501_v49 }
 0xd4e   :  { %v11157_v15 = vpop.eup %11156  ;;  %11166 = vtanh.f32 %v4625_v41  ;;  %v4606_v58 = vadd.f32 %v4586_v4, %v13590_v6  ;;  %v4591_v14 = vmul.f32 %v4571_v19, %v13598_v17  ;;  %10336 = vmatmul.mubr.msk.bf16.vlgmr.msra.gmra.mrb[100].mxu0 %vm368_vm0, %v4694_v32  ;;  %v4658_v62 = vadd.f32 1.0, %v11155_v18 }
 0xd4f   :  { %v11159_v29 = vpop.eup %11158  ;;  %11168 = vtanh.f32 %v4628_v63  ;;  %v4589_v54 = vmul.f32 %v4569_v13, %v13602_v46  ;;  %v4572_v37 = vmul.f32 %v4552_v27, %v13611_v57  ;;  %v4550_v39 = vmul.f32 0.044715, %v13619_v55 }
 0xd50   :  { %v11161_v53 = vpop.eup %11160  ;;  %v4626_v9 = vmul.f32 0.7978846, %v4606_v58  ;;  %v4611_v49 = vadd.f32 %v4591_v14, %v13598_v17  ;;  %v4677_v24 = vmul.f32 %v4657_v31, %v13537_v59  ;;  %v4678_v30 = vmul.f32 %v4658_v62, %v13539_v35 }
 0xd51   :  { %v11163_v50 = vpop.eup %11162  ;;  %v4609_v32 = vadd.f32 %v4589_v54, %v13602_v46  ;;  %v4592_v18 = vmul.f32 %v4572_v37, %v13611_v57  ;;  %v4570_v41 = vmul.f32 %v4550_v39, %v13619_v55  ;;  %v4659_v4 = vadd.f32 1.0, %v11149_v0 }
 0xd52   :  { %11170 = vtanh.f32 %v4626_v9  ;;  %v4631_v19 = vmul.f32 0.7978846, %v4611_v49  ;;  %v4695_v63 = vpack.c.bf16 %v4678_v30, %v4677_v24  ;;  %v4660_v13 = vadd.f32 1.0, %v11153_v60 }
 0xd53   :  { %v4629_v27 = vmul.f32 0.7978846, %v4609_v32  ;;  %v4612_v58 = vadd.f32 %v4592_v18, %v13611_v57  ;;  %v4590_v14 = vmul.f32 %v4570_v41, %v13619_v55  ;;  %v4679_v59 = vmul.f32 %v4659_v4, %v13544_v20 }
 0xd54   :  { %11172 = vtanh.f32 %v4631_v19  ;;  %10339 = vmatprep.mubr.msk.bf16.mxu0 %vm368_vm0, %v4695_v63  ;;  %v4680_v35 = vmul.f32 %v4660_v13, %v13547_v56  ;;  %v4522_v31 = vmul.f32 0.5, %v13554_v52  ;;  %v4661_v62 = vadd.f32 1.0, %v11159_v29 }
 0xd55   :  { %11174 = vtanh.f32 %v4629_v27  ;;  %v4632_v0 = vmul.f32 0.7978846, %v4612_v58  ;;  %v4610_v54 = vadd.f32 %v4590_v14, %v13619_v55  ;;  %v4662_v60 = vadd.f32 1.0, %v11163_v50 }
 0xd56   :  { %v11165_v37 = vpop.eup %11164  ;;  %v4696_v39 = vpack.c.bf16 %v4680_v35, %v4679_v59  ;;  %v4681_v9 = vmul.f32 %v4661_v62, %v13561_v16  ;;  %v4523_v49 = vmul.f32 0.5, %v13542_v3  ;;  %v4663_v30 = vadd.f32 1.0, %v11157_v15 }
 0xd57   :  { %11176 = vtanh.f32 %v4632_v0  ;;  %v4630_v20 = vmul.f32 0.7978846, %v4610_v54  ;;  %v4682_v24 = vmul.f32 %v4662_v60, %v4522_v31  ;;  %v4524_v56 = vmul.f32 0.5, %v13551_v36 }
 0xd58   :  { %v11167_v32 = vpop.eup %11166  ;;  %10340 = vmatmul.mubr.msk.bf16.gmra.mrb[104].mxu0 %vm368_vm0, %v4696_v39  ;;  %v4664_v52 = vadd.f32 1.0, %v11161_v53  ;;  %v4683_v50 = vmul.f32 %v4663_v30, %v4523_v49  ;;  %v4527_v41 = vmul.f32 0.5, %v13567_v8  ;;  %v4528_v16 = vmul.f32 0.5, %v13581_v1 }
 0xd59   :  { %v11169_v29 = vpop.eup %11168  ;;  %11178 = vtanh.f32 %v4630_v20  ;;  %v4697_v18 = vpack.c.bf16 %v4682_v24, %v4681_v9  ;;  %v4667_v3 = vadd.f32 1.0, %v11165_v37  ;;  %v4665_v15 = vadd.f32 1.0, %v11167_v32 }
 0xd5a   :  { %v4684_v4 = vmul.f32 %v4664_v52, %v4524_v56  ;;  %v4668_v19 = vadd.f32 1.0, %v11169_v29  ;;  %v4525_v36 = vmul.f32 0.5, %v13576_v38  ;;  %v4526_v53 = vmul.f32 0.5, %v13590_v6 }
 0xd5b   :  { %10343 = vmatprep.mubr.msk.bf16.mxu0 %vm368_vm0, %v4697_v18  ;;  %v4687_v27 = vmul.f32 %v4667_v3, %v4527_v41  ;;  %v4531_v37 = vmul.f32 0.5, %v13598_v17  ;;  %v4532_v39 = vmul.f32 0.5, %v13611_v57  ;;  %v4529_v6 = vmul.f32 0.5, %v13602_v46  ;;  %v13663_v17 = vld [vmem:[%s15576_s13] ss:$0 sm:$0xff] }
 0xd5c   :  { %v11171_v63 = vpop.eup %11170  ;;  %v4698_v13 = vpack.c.bf16 %v4684_v4, %v4683_v50  ;;  %v4688_v58 = vmul.f32 %v4668_v19, %v4528_v16  ;;  %v4685_v31 = vmul.f32 %v4665_v15, %v4525_v36  ;;  %v4530_v49 = vmul.f32 0.5, %v13619_v55 }
 0xd5d   :  { %v4666_v14 = vadd.f32 1.0, %v11171_v63 }
 0xd5e   :  { %v11173_v59 = vpop.eup %11172  ;;  %v4700_v35 = vpack.c.bf16 %v4688_v58, %v4687_v27 }
 0xd5f   :  { %v11175_v8 = vpop.eup %11174  ;;  %v4686_v62 = vmul.f32 %v4666_v14, %v4526_v53  ;;  %v4671_v1 = vadd.f32 1.0, %v11173_v59 }
 0xd60   :  { %10344 = vmatmul.mubr.msk.bf16.gmra.mrb[108].mxu0 %vm368_vm0, %v4698_v13  ;;  %v4669_v60 = vadd.f32 1.0, %v11175_v8 }
 0xd61   :  { %v11177_v0 = vpop.eup %11176  ;;  %v4699_v54 = vpack.c.bf16 %v4686_v62, %v4685_v31  ;;  %v4691_v24 = vmul.f32 %v4671_v1, %v4531_v37 }
 0xd62   :  { %v4672_v9 = vadd.f32 1.0, %v11177_v0  ;;  %v4689_v32 = vmul.f32 %v4669_v60, %v4529_v6 }
 0xd63   :  { %v11179_v38 = vpop.eup %11178  ;;  %10347 = vmatprep.mubr.msk.bf16.mxu0 %vm368_vm0, %v4699_v54 }
 0xd64   :  { %v4670_v20 = vadd.f32 1.0, %v11179_v38  ;;  %v4692_v30 = vmul.f32 %v4672_v9, %v4532_v39 }
 0xd66   :  { %v4690_v56 = vmul.f32 %v4670_v20, %v4530_v49  ;;  %v4702_v52 = vpack.c.bf16 %v4692_v30, %v4691_v24 }
 0xd68   :  { %10348 = vmatmul.mubr.msk.bf16.gmra.mrb[112].mxu0 %vm368_vm0, %v4700_v35  ;;  %v4701_v29 = vpack.c.bf16 %v4690_v56, %v4689_v32 }
 0xd6a   :  { %10351 = vmatprep.mubr.msk.bf16.mxu0 %vm368_vm0, %v4701_v29 }
 0xd70   :  { %10352 = vmatmul.mubr.msk.bf16.gmra.mrb[116].mxu0 %vm368_vm0, %v4702_v52 }
 0xd71   :  { %10381 = vmatprep.mubr.msk.bf16.mxu0 %vm11486_vm8, %v15657_v22 }
 0xe21   :  { %v10337_v46 = vpop.f32.mrb[100].mxu0 }
 0xe22   :  { %v4806_v57 = vpop.f32.mrb[101].mxu0  ;;  %v4815_v55 = vadd.f32 %v10337_v46, %v13663_v17 }
 0xe23   :  { %v4807_v18 = vadd.f32 %v13663_v17, %v4806_v57  ;;  %v10338_v50 = vpop.f32.mrb[102].mxu0 }
 0xe24   :  { %v4809_v41 = vpop.f32.mrb[103].mxu0  ;;  %v4818_v16 = vadd.f32 %v10338_v50, %v13663_v17  ;;  %v13673_v19 = vadd.f32 %v4815_v55, %v13392_v51 }
 0xe25   :  { %v13668_v4 = vadd.f32 %v4807_v18, %v13379_v43  ;;  %v4810_v3 = vadd.f32 %v13663_v17, %v4809_v41 }
 0xe26   :  { %v13681_v13 = vadd.f32 %v4818_v16, %v13396_v61  ;;  %v4912_v58 = vsel %vm825_vm14, %v13673_v19, 0.0 }
 0xe27   :  { %v13676_v15 = vadd.f32 %v4810_v3, %v13382_v2  ;;  %v4906_v63 = vsel %vm825_vm14, %v13668_v4, 0.0 }
 0xe28   :  { %4907 = vadd.xlane.f32.xlu1 %v4906_v63  ;;  %v4915_v14 = vsel %vm825_vm14, %v13681_v13, 0.0 }
 0xe29   :  { %v4909_v43 = vsel %vm825_vm14, %v13676_v15, 0.0 }
 0xe2a   :  { %4910 = vadd.xlane.f32.xlu0 %v4909_v43 }
 0xe2b   :  { %v10341_v27 = vpop.f32.mrb[104].mxu0 }
 0xe2c   :  { %v4822_v51 = vpop.f32.mrb[105].mxu0  ;;  %4913 = vadd.xlane.f32.xlu1 %v4912_v58  ;;  %v4831_v2 = vadd.f32 %v10341_v27, %v13663_v17 }
 0xe2d   :  { %v4823_v36 = vadd.f32 %v13663_v17, %v4822_v51  ;;  %v10342_v53 = vpop.f32.mrb[106].mxu0 }
 0xe2e   :  { %v4825_v61 = vpop.f32.mrb[107].mxu0  ;;  %4916 = vadd.xlane.f32.xlu0 %v4915_v14  ;;  %v4834_v35 = vadd.f32 %v10342_v53, %v13663_v17  ;;  %v13697_v31 = vadd.f32 %v4831_v2, %v13417_v21 }
 0xe2f   :  { %v13692_v59 = vadd.f32 %v4823_v36, %v13407_v34  ;;  %v4826_v8 = vadd.f32 %v13663_v17, %v4825_v61 }
 0xe30   :  { %v13705_v0 = vadd.f32 %v4834_v35, %v13421_v25 }
 0xe31   :  { %v13700_v62 = vadd.f32 %v4826_v8, %v13410_v40  ;;  %v4918_v1 = vsel %vm825_vm14, %v13692_v59, 0.0  ;;  %v4924_v40 = vsel %vm825_vm14, %v13697_v31, 0.0 }
 0xe32   :  { %4919 = vadd.xlane.f32.xlu1 %v4918_v1  ;;  %v4927_v49 = vsel %vm825_vm14, %v13705_v0, 0.0 }
 0xe33   :  { %v10345_v54 = vpop.f32.mrb[108].mxu0  ;;  %v4921_v34 = vsel %vm825_vm14, %v13700_v62, 0.0 }
 0xe34   :  { %4922 = vadd.xlane.f32.xlu0 %v4921_v34  ;;  %v4838_v60 = vpop.f32.mrb[109].mxu0  ;;  %v4847_v37 = vadd.f32 %v10345_v54, %v13663_v17 }
 0xe35   :  { %v4839_v21 = vadd.f32 %v13663_v17, %v4838_v60  ;;  %v10346_v39 = vpop.f32.mrb[110].mxu0 }
 0xe36   :  { %4925 = vadd.xlane.f32.xlu1 %v4924_v40  ;;  %v4841_v9 = vpop.f32.mrb[111].mxu0  ;;  %v4850_v25 = vadd.f32 %v10346_v39, %v13663_v17  ;;  %v13721_v20 = vadd.f32 %v4847_v37, %v13443_v26 }
 0xe37   :  { %v13714_v38 = vadd.f32 %v4839_v21, %v13434_v47  ;;  %v4842_v6 = vadd.f32 %v13663_v17, %v4841_v9 }
 0xe38   :  { %4928 = vadd.xlane.f32.xlu0 %v4927_v49  ;;  %v13729_v47 = vadd.f32 %v4850_v25, %v13447_v12 }
 0xe39   :  { %v13724_v24 = vadd.f32 %v4842_v6, %v13437_v23  ;;  %v4930_v30 = vsel %vm825_vm14, %v13714_v38, 0.0  ;;  %v4936_v23 = vsel %vm825_vm14, %v13721_v20, 0.0 }
 0xe3a   :  { %4931 = vadd.xlane.f32.xlu1 %v4930_v30  ;;  %v4939_v50 = vsel %vm825_vm14, %v13729_v47, 0.0 }
 0xe3b   :  { %v10349_v32 = vpop.f32.mrb[112].mxu0  ;;  %v4933_v56 = vsel %vm825_vm14, %v13724_v24, 0.0 }
 0xe3c   :  { %4934 = vadd.xlane.f32.xlu0 %v4933_v56  ;;  %v4854_v52 = vpop.f32.mrb[113].mxu0  ;;  %v4863_v29 = vadd.f32 %v10349_v32, %v13663_v17 }
 0xe3d   :  { %v4855_v26 = vadd.f32 %v13663_v17, %v4854_v52  ;;  %v10350_v46 = vpop.f32.mrb[114].mxu0 }
 0xe3e   :  { %4937 = vadd.xlane.f32.xlu1 %v4936_v23  ;;  %v4857_v57 = vpop.f32.mrb[115].mxu0  ;;  %v4866_v12 = vadd.f32 %v10350_v46, %v13663_v17  ;;  %v13745_v41 = vadd.f32 %v4863_v29, %v13471_v7 }
 0xe3f   :  { %v13738_v55 = vadd.f32 %v4855_v26, %v13456_v45  ;;  %v4858_v18 = vadd.f32 %v13663_v17, %v4857_v57 }
 0xe40   :  { %4940 = vadd.xlane.f32.xlu0 %v4939_v50  ;;  %v13753_v45 = vadd.f32 %v4866_v12, %v13474_v42 }
 0xe41   :  { %v13748_v16 = vadd.f32 %v4858_v18, %v13460_v44  ;;  %v4942_v3 = vsel %vm825_vm14, %v13738_v55, 0.0  ;;  %v4948_v44 = vsel %vm825_vm14, %v13745_v41, 0.0 }
 0xe42   :  { %4943 = vadd.xlane.f32.xlu1 %v4942_v3  ;;  %v4951_v14 = vsel %vm825_vm14, %v13753_v45, 0.0 }
 0xe43   :  { %v10353_v63 = vpop.f32.mrb[116].mxu0  ;;  %v4945_v43 = vsel %vm825_vm14, %v13748_v16, 0.0 }
 0xe44   :  { %4946 = vadd.xlane.f32.xlu0 %v4945_v43  ;;  %v4870_v27 = vpop.f32.mrb[117].mxu0  ;;  %v4879_v58 = vadd.f32 %v10353_v63, %v13663_v17 }
 0xe45   :  { %v4871_v7 = vadd.f32 %v13663_v17, %v4870_v27  ;;  %v10354_v51 = vpop.f32.mrb[118].mxu0 }
 0xe46   :  { %4949 = vadd.xlane.f32.xlu1 %v4948_v44  ;;  %v4873_v2 = vpop.f32.mrb[119].mxu0  ;;  %v4882_v42 = vadd.f32 %v10354_v51, %v13663_v17  ;;  %v13769_v61 = vadd.f32 %v4879_v58, %v13494_v10 }
 0xe47   :  { %v13762_v36 = vadd.f32 %v4871_v7, %v13485_v48  ;;  %v4874_v53 = vadd.f32 %v13663_v17, %v4873_v2 }
 0xe48   :  { %4952 = vadd.xlane.f32.xlu0 %v4951_v14  ;;  %v13777_v48 = vadd.f32 %v4882_v42, %v13497_v11  ;;  %v4960_v1 = vsel %vm825_vm14, %v13769_v61, 0.0 }
 0xe49   :  { %v13772_v35 = vadd.f32 %v4874_v53, %v13488_v33  ;;  %v4954_v8 = vsel %vm825_vm14, %v13762_v36, 0.0 }
 0xe4a   :  { %4955 = vadd.xlane.f32.xlu1 %v4954_v8  ;;  %v4963_v10 = vsel %vm825_vm14, %v13777_v48, 0.0 }
 0xe4b   :  { %v4957_v17 = vsel %vm825_vm14, %v13772_v35, 0.0 }
 0xe4c   :  { %4958 = vadd.xlane.f32.xlu0 %v4957_v17 }
 0xe4e   :  { %4961 = vadd.xlane.f32.xlu1 %v4960_v1 }
 0xe50   :  { %4964 = vadd.xlane.f32.xlu0 %v4963_v10 }
 0xeb5   :  { %v4908_v33 = vpop.xlane.xlu1 %4907 }
 0xeb6   :  { %v4966_v54 = vmul.f32 0.03125, %v4908_v33 }
 0xeb7   :  { %v4911_v34 = vpop.xlane.xlu0 %4910 }
 0xeb8   :  { %v13786_v60 = vsub.f32 %v13668_v4, %v4966_v54  ;;  %v4967_v11 = vmul.f32 0.03125, %v4911_v34 }
 0xeb9   :  { %v4914_v37 = vpop.xlane.xlu1 %4913 }
 0xeba   :  { %v13789_v21 = vsub.f32 %v13676_v15, %v4967_v11  ;;  %v4968_v39 = vmul.f32 0.03125, %v4914_v37  ;;  %v5006_v40 = vmul.f32 %v13786_v60, %v13786_v60 }
 0xebb   :  { %v4917_v9 = vpop.xlane.xlu0 %4916 }
 0xebc   :  { %v13794_v25 = vsub.f32 %v13673_v19, %v4968_v39  ;;  %v4969_v6 = vmul.f32 0.03125, %v4917_v9  ;;  %v5026_v49 = vsel %vm825_vm14, %v5006_v40, 0.0  ;;  %v5007_v4 = vmul.f32 %v13789_v21, %v13789_v21 }
 0xebd   :  { %5027 = vadd.xlane.f32.xlu1 %v5026_v49 }
 0xebe   :  { %v13800_v30 = vsub.f32 %v13681_v13, %v4969_v6  ;;  %v5029_v15 = vsel %vm825_vm14, %v5007_v4, 0.0  ;;  %v5008_v32 = vmul.f32 %v13794_v25, %v13794_v25 }
 0xebf   :  { %v4920_v56 = vpop.xlane.xlu1 %4919  ;;  %5030 = vadd.xlane.f32.xlu0 %v5029_v15 }
 0xec0   :  { %v4970_v52 = vmul.f32 0.03125, %v4920_v56  ;;  %v5032_v19 = vsel %vm825_vm14, %v5008_v32, 0.0  ;;  %v5009_v29 = vmul.f32 %v13800_v30, %v13800_v30 }
 0xec1   :  { %v4923_v26 = vpop.xlane.xlu0 %4922  ;;  %5033 = vadd.xlane.f32.xlu1 %v5032_v19 }
 0xec2   :  { %v13809_v46 = vsub.f32 %v13692_v59, %v4970_v52  ;;  %v4971_v13 = vmul.f32 0.03125, %v4923_v26  ;;  %v5035_v23 = vsel %vm825_vm14, %v5009_v29, 0.0 }
 0xec3   :  { %v4926_v57 = vpop.xlane.xlu1 %4925  ;;  %5036 = vadd.xlane.f32.xlu0 %v5035_v23 }
 0xec4   :  { %v13813_v12 = vsub.f32 %v13700_v62, %v4971_v13  ;;  %v4972_v18 = vmul.f32 0.03125, %v4926_v57  ;;  %v5010_v50 = vmul.f32 %v13809_v46, %v13809_v46 }
 0xec5   :  { %v4929_v3 = vpop.xlane.xlu0 %4928 }
 0xec6   :  { %v13818_v63 = vsub.f32 %v13697_v31, %v4972_v18  ;;  %v4973_v43 = vmul.f32 0.03125, %v4929_v3  ;;  %v5038_v59 = vsel %vm825_vm14, %v5010_v50, 0.0  ;;  %v5011_v27 = vmul.f32 %v13813_v12, %v13813_v12 }
 0xec7   :  { %v4932_v58 = vpop.xlane.xlu1 %4931  ;;  %5039 = vadd.xlane.f32.xlu1 %v5038_v59 }
 0xec8   :  { %v13824_v7 = vsub.f32 %v13705_v0, %v4973_v43  ;;  %v4974_v62 = vmul.f32 0.03125, %v4932_v58  ;;  %v5041_v51 = vsel %vm825_vm14, %v5011_v27, 0.0  ;;  %v5012_v44 = vmul.f32 %v13818_v63, %v13818_v63 }
 0xec9   :  { %5042 = vadd.xlane.f32.xlu0 %v5041_v51  ;;  %v4935_v31 = vpop.xlane.xlu0 %4934 }
 0xeca   :  { %v13830_v2 = vsub.f32 %v13714_v38, %v4974_v62  ;;  %v4975_v42 = vmul.f32 0.03125, %v4935_v31  ;;  %v5044_v53 = vsel %vm825_vm14, %v5012_v44, 0.0  ;;  %v5013_v14 = vmul.f32 %v13824_v7, %v13824_v7 }
 0xecb   :  { %v4938_v8 = vpop.xlane.xlu1 %4937  ;;  %5045 = vadd.xlane.f32.xlu1 %v5044_v53 }
 0xecc   :  { %v13836_v0 = vsub.f32 %v13724_v24, %v4975_v42  ;;  %v4976_v17 = vmul.f32 0.03125, %v4938_v8  ;;  %v5047_v1 = vsel %vm825_vm14, %v5013_v14, 0.0  ;;  %v5014_v10 = vmul.f32 %v13830_v2, %v13830_v2 }
 0xecd   :  { %5048 = vadd.xlane.f32.xlu0 %v5047_v1  ;;  %v4941_v38 = vpop.xlane.xlu0 %4940 }
 0xece   :  { %v13842_v33 = vsub.f32 %v13721_v20, %v4976_v17  ;;  %v4977_v54 = vmul.f32 0.03125, %v4941_v38  ;;  %v5050_v34 = vsel %vm825_vm14, %v5014_v10, 0.0  ;;  %v5015_v11 = vmul.f32 %v13836_v0, %v13836_v0 }
 0xecf   :  { %v4944_v37 = vpop.xlane.xlu1 %4943  ;;  %5051 = vadd.xlane.f32.xlu1 %v5050_v34 }
 0xed0   :  { %v13848_v24 = vsub.f32 %v13729_v47, %v4977_v54  ;;  %v4978_v39 = vmul.f32 0.03125, %v4944_v37  ;;  %v5053_v40 = vsel %vm825_vm14, %v5015_v11, 0.0  ;;  %v5016_v9 = vmul.f32 %v13842_v33, %v13842_v33  ;;  %v10889_v54 = vld [vmem:[%s15567_s5 + $0x18] sm:$0xff]  }
 0xed1   :  { %5054 = vadd.xlane.f32.xlu0 %v5053_v40  ;;  %v4947_v20 = vpop.xlane.xlu0 %4946 }
 0xed2   :  { %v13854_v6 = vsub.f32 %v13738_v55, %v4978_v39  ;;  %v4979_v49 = vmul.f32 0.03125, %v4947_v20  ;;  %v5056_v4 = vsel %vm825_vm14, %v5016_v9, 0.0  ;;  %v5017_v15 = vmul.f32 %v13848_v24, %v13848_v24 }
 0xed3   :  { %v4950_v32 = vpop.xlane.xlu1 %4949  ;;  %5057 = vadd.xlane.f32.xlu1 %v5056_v4 }
 0xed4   :  { %v13860_v47 = vsub.f32 %v13748_v16, %v4979_v49  ;;  %v4980_v56 = vmul.f32 0.03125, %v4950_v32  ;;  %v5059_v52 = vsel %vm825_vm14, %v5017_v15, 0.0  ;;  %v5018_v19 = vmul.f32 %v13854_v6, %v13854_v6 }
 0xed5   :  { %5060 = vadd.xlane.f32.xlu0 %v5059_v52  ;;  %v4953_v55 = vpop.xlane.xlu0 %4952 }
 0xed6   :  { %v13866_v29 = vsub.f32 %v13745_v41, %v4980_v56  ;;  %v4981_v26 = vmul.f32 0.03125, %v4953_v55  ;;  %v5062_v13 = vsel %vm825_vm14, %v5018_v19, 0.0  ;;  %v5019_v23 = vmul.f32 %v13860_v47, %v13860_v47  ;;  %v4885_v19 = vld [vmem:[%s15577_s14] sm:$0x3] }
 0xed7   :  { %5063 = vadd.xlane.f32.xlu1 %v5062_v13  ;;  %v4956_v16 = vpop.xlane.xlu1 %4955 }
 0xed8   :  { %v13872_v57 = vsub.f32 %v13753_v45, %v4981_v26  ;;  %v4982_v18 = vmul.f32 0.03125, %v4956_v16  ;;  %v5065_v50 = vsel %vm825_vm14, %v5019_v23, 0.0  ;;  %v5020_v3 = vmul.f32 %v13866_v29, %v13866_v29 }
 0xed9   :  { %5066 = vadd.xlane.f32.xlu0 %v5065_v50  ;;  %v4959_v41 = vpop.xlane.xlu0 %4958  ;;  %v13916_v16 = vrot.slane %v4885_v19, %v15675_v5 }
 0xeda   :  { %v13878_v43 = vsub.f32 %v13762_v36, %v4982_v18  ;;  %v4983_v59 = vmul.f32 0.03125, %v4959_v41  ;;  %v5068_v27 = vsel %vm825_vm14, %v5020_v3, 0.0  ;;  %v5021_v58 = vmul.f32 %v13872_v57, %v13872_v57 }
 0xedb   :  { %5069 = vadd.xlane.f32.xlu1 %v5068_v27  ;;  %v4962_v45 = vpop.xlane.xlu1 %4961 }
 0xedc   :  { %v13884_v62 = vsub.f32 %v13772_v35, %v4983_v59  ;;  %v4984_v51 = vmul.f32 0.03125, %v4962_v45  ;;  %v5071_v44 = vsel %vm825_vm14, %v5021_v58, 0.0  ;;  %v5022_v31 = vmul.f32 %v13878_v43, %v13878_v43 }
 0xedd   :  { %5072 = vadd.xlane.f32.xlu0 %v5071_v44  ;;  %v4965_v36 = vpop.xlane.xlu0 %4964  ;;  %v13920_v44 = vrot.slane %v4885_v19, %v15676_v28 }
 0xede   :  { %v13890_v42 = vsub.f32 %v13769_v61, %v4984_v51  ;;  %v4985_v53 = vmul.f32 0.03125, %v4965_v36  ;;  %v5074_v14 = vsel %vm825_vm14, %v5022_v31, 0.0  ;;  %v5023_v8 = vmul.f32 %v13884_v62, %v13884_v62 }
 0xedf   :  { %5075 = vadd.xlane.f32.xlu1 %v5074_v14 }
 0xee0   :  { %v13896_v35 = vsub.f32 %v13777_v48, %v4985_v53  ;;  %v5077_v17 = vsel %vm825_vm14, %v5023_v8, 0.0  ;;  %v5024_v1 = vmul.f32 %v13890_v42, %v13890_v42  ;;  %v10888_v48 = vld [vmem:[%s15567_s5 + $0x10] sm:$0xff]  }
 0xee1   :  { %5078 = vadd.xlane.f32.xlu0 %v5077_v17  ;;  %10355 = vmatprep.subr.bf16.mxu1 %v10888_v48 }
 0xee2   :  { %v5080_v10 = vsel %vm825_vm14, %v5024_v1, 0.0  ;;  %v5025_v61 = vmul.f32 %v13896_v35, %v13896_v35  ;;  %10356 = vmatpush3.bf16.msra.mxu1 %v10888_v48 }
 0xee3   :  { %5081 = vadd.xlane.f32.xlu1 %v5080_v10  ;;  %10357 = vmatprep.subr.bf16.mxu1 %v10889_v54 }
 0xee4   :  { %v5083_v38 = vsel %vm825_vm14, %v5025_v61, 0.0 }
 0xee5   :  { %5084 = vadd.xlane.f32.xlu0 %v5083_v38 }
 0xee6   :  { %10358 = vmatpush3.bf16.msra.mxu1 %v10889_v54 }
 0xee7   :  { %10385 = vmatprep.subr.bf16.mxu1 %v15657_v22 }
 0xf4a   :  { %v5028_v34 = vpop.xlane.xlu1 %5027 }
 0xf4b   :  { %v5086_v11 = vmul.f32 0.03125, %v5028_v34 }
 0xf4c   :  { %v5031_v37 = vpop.xlane.xlu0 %5030 }
 0xf4d   :  { %v5106_v39 = vadd.f32 1e-12, %v5086_v11  ;;  %v5087_v40 = vmul.f32 0.03125, %v5031_v37 }
 0xf4e   :  { %v5034_v9 = vpop.xlane.xlu1 %5033 }
 0xf4f   :  { %11180 = vrsqrt.f32 %v5106_v39  ;;  %v5107_v20 = vadd.f32 1e-12, %v5087_v40  ;;  %v5088_v49 = vmul.f32 0.03125, %v5034_v9 }
 0xf50   :  { %v5037_v4 = vpop.xlane.xlu0 %5036 }
 0xf51   :  { %11182 = vrsqrt.f32 %v5107_v20  ;;  %v5108_v15 = vadd.f32 1e-12, %v5088_v49  ;;  %v5089_v32 = vmul.f32 0.03125, %v5037_v4 }
 0xf53   :  { %11184 = vrsqrt.f32 %v5108_v15  ;;  %v5109_v56 = vadd.f32 1e-12, %v5089_v32 }
 0xf54   :  { %v5040_v52 = vpop.xlane.xlu1 %5039 }
 0xf55   :  { %11186 = vrsqrt.f32 %v5109_v56  ;;  %v5090_v55 = vmul.f32 0.03125, %v5040_v52 }
 0xf56   :  { %v5043_v26 = vpop.xlane.xlu0 %5042 }
 0xf57   :  { %v5110_v13 = vadd.f32 1e-12, %v5090_v55  ;;  %v5091_v23 = vmul.f32 0.03125, %v5043_v26 }
 0xf58   :  { %v5046_v18 = vpop.xlane.xlu1 %5045 }
 0xf59   :  { %v11181_v50 = vpop.eup %11180  ;;  %11188 = vrsqrt.f32 %v5110_v13  ;;  %v5111_v3 = vadd.f32 1e-12, %v5091_v23  ;;  %v5092_v41 = vmul.f32 0.03125, %v5046_v18 }
 0xf5a   :  { %v5049_v59 = vpop.xlane.xlu0 %5048  ;;  %v5146_v27 = vmul.f32 %v11181_v50, %v13786_v60 }
 0xf5b   :  { %v11183_v58 = vpop.eup %11182  ;;  %11190 = vrsqrt.f32 %v5111_v3  ;;  %v5112_v45 = vadd.f32 1e-12, %v5092_v41  ;;  %v5093_v51 = vmul.f32 0.03125, %v5049_v59 }
 0xf5c   :  { %v5052_v31 = vpop.xlane.xlu1 %5051  ;;  %v5147_v36 = vmul.f32 %v11183_v58, %v13789_v21  ;;  %v5170_v53 = vmul.f32 %v13916_v16, %v5146_v27 }
 0xf5d   :  { %v11185_v14 = vpop.eup %11184  ;;  %11192 = vrsqrt.f32 %v5112_v45  ;;  %v5113_v8 = vadd.f32 1e-12, %v5093_v51  ;;  %v5094_v17 = vmul.f32 0.03125, %v5052_v31 }
 0xf5e   :  { %v5148_v1 = vmul.f32 %v11185_v14, %v13794_v25  ;;  %v5055_v10 = vpop.xlane.xlu0 %5054  ;;  %v5171_v60 = vmul.f32 %v13916_v16, %v5147_v36  ;;  %v13929_v11 = vadd.f32 %v13920_v44, %v5170_v53 }
 0xf5f   :  { %v11187_v61 = vpop.eup %11186  ;;  %11194 = vrsqrt.f32 %v5113_v8  ;;  %v5114_v38 = vadd.f32 1e-12, %v5094_v17  ;;  %v5095_v48 = vmul.f32 0.03125, %v5055_v10 }
 0xf60   :  { %v5172_v54 = vmul.f32 %v13916_v16, %v5148_v1  ;;  %v5149_v34 = vmul.f32 %v11187_v61, %v13800_v30  ;;  %v5058_v21 = vpop.xlane.xlu1 %5057  ;;  %v13932_v37 = vadd.f32 %v13920_v44, %v5171_v60 }
 0xf61   :  { %11196 = vrsqrt.f32 %v5114_v38  ;;  %v5115_v25 = vadd.f32 1e-12, %v5095_v48  ;;  %v5096_v39 = vmul.f32 0.03125, %v5058_v21 }
 0xf62   :  { %15677 = vst [vmem:[#allocation5_spill] sm:$0xff] %v13932_v37  ;;  %v5173_v40 = vmul.f32 %v13916_v16, %v5149_v34  ;;  %v5061_v9 = vpop.xlane.xlu0 %5060  ;;  %v5214_v20 = vpack.c.bf16 %v13932_v37, %v13929_v11  ;;  %v13938_v15 = vadd.f32 %v13920_v44, %v5172_v54 }
 0xf63   :  { %v11189_v49 = vpop.eup %11188  ;;  %11198 = vrsqrt.f32 %v5115_v25  ;;  %v5116_v4 = vadd.f32 1e-12, %v5096_v39  ;;  %v5097_v30 = vmul.f32 0.03125, %v5061_v9 }
 0xf64   :  { %v13941_v32 = vadd.f32 %v13920_v44, %v5173_v40  ;;  %v5064_v56 = vpop.xlane.xlu1 %5063  ;;  %10359 = vmatprep.mubr.msk.bf16.mxu1 %vm825_vm14, %v5214_v20  ;;  %v5150_v52 = vmul.f32 %v11189_v49, %v13809_v46 }
 0xf65   :  { %v11191_v19 = vpop.eup %11190  ;;  %11200 = vrsqrt.f32 %v5116_v4  ;;  %v5117_v55 = vadd.f32 1e-12, %v5097_v30  ;;  %v5098_v26 = vmul.f32 0.03125, %v5064_v56 }
 0xf66   :  { %15678 = vst [vmem:[#allocation6_spill] sm:$0xff] %v13941_v32  ;;  %v5067_v13 = vpop.xlane.xlu0 %5066  ;;  %v5215_v23 = vpack.c.bf16 %v13941_v32, %v13938_v15  ;;  %v5151_v18 = vmul.f32 %v11191_v19, %v13813_v12  ;;  %v5174_v50 = vmul.f32 %v13916_v16, %v5150_v52 }
 0xf67   :  { %v11193_v3 = vpop.eup %11192  ;;  %11202 = vrsqrt.f32 %v5117_v55  ;;  %v5118_v41 = vadd.f32 1e-12, %v5098_v26  ;;  %v5099_v59 = vmul.f32 0.03125, %v5067_v13 }
 0xf68   :  { %v5070_v27 = vpop.xlane.xlu1 %5069  ;;  %10360 = vmatmul.mubr.msk.bf16.vlgmr.msra.gmra.mrb[140].mxu1 %vm825_vm14, %v5215_v23  ;;  %v5175_v46 = vmul.f32 %v13916_v16, %v5151_v18  ;;  %v5152_v58 = vmul.f32 %v11193_v3, %v13818_v63  ;;  %v13953_v12 = vadd.f32 %v13920_v44, %v5174_v50 }
 0xf69   :  { %v11195_v45 = vpop.eup %11194  ;;  %11204 = vrsqrt.f32 %v5118_v41  ;;  %v5119_v51 = vadd.f32 1e-12, %v5099_v59  ;;  %v5100_v31 = vmul.f32 0.03125, %v5070_v27 }
 0xf6a   :  { %v5073_v36 = vpop.xlane.xlu0 %5072  ;;  %15679 = vst [vmem:[#allocation8_spill] sm:$0xff] %v13953_v12  ;;  %v13956_v53 = vadd.f32 %v13920_v44, %v5175_v46  ;;  %v5153_v14 = vmul.f32 %v11195_v45, %v13824_v7  ;;  %v5176_v8 = vmul.f32 %v13916_v16, %v5152_v58 }
 0xf6b   :  { %v11197_v17 = vpop.eup %11196  ;;  %11206 = vrsqrt.f32 %v5119_v51  ;;  %v5120_v1 = vadd.f32 1e-12, %v5100_v31  ;;  %v5101_v10 = vmul.f32 0.03125, %v5073_v36 }
 0xf6c   :  { %15680 = vst [vmem:[#allocation7_spill] sm:$0xff] %v13956_v53  ;;  %v5076_v63 = vpop.xlane.xlu1 %5075  ;;  %v5216_v60 = vpack.c.bf16 %v13956_v53, %v13953_v12  ;;  %v5177_v61 = vmul.f32 %v13916_v16, %v5153_v14  ;;  %v5154_v38 = vmul.f32 %v11197_v17, %v13830_v2  ;;  %v13966_v21 = vadd.f32 %v13920_v44, %v5176_v8 }
 0xf6d   :  { %v11199_v48 = vpop.eup %11198  ;;  %11208 = vrsqrt.f32 %v5120_v1  ;;  %v5121_v54 = vadd.f32 1e-12, %v5101_v10  ;;  %v5102_v34 = vmul.f32 0.03125, %v5076_v63 }
 0xf6e   :  { %10363 = vmatprep.mubr.msk.bf16.mxu1 %vm825_vm14, %v5216_v60  ;;  %v5079_v7 = vpop.xlane.xlu0 %5078  ;;  %15681 = vst [vmem:[#allocation9_spill] sm:$0xff] %v13966_v21  ;;  %v13969_v25 = vadd.f32 %v13920_v44, %v5177_v61  ;;  %v5155_v39 = vmul.f32 %v11199_v48, %v13836_v0  ;;  %v5178_v40 = vmul.f32 %v13916_v16, %v5154_v38 }
 0xf6f   :  { %v11201_v9 = vpop.eup %11200  ;;  %11210 = vrsqrt.f32 %v5121_v54  ;;  %v5122_v2 = vadd.f32 1e-12, %v5102_v34  ;;  %v5103_v20 = vmul.f32 0.03125, %v5079_v7 }
 0xf70   :  { %15682 = vst [vmem:[#allocation10_spill] sm:$0xff] %v13969_v25  ;;  %v5082_v49 = vpop.xlane.xlu1 %5081  ;;  %v5217_v4 = vpack.c.bf16 %v13969_v25, %v13966_v21  ;;  %v5179_v30 = vmul.f32 %v13916_v16, %v5155_v39  ;;  %v5156_v56 = vmul.f32 %v11201_v9, %v13842_v33  ;;  %v13979_v26 = vadd.f32 %v13920_v44, %v5178_v40 }
 0xf71   :  { %v11203_v52 = vpop.eup %11202  ;;  %11212 = vrsqrt.f32 %v5122_v2  ;;  %v5123_v19 = vadd.f32 1e-12, %v5103_v20  ;;  %v5104_v55 = vmul.f32 0.03125, %v5082_v49 }
 0xf72   :  { %10364 = vmatmul.mubr.msk.bf16.gmra.mrb[144].mxu1 %vm825_vm14, %v5217_v4  ;;  %v5085_v0 = vpop.xlane.xlu0 %5084  ;;  %15683 = vst [vmem:[#allocation12_spill] sm:$0xff] %v13979_v26  ;;  %v13982_v13 = vadd.f32 %v13920_v44, %v5179_v30  ;;  %v5157_v23 = vmul.f32 %v11203_v52, %v13848_v24  ;;  %v5180_v18 = vmul.f32 %v13916_v16, %v5156_v56 }
 0xf73   :  { %v11205_v50 = vpop.eup %11204  ;;  %11214 = vrsqrt.f32 %v5123_v19  ;;  %v5124_v33 = vadd.f32 1e-12, %v5104_v55  ;;  %v5105_v3 = vmul.f32 0.03125, %v5085_v0 }
 0xf74   :  { %15684 = vst [vmem:[#allocation11_spill] sm:$0xff] %v13982_v13  ;;  %v5218_v41 = vpack.c.bf16 %v13982_v13, %v13979_v26  ;;  %v5181_v59 = vmul.f32 %v13916_v16, %v5157_v23  ;;  %v5158_v27 = vmul.f32 %v11205_v50, %v13854_v6  ;;  %v13992_v24 = vadd.f32 %v13920_v44, %v5180_v18 }
 0xf75   :  { %v11207_v46 = vpop.eup %11206  ;;  %11216 = vrsqrt.f32 %v5124_v33  ;;  %v5125_v58 = vadd.f32 1e-12, %v5105_v3 }
 0xf76   :  { %10367 = vmatprep.mubr.msk.bf16.mxu1 %vm825_vm14, %v5218_v41  ;;  %15685 = vst [vmem:[#allocation13_spill] sm:$0xff] %v13992_v24  ;;  %v13995_v45 = vadd.f32 %v13920_v44, %v5181_v59  ;;  %v5159_v51 = vmul.f32 %v11207_v46, %v13860_v47  ;;  %v5182_v31 = vmul.f32 %v13916_v16, %v5158_v27 }
 0xf77   :  { %v11209_v36 = vpop.eup %11208  ;;  %11218 = vrsqrt.f32 %v5125_v58 }
 0xf78   :  { %15686 = vst [vmem:[#allocation14_spill] sm:$0xff] %v13995_v45  ;;  %v5219_v6 = vpack.c.bf16 %v13995_v45, %v13992_v24  ;;  %v5183_v14 = vmul.f32 %v13916_v16, %v5159_v51  ;;  %v5160_v8 = vmul.f32 %v11209_v36, %v13866_v29  ;;  %v14005_v1 = vadd.f32 %v13920_v44, %v5182_v31 }
 0xf79   :  { %v11211_v17 = vpop.eup %11210 }
 0xf7a   :  { %10368 = vmatmul.mubr.msk.bf16.gmra.mrb[148].mxu1 %vm825_vm14, %v5219_v6  ;;  %15687 = vst [vmem:[#allocation16_spill] sm:$0xff] %v14005_v1  ;;  %v14008_v10 = vadd.f32 %v13920_v44, %v5183_v14  ;;  %v5161_v47 = vmul.f32 %v11211_v17, %v13872_v57  ;;  %v5184_v63 = vmul.f32 %v13916_v16, %v5160_v8 }
 0xf7b   :  { %v11213_v60 = vpop.eup %11212 }
 0xf7c   :  { %15688 = vst [vmem:[#allocation15_spill] sm:$0xff] %v14008_v10  ;;  %v5220_v61 = vpack.c.bf16 %v14008_v10, %v14005_v1  ;;  %v5185_v38 = vmul.f32 %v13916_v16, %v5161_v47  ;;  %v5162_v29 = vmul.f32 %v11213_v60, %v13878_v43  ;;  %v14018_v54 = vadd.f32 %v13920_v44, %v5184_v63 }
 0xf7d   :  { %v11215_v48 = vpop.eup %11214 }
 0xf7e   :  { %10371 = vmatprep.mubr.msk.bf16.mxu1 %vm825_vm14, %v5220_v61  ;;  %15689 = vst [vmem:[#allocation17_spill] sm:$0xff] %v14018_v54  ;;  %v14021_v34 = vadd.f32 %v13920_v44, %v5185_v38  ;;  %v5163_v57 = vmul.f32 %v11215_v48, %v13884_v62  ;;  %v5186_v7 = vmul.f32 %v13916_v16, %v5162_v29 }
 0xf7f   :  { %v11217_v39 = vpop.eup %11216 }
 0xf80   :  { %15690 = vst [vmem:[#allocation18_spill] sm:$0xff] %v14021_v34  ;;  %v5221_v40 = vpack.c.bf16 %v14021_v34, %v14018_v54  ;;  %v5187_v9 = vmul.f32 %v13916_v16, %v5163_v57  ;;  %v5164_v43 = vmul.f32 %v11217_v39, %v13890_v42  ;;  %v14031_v20 = vadd.f32 %v13920_v44, %v5186_v7 }
 0xf81   :  { %v11219_v2 = vpop.eup %11218 }
 0xf82   :  { %10372 = vmatmul.mubr.msk.bf16.gmra.mrb[152].mxu1 %vm825_vm14, %v5221_v40  ;;  %15691 = vst [vmem:[#allocation20_spill] sm:$0xff] %v14031_v20  ;;  %v14034_v49 = vadd.f32 %v13920_v44, %v5187_v9  ;;  %v5165_v62 = vmul.f32 %v11219_v2, %v13896_v35  ;;  %v5188_v4 = vmul.f32 %v13916_v16, %v5164_v43 }
 0xf84   :  { %15692 = vst [vmem:[#allocation19_spill] sm:$0xff] %v14034_v49  ;;  %v5222_v30 = vpack.c.bf16 %v14034_v49, %v14031_v20  ;;  %v5189_v56 = vmul.f32 %v13916_v16, %v5165_v62  ;;  %v14043_v42 = vadd.f32 %v13920_v44, %v5188_v4  ;;  %v9468_v16 = vld [vmem:[%s15569_s6 + $0x1] ss:$0 sm:$0xff] }
 0xf86   :  { %10375 = vmatprep.mubr.msk.bf16.mxu1 %vm825_vm14, %v5222_v30  ;;  %15693 = vst [vmem:[#allocation21_spill] sm:$0xff] %v14043_v42  ;;  %v14046_v52 = vadd.f32 %v13920_v44, %v5189_v56 }
 0xf88   :  { %15694 = vst [vmem:[#allocation22_spill] sm:$0xff] %v14046_v52  ;;  %v5223_v19 = vpack.c.bf16 %v14046_v52, %v14043_v42 }
 0xf8a   :  { %10376 = vmatmul.mubr.msk.bf16.gmra.mrb[156].mxu1 %vm825_vm14, %v5223_v19 }
 0xf8b   :  { %10387 = vmatprep.mubr.msk.bf16.mxu1 %vm11486_vm8, %v15657_v22 }
0x103b   :  { %v10361_v35 = vpop.f32.mrb[140].mxu1 }
0x103c   :  { %v5313_v55 = vpop.f32.mrb[141].mxu1  ;;  %v5322_v23 = vadd.f32 %v10361_v35, %v9468_v16 }
0x103d   :  { %v10362_v0 = vpop.f32.mrb[142].mxu1  ;;  %v5314_v44 = vadd.f32 %v9468_v16, %v5313_v55 }
0x103e   :  { %v5325_v18 = vadd.f32 %v10362_v0, %v9468_v16  ;;  %v5316_v50 = vpop.f32.mrb[143].mxu1 }
0x103f   :  { %v5317_v33 = vadd.f32 %v9468_v16, %v5316_v50 }
0x1040   :  { %v14056_v3 = vpack.c.bf16 %v5325_v18, %v5322_v23 }
0x1041   :  { %v14058_v41 = vpack.c.bf16 %v5317_v33, %v5314_v44 }
0x1042   :  { %5453 = vrot.lane.b32.xlu0 %v14056_v3, %s11487_s23 }
0x1043   :  { %5403 = vrot.lane.b32.xlu1 %v14058_v41, %s11487_s23 }
0x1045   :  { %v10365_v59 = vpop.f32.mrb[144].mxu1 }
0x1046   :  { %v5329_v27 = vpop.f32.mrb[145].mxu1  ;;  %v5338_v58 = vadd.f32 %v10365_v59, %v9468_v16 }
0x1047   :  { %v10366_v46 = vpop.f32.mrb[146].mxu1  ;;  %v5330_v36 = vadd.f32 %v9468_v16, %v5329_v27 }
0x1048   :  { %v5341_v51 = vadd.f32 %v10366_v46, %v9468_v16  ;;  %v5332_v31 = vpop.f32.mrb[147].mxu1 }
0x1049   :  { %v5333_v6 = vadd.f32 %v9468_v16, %v5332_v31 }
0x104a   :  { %v14064_v14 = vpack.c.bf16 %v5341_v51, %v5338_v58 }
0x104b   :  { %v14066_v8 = vpack.c.bf16 %v5333_v6, %v5330_v36 }
0x104d   :  { %5503 = vrot.lane.b32.xlu1 %v14066_v8, %s11487_s23  ;;  %v10369_v17 = vpop.f32.mrb[148].mxu1 }
0x104e   :  { %v5345_v47 = vpop.f32.mrb[149].mxu1  ;;  %v5354_v60 = vadd.f32 %v10369_v17, %v9468_v16 }
0x104f   :  { %v10370_v63 = vpop.f32.mrb[150].mxu1  ;;  %v5346_v29 = vadd.f32 %v9468_v16, %v5345_v47 }
0x1050   :  { %v5357_v61 = vadd.f32 %v10370_v63, %v9468_v16  ;;  %v5348_v38 = vpop.f32.mrb[151].mxu1 }
0x1051   :  { %v5349_v48 = vadd.f32 %v9468_v16, %v5348_v38  ;;  %5553 = vrot.lane.b32.xlu1 %v14064_v14, %s11487_s23 }
0x1052   :  { %v14072_v57 = vpack.c.bf16 %v5357_v61, %v5354_v60 }
0x1053   :  { %v14074_v7 = vpack.c.bf16 %v5349_v48, %v5346_v29 }
0x1055   :  { %5653 = vrot.lane.b32.xlu1 %v14072_v57, %s11487_s23  ;;  %5603 = vrot.lane.b32.xlu0 %v14074_v7, %s11487_s23  ;;  %v10373_v39 = vpop.f32.mrb[152].mxu1 }
0x1056   :  { %v5361_v40 = vpop.f32.mrb[153].mxu1  ;;  %v5370_v43 = vadd.f32 %v10373_v39, %v9468_v16 }
0x1057   :  { %v10374_v9 = vpop.f32.mrb[154].mxu1  ;;  %v5362_v4 = vadd.f32 %v9468_v16, %v5361_v40 }
0x1058   :  { %v5373_v2 = vadd.f32 %v10374_v9, %v9468_v16  ;;  %v5364_v62 = vpop.f32.mrb[155].mxu1 }
0x1059   :  { %v5365_v30 = vadd.f32 %v9468_v16, %v5364_v62 }
0x105a   :  { %v14080_v56 = vpack.c.bf16 %v5373_v2, %v5370_v43 }
0x105b   :  { %v14082_v19 = vpack.c.bf16 %v5365_v30, %v5362_v4 }
0x105c   :  { %5753 = vrot.lane.b32.xlu1 %v14080_v56, %s11487_s23 }
0x105d   :  { %5703 = vrot.lane.b32.xlu0 %v14082_v19, %s11487_s23  ;;  %v10377_v35 = vpop.f32.mrb[156].mxu1 }
0x105e   :  { %v5377_v55 = vpop.f32.mrb[157].mxu1  ;;  %v5386_v23 = vadd.f32 %v10377_v35, %v9468_v16 }
0x105f   :  { %v10378_v0 = vpop.f32.mrb[158].mxu1  ;;  %v5378_v44 = vadd.f32 %v9468_v16, %v5377_v55 }
0x1060   :  { %v5389_v18 = vadd.f32 %v10378_v0, %v9468_v16  ;;  %v5380_v50 = vpop.f32.mrb[159].mxu1 }
0x1061   :  { %v5381_v33 = vadd.f32 %v9468_v16, %v5380_v50 }
0x1062   :  { %v14088_v59 = vpack.c.bf16 %v5389_v18, %v5386_v23 }
0x1063   :  { %v14090_v27 = vpack.c.bf16 %v5381_v33, %v5378_v44 }
0x1064   :  { %5853 = vrot.lane.b32.xlu1 %v14088_v59, %s11487_s23 }
0x1065   :  { %5803 = vrot.lane.b32.xlu0 %v14090_v27, %s11487_s23 }
0x1068   :  { %6132 = vrot.lane.b32.xlu1 %v14058_v41, %s11488_s27 }
0x1069   :  { %6179 = vrot.lane.b32.xlu0 %v14056_v3, %s11488_s27 }
0x106c   :  { %6226 = vrot.lane.b32.xlu1 %v14066_v8, %s11488_s27 }
0x106d   :  { %6273 = vrot.lane.b32.xlu0 %v14064_v14, %s11488_s27 }
0x1070   :  { %6320 = vrot.lane.b32.xlu1 %v14074_v7, %s11488_s27 }
0x1071   :  { %6414 = vrot.lane.b32.xlu0 %v14082_v19, %s11488_s27 }
0x1074   :  { %6367 = vrot.lane.b32.xlu1 %v14072_v57, %s11488_s27 }
0x1078   :  { %6461 = vrot.lane.b32.xlu1 %v14080_v56, %s11488_s27 }
0x10b4   :  { %v5454_v16 = vpop.permute.xlu0 %5453 }
0x10b5   :  { %v5459_v46 = vsel %vm1324_vm15, %v5454_v16, 0  ;;  %v5404_v58 = vpop.permute.xlu1 %5403 }
0x10b6   :  { %v5409_v51 = vsel %vm1324_vm15, %v5404_v58, 0  ;;  %10386 = vmatpush3.bf16.xpose.msra.mxu1 %v5459_v46 }
0x10b7   :  { %10380 = vmatpush3.bf16.xpose.msra.mxu0 %v5409_v51  ;;  %10397 = vmatprep.subr.bf16.mxu1 %v15657_v22 }
0x10b8   :  { %10391 = vmatprep.subr.bf16.mxu0 %v15657_v22 }
0x10bd   :  { %10388 = vmatmul.mubr.msk.bf16.vlgmr.msra.gmra.mrb[160].mxu1 %vm1324_vm15, %v14056_v3 }
0x10be   :  { %10382 = vmatmul.mubr.msk.bf16.vlgmr.msra.gmra.mrb[120].mxu0 %vm1324_vm15, %v14058_v41  ;;  %10399 = vmatprep.mubr.msk.bf16.mxu1 %vm11486_vm8, %v15657_v22 }
0x10bf   :  { %v5504_v31 = vpop.permute.xlu1 %5503  ;;  %10393 = vmatprep.mubr.msk.bf16.mxu0 %vm11486_vm8, %v15657_v22 }
0x10c0   :  { %v5509_v36 = vsel %vm1324_vm15, %v5504_v31, 0 }
0x10c1   :  { %10392 = vmatpush3.bf16.xpose.msra.mxu0 %v5509_v36 }
0x10c2   :  { %10403 = vmatprep.subr.bf16.mxu0 %v15657_v22 }
0x10c3   :  { %v5554_v6 = vpop.permute.xlu1 %5553 }
0x10c4   :  { %v5559_v17 = vsel %vm1324_vm15, %v5554_v6, 0 }
0x10c5   :  { %10398 = vmatpush3.bf16.xpose.msra.mxu1 %v5559_v17 }
0x10c6   :  { %10409 = vmatprep.subr.bf16.mxu1 %v15657_v22 }
0x10c7   :  { %v5604_v47 = vpop.permute.xlu0 %5603  ;;  %v5654_v60 = vpop.permute.xlu1 %5653 }
0x10c8   :  { %v5609_v63 = vsel %vm1324_vm15, %v5604_v47, 0  ;;  %10394 = vmatmul.mubr.msk.bf16.vlgmr.msra.gmra.mrb[124].mxu0 %vm1324_vm15, %v14066_v8  ;;  %v5659_v61 = vsel %vm1324_vm15, %v5654_v60, 0 }
0x10c9   :  { %10404 = vmatpush3.bf16.xpose.msra.mxu0 %v5609_v63  ;;  %10405 = vmatprep.mubr.msk.bf16.mxu0 %vm11486_vm8, %v15657_v22 }
0x10ca   :  { %10415 = vmatprep.subr.bf16.mxu0 %v15657_v22 }
0x10cc   :  { %10400 = vmatmul.mubr.msk.bf16.vlgmr.msra.gmra.mrb[164].mxu1 %vm1324_vm15, %v14064_v14 }
0x10cd   :  { %10410 = vmatpush3.bf16.xpose.msra.mxu1 %v5659_v61  ;;  %10411 = vmatprep.mubr.msk.bf16.mxu1 %vm11486_vm8, %v15657_v22 }
0x10ce   :  { %10421 = vmatprep.subr.bf16.mxu1 %v15657_v22  ;;  %v5754_v48 = vpop.permute.xlu1 %5753 }
0x10cf   :  { %v5704_v38 = vpop.permute.xlu0 %5703  ;;  %v5759_v39 = vsel %vm1324_vm15, %v5754_v48, 0 }
0x10d0   :  { %v5709_v29 = vsel %vm1324_vm15, %v5704_v38, 0  ;;  %10406 = vmatmul.mubr.msk.bf16.vlgmr.msra.gmra.mrb[128].mxu0 %vm1324_vm15, %v14074_v7 }
0x10d1   :  { %10416 = vmatpush3.bf16.xpose.msra.mxu0 %v5709_v29  ;;  %10417 = vmatprep.mubr.msk.bf16.mxu0 %vm11486_vm8, %v15657_v22 }
0x10d2   :  { %10427 = vmatprep.subr.bf16.mxu0 %v15657_v22 }
0x10d4   :  { %10412 = vmatmul.mubr.msk.bf16.vlgmr.msra.gmra.mrb[168].mxu1 %vm1324_vm15, %v14072_v57 }
0x10d5   :  { %10422 = vmatpush3.bf16.xpose.msra.mxu1 %v5759_v39  ;;  %10423 = vmatprep.mubr.msk.bf16.mxu1 %vm11486_vm8, %v15657_v22 }
0x10d6   :  { %10433 = vmatprep.subr.bf16.mxu1 %v15657_v22  ;;  %v5854_v43 = vpop.permute.xlu1 %5853 }
0x10d7   :  { %v5804_v40 = vpop.permute.xlu0 %5803  ;;  %v5859_v2 = vsel %vm1324_vm15, %v5854_v43, 0 }
0x10d8   :  { %v5809_v9 = vsel %vm1324_vm15, %v5804_v40, 0  ;;  %10418 = vmatmul.mubr.msk.bf16.vlgmr.msra.gmra.mrb[132].mxu0 %vm1324_vm15, %v14082_v19 }
0x10d9   :  { %10428 = vmatpush3.bf16.xpose.msra.mxu0 %v5809_v9  ;;  %10429 = vmatprep.mubr.msk.bf16.mxu0 %vm11486_vm8, %v15657_v22 }
0x10da   :  { %10439 = vmatprep.subr.bf16.mxu0 %v15657_v22  ;;  %v6133_v62 = vpop.permute.xlu1 %6132 }
0x10db   :  { %v6180_v4 = vpop.permute.xlu0 %6179 }
0x10dc   :  { %10424 = vmatmul.mubr.msk.bf16.vlgmr.msra.gmra.mrb[172].mxu1 %vm1324_vm15, %v14080_v56 }
0x10dd   :  { %10434 = vmatpush3.bf16.xpose.msra.mxu1 %v5859_v2  ;;  %10435 = vmatprep.mubr.msk.bf16.mxu1 %vm11486_vm8, %v15657_v22 }
0x10de   :  { %10445 = vmatprep.subr.bf16.mxu1 %v15657_v22 }
0x10e0   :  { %10430 = vmatmul.mubr.msk.bf16.vlgmr.msra.gmra.mrb[136].mxu0 %vm1324_vm15, %v14090_v27 }
0x10e1   :  { %10440 = vmatpush3.bf16.msra.mxu0 %v6133_v62  ;;  %10441 = vmatprep.mubr.msk.bf16.mxu0 %vm11486_vm8, %v15657_v22 }
0x10e2   :  { %10451 = vmatprep.subr.bf16.mxu0 %v15657_v22 }
0x10e4   :  { %10436 = vmatmul.mubr.msk.bf16.vlgmr.msra.gmra.mrb[176].mxu1 %vm1324_vm15, %v14088_v59 }
0x10e5   :  { %10446 = vmatpush3.bf16.msra.mxu1 %v6180_v4  ;;  %10447 = vmatprep.mubr.msk.bf16.mxu1 %vm11486_vm8, %v15657_v22 }
0x10e6   :  { %10457 = vmatprep.subr.bf16.mxu1 %v15657_v22 }
0x1190   :  { %v14174_v30 = vpop.f32.mrb[160].mxu1 }
0x1191   :  { %v14176_v35 = vpop.f32.mrb[120].mxu0  ;;  %v10389_v55 = vpop.f32.mrb[161].mxu1  ;;  %v5908_v0 = vsel %vm1324_vm15, %v14174_v30, -inf }
0x1192   :  { %v10383_v23 = vpop.f32.mrb[121].mxu0  ;;  %5909 = vmax.xlane.f32.xlu0 %v5908_v0  ;;  %v14180_v18 = vpop.f32.mrb[162].mxu1  ;;  %v5902_v46 = vsel %vm1324_vm15, %v14176_v35, -inf }
0x1193   :  { %v14182_v50 = vpop.f32.mrb[122].mxu0  ;;  %v10390_v44 = vpop.f32.mrb[163].mxu1  ;;  %v5911_v58 = vsel %vm1324_vm15, %v14180_v18, -inf }
0x1194   :  { %v10384_v33 = vpop.f32.mrb[123].mxu0  ;;  %v5905_v16 = vsel %vm1324_vm15, %v14182_v50, -inf }
0x1195   :  { %5906 = vmax.xlane.f32.xlu1 %v5905_v16 }
0x1196   :  { %5903 = vmax.xlane.f32.xlu0 %v5902_v46 }
0x119a   :  { %5912 = vmax.xlane.f32.xlu0 %v5911_v58 }
0x119b   :  { %v14190_v51 = vpop.f32.mrb[124].mxu0 }
0x119c   :  { %v10395_v31 = vpop.f32.mrb[125].mxu0  ;;  %v5914_v39 = vsel %vm1324_vm15, %v14190_v51, -inf }
0x119d   :  { %v14192_v36 = vpop.f32.mrb[126].mxu0 }
0x119e   :  { %v10396_v6 = vpop.f32.mrb[127].mxu0  ;;  %v5917_v43 = vsel %vm1324_vm15, %v14192_v36, -inf }
0x119f   :  { %v14194_v17 = vpop.f32.mrb[164].mxu1 }
0x11a0   :  { %v10401_v47 = vpop.f32.mrb[165].mxu1  ;;  %v5920_v63 = vsel %vm1324_vm15, %v14194_v17, -inf }
0x11a1   :  { %5921 = vmax.xlane.f32.xlu1 %v5920_v63  ;;  %v14198_v60 = vpop.f32.mrb[166].mxu1 }
0x11a2   :  { %v10402_v61 = vpop.f32.mrb[167].mxu1  ;;  %v5923_v38 = vsel %vm1324_vm15, %v14198_v60, -inf }
0x11a3   :  { %5924 = vmax.xlane.f32.xlu0 %v5923_v38  ;;  %v14202_v29 = vpop.f32.mrb[128].mxu0 }
0x11a4   :  { %v10407_v48 = vpop.f32.mrb[129].mxu0  ;;  %v5926_v16 = vsel %vm1324_vm15, %v14202_v29, -inf }
0x11a5   :  { %5915 = vmax.xlane.f32.xlu1 %v5914_v39  ;;  %v14206_v40 = vpop.f32.mrb[130].mxu0 }
0x11a6   :  { %v10408_v9 = vpop.f32.mrb[131].mxu0  ;;  %v5929_v31 = vsel %vm1324_vm15, %v14206_v40, -inf }
0x11a7   :  { %5918 = vmax.xlane.f32.xlu0 %v5917_v43  ;;  %v14210_v2 = vpop.f32.mrb[168].mxu1 }
0x11a8   :  { %v10413_v62 = vpop.f32.mrb[169].mxu1  ;;  %v5932_v4 = vsel %vm1324_vm15, %v14210_v2, -inf }
0x11a9   :  { %5933 = vmax.xlane.f32.xlu1 %v5932_v4  ;;  %v14214_v55 = vpop.f32.mrb[170].mxu1 }
0x11aa   :  { %v10414_v0 = vpop.f32.mrb[171].mxu1  ;;  %v5935_v23 = vsel %vm1324_vm15, %v14214_v55, -inf }
0x11ab   :  { %5936 = vmax.xlane.f32.xlu0 %v5935_v23  ;;  %v14218_v44 = vpop.f32.mrb[132].mxu0 }
0x11ac   :  { %v10419_v33 = vpop.f32.mrb[133].mxu0  ;;  %v5938_v43 = vsel %vm1324_vm15, %v14218_v44, -inf }
0x11ad   :  { %5927 = vmax.xlane.f32.xlu1 %v5926_v16  ;;  %v14222_v46 = vpop.f32.mrb[134].mxu0 }
0x11ae   :  { %v10420_v58 = vpop.f32.mrb[135].mxu0  ;;  %v5941_v0 = vsel %vm1324_vm15, %v14222_v46, -inf }
0x11af   :  { %v14226_v6 = vpop.f32.mrb[172].mxu1  ;;  %5930 = vmax.xlane.f32.xlu0 %v5929_v31 }
0x11b0   :  { %v10425_v47 = vpop.f32.mrb[173].mxu1  ;;  %v5944_v63 = vsel %vm1324_vm15, %v14226_v6, -inf }
0x11b1   :  { %v14230_v61 = vpop.f32.mrb[174].mxu1  ;;  %5945 = vmax.xlane.f32.xlu1 %v5944_v63 }
0x11b2   :  { %v10426_v38 = vpop.f32.mrb[175].mxu1  ;;  %v5947_v48 = vsel %vm1324_vm15, %v14230_v61, -inf }
0x11b3   :  { %5948 = vmax.xlane.f32.xlu0 %v5947_v48  ;;  %v14234_v39 = vpop.f32.mrb[136].mxu0  ;;  %v14258_v48 = vpop.permute.xlu1 %6226 }
0x11b4   :  { %v10431_v9 = vpop.f32.mrb[137].mxu0  ;;  %v5950_v63 = vsel %vm1324_vm15, %v14234_v39, -inf }
0x11b5   :  { %5939 = vmax.xlane.f32.xlu1 %v5938_v43  ;;  %v14238_v62 = vpop.f32.mrb[138].mxu0  ;;  %v14262_v43 = vpop.permute.xlu0 %6273 }
0x11b6   :  { %v10432_v4 = vpop.f32.mrb[139].mxu0  ;;  %v5953_v38 = vsel %vm1324_vm15, %v14238_v62, -inf }
0x11b7   :  { %v14242_v23 = vpop.f32.mrb[176].mxu1  ;;  %5942 = vmax.xlane.f32.xlu0 %v5941_v0  ;;  %v14260_v9 = vpop.permute.xlu1 %6320 }
0x11b8   :  { %v10437_v33 = vpop.f32.mrb[177].mxu1  ;;  %v5956_v16 = vsel %vm1324_vm15, %v14242_v23, -inf }
0x11b9   :  { %v14246_v58 = vpop.f32.mrb[178].mxu1  ;;  %5957 = vmax.xlane.f32.xlu1 %v5956_v16  ;;  %v14266_v0 = vpop.permute.xlu0 %6414 }
0x11ba   :  { %v10438_v31 = vpop.f32.mrb[179].mxu1  ;;  %v5959_v47 = vsel %vm1324_vm15, %v14246_v58, -inf }
0x11bb   :  { %5960 = vmax.xlane.f32.xlu0 %v5959_v47  ;;  %v14264_v4 = vpop.permute.xlu1 %6367 }
0x11bd   :  { %5951 = vmax.xlane.f32.xlu1 %v5950_v63 }
0x11bf   :  { %5954 = vmax.xlane.f32.xlu0 %v5953_v38  ;;  %v14268_v33 = vpop.permute.xlu1 %6461 }
0x11ce   :  { %6555 = vrot.lane.b32.xlu1 %v14088_v59, %s11488_s27 }
0x11d5   :  { %6508 = vrot.lane.b32.xlu0 %v14090_v27, %s11488_s27 }
0x121f   :  { %v5910_v16 = vpop.xlane.xlu0 %5909 }
0x1220   :  { %v5964_v31 = vsub.f32 %v14174_v30, %v5910_v16 }
0x1222   :  { %v5986_v47 = vmul.f32 1.442695, %v5964_v31  ;;  %v5907_v63 = vpop.xlane.xlu1 %5906 }
0x1223   :  { %v5904_v38 = vpop.xlane.xlu0 %5903  ;;  %v5963_v5 = vsub.f32 %v14182_v50, %v5907_v63 }
0x1224   :  { %11220 = vpow2.f32 %v5986_v47  ;;  %v5962_v28 = vsub.f32 %v14176_v35, %v5904_v38 }
0x1225   :  { %v5984_v20 = vmul.f32 1.442695, %v5963_v5 }
0x1226   :  { %v5982_v52 = vmul.f32 1.442695, %v5962_v28 }
0x1227   :  { %v5913_v49 = vpop.xlane.xlu0 %5912 }
0x1228   :  { %11222 = vpow2.f32 %v5982_v52  ;;  %v5965_v42 = vsub.f32 %v14180_v18, %v5913_v49 }
0x122a   :  { %v5988_v34 = vmul.f32 1.442695, %v5965_v42 }
0x122c   :  { %11224 = vpow2.f32 %v5988_v34 }
0x122d   :  { %11226 = vpow2.f32 %v5984_v20 }
0x122e   :  { %v14274_v10 = vpop.eup %11220  ;;  %v5922_v30 = vpop.xlane.xlu1 %5921 }
0x122f   :  { %v5968_v16 = vsub.f32 %v14194_v17, %v5922_v30  ;;  %v6028_v31 = vsel %vm1324_vm15, %v14274_v10, 0.0 }
0x1230   :  { %v5925_v35 = vpop.xlane.xlu0 %5924  ;;  %6029 = vadd.xlane.f32.xlu1 %v6028_v31 }
0x1231   :  { %v5994_v50 = vmul.f32 1.442695, %v5968_v16  ;;  %v5969_v28 = vsub.f32 %v14198_v60, %v5925_v35 }
0x1232   :  { %v14280_v52 = vpop.eup %11222  ;;  %v5916_v49 = vpop.xlane.xlu1 %5915 }
0x1233   :  { %11228 = vpow2.f32 %v5994_v50  ;;  %v5996_v5 = vmul.f32 1.442695, %v5969_v28  ;;  %v5966_v34 = vsub.f32 %v14190_v51, %v5916_v49  ;;  %v6022_v20 = vsel %vm1324_vm15, %v14280_v52, 0.0 }
0x1234   :  { %v5919_v42 = vpop.xlane.xlu0 %5918  ;;  %6023 = vadd.xlane.f32.xlu1 %v6022_v20 }
0x1235   :  { %11230 = vpow2.f32 %v5996_v5  ;;  %v5990_v18 = vmul.f32 1.442695, %v5966_v34  ;;  %v5967_v17 = vsub.f32 %v14192_v36, %v5919_v42 }
0x1236   :  { %v14286_v47 = vpop.eup %11224  ;;  %v5934_v63 = vpop.xlane.xlu1 %5933 }
0x1237   :  { %11232 = vpow2.f32 %v5990_v18  ;;  %v5992_v60 = vmul.f32 1.442695, %v5967_v17  ;;  %v5972_v38 = vsub.f32 %v14210_v2, %v5934_v63  ;;  %v6031_v30 = vsel %vm1324_vm15, %v14286_v47, 0.0  ;;  %v14291_v51 = vpop.eup %11226 }
0x1238   :  { %v5937_v16 = vpop.xlane.xlu0 %5936  ;;  %6032 = vadd.xlane.f32.xlu0 %v6031_v30  ;;  %v6025_v49 = vsel %vm1324_vm15, %v14291_v51, 0.0 }
0x1239   :  { %11234 = vpow2.f32 %v5992_v60  ;;  %v6002_v31 = vmul.f32 1.442695, %v5972_v38  ;;  %v5973_v35 = vsub.f32 %v14214_v55, %v5937_v16 }
0x123a   :  { %v5928_v50 = vpop.xlane.xlu1 %5927 }
0x123b   :  { %11236 = vpow2.f32 %v6002_v31  ;;  %v6004_v36 = vmul.f32 1.442695, %v5973_v35  ;;  %v5970_v28 = vsub.f32 %v14202_v29, %v5928_v50 }
0x123c   :  { %v5931_v2 = vpop.xlane.xlu0 %5930  ;;  %6026 = vadd.xlane.f32.xlu0 %v6025_v49 }
0x123d   :  { %v14297_v5 = vpop.eup %11228  ;;  %11238 = vpow2.f32 %v6004_v36  ;;  %v5998_v34 = vmul.f32 1.442695, %v5970_v28  ;;  %v5971_v20 = vsub.f32 %v14206_v40, %v5931_v2 }
0x123e   :  { %v5946_v42 = vpop.xlane.xlu1 %5945  ;;  %v6040_v55 = vsel %vm1324_vm15, %v14297_v5, 0.0 }
0x123f   :  { %v14302_v18 = vpop.eup %11230  ;;  %11240 = vpow2.f32 %v5998_v34  ;;  %v6000_v17 = vmul.f32 1.442695, %v5971_v20  ;;  %v5976_v29 = vsub.f32 %v14226_v6, %v5946_v42  ;;  %6041 = vadd.xlane.f32.xlu1 %v6040_v55 }
0x1240   :  { %v5949_v63 = vpop.xlane.xlu0 %5948  ;;  %v6043_v60 = vsel %vm1324_vm15, %v14302_v18, 0.0 }
0x1241   :  { %v14307_v38 = vpop.eup %11232  ;;  %11242 = vpow2.f32 %v6000_v17  ;;  %v6010_v30 = vmul.f32 1.442695, %v5976_v29  ;;  %v5977_v40 = vsub.f32 %v14230_v61, %v5949_v63  ;;  %6044 = vadd.xlane.f32.xlu0 %v6043_v60 }
0x1242   :  { %v5940_v16 = vpop.xlane.xlu1 %5939  ;;  %v6034_v31 = vsel %vm1324_vm15, %v14307_v38, 0.0 }
0x1243   :  { %v14312_v35 = vpop.eup %11234  ;;  %11244 = vpow2.f32 %v6010_v30  ;;  %v6012_v6 = vmul.f32 1.442695, %v5977_v40  ;;  %v5974_v50 = vsub.f32 %v14218_v44, %v5940_v16  ;;  %6035 = vadd.xlane.f32.xlu1 %v6034_v31 }
0x1244   :  { %v5943_v36 = vpop.xlane.xlu0 %5942  ;;  %v6037_v28 = vsel %vm1324_vm15, %v14312_v35, 0.0 }
0x1245   :  { %v14317_v49 = vpop.eup %11236  ;;  %11246 = vpow2.f32 %v6012_v6  ;;  %v6006_v61 = vmul.f32 1.442695, %v5974_v50  ;;  %v5975_v2 = vsub.f32 %v14222_v46, %v5943_v36  ;;  %6038 = vadd.xlane.f32.xlu0 %v6037_v28 }
0x1246   :  { %v5958_v34 = vpop.xlane.xlu1 %5957  ;;  %v6052_v20 = vsel %vm1324_vm15, %v14317_v49, 0.0 }
0x1247   :  { %v14322_v42 = vpop.eup %11238  ;;  %11248 = vpow2.f32 %v6006_v61  ;;  %v6008_v44 = vmul.f32 1.442695, %v5975_v2  ;;  %v5980_v55 = vsub.f32 %v14242_v23, %v5958_v34  ;;  %6053 = vadd.xlane.f32.xlu1 %v6052_v20 }
0x1248   :  { %v5961_v17 = vpop.xlane.xlu0 %5960  ;;  %v6055_v29 = vsel %vm1324_vm15, %v14322_v42, 0.0 }
0x1249   :  { %v14327_v63 = vpop.eup %11240  ;;  %11250 = vpow2.f32 %v6008_v44  ;;  %v6018_v46 = vmul.f32 1.442695, %v5980_v55  ;;  %v5981_v60 = vsub.f32 %v14246_v58, %v5961_v17  ;;  %6056 = vadd.xlane.f32.xlu0 %v6055_v29 }
0x124a   :  { %v5952_v30 = vpop.xlane.xlu1 %5951  ;;  %v6046_v40 = vsel %vm1324_vm15, %v14327_v63, 0.0 }
0x124b   :  { %v14332_v16 = vpop.eup %11242  ;;  %11252 = vpow2.f32 %v6018_v46  ;;  %v6020_v23 = vmul.f32 1.442695, %v5981_v60  ;;  %v5978_v31 = vsub.f32 %v14234_v39, %v5952_v30  ;;  %6047 = vadd.xlane.f32.xlu1 %v6046_v40 }
0x124c   :  { %v5955_v6 = vpop.xlane.xlu0 %5954  ;;  %v6049_v50 = vsel %vm1324_vm15, %v14332_v16, 0.0 }
0x124d   :  { %v14337_v36 = vpop.eup %11244  ;;  %11254 = vpow2.f32 %v6020_v23  ;;  %v6014_v58 = vmul.f32 1.442695, %v5978_v31  ;;  %v5979_v28 = vsub.f32 %v14238_v62, %v5955_v6  ;;  %6050 = vadd.xlane.f32.xlu0 %v6049_v50 }
0x124e   :  { %v6064_v61 = vsel %vm1324_vm15, %v14337_v36, 0.0  ;;  %v14422_v6 = vpop.permute.xlu1 %6555 }
0x124f   :  { %v14342_v2 = vpop.eup %11246  ;;  %11256 = vpow2.f32 %v6014_v58  ;;  %v6016_v34 = vmul.f32 1.442695, %v5979_v28  ;;  %6065 = vadd.xlane.f32.xlu1 %v6064_v61 }
0x1250   :  { %v6067_v39 = vsel %vm1324_vm15, %v14342_v2, 0.0  ;;  %v14424_v50 = vpop.permute.xlu0 %6508 }
0x1251   :  { %v14346_v20 = vpop.eup %11248  ;;  %11258 = vpow2.f32 %v6016_v34  ;;  %6068 = vadd.xlane.f32.xlu0 %v6067_v39 }
0x1252   :  { %v6058_v44 = vsel %vm1324_vm15, %v14346_v20, 0.0 }
0x1253   :  { %v14350_v62 = vpop.eup %11250  ;;  %6059 = vadd.xlane.f32.xlu1 %v6058_v44 }
0x1254   :  { %v6061_v55 = vsel %vm1324_vm15, %v14350_v62, 0.0 }
0x1255   :  { %v14354_v17 = vpop.eup %11252  ;;  %6062 = vadd.xlane.f32.xlu0 %v6061_v55 }
0x1256   :  { %v6076_v29 = vsel %vm1324_vm15, %v14354_v17, 0.0 }
0x1257   :  { %v14358_v46 = vpop.eup %11254  ;;  %6077 = vadd.xlane.f32.xlu1 %v6076_v29 }
0x1258   :  { %v6079_v60 = vsel %vm1324_vm15, %v14358_v46, 0.0 }
0x1259   :  { %v14362_v30 = vpop.eup %11256  ;;  %6080 = vadd.xlane.f32.xlu0 %v6079_v60 }
0x125a   :  { %v6070_v40 = vsel %vm1324_vm15, %v14362_v30, 0.0 }
0x125b   :  { %v14366_v23 = vpop.eup %11258  ;;  %6071 = vadd.xlane.f32.xlu1 %v6070_v40 }
0x125c   :  { %v6073_v31 = vsel %vm1324_vm15, %v14366_v23, 0.0 }
0x125d   :  { %6074 = vadd.xlane.f32.xlu0 %v6073_v31 }
0x126c   :  { %6655 = vrot.lane.b32.xlu1 %v14056_v3, %s11489_s26 }
0x1270   :  { %6706 = vrot.lane.b32.xlu1 %v14066_v8, %s11489_s26 }
0x1273   :  { %6604 = vrot.lane.b32.xlu0 %v14058_v41, %s11489_s26 }
0x1274   :  { %6757 = vrot.lane.b32.xlu1 %v14064_v14, %s11489_s26 }
0x1277   :  { %6602 = vrot.lane.b32.xlu0 %v14058_v41, %s11490_s28 }
0x1278   :  { %6808 = vrot.lane.b32.xlu1 %v14074_v7, %s11489_s26 }
0x127b   :  { %6653 = vrot.lane.b32.xlu0 %v14056_v3, %s11490_s28 }
0x127c   :  { %6859 = vrot.lane.b32.xlu1 %v14072_v57, %s11489_s26 }
0x127f   :  { %6704 = vrot.lane.b32.xlu0 %v14066_v8, %s11490_s28 }
0x1280   :  { %6910 = vrot.lane.b32.xlu1 %v14082_v19, %s11489_s26 }
0x1283   :  { %6755 = vrot.lane.b32.xlu0 %v14064_v14, %s11490_s28 }
0x1284   :  { %6961 = vrot.lane.b32.xlu1 %v14080_v56, %s11489_s26 }
0x1287   :  { %6806 = vrot.lane.b32.xlu0 %v14074_v7, %s11490_s28 }
0x1288   :  { %7012 = vrot.lane.b32.xlu1 %v14090_v27, %s11489_s26 }
0x128b   :  { %6857 = vrot.lane.b32.xlu0 %v14072_v57, %s11490_s28 }
0x128c   :  { %7063 = vrot.lane.b32.xlu1 %v14088_v59, %s11489_s26 }
0x128f   :  { %6908 = vrot.lane.b32.xlu0 %v14082_v19, %s11490_s28 }
0x1290   :  { %7061 = vrot.lane.b32.xlu1 %v14088_v59, %s11490_s28 }
0x1293   :  { %6959 = vrot.lane.b32.xlu0 %v14080_v56, %s11490_s28 }
0x1294   :  { %7342 = vrot.lane.b32.xlu1 %v14058_v41, %s11491_s29 }
0x1297   :  { %7010 = vrot.lane.b32.xlu0 %v14090_v27, %s11490_s28 }
0x1298   :  { %7436 = vrot.lane.b32.xlu1 %v14066_v8, %s11491_s29 }
0x129b   :  { %7389 = vrot.lane.b32.xlu0 %v14056_v3, %s11491_s29 }
0x129c   :  { %7530 = vrot.lane.b32.xlu1 %v14074_v7, %s11491_s29 }
0x129f   :  { %7483 = vrot.lane.b32.xlu0 %v14064_v14, %s11491_s29 }
0x12a0   :  { %7577 = vrot.lane.b32.xlu1 %v14072_v57, %s11491_s29 }
0x12bd   :  { %v6030_v41 = vpop.xlane.xlu1 %6029 }
0x12be   :  { %11260 = vrcp.f32 %v6030_v41 }
0x12c1   :  { %v6024_v58 = vpop.xlane.xlu1 %6023 }
0x12c5   :  { %v6033_v8 = vpop.xlane.xlu0 %6032 }
0x12c6   :  { %11262 = vrcp.f32 %v6033_v8 }
0x12c7   :  { %11264 = vrcp.f32 %v6024_v58 }
0x12c8   :  { %v11261_v7 = vpop.eup %11260 }
0x12c9   :  { %v6027_v3 = vpop.xlane.xlu0 %6026  ;;  %v6104_v57 = vmul.f32 %v11261_v7, %v14274_v10 }
0x12ca   :  { %11266 = vrcp.f32 %v6027_v3 }
0x12cc   :  { %v6042_v28 = vpop.xlane.xlu1 %6041 }
0x12cd   :  { %11268 = vrcp.f32 %v6042_v28 }
0x12ce   :  { %v6045_v61 = vpop.xlane.xlu0 %6044 }
0x12cf   :  { %11270 = vrcp.f32 %v6045_v61 }
0x12d0   :  { %v11263_v14 = vpop.eup %11262  ;;  %v6036_v34 = vpop.xlane.xlu1 %6035 }
0x12d1   :  { %v6105_v39 = vmul.f32 %v11263_v14, %v14286_v47  ;;  %11272 = vrcp.f32 %v6036_v34  ;;  %v11265_v44 = vpop.eup %11264 }
0x12d2   :  { %v6039_v55 = vpop.xlane.xlu0 %6038  ;;  %v6102_v31 = vmul.f32 %v11265_v44, %v14280_v52 }
0x12d3   :  { %11274 = vrcp.f32 %v6039_v55  ;;  %v6123_v29 = vpack.c.bf16 %v6105_v39, %v6104_v57 }
0x12d4   :  { %v11267_v60 = vpop.eup %11266  ;;  %v6054_v40 = vpop.xlane.xlu1 %6053 }
0x12d5   :  { %v6103_v41 = vmul.f32 %v11267_v60, %v14291_v51  ;;  %11276 = vrcp.f32 %v6054_v40  ;;  %10448 = vmatmul.mubr.msk.bf16.vlgmr.msra.gmra.mrb[180].mxu1 %vm1324_vm15, %v6123_v29 }
0x12d6   :  { %10458 = vmatpush3.bf16.msra.mxu1 %v14262_v43  ;;  %v6057_v58 = vpop.xlane.xlu0 %6056  ;;  %10459 = vmatprep.mubr.msk.bf16.mxu1 %vm11486_vm8, %v15657_v22 }
0x12d7   :  { %v11269_v10 = vpop.eup %11268  ;;  %11278 = vrcp.f32 %v6057_v58  ;;  %v6122_v47 = vpack.c.bf16 %v6103_v41, %v6102_v31  ;;  %10469 = vmatprep.subr.bf16.mxu1 %v15657_v22 }
0x12d8   :  { %v6048_v8 = vpop.xlane.xlu1 %6047  ;;  %v6108_v52 = vmul.f32 %v11269_v10, %v14297_v5 }
0x12d9   :  { %v11271_v3 = vpop.eup %11270  ;;  %11280 = vrcp.f32 %v6048_v8  ;;  %10442 = vmatmul.mubr.msk.bf16.vlgmr.msra.gmra.mrb[140].mxu0 %vm1324_vm15, %v6122_v47 }
0x12da   :  { %v6109_v51 = vmul.f32 %v11271_v3, %v14302_v18  ;;  %10452 = vmatpush3.bf16.msra.mxu0 %v14258_v48  ;;  %v6051_v43 = vpop.xlane.xlu0 %6050  ;;  %10453 = vmatprep.mubr.msk.bf16.mxu0 %vm11486_vm8, %v15657_v22 }
0x12db   :  { %v11273_v28 = vpop.eup %11272  ;;  %11282 = vrcp.f32 %v6051_v43  ;;  %10463 = vmatprep.subr.bf16.mxu0 %v15657_v22 }
0x12dc   :  { %v6066_v7 = vpop.xlane.xlu1 %6065  ;;  %v6125_v61 = vpack.c.bf16 %v6109_v51, %v6108_v52  ;;  %v6106_v34 = vmul.f32 %v11273_v28, %v14307_v38 }
0x12dd   :  { %v11275_v14 = vpop.eup %11274  ;;  %11284 = vrcp.f32 %v6066_v7 }
0x12de   :  { %v6107_v5 = vmul.f32 %v11275_v14, %v14312_v35  ;;  %10460 = vmatmul.mubr.msk.bf16.vlgmr.msra.gmra.mrb[184].mxu1 %vm1324_vm15, %v6125_v61  ;;  %v6069_v18 = vpop.xlane.xlu0 %6068 }
0x12df   :  { %v11277_v48 = vpop.eup %11276  ;;  %10470 = vmatpush3.bf16.msra.mxu1 %v14264_v4  ;;  %11286 = vrcp.f32 %v6069_v18  ;;  %10471 = vmatprep.mubr.msk.bf16.mxu1 %vm11486_vm8, %v15657_v22 }
0x12e0   :  { %v6060_v57 = vpop.xlane.xlu1 %6059  ;;  %v6124_v39 = vpack.c.bf16 %v6107_v5, %v6106_v34  ;;  %10481 = vmatprep.subr.bf16.mxu1 %v15657_v22  ;;  %v6112_v38 = vmul.f32 %v11277_v48, %v14317_v49 }
0x12e1   :  { %v11279_v44 = vpop.eup %11278  ;;  %11288 = vrcp.f32 %v6060_v57 }
0x12e2   :  { %v6113_v35 = vmul.f32 %v11279_v44, %v14322_v42  ;;  %10454 = vmatmul.mubr.msk.bf16.vlgmr.msra.gmra.mrb[144].mxu0 %vm1324_vm15, %v6124_v39  ;;  %v6063_v55 = vpop.xlane.xlu0 %6062 }
0x12e3   :  { %v11281_v29 = vpop.eup %11280  ;;  %10464 = vmatpush3.bf16.msra.mxu0 %v14260_v9  ;;  %11290 = vrcp.f32 %v6063_v55  ;;  %10465 = vmatprep.mubr.msk.bf16.mxu0 %vm11486_vm8, %v15657_v22 }
0x12e4   :  { %v6078_v4 = vpop.xlane.xlu1 %6077  ;;  %v6127_v60 = vpack.c.bf16 %v6113_v35, %v6112_v38  ;;  %10475 = vmatprep.subr.bf16.mxu0 %v15657_v22  ;;  %v6110_v49 = vmul.f32 %v11281_v29, %v14327_v63 }
0x12e5   :  { %v11283_v40 = vpop.eup %11282  ;;  %11292 = vrcp.f32 %v6078_v4 }
0x12e6   :  { %v6111_v42 = vmul.f32 %v11283_v40, %v14332_v16  ;;  %10472 = vmatmul.mubr.msk.bf16.vlgmr.msra.gmra.mrb[188].mxu1 %vm1324_vm15, %v6127_v60  ;;  %v6081_v31 = vpop.xlane.xlu0 %6080 }
0x12e7   :  { %v11285_v41 = vpop.eup %11284  ;;  %10482 = vmatpush3.bf16.msra.mxu1 %v14268_v33  ;;  %11294 = vrcp.f32 %v6081_v31  ;;  %10483 = vmatprep.mubr.msk.bf16.mxu1 %vm11486_vm8, %v15657_v22 }
0x12e8   :  { %v6072_v9 = vpop.xlane.xlu1 %6071  ;;  %v6126_v58 = vpack.c.bf16 %v6111_v42, %v6110_v49  ;;  %10493 = vmatprep.subr.bf16.mxu1 %v15657_v22  ;;  %v6116_v63 = vmul.f32 %v11285_v41, %v14337_v36 }
0x12e9   :  { %v11287_v10 = vpop.eup %11286  ;;  %11296 = vrcp.f32 %v6072_v9 }
0x12ea   :  { %v6117_v16 = vmul.f32 %v11287_v10, %v14342_v2  ;;  %10466 = vmatmul.mubr.msk.bf16.vlgmr.msra.gmra.mrb[148].mxu0 %vm1324_vm15, %v6126_v58  ;;  %v6075_v47 = vpop.xlane.xlu0 %6074 }
0x12eb   :  { %v11289_v8 = vpop.eup %11288  ;;  %10476 = vmatpush3.bf16.msra.mxu0 %v14266_v0  ;;  %11298 = vrcp.f32 %v6075_v47  ;;  %10477 = vmatprep.mubr.msk.bf16.mxu0 %vm11486_vm8, %v15657_v22 }
0x12ec   :  { %v6656_v33 = vpop.permute.xlu1 %6655  ;;  %v6129_v3 = vpack.c.bf16 %v6117_v16, %v6116_v63  ;;  %10487 = vmatprep.subr.bf16.mxu0 %v15657_v22  ;;  %v6114_v51 = vmul.f32 %v11289_v8, %v14346_v20 }
0x12ed   :  { %v11291_v52 = vpop.eup %11290  ;;  %v6661_v48 = vsel %vm1324_vm15, %v6656_v33, 0 }
0x12ee   :  { %v6115_v36 = vmul.f32 %v11291_v52, %v14350_v62  ;;  %10484 = vmatmul.mubr.msk.bf16.vlgmr.msra.gmra.mrb[192].mxu1 %vm1324_vm15, %v6129_v3  ;;  %v6605_v2 = vpop.permute.xlu0 %6604 }
0x12ef   :  { %v11293_v43 = vpop.eup %11292  ;;  %10494 = vmatpush3.bf16.msra.mxu1 %v14422_v6  ;;  %10495 = vmatprep.mubr.msk.bf16.mxu1 %vm11486_vm8, %v15657_v22 }
0x12f0   :  { %v6707_v0 = vpop.permute.xlu1 %6706  ;;  %v6128_v28 = vpack.c.bf16 %v6115_v36, %v6114_v51  ;;  %10505 = vmatprep.subr.bf16.mxu1 %v15657_v22  ;;  %v6120_v61 = vmul.f32 %v11293_v43, %v14354_v17 }
0x12f1   :  { %v11295_v7 = vpop.eup %11294  ;;  %v6712_v29 = vsel %vm1324_vm15, %v6707_v0, 0 }
0x12f2   :  { %v6121_v20 = vmul.f32 %v11295_v7, %v14358_v46  ;;  %10478 = vmatmul.mubr.msk.bf16.vlgmr.msra.gmra.mrb[152].mxu0 %vm1324_vm15, %v6128_v28  ;;  %v6603_v62 = vpop.permute.xlu0 %6602 }
0x12f3   :  { %v11297_v14 = vpop.eup %11296  ;;  %10488 = vmatpush3.bf16.msra.mxu0 %v14424_v50  ;;  %10489 = vmatprep.mubr.msk.bf16.mxu0 %vm11486_vm8, %v15657_v22 }
0x12f4   :  { %v6758_v6 = vpop.permute.xlu1 %6757  ;;  %v6131_v34 = vpack.c.bf16 %v6121_v20, %v6120_v61  ;;  %10499 = vmatprep.subr.bf16.mxu0 %v15657_v22  ;;  %v6118_v18 = vmul.f32 %v11297_v14, %v14362_v30  ;;  %v6610_v30 = vsel %vm1324_vm15, %v6605_v2, 0 }
0x12f5   :  { %v11299_v5 = vpop.eup %11298  ;;  %v6763_v38 = vsel %vm1324_vm15, %v6758_v6, 0 }
0x12f6   :  { %v6119_v17 = vmul.f32 %v11299_v5, %v14366_v23  ;;  %10496 = vmatmul.mubr.msk.bf16.vlgmr.msra.gmra.mrb[196].mxu1 %vm1324_vm15, %v6131_v34  ;;  %v6654_v46 = vpop.permute.xlu0 %6653 }
0x12f7   :  { %10507 = vmatprep.mubr.msk.bf16.mxu1 %vm11486_vm8, %v15657_v22 }
0x12f8   :  { %v6809_v50 = vpop.permute.xlu1 %6808  ;;  %10506 = vmatpush3.bf16.xpose.msra.mxu1 %v6661_v48  ;;  %v6130_v57 = vpack.c.bf16 %v6119_v17, %v6118_v18 }
0x12f9   :  { %10517 = vmatprep.subr.bf16.mxu1 %v15657_v22  ;;  %v6814_v49 = vsel %vm1324_vm15, %v6809_v50, 0 }
0x12fa   :  { %10490 = vmatmul.mubr.msk.bf16.vlgmr.msra.gmra.mrb[156].mxu0 %vm1324_vm15, %v6130_v57  ;;  %v6705_v39 = vpop.permute.xlu0 %6704 }
0x12fb   :  { %10501 = vmatprep.mubr.msk.bf16.mxu0 %vm11486_vm8, %v15657_v22 }
0x12fc   :  { %v6860_v23 = vpop.permute.xlu1 %6859  ;;  %10500 = vmatpush3.bf16.xpose.msra.mxu0 %v6610_v30 }
0x12fd   :  { %10511 = vmatprep.subr.bf16.mxu0 %v15657_v22  ;;  %v6865_v4 = vsel %vm1324_vm15, %v6860_v23, 0 }
0x12fe   :  { %v6756_v44 = vpop.permute.xlu0 %6755 }
0x12ff   :  { %10508 = vmatmul.mubr.msk.bf16.vlgmr.msra.gmra.mrb[200].mxu1 %vm1324_vm15, %v6654_v46 }
0x1300   :  { %10518 = vmatpush3.bf16.xpose.msra.mxu1 %v6763_v38  ;;  %10519 = vmatprep.mubr.msk.bf16.mxu1 %vm11486_vm8, %v15657_v22  ;;  %v6911_v35 = vpop.permute.xlu1 %6910 }
0x1301   :  { %10529 = vmatprep.subr.bf16.mxu1 %v15657_v22  ;;  %v6916_v9 = vsel %vm1324_vm15, %v6911_v35, 0 }
0x1302   :  { %v6807_v55 = vpop.permute.xlu0 %6806 }
0x1303   :  { %10502 = vmatmul.mubr.msk.bf16.vlgmr.msra.gmra.mrb[160].mxu0 %vm1324_vm15, %v6603_v62 }
0x1304   :  { %10512 = vmatpush3.bf16.xpose.msra.mxu0 %v6712_v29  ;;  %10513 = vmatprep.mubr.msk.bf16.mxu0 %vm11486_vm8, %v15657_v22  ;;  %v6962_v40 = vpop.permute.xlu1 %6961 }
0x1305   :  { %10523 = vmatprep.subr.bf16.mxu0 %v15657_v22  ;;  %v6967_v41 = vsel %vm1324_vm15, %v6962_v40, 0 }
0x1306   :  { %v6858_v60 = vpop.permute.xlu0 %6857 }
0x1307   :  { %10520 = vmatmul.mubr.msk.bf16.vlgmr.msra.gmra.mrb[204].mxu1 %vm1324_vm15, %v6756_v44 }
0x1308   :  { %10530 = vmatpush3.bf16.xpose.msra.mxu1 %v6865_v4  ;;  %10531 = vmatprep.mubr.msk.bf16.mxu1 %vm11486_vm8, %v15657_v22  ;;  %v7013_v31 = vpop.permute.xlu1 %7012 }
0x1309   :  { %10541 = vmatprep.subr.bf16.mxu1 %v15657_v22  ;;  %v7018_v47 = vsel %vm1324_vm15, %v7013_v31, 0 }
0x130a   :  { %v6909_v42 = vpop.permute.xlu0 %6908 }
0x130b   :  { %10514 = vmatmul.mubr.msk.bf16.vlgmr.msra.gmra.mrb[164].mxu0 %vm1324_vm15, %v6705_v39 }
0x130c   :  { %10524 = vmatpush3.bf16.xpose.msra.mxu0 %v6814_v49  ;;  %10525 = vmatprep.mubr.msk.bf16.mxu0 %vm11486_vm8, %v15657_v22  ;;  %v7064_v10 = vpop.permute.xlu1 %7063 }
0x130d   :  { %10535 = vmatprep.subr.bf16.mxu0 %v15657_v22  ;;  %v7069_v63 = vsel %vm1324_vm15, %v7064_v10, 0 }
0x130e   :  { %v6960_v58 = vpop.permute.xlu0 %6959 }
0x130f   :  { %10532 = vmatmul.mubr.msk.bf16.vlgmr.msra.gmra.mrb[208].mxu1 %vm1324_vm15, %v6858_v60 }
0x1310   :  { %10542 = vmatpush3.bf16.xpose.msra.mxu1 %v6967_v41  ;;  %10543 = vmatprep.mubr.msk.bf16.mxu1 %vm11486_vm8, %v15657_v22  ;;  %v7062_v8 = vpop.permute.xlu1 %7061 }
0x1311   :  { %10553 = vmatprep.subr.bf16.mxu1 %v15657_v22 }
0x1312   :  { %v7011_v16 = vpop.permute.xlu0 %7010 }
0x1313   :  { %10526 = vmatmul.mubr.msk.bf16.vlgmr.msra.gmra.mrb[168].mxu0 %vm1324_vm15, %v6807_v55 }
0x1314   :  { %10536 = vmatpush3.bf16.xpose.msra.mxu0 %v6916_v9  ;;  %10537 = vmatprep.mubr.msk.bf16.mxu0 %vm11486_vm8, %v15657_v22  ;;  %v7343_v3 = vpop.permute.xlu1 %7342 }
0x1315   :  { %10547 = vmatprep.subr.bf16.mxu0 %v15657_v22 }
0x1316   :  { %v7390_v33 = vpop.permute.xlu0 %7389 }
0x1317   :  { %10544 = vmatmul.mubr.msk.bf16.vlgmr.msra.gmra.mrb[212].mxu1 %vm1324_vm15, %v6960_v58 }
0x1318   :  { %10554 = vmatpush3.bf16.xpose.msra.mxu1 %v7069_v63  ;;  %10555 = vmatprep.mubr.msk.bf16.mxu1 %vm11486_vm8, %v15657_v22 }
0x1319   :  { %10565 = vmatprep.subr.bf16.mxu1 %v15657_v22 }
0x131b   :  { %10538 = vmatmul.mubr.msk.bf16.vlgmr.msra.gmra.mrb[172].mxu0 %vm1324_vm15, %v6909_v42 }
0x131c   :  { %10548 = vmatpush3.bf16.xpose.msra.mxu0 %v7018_v47  ;;  %10549 = vmatprep.mubr.msk.bf16.mxu0 %vm11486_vm8, %v15657_v22 }
0x131d   :  { %10559 = vmatprep.subr.bf16.mxu0 %v15657_v22 }
0x131f   :  { %10556 = vmatmul.mubr.msk.bf16.vlgmr.msra.gmra.mrb[216].mxu1 %vm1324_vm15, %v7062_v8 }
0x1320   :  { %10566 = vmatpush3.bf16.msra.mxu1 %v7390_v33  ;;  %10567 = vmatprep.mubr.msk.bf16.mxu1 %vm11486_vm8, %v15657_v22 }
0x1321   :  { %10577 = vmatprep.subr.bf16.mxu1 %v15657_v22 }
0x1323   :  { %10550 = vmatmul.mubr.msk.bf16.vlgmr.msra.gmra.mrb[176].mxu0 %vm1324_vm15, %v7011_v16 }
0x1324   :  { %10560 = vmatpush3.bf16.msra.mxu0 %v7343_v3  ;;  %10561 = vmatprep.mubr.msk.bf16.mxu0 %vm11486_vm8, %v15657_v22 }
0x1325   :  { %10571 = vmatprep.subr.bf16.mxu0 %v15657_v22 }
0x13a8   :  { %v14544_v52 = vpop.f32.mrb[180].mxu1 }
0x13a9   :  { %v10449_v51 = vpop.f32.mrb[181].mxu1 }
0x13aa   :  { %v14546_v36 = vpop.f32.mrb[182].mxu1 }
0x13ab   :  { %v10450_v2 = vpop.f32.mrb[183].mxu1 }
0x13ac   :  { %v14548_v43 = vpop.f32.mrb[140].mxu0 }
0x13ad   :  { %v10443_v0 = vpop.f32.mrb[141].mxu0 }
0x13ae   :  { %v14550_v28 = vpop.f32.mrb[142].mxu0 }
0x13af   :  { %v10444_v7 = vpop.f32.mrb[143].mxu0 }
0x13b1   :  { %v14552_v61 = vpop.f32.mrb[184].mxu1 }
0x13b2   :  { %v10461_v20 = vpop.f32.mrb[185].mxu1 }
0x13b3   :  { %v14554_v62 = vpop.f32.mrb[186].mxu1 }
0x13b4   :  { %v10462_v14 = vpop.f32.mrb[187].mxu1 }
0x13b5   :  { %v14556_v6 = vpop.f32.mrb[144].mxu0 }
0x13b6   :  { %v10455_v34 = vpop.f32.mrb[145].mxu0 }
0x13b7   :  { %v14558_v5 = vpop.f32.mrb[146].mxu0 }
0x13b8   :  { %v10456_v18 = vpop.f32.mrb[147].mxu0 }
0x13b9   :  { %v14560_v17 = vpop.f32.mrb[188].mxu1 }
0x13ba   :  { %v10473_v46 = vpop.f32.mrb[189].mxu1 }
0x13bb   :  { %v14562_v48 = vpop.f32.mrb[190].mxu1 }
0x13bc   :  { %v10474_v50 = vpop.f32.mrb[191].mxu1 }
0x13bd   :  { %v14564_v57 = vpop.f32.mrb[148].mxu0 }
0x13be   :  { %v10467_v39 = vpop.f32.mrb[149].mxu0 }
0x13bf   :  { %v14566_v30 = vpop.f32.mrb[150].mxu0 }
0x13c0   :  { %v10468_v23 = vpop.f32.mrb[151].mxu0 }
0x13c1   :  { %v14568_v44 = vpop.f32.mrb[192].mxu1 }
0x13c2   :  { %v10485_v38 = vpop.f32.mrb[193].mxu1 }
0x13c3   :  { %v14570_v35 = vpop.f32.mrb[194].mxu1 }
0x13c4   :  { %v10486_v55 = vpop.f32.mrb[195].mxu1 }
0x13c5   :  { %v14572_v29 = vpop.f32.mrb[152].mxu0 }
0x13c6   :  { %v10479_v4 = vpop.f32.mrb[153].mxu0 }
0x13c7   :  { %v14574_v60 = vpop.f32.mrb[154].mxu0 }
0x13c8   :  { %v10480_v40 = vpop.f32.mrb[155].mxu0 }
0x13c9   :  { %v14576_v49 = vpop.f32.mrb[196].mxu1 }
0x13ca   :  { %v10497_v42 = vpop.f32.mrb[197].mxu1 }
0x13cb   :  { %v14578_v31 = vpop.f32.mrb[198].mxu1 }
0x13cc   :  { %v10498_v41 = vpop.f32.mrb[199].mxu1 }
0x13cd   :  { %v14580_v9 = vpop.f32.mrb[156].mxu0 }
0x13ce   :  { %v10491_v58 = vpop.f32.mrb[157].mxu0 }
0x13cf   :  { %v14582_v10 = vpop.f32.mrb[158].mxu0 }
0x13d0   :  { %v10492_v63 = vpop.f32.mrb[159].mxu0 }
0x13d2   :  { %v14584_v16 = vpop.f32.mrb[200].mxu1 }
0x13d3   :  { %v10509_v47 = vpop.f32.mrb[201].mxu1  ;;  %v7118_v8 = vsel %vm1324_vm15, %v14584_v16, -inf }
0x13d4   :  { %7119 = vmax.xlane.f32.xlu0 %v7118_v8  ;;  %v14588_v33 = vpop.f32.mrb[202].mxu1 }
0x13d5   :  { %v10510_v3 = vpop.f32.mrb[203].mxu1  ;;  %v7121_v46 = vsel %vm1324_vm15, %v14588_v33, -inf }
0x13d6   :  { %v14590_v51 = vpop.f32.mrb[160].mxu0 }
0x13d7   :  { %v10503_v2 = vpop.f32.mrb[161].mxu0  ;;  %v7112_v0 = vsel %vm1324_vm15, %v14590_v51, -inf }
0x13d8   :  { %v14594_v7 = vpop.f32.mrb[162].mxu0  ;;  %7113 = vmax.xlane.f32.xlu0 %v7112_v0 }
0x13d9   :  { %v10504_v20 = vpop.f32.mrb[163].mxu0  ;;  %v7115_v14 = vsel %vm1324_vm15, %v14594_v7, -inf }
0x13da   :  { %7116 = vmax.xlane.f32.xlu1 %v7115_v14  ;;  %v14598_v34 = vpop.f32.mrb[204].mxu1 }
0x13db   :  { %v10521_v18 = vpop.f32.mrb[205].mxu1  ;;  %v7130_v23 = vsel %vm1324_vm15, %v14598_v34, -inf }
0x13dc   :  { %7122 = vmax.xlane.f32.xlu0 %v7121_v46  ;;  %v14602_v50 = vpop.f32.mrb[206].mxu1 }
0x13dd   :  { %v10522_v39 = vpop.f32.mrb[207].mxu1  ;;  %v7133_v4 = vsel %vm1324_vm15, %v14602_v50, -inf }
0x13de   :  { %v14606_v38 = vpop.f32.mrb[164].mxu0  ;;  %7131 = vmax.xlane.f32.xlu1 %v7130_v23 }
0x13df   :  { %v10515_v55 = vpop.f32.mrb[165].mxu0  ;;  %v7124_v41 = vsel %vm1324_vm15, %v14606_v38, -inf }
0x13e0   :  { %v14610_v40 = vpop.f32.mrb[166].mxu0  ;;  %7134 = vmax.xlane.f32.xlu0 %v7133_v4 }
0x13e1   :  { %v10516_v42 = vpop.f32.mrb[167].mxu0  ;;  %v7127_v47 = vsel %vm1324_vm15, %v14610_v40, -inf }
0x13e2   :  { %7125 = vmax.xlane.f32.xlu1 %v7124_v41  ;;  %v14614_v58 = vpop.f32.mrb[208].mxu1 }
0x13e3   :  { %v10533_v63 = vpop.f32.mrb[209].mxu1  ;;  %v7142_v2 = vsel %vm1324_vm15, %v14614_v58, -inf }
0x13e4   :  { %7128 = vmax.xlane.f32.xlu0 %v7127_v47  ;;  %v14618_v8 = vpop.f32.mrb[210].mxu1 }
0x13e5   :  { %v10534_v3 = vpop.f32.mrb[211].mxu1  ;;  %v7145_v14 = vsel %vm1324_vm15, %v14618_v8, -inf }
0x13e6   :  { %v14622_v0 = vpop.f32.mrb[168].mxu0  ;;  %7143 = vmax.xlane.f32.xlu1 %v7142_v2 }
0x13e7   :  { %v10527_v20 = vpop.f32.mrb[169].mxu0  ;;  %v7136_v39 = vsel %vm1324_vm15, %v14622_v0, -inf }
0x13e8   :  { %v14626_v18 = vpop.f32.mrb[170].mxu0  ;;  %7146 = vmax.xlane.f32.xlu0 %v7145_v14 }
0x13e9   :  { %v10528_v46 = vpop.f32.mrb[171].mxu0  ;;  %v7139_v4 = vsel %vm1324_vm15, %v14626_v18, -inf }
0x13ea   :  { %7137 = vmax.xlane.f32.xlu1 %v7136_v39  ;;  %v14630_v23 = vpop.f32.mrb[212].mxu1 }
0x13eb   :  { %v10545_v55 = vpop.f32.mrb[213].mxu1  ;;  %v7154_v63 = vsel %vm1324_vm15, %v14630_v23, -inf }
0x13ec   :  { %7140 = vmax.xlane.f32.xlu0 %v7139_v4  ;;  %v14634_v42 = vpop.f32.mrb[214].mxu1 }
0x13ed   :  { %v10546_v41 = vpop.f32.mrb[215].mxu1  ;;  %v7157_v2 = vsel %vm1324_vm15, %v14634_v42, -inf }
0x13ee   :  { %v14638_v47 = vpop.f32.mrb[172].mxu0  ;;  %7155 = vmax.xlane.f32.xlu1 %v7154_v63 }
0x13ef   :  { %v10539_v3 = vpop.f32.mrb[173].mxu0  ;;  %v7148_v46 = vsel %vm1324_vm15, %v14638_v47, -inf }
0x13f0   :  { %v14642_v20 = vpop.f32.mrb[174].mxu0  ;;  %7158 = vmax.xlane.f32.xlu0 %v7157_v2 }
0x13f1   :  { %v10540_v14 = vpop.f32.mrb[175].mxu0  ;;  %v7151_v4 = vsel %vm1324_vm15, %v14642_v20, -inf }
0x13f2   :  { %7149 = vmax.xlane.f32.xlu1 %v7148_v46  ;;  %v14646_v39 = vpop.f32.mrb[216].mxu1 }
0x13f3   :  { %v10557_v55 = vpop.f32.mrb[217].mxu1  ;;  %v7166_v3 = vsel %vm1324_vm15, %v14646_v39, -inf }
0x13f4   :  { %7152 = vmax.xlane.f32.xlu0 %v7151_v4  ;;  %v14650_v41 = vpop.f32.mrb[218].mxu1 }
0x13f5   :  { %v10558_v63 = vpop.f32.mrb[219].mxu1  ;;  %v7169_v46 = vsel %vm1324_vm15, %v14650_v41, -inf }
0x13f6   :  { %7167 = vmax.xlane.f32.xlu1 %v7166_v3  ;;  %v14654_v2 = vpop.f32.mrb[176].mxu0  ;;  %v14668_v3 = vpop.permute.xlu1 %7436 }
0x13f7   :  { %v10551_v14 = vpop.f32.mrb[177].mxu0  ;;  %v7160_v4 = vsel %vm1324_vm15, %v14654_v2, -inf }
0x13f8   :  { %7170 = vmax.xlane.f32.xlu0 %v7169_v46  ;;  %v14658_v54 = vpop.f32.mrb[178].mxu0  ;;  %v14670_v14 = vpop.permute.xlu0 %7483 }
0x13f9   :  { %v10552_v55 = vpop.f32.mrb[179].mxu0  ;;  %v7163_v63 = vsel %vm1324_vm15, %v14658_v54, -inf }
0x13fa   :  { %7161 = vmax.xlane.f32.xlu1 %v7160_v4  ;;  %v14672_v46 = vpop.permute.xlu1 %7530 }
0x13fc   :  { %7164 = vmax.xlane.f32.xlu0 %v7163_v63 }
0x13fe   :  { %v14675_v4 = vpop.permute.xlu1 %7577 }
0x140b   :  { %7671 = vrot.lane.b32.xlu1 %v14080_v56, %s11491_s29 }
0x1412   :  { %7624 = vrot.lane.b32.xlu0 %v14082_v19, %s11491_s29 }
0x1461   :  { %v7120_v55 = vpop.xlane.xlu0 %7119 }
0x1462   :  { %v7174_v1 = vsub.f32 %v14584_v16, %v7120_v55 }
0x1464   :  { %v7196_v45 = vmul.f32 1.442695, %v7174_v1 }
0x1465   :  { %v7114_v13 = vpop.xlane.xlu0 %7113 }
0x1466   :  { %11300 = vpow2.f32 %v7196_v45  ;;  %v7172_v63 = vsub.f32 %v14590_v51, %v7114_v13 }
0x1467   :  { %v7117_v56 = vpop.xlane.xlu1 %7116 }
0x1468   :  { %v7192_v24 = vmul.f32 1.442695, %v7172_v63  ;;  %v7173_v19 = vsub.f32 %v14594_v7, %v7117_v56 }
0x1469   :  { %v7123_v26 = vpop.xlane.xlu0 %7122 }
0x146a   :  { %11302 = vpow2.f32 %v7192_v24  ;;  %v7175_v25 = vsub.f32 %v14588_v33, %v7123_v26  ;;  %v7194_v53 = vmul.f32 1.442695, %v7173_v19 }
0x146b   :  { %v7132_v21 = vpop.xlane.xlu1 %7131 }
0x146c   :  { %v7198_v12 = vmul.f32 1.442695, %v7175_v25  ;;  %v7178_v16 = vsub.f32 %v14598_v34, %v7132_v21 }
0x146d   :  { %v7135_v55 = vpop.xlane.xlu0 %7134 }
0x146e   :  { %11304 = vpow2.f32 %v7198_v12  ;;  %v7204_v1 = vmul.f32 1.442695, %v7178_v16  ;;  %v7179_v45 = vsub.f32 %v14602_v50, %v7135_v55 }
0x146f   :  { %11306 = vpow2.f32 %v7194_v53  ;;  %v7126_v13 = vpop.xlane.xlu1 %7125 }
0x1470   :  { %v14682_v51 = vpop.eup %11300  ;;  %11308 = vpow2.f32 %v7204_v1  ;;  %v7206_v7 = vmul.f32 1.442695, %v7179_v45  ;;  %v7176_v24 = vsub.f32 %v14606_v38, %v7126_v13 }
0x1471   :  { %v7129_v63 = vpop.xlane.xlu0 %7128  ;;  %v7238_v26 = vsel %vm1324_vm15, %v14682_v51, 0.0 }
0x1472   :  { %v7200_v25 = vmul.f32 1.442695, %v7176_v24  ;;  %v7177_v21 = vsub.f32 %v14610_v40, %v7129_v63  ;;  %7239 = vadd.xlane.f32.xlu1 %v7238_v26  ;;  %11310 = vpow2.f32 %v7206_v7 }
0x1473   :  { %v7144_v12 = vpop.xlane.xlu1 %7143 }
0x1474   :  { %v14688_v33 = vpop.eup %11302  ;;  %11312 = vpow2.f32 %v7200_v25  ;;  %v7202_v53 = vmul.f32 1.442695, %v7177_v21  ;;  %v7182_v34 = vsub.f32 %v14614_v58, %v7144_v12 }
0x1475   :  { %v7147_v50 = vpop.xlane.xlu0 %7146  ;;  %v7232_v38 = vsel %vm1324_vm15, %v14688_v33, 0.0 }
0x1476   :  { %v7212_v56 = vmul.f32 1.442695, %v7182_v34  ;;  %v7183_v19 = vsub.f32 %v14618_v8, %v7147_v50  ;;  %7233 = vadd.xlane.f32.xlu1 %v7232_v38  ;;  %11314 = vpow2.f32 %v7202_v53 }
0x1477   :  { %v7138_v16 = vpop.xlane.xlu1 %7137 }
0x1478   :  { %v14694_v40 = vpop.eup %11304  ;;  %11316 = vpow2.f32 %v7212_v56  ;;  %v7214_v55 = vmul.f32 1.442695, %v7183_v19  ;;  %v7180_v1 = vsub.f32 %v14622_v0, %v7138_v16 }
0x1479   :  { %v14697_v45 = vpop.eup %11306  ;;  %v7141_v13 = vpop.xlane.xlu0 %7140  ;;  %v7241_v58 = vsel %vm1324_vm15, %v14694_v40, 0.0 }
0x147a   :  { %v14701_v7 = vpop.eup %11308  ;;  %v7208_v24 = vmul.f32 1.442695, %v7180_v1  ;;  %v7181_v8 = vsub.f32 %v14626_v18, %v7141_v13  ;;  %7242 = vadd.xlane.f32.xlu0 %v7241_v58  ;;  %11318 = vpow2.f32 %v7214_v55  ;;  %v7235_v53 = vsel %vm1324_vm15, %v14697_v45, 0.0 }
0x147b   :  { %v7156_v63 = vpop.xlane.xlu1 %7155  ;;  %v7250_v26 = vsel %vm1324_vm15, %v14701_v7, 0.0 }
0x147c   :  { %11320 = vpow2.f32 %v7208_v24  ;;  %v7210_v25 = vmul.f32 1.442695, %v7181_v8  ;;  %v7186_v0 = vsub.f32 %v14630_v23, %v7156_v63  ;;  %7251 = vadd.xlane.f32.xlu1 %v7250_v26  ;;  %v14707_v21 = vpop.eup %11310 }
0x147d   :  { %v7159_v12 = vpop.xlane.xlu0 %7158  ;;  %v7253_v1 = vsel %vm1324_vm15, %v14707_v21, 0.0 }
0x147e   :  { %v14711_v34 = vpop.eup %11312  ;;  %v7220_v18 = vmul.f32 1.442695, %v7186_v0  ;;  %v7187_v50 = vsub.f32 %v14634_v42, %v7159_v12  ;;  %7236 = vadd.xlane.f32.xlu0 %v7235_v53  ;;  %11322 = vpow2.f32 %v7210_v25 }
0x147f   :  { %v7150_v38 = vpop.xlane.xlu1 %7149  ;;  %v7244_v56 = vsel %vm1324_vm15, %v14711_v34, 0.0 }
0x1480   :  { %11324 = vpow2.f32 %v7220_v18  ;;  %v7222_v23 = vmul.f32 1.442695, %v7187_v50  ;;  %v7184_v19 = vsub.f32 %v14638_v47, %v7150_v38  ;;  %7245 = vadd.xlane.f32.xlu1 %v7244_v56  ;;  %v14717_v16 = vpop.eup %11314 }
0x1481   :  { %v7153_v55 = vpop.xlane.xlu0 %7152  ;;  %v7247_v0 = vsel %vm1324_vm15, %v14717_v16, 0.0 }
0x1482   :  { %v14721_v13 = vpop.eup %11316  ;;  %v7216_v42 = vmul.f32 1.442695, %v7184_v19  ;;  %v7185_v58 = vsub.f32 %v14642_v20, %v7153_v55  ;;  %7254 = vadd.xlane.f32.xlu0 %v7253_v1  ;;  %11326 = vpow2.f32 %v7222_v23 }
0x1483   :  { %v7168_v24 = vpop.xlane.xlu1 %7167  ;;  %v7262_v8 = vsel %vm1324_vm15, %v14721_v13, 0.0 }
0x1484   :  { %11328 = vpow2.f32 %v7216_v42  ;;  %v7218_v47 = vmul.f32 1.442695, %v7185_v58  ;;  %v7190_v63 = vsub.f32 %v14646_v39, %v7168_v24  ;;  %7263 = vadd.xlane.f32.xlu1 %v7262_v8  ;;  %v14727_v26 = vpop.eup %11318 }
0x1485   :  { %v7171_v25 = vpop.xlane.xlu0 %7170  ;;  %v7265_v19 = vsel %vm1324_vm15, %v14727_v26, 0.0 }
0x1486   :  { %v14731_v12 = vpop.eup %11320  ;;  %v7228_v20 = vmul.f32 1.442695, %v7190_v63  ;;  %v7191_v53 = vsub.f32 %v14650_v41, %v7171_v25  ;;  %7248 = vadd.xlane.f32.xlu0 %v7247_v0  ;;  %11330 = vpow2.f32 %v7218_v47 }
0x1487   :  { %v7162_v18 = vpop.xlane.xlu1 %7161  ;;  %v7256_v50 = vsel %vm1324_vm15, %v14731_v12, 0.0 }
0x1488   :  { %11332 = vpow2.f32 %v7228_v20  ;;  %v7230_v39 = vmul.f32 1.442695, %v7191_v53  ;;  %v7188_v38 = vsub.f32 %v14654_v2, %v7162_v18  ;;  %7257 = vadd.xlane.f32.xlu1 %v7256_v50  ;;  %v14737_v56 = vpop.eup %11322 }
0x1489   :  { %v7165_v23 = vpop.xlane.xlu0 %7164  ;;  %v7259_v24 = vsel %vm1324_vm15, %v14737_v56, 0.0 }
0x148a   :  { %v14741_v55 = vpop.eup %11324  ;;  %v7224_v41 = vmul.f32 1.442695, %v7188_v38  ;;  %v7189_v1 = vsub.f32 %v14658_v54, %v7165_v23  ;;  %7266 = vadd.xlane.f32.xlu0 %v7265_v19  ;;  %11334 = vpow2.f32 %v7230_v39 }
0x148b   :  { %v7274_v42 = vsel %vm1324_vm15, %v14741_v55, 0.0  ;;  %v14780_v19 = vpop.permute.xlu1 %7671 }
0x148c   :  { %11336 = vpow2.f32 %v7224_v41  ;;  %v7226_v58 = vmul.f32 1.442695, %v7189_v1  ;;  %7275 = vadd.xlane.f32.xlu1 %v7274_v42  ;;  %v14746_v2 = vpop.eup %11326 }
0x148d   :  { %v7277_v63 = vsel %vm1324_vm15, %v14746_v2, 0.0  ;;  %v14782_v1 = vpop.permute.xlu0 %7624 }
0x148e   :  { %v14750_v8 = vpop.eup %11328  ;;  %7260 = vadd.xlane.f32.xlu0 %v7259_v24  ;;  %11338 = vpow2.f32 %v7226_v58 }
0x148f   :  { %v7268_v47 = vsel %vm1324_vm15, %v14750_v8, 0.0 }
0x1490   :  { %7269 = vadd.xlane.f32.xlu1 %v7268_v47  ;;  %v14754_v54 = vpop.eup %11330 }
0x1491   :  { %v7271_v53 = vsel %vm1324_vm15, %v14754_v54, 0.0 }
0x1492   :  { %v14758_v25 = vpop.eup %11332  ;;  %7278 = vadd.xlane.f32.xlu0 %v7277_v63 }
0x1493   :  { %v7286_v0 = vsel %vm1324_vm15, %v14758_v25, 0.0 }
0x1494   :  { %7287 = vadd.xlane.f32.xlu1 %v7286_v0  ;;  %v14762_v20 = vpop.eup %11334 }
0x1495   :  { %v7289_v39 = vsel %vm1324_vm15, %v14762_v20, 0.0 }
0x1496   :  { %v14766_v18 = vpop.eup %11336  ;;  %7272 = vadd.xlane.f32.xlu0 %v7271_v53 }
0x1497   :  { %v7280_v50 = vsel %vm1324_vm15, %v14766_v18, 0.0 }
0x1498   :  { %7281 = vadd.xlane.f32.xlu1 %v7280_v50  ;;  %v14772_v38 = vpop.eup %11338 }
0x1499   :  { %v7283_v23 = vsel %vm1324_vm15, %v14772_v38, 0.0 }
0x149a   :  { %7290 = vadd.xlane.f32.xlu0 %v7289_v39 }
0x149e   :  { %7284 = vadd.xlane.f32.xlu0 %v7283_v23 }
0x14a9   :  { %7765 = vrot.lane.b32.xlu1 %v14088_v59, %s11491_s29 }
0x14b4   :  { %7718 = vrot.lane.b32.xlu0 %v14090_v27, %s11491_s29 }
0x14ff   :  { %v7240_v41 = vpop.xlane.xlu1 %7239 }
0x1500   :  { %11340 = vrcp.f32 %v7240_v41 }
0x1503   :  { %v7234_v42 = vpop.xlane.xlu1 %7233 }
0x1507   :  { %v7243_v58 = vpop.xlane.xlu0 %7242 }
0x1508   :  { %11342 = vrcp.f32 %v7243_v58 }
0x1509   :  { %v7252_v24 = vpop.xlane.xlu1 %7251  ;;  %11344 = vrcp.f32 %v7234_v42 }
0x150a   :  { %v11341_v59 = vpop.eup %11340 }
0x150b   :  { %v7237_v47 = vpop.xlane.xlu0 %7236  ;;  %v7314_v50 = vmul.f32 %v11341_v59, %v14682_v51 }
0x150c   :  { %11346 = vrcp.f32 %v7237_v47 }
0x150d   :  { %v7246_v63 = vpop.xlane.xlu1 %7245  ;;  %11348 = vrcp.f32 %v7252_v24 }
0x150f   :  { %v7255_v0 = vpop.xlane.xlu0 %7254 }
0x1510   :  { %11350 = vrcp.f32 %v7255_v0 }
0x1511   :  { %v7264_v53 = vpop.xlane.xlu1 %7263  ;;  %11352 = vrcp.f32 %v7246_v63 }
0x1512   :  { %v11343_v27 = vpop.eup %11342 }
0x1513   :  { %v7315_v39 = vmul.f32 %v11343_v27, %v14694_v40  ;;  %v7249_v23 = vpop.xlane.xlu0 %7248  ;;  %v11345_v41 = vpop.eup %11344 }
0x1514   :  { %11354 = vrcp.f32 %v7249_v23  ;;  %v7312_v47 = vmul.f32 %v11345_v41, %v14688_v33 }
0x1515   :  { %v7258_v58 = vpop.xlane.xlu1 %7257  ;;  %v7333_v32 = vpack.c.bf16 %v7315_v39, %v7314_v50  ;;  %11356 = vrcp.f32 %v7264_v53 }
0x1516   :  { %v11347_v42 = vpop.eup %11346 }
0x1517   :  { %v7313_v24 = vmul.f32 %v11347_v42, %v14697_v45  ;;  %10568 = vmatmul.mubr.msk.bf16.vlgmr.msra.gmra.mrb[220].mxu1 %vm1324_vm15, %v7333_v32  ;;  %v7267_v0 = vpop.xlane.xlu0 %7266  ;;  %v11349_v37 = vpop.eup %11348 }
0x1518   :  { %10578 = vmatpush3.bf16.msra.mxu1 %v14670_v14  ;;  %11358 = vrcp.f32 %v7267_v0  ;;  %10579 = vmatprep.mubr.msk.bf16.mxu1 %vm11486_vm8, %v15657_v22  ;;  %v7318_v33 = vmul.f32 %v11349_v37, %v14701_v7 }
0x1519   :  { %v7276_v51 = vpop.xlane.xlu1 %7275  ;;  %v7332_v40 = vpack.c.bf16 %v7313_v24, %v7312_v47  ;;  %10589 = vmatprep.subr.bf16.mxu1 %v15657_v22  ;;  %11360 = vrcp.f32 %v7258_v58 }
0x151a   :  { %v11351_v63 = vpop.eup %11350 }
0x151b   :  { %v7319_v45 = vmul.f32 %v11351_v63, %v14707_v21  ;;  %10562 = vmatmul.mubr.msk.bf16.vlgmr.msra.gmra.mrb[180].mxu0 %vm1324_vm15, %v7332_v40  ;;  %v7261_v32 = vpop.xlane.xlu0 %7260  ;;  %v11353_v59 = vpop.eup %11352 }
0x151c   :  { %10572 = vmatpush3.bf16.msra.mxu0 %v14668_v3  ;;  %11362 = vrcp.f32 %v7261_v32  ;;  %10573 = vmatprep.mubr.msk.bf16.mxu0 %vm11486_vm8, %v15657_v22  ;;  %v7316_v37 = vmul.f32 %v11353_v59, %v14711_v34 }
0x151d   :  { %v7270_v14 = vpop.xlane.xlu1 %7269  ;;  %v7335_v53 = vpack.c.bf16 %v7319_v45, %v7318_v33  ;;  %10583 = vmatprep.subr.bf16.mxu0 %v15657_v22  ;;  %11364 = vrcp.f32 %v7276_v51 }
0x151e   :  { %v11355_v27 = vpop.eup %11354 }
0x151f   :  { %v7317_v7 = vmul.f32 %v11355_v27, %v14717_v16  ;;  %10580 = vmatmul.mubr.msk.bf16.vlgmr.msra.gmra.mrb[224].mxu1 %vm1324_vm15, %v7335_v53  ;;  %v7279_v21 = vpop.xlane.xlu0 %7278  ;;  %v11357_v50 = vpop.eup %11356 }
0x1520   :  { %10590 = vmatpush3.bf16.msra.mxu1 %v14675_v4  ;;  %11366 = vrcp.f32 %v7279_v21  ;;  %10591 = vmatprep.mubr.msk.bf16.mxu1 %vm11486_vm8, %v15657_v22  ;;  %v7322_v34 = vmul.f32 %v11357_v50, %v14721_v13 }
0x1521   :  { %v7288_v3 = vpop.xlane.xlu1 %7287  ;;  %v7334_v39 = vpack.c.bf16 %v7317_v7, %v7316_v37  ;;  %10601 = vmatprep.subr.bf16.mxu1 %v15657_v22  ;;  %11368 = vrcp.f32 %v7270_v14 }
0x1522   :  { %v11359_v23 = vpop.eup %11358 }
0x1523   :  { %v7323_v16 = vmul.f32 %v11359_v23, %v14727_v26  ;;  %10574 = vmatmul.mubr.msk.bf16.vlgmr.msra.gmra.mrb[184].mxu0 %vm1324_vm15, %v7334_v39  ;;  %v7273_v41 = vpop.xlane.xlu0 %7272  ;;  %v11361_v58 = vpop.eup %11360 }
0x1524   :  { %10584 = vmatpush3.bf16.msra.mxu0 %v14672_v46  ;;  %11370 = vrcp.f32 %v7273_v41  ;;  %10585 = vmatprep.mubr.msk.bf16.mxu0 %vm11486_vm8, %v15657_v22  ;;  %v7320_v47 = vmul.f32 %v11361_v58, %v14731_v12 }
0x1525   :  { %v7337_v4 = vpack.c.bf16 %v7323_v16, %v7322_v34  ;;  %10595 = vmatprep.subr.bf16.mxu0 %v15657_v22  ;;  %11372 = vrcp.f32 %v7288_v3  ;;  %v7282_v26 = vpop.xlane.xlu1 %7281 }
0x1526   :  { %v11363_v42 = vpop.eup %11362 }
0x1527   :  { %v7321_v13 = vmul.f32 %v11363_v42, %v14737_v56  ;;  %10592 = vmatmul.mubr.msk.bf16.vlgmr.msra.gmra.mrb[228].mxu1 %vm1324_vm15, %v7337_v4  ;;  %v7291_v24 = vpop.xlane.xlu0 %7290  ;;  %v11365_v0 = vpop.eup %11364 }
0x1528   :  { %10602 = vmatpush3.bf16.msra.mxu1 %v14780_v19  ;;  %11374 = vrcp.f32 %v7291_v24  ;;  %10603 = vmatprep.mubr.msk.bf16.mxu1 %vm11486_vm8, %v15657_v22  ;;  %v7326_v12 = vmul.f32 %v11365_v0, %v14741_v55 }
0x1529   :  { %v7336_v46 = vpack.c.bf16 %v7321_v13, %v7320_v47  ;;  %10613 = vmatprep.subr.bf16.mxu1 %v15657_v22  ;;  %11376 = vrcp.f32 %v7282_v26  ;;  %v7766_v32 = vpop.permute.xlu1 %7765 }
0x152a   :  { %v11367_v51 = vpop.eup %11366 }
0x152b   :  { %v7327_v56 = vmul.f32 %v11367_v51, %v14746_v2  ;;  %10586 = vmatmul.mubr.msk.bf16.vlgmr.msra.gmra.mrb[188].mxu0 %vm1324_vm15, %v7336_v46  ;;  %v7285_v40 = vpop.xlane.xlu0 %7284  ;;  %v11369_v63 = vpop.eup %11368 }
0x152c   :  { %10596 = vmatpush3.bf16.msra.mxu0 %v14782_v1  ;;  %11378 = vrcp.f32 %v7285_v40  ;;  %10597 = vmatprep.mubr.msk.bf16.mxu0 %vm11486_vm8, %v15657_v22  ;;  %v7324_v45 = vmul.f32 %v11369_v63, %v14750_v8 }
0x152d   :  { %v7339_v19 = vpack.c.bf16 %v7327_v56, %v7326_v12  ;;  %10607 = vmatprep.subr.bf16.mxu0 %v15657_v22 }
0x152e   :  { %v11371_v33 = vpop.eup %11370 }
0x152f   :  { %v7325_v55 = vmul.f32 %v11371_v33, %v14754_v54  ;;  %10604 = vmatmul.mubr.msk.bf16.vlgmr.msra.gmra.mrb[232].mxu1 %vm1324_vm15, %v7339_v19  ;;  %v11373_v2 = vpop.eup %11372  ;;  %v7719_v27 = vpop.permute.xlu0 %7718 }
0x1530   :  { %10614 = vmatpush3.bf16.msra.mxu1 %v7766_v32  ;;  %10615 = vmatprep.mubr.msk.bf16.mxu1 %vm11486_vm8, %v15657_v22  ;;  %v7330_v14 = vmul.f32 %v11373_v2, %v14758_v25  ;;  %v10890_v25 = vld [vmem:[%s15570_s7 + $0x10] sm:$0xff]  }
0x1531   :  { %v7338_v1 = vpack.c.bf16 %v7325_v55, %v7324_v45 }
0x1532   :  { %v11375_v59 = vpop.eup %11374 }
0x1533   :  { %v7331_v53 = vmul.f32 %v11375_v59, %v14762_v20  ;;  %10598 = vmatmul.mubr.msk.bf16.vlgmr.msra.gmra.mrb[192].mxu0 %vm1324_vm15, %v7338_v1  ;;  %v11377_v8 = vpop.eup %11376  ;;  %v10891_v20 = vld [vmem:[%s15570_s7 + $0x18] sm:$0xff]  }
0x1534   :  { %10608 = vmatpush3.bf16.msra.mxu0 %v7719_v27  ;;  %10609 = vmatprep.mubr.msk.bf16.mxu0 %vm11486_vm8, %v15657_v22  ;;  %v7328_v7 = vmul.f32 %v11377_v8, %v14766_v18 }
0x1535   :  { %v7341_v54 = vpack.c.bf16 %v7331_v53, %v7330_v14  ;;  %10619 = vmatprep.subr.bf16.mxu0 %v10890_v25 }
0x1536   :  { %v11379_v37 = vpop.eup %11378 }
0x1537   :  { %v7329_v21 = vmul.f32 %v11379_v37, %v14772_v38  ;;  %10616 = vmatmul.mubr.msk.bf16.vlgmr.msra.gmra.mrb[236].mxu1 %vm1324_vm15, %v7341_v54 }
0x1539   :  { %v7340_v50 = vpack.c.bf16 %v7329_v21, %v7328_v7 }
0x153b   :  { %10610 = vmatmul.mubr.msk.bf16.vlgmr.msra.gmra.mrb[196].mxu0 %vm1324_vm15, %v7340_v50 }
0x153c   :  { %10620 = vmatpush3.bf16.msra.mxu0 %v10890_v25 }
0x153d   :  { %10621 = vmatprep.subr.bf16.mxu0 %v10891_v20 }
0x1540   :  { %10622 = vmatpush3.bf16.msra.mxu0 %v10891_v20 }
0x15ea   :  { %v7429_v3 = vpop.f32.mrb[220].mxu1 }
0x15eb   :  { %v10569_v39 = vpop.f32.mrb[221].mxu1 }
0x15ec   :  { %v7432_v18 = vpop.f32.mrb[222].mxu1 }
0x15ed   :  { %v10833_v38 = vpack.i.bf16 %v7432_v18, %v7429_v3  ;;  %v10570_v23 = vpop.f32.mrb[223].mxu1 }
0x15ee   :  { %v7382_v34 = vpop.f32.mrb[180].mxu0 }
0x15ef   :  { %10834 = vrot.lane.b32.xlu1 %v10833_v38, %s11492_s21  ;;  %v10563_v16 = vpop.f32.mrb[181].mxu0 }
0x15f0   :  { %v7385_v41 = vpop.f32.mrb[182].mxu0 }
0x15f1   :  { %v10828_v58 = vpack.i.bf16 %v7385_v41, %v7382_v34  ;;  %v10564_v4 = vpop.f32.mrb[183].mxu0 }
0x15f2   :  { %v7523_v42 = vpop.f32.mrb[224].mxu1 }
0x15f3   :  { %10829 = vrot.lane.b32.xlu0 %v10828_v58, %s11492_s21  ;;  %v10581_v47 = vpop.f32.mrb[225].mxu1 }
0x15f4   :  { %v7526_v13 = vpop.f32.mrb[226].mxu1 }
0x15f5   :  { %v10843_v26 = vpack.i.bf16 %v7526_v13, %v7523_v42  ;;  %v10582_v24 = vpop.f32.mrb[227].mxu1 }
0x15f6   :  { %v7476_v0 = vpop.f32.mrb[184].mxu0 }
0x15f7   :  { %10844 = vrot.lane.b32.xlu1 %v10843_v26, %s11492_s21  ;;  %v10575_v46 = vpop.f32.mrb[185].mxu0 }
0x15f8   :  { %v7479_v51 = vpop.f32.mrb[186].mxu0 }
0x15f9   :  { %v10838_v12 = vpack.i.bf16 %v7479_v51, %v7476_v0  ;;  %v10576_v56 = vpop.f32.mrb[187].mxu0 }
0x15fa   :  { %v7617_v40 = vpop.f32.mrb[228].mxu1 }
0x15fb   :  { %10839 = vrot.lane.b32.xlu0 %v10838_v12, %s11492_s21  ;;  %v10593_v63 = vpop.f32.mrb[229].mxu1 }
0x15fc   :  { %v7620_v19 = vpop.f32.mrb[230].mxu1 }
0x15fd   :  { %v10853_v33 = vpack.i.bf16 %v7620_v19, %v7617_v40  ;;  %v10594_v45 = vpop.f32.mrb[231].mxu1 }
0x15fe   :  { %v7570_v55 = vpop.f32.mrb[188].mxu0 }
0x15ff   :  { %10854 = vrot.lane.b32.xlu1 %v10853_v33, %s11492_s21  ;;  %v10587_v32 = vpop.f32.mrb[189].mxu0 }
0x1600   :  { %v7573_v2 = vpop.f32.mrb[190].mxu0 }
0x1601   :  { %v10848_v1 = vpack.i.bf16 %v7573_v2, %v7570_v55  ;;  %v10588_v59 = vpop.f32.mrb[191].mxu0 }
0x1602   :  { %v7711_v14 = vpop.f32.mrb[232].mxu1 }
0x1603   :  { %10849 = vrot.lane.b32.xlu0 %v10848_v1, %s11492_s21  ;;  %v10605_v53 = vpop.f32.mrb[233].mxu1 }
0x1604   :  { %v7714_v27 = vpop.f32.mrb[234].mxu1 }
0x1605   :  { %v10863_v8 = vpack.i.bf16 %v7714_v27, %v7711_v14  ;;  %v10606_v54 = vpop.f32.mrb[235].mxu1 }
0x1606   :  { %v7664_v37 = vpop.f32.mrb[192].mxu0 }
0x1607   :  { %10864 = vrot.lane.b32.xlu1 %v10863_v8, %s11492_s21  ;;  %v10599_v7 = vpop.f32.mrb[193].mxu0 }
0x1608   :  { %v7667_v21 = vpop.f32.mrb[194].mxu0 }
0x1609   :  { %v10858_v50 = vpack.i.bf16 %v7667_v21, %v7664_v37  ;;  %v10600_v25 = vpop.f32.mrb[195].mxu0 }
0x160a   :  { %v7805_v20 = vpop.f32.mrb[236].mxu1 }
0x160b   :  { %10859 = vrot.lane.b32.xlu0 %v10858_v50, %s11492_s21  ;;  %v10617_v3 = vpop.f32.mrb[237].mxu1 }
0x160c   :  { %v7808_v39 = vpop.f32.mrb[238].mxu1 }
0x160d   :  { %v10873_v18 = vpack.i.bf16 %v7808_v39, %v7805_v20  ;;  %v10618_v38 = vpop.f32.mrb[239].mxu1 }
0x160e   :  { %v7758_v23 = vpop.f32.mrb[196].mxu0 }
0x160f   :  { %10874 = vrot.lane.b32.xlu1 %v10873_v18, %s11492_s21  ;;  %v10611_v34 = vpop.f32.mrb[197].mxu0 }
0x1610   :  { %v7761_v16 = vpop.f32.mrb[198].mxu0 }
0x1611   :  { %v10868_v41 = vpack.i.bf16 %v7761_v16, %v7758_v23  ;;  %v10612_v58 = vpop.f32.mrb[199].mxu0 }
0x1613   :  { %10869 = vrot.lane.b32.xlu0 %v10868_v41, %s11492_s21 }
0x1661   :  { %v10835_v4 = vpop.permute.xlu1 %10834 }
0x1662   :  { %v10837_v42 = vunpack.i.h.bf16 %v10835_v4  ;;  %v10836_v47 = vunpack.i.l.bf16 %v10835_v4 }
0x1664   :  { %v7895_v13 = vsel %vm1324_vm15, %v14546_v36, %v10837_v42  ;;  %v7894_v26 = vsel %vm1324_vm15, %v14544_v52, %v10836_v47 }
0x1665   :  { %v7913_v24 = vpack.c.bf16 %v7895_v13, %v7894_v26  ;;  %v10830_v0 = vpop.permute.xlu0 %10829 }
0x1666   :  { %v10832_v46 = vunpack.i.h.bf16 %v10830_v0  ;;  %v10831_v51 = vunpack.i.l.bf16 %v10830_v0 }
0x1668   :  { %v7893_v12 = vsel %vm1324_vm15, %v14550_v28, %v10832_v46  ;;  %v7892_v56 = vsel %vm1324_vm15, %v14548_v43, %v10831_v51 }
0x1669   :  { %v7912_v40 = vpack.c.bf16 %v7893_v12, %v7892_v56  ;;  %v10845_v63 = vpop.permute.xlu1 %10844  ;;  %v15695_v56 = vld [vmem:[#allocation5_spill] sm:$0xff] }
0x166a   :  { %v10847_v19 = vunpack.i.h.bf16 %v10845_v63  ;;  %v10846_v33 = vunpack.i.l.bf16 %v10845_v63 }
0x166b   :  { %10623 = vmatprep.mubr.msk.bf16.mxu0 %vm825_vm14, %v7912_v40 }
0x166c   :  { %v7899_v36 = vsel %vm1324_vm15, %v14554_v62, %v10847_v19  ;;  %v7898_v52 = vsel %vm1324_vm15, %v14552_v61, %v10846_v33  ;;  %10624 = vmatmul.mubr.msk.bf16.vlgmr.msra.gmra.mrb[200].mxu0 %vm825_vm14, %v7913_v24 }
0x166d   :  { %v7915_v45 = vpack.c.bf16 %v7899_v36, %v7898_v52  ;;  %v10840_v55 = vpop.permute.xlu0 %10839  ;;  %v15696_v36 = vld [vmem:[#allocation6_spill] sm:$0xff] }
0x166e   :  { %v10842_v28 = vunpack.i.h.bf16 %v10840_v55  ;;  %v10841_v32 = vunpack.i.l.bf16 %v10840_v55 }
0x1670   :  { %v7897_v43 = vsel %vm1324_vm15, %v14558_v5, %v10842_v28  ;;  %v7896_v2 = vsel %vm1324_vm15, %v14556_v6, %v10841_v32 }
0x1671   :  { %v7914_v1 = vpack.c.bf16 %v7897_v43, %v7896_v2  ;;  %v10855_v59 = vpop.permute.xlu1 %10854  ;;  %v15697_v43 = vld [vmem:[#allocation8_spill] sm:$0xff] }
0x1672   :  { %v10857_v14 = vunpack.i.h.bf16 %v10855_v59  ;;  %v10856_v53 = vunpack.i.l.bf16 %v10855_v59 }
0x1673   :  { %10627 = vmatprep.mubr.msk.bf16.mxu0 %vm825_vm14, %v7914_v1 }
0x1674   :  { %v7903_v61 = vsel %vm1324_vm15, %v14562_v48, %v10857_v14  ;;  %v7902_v62 = vsel %vm1324_vm15, %v14560_v17, %v10856_v53  ;;  %10628 = vmatmul.mubr.msk.bf16.gmra.mrb[204].mxu0 %vm825_vm14, %v7915_v45  ;;  %v15698_v14 = vld [vmem:[#allocation9_spill] sm:$0xff] }
0x1675   :  { %v7917_v27 = vpack.c.bf16 %v7903_v61, %v7902_v62  ;;  %v10850_v8 = vpop.permute.xlu0 %10849  ;;  %v15699_v61 = vld [vmem:[#allocation7_spill] sm:$0xff] }
0x1676   :  { %v10852_v5 = vunpack.i.h.bf16 %v10850_v8  ;;  %v10851_v54 = vunpack.i.l.bf16 %v10850_v8 }
0x1678   :  { %v7901_v6 = vsel %vm1324_vm15, %v14566_v30, %v10852_v5  ;;  %v7900_v37 = vsel %vm1324_vm15, %v14564_v57, %v10851_v54  ;;  %v15700_v54 = vld [vmem:[#allocation10_spill] sm:$0xff] }
0x1679   :  { %v7916_v7 = vpack.c.bf16 %v7901_v6, %v7900_v37  ;;  %v10865_v21 = vpop.permute.xlu1 %10864 }
0x167a   :  { %v10867_v50 = vunpack.i.h.bf16 %v10865_v21  ;;  %v10866_v25 = vunpack.i.l.bf16 %v10865_v21 }
0x167b   :  { %10631 = vmatprep.mubr.msk.bf16.mxu0 %vm825_vm14, %v7916_v7 }
0x167c   :  { %v7907_v17 = vsel %vm1324_vm15, %v14570_v35, %v10867_v50  ;;  %v7906_v48 = vsel %vm1324_vm15, %v14568_v44, %v10866_v25  ;;  %10632 = vmatmul.mubr.msk.bf16.gmra.mrb[208].mxu0 %vm825_vm14, %v7917_v27 }
0x167d   :  { %v7919_v20 = vpack.c.bf16 %v7907_v17, %v7906_v48  ;;  %v10860_v3 = vpop.permute.xlu0 %10859 }
0x167e   :  { %v10862_v30 = vunpack.i.h.bf16 %v10860_v3  ;;  %v10861_v39 = vunpack.i.l.bf16 %v10860_v3 }
0x1680   :  { %v7905_v57 = vsel %vm1324_vm15, %v14574_v60, %v10862_v30  ;;  %v7904_v18 = vsel %vm1324_vm15, %v14572_v29, %v10861_v39 }
0x1681   :  { %v7918_v38 = vpack.c.bf16 %v7905_v57, %v7904_v18  ;;  %v10875_v23 = vpop.permute.xlu1 %10874  ;;  %v15702_v57 = vld [vmem:[#allocation13_spill] sm:$0xff] }
0x1682   :  { %v10877_v34 = vunpack.i.h.bf16 %v10875_v23  ;;  %v10876_v16 = vunpack.i.l.bf16 %v10875_v23 }
0x1683   :  { %10635 = vmatprep.mubr.msk.bf16.mxu0 %vm825_vm14, %v7918_v38  ;;  %v15703_v38 = vld [vmem:[#allocation11_spill] sm:$0xff] }
0x1684   :  { %v7911_v44 = vsel %vm1324_vm15, %v14578_v31, %v10877_v34  ;;  %v7910_v35 = vsel %vm1324_vm15, %v14576_v49, %v10876_v16  ;;  %10636 = vmatmul.mubr.msk.bf16.gmra.mrb[212].mxu0 %vm825_vm14, %v7919_v20  ;;  %v14911_v49 = vld [vmem:[%s15571_s8 + $0x1] ss:$0 sm:$0xff]  ;;  %v15701_v20 = vld [vmem:[#allocation12_spill] sm:$0xff] }
0x1685   :  { %v7921_v41 = vpack.c.bf16 %v7911_v44, %v7910_v35  ;;  %v10870_v58 = vpop.permute.xlu0 %10869  ;;  %v15704_v35 = vld [vmem:[#allocation14_spill] sm:$0xff] }
0x1686   :  { %v10872_v60 = vunpack.i.h.bf16 %v10870_v58  ;;  %v10871_v4 = vunpack.i.l.bf16 %v10870_v58 }
0x1688   :  { %v7909_v29 = vsel %vm1324_vm15, %v14582_v10, %v10872_v60  ;;  %v7908_v42 = vsel %vm1324_vm15, %v14580_v9, %v10871_v4 }
0x1689   :  { %v7920_v47 = vpack.c.bf16 %v7909_v29, %v7908_v42 }
0x168b   :  { %10639 = vmatprep.mubr.msk.bf16.mxu0 %vm825_vm14, %v7920_v47 }
0x168c   :  { %10640 = vmatmul.mubr.msk.bf16.gmra.mrb[216].mxu0 %vm825_vm14, %v7921_v41 }
0x173f   :  { %v10625_v31 = vpop.f32.mrb[200].mxu0 }
0x1740   :  { %v8011_v13 = vpop.f32.mrb[201].mxu0  ;;  %v8020_v26 = vadd.f32 %v10625_v31, %v14911_v49 }
0x1741   :  { %v8012_v24 = vadd.f32 %v14911_v49, %v8011_v13  ;;  %v10626_v10 = vpop.f32.mrb[202].mxu0  ;;  %v15705_v13 = vld [vmem:[#allocation16_spill] sm:$0xff] }
0x1742   :  { %v8014_v0 = vpop.f32.mrb[203].mxu0  ;;  %v14920_v51 = vadd.f32 %v8020_v26, %v13938_v15  ;;  %v8023_v12 = vadd.f32 %v10626_v10, %v14911_v49 }
0x1743   :  { %v14916_v9 = vadd.f32 %v8012_v24, %v13929_v11  ;;  %v8015_v46 = vadd.f32 %v14911_v49, %v8014_v0  ;;  %v15706_v0 = vld [vmem:[#allocation17_spill] sm:$0xff] }
0x1744   :  { %v14931_v52 = vadd.f32 %v8023_v12, %v15696_v36  ;;  %v8118_v28 = vsel %vm825_vm14, %v14920_v51, 0.0  ;;  %v15707_v12 = vld [vmem:[#allocation15_spill] sm:$0xff] }
0x1745   :  { %v14924_v40 = vadd.f32 %v8015_v46, %v15695_v56  ;;  %v8112_v63 = vsel %vm825_vm14, %v14916_v9, 0.0 }
0x1746   :  { %8113 = vadd.xlane.f32.xlu0 %v8112_v63  ;;  %v8121_v8 = vsel %vm825_vm14, %v14931_v52, 0.0 }
0x1747   :  { %v10629_v19 = vpop.f32.mrb[204].mxu0  ;;  %v8115_v33 = vsel %vm825_vm14, %v14924_v40, 0.0 }
0x1748   :  { %v8027_v11 = vpop.f32.mrb[205].mxu0  ;;  %8116 = vadd.xlane.f32.xlu1 %v8115_v33  ;;  %v8036_v15 = vadd.f32 %v10629_v19, %v14911_v49 }
0x1749   :  { %v8028_v45 = vadd.f32 %v14911_v49, %v8027_v11  ;;  %v10630_v55 = vpop.f32.mrb[206].mxu0  ;;  %v15708_v11 = vld [vmem:[#allocation18_spill] sm:$0xff] }
0x174a   :  { %v8030_v32 = vpop.f32.mrb[207].mxu0  ;;  %8119 = vadd.xlane.f32.xlu0 %v8118_v28  ;;  %v8039_v59 = vadd.f32 %v10630_v55, %v14911_v49  ;;  %v14943_v53 = vadd.f32 %v8036_v15, %v15698_v14 }
0x174b   :  { %v14938_v2 = vadd.f32 %v8028_v45, %v15697_v43  ;;  %v8031_v1 = vadd.f32 %v14911_v49, %v8030_v32 }
0x174c   :  { %v14953_v6 = vadd.f32 %v8039_v59, %v15700_v54  ;;  %v8130_v25 = vsel %vm825_vm14, %v14943_v53, 0.0  ;;  %v15709_v59 = vld [vmem:[#allocation20_spill] sm:$0xff] }
0x174d   :  { %v14946_v62 = vadd.f32 %v8031_v1, %v15699_v61  ;;  %v8124_v27 = vsel %vm825_vm14, %v14938_v2, 0.0 }
0x174e   :  { %8125 = vadd.xlane.f32.xlu1 %v8124_v27  ;;  %8122 = vadd.xlane.f32.xlu0 %v8121_v8  ;;  %v8133_v16 = vsel %vm825_vm14, %v14953_v6, 0.0  ;;  %v15710_v8 = vld [vmem:[#allocation21_spill] sm:$0xff] }
0x174f   :  { %v10633_v5 = vpop.f32.mrb[208].mxu0  ;;  %v8127_v17 = vsel %vm825_vm14, %v14946_v62, 0.0 }
0x1750   :  { %v8043_v37 = vpop.f32.mrb[209].mxu0  ;;  %v8052_v7 = vadd.f32 %v10633_v5, %v14911_v49 }
0x1751   :  { %v8044_v21 = vadd.f32 %v14911_v49, %v8043_v37  ;;  %v10634_v50 = vpop.f32.mrb[210].mxu0  ;;  %v15711_v37 = vld [vmem:[#allocation19_spill] sm:$0xff] }
0x1752   :  { %v8046_v48 = vpop.f32.mrb[211].mxu0  ;;  %8131 = vadd.xlane.f32.xlu1 %v8130_v25  ;;  %8128 = vadd.xlane.f32.xlu0 %v8127_v17  ;;  %v8055_v39 = vadd.f32 %v10634_v50, %v14911_v49  ;;  %v14967_v18 = vadd.f32 %v8052_v7, %v15702_v57  ;;  %v15712_v50 = vld [vmem:[#allocation22_spill] sm:$0xff] }
0x1753   :  { %v14962_v3 = vadd.f32 %v8044_v21, %v15701_v20  ;;  %v8047_v30 = vadd.f32 %v14911_v49, %v8046_v48 }
0x1754   :  { %v14977_v41 = vadd.f32 %v8055_v39, %v15704_v35  ;;  %v8142_v42 = vsel %vm825_vm14, %v14967_v18, 0.0 }
0x1755   :  { %v14970_v23 = vadd.f32 %v8047_v30, %v15703_v38  ;;  %v8136_v34 = vsel %vm825_vm14, %v14962_v3, 0.0 }
0x1756   :  { %8137 = vadd.xlane.f32.xlu1 %v8136_v34  ;;  %8134 = vadd.xlane.f32.xlu0 %v8133_v16  ;;  %v8145_v19 = vsel %vm825_vm14, %v14977_v41, 0.0 }
0x1757   :  { %v10637_v44 = vpop.f32.mrb[212].mxu0  ;;  %v8139_v47 = vsel %vm825_vm14, %v14970_v23, 0.0 }
0x1758   :  { %v8059_v58 = vpop.f32.mrb[213].mxu0  ;;  %v8068_v60 = vadd.f32 %v10637_v44, %v14911_v49 }
0x1759   :  { %v8060_v4 = vadd.f32 %v14911_v49, %v8059_v58  ;;  %v10638_v29 = vpop.f32.mrb[214].mxu0 }
0x175a   :  { %v8062_v31 = vpop.f32.mrb[215].mxu0  ;;  %8143 = vadd.xlane.f32.xlu1 %v8142_v42  ;;  %8140 = vadd.xlane.f32.xlu0 %v8139_v47  ;;  %v8071_v10 = vadd.f32 %v10638_v29, %v14911_v49  ;;  %v14991_v46 = vadd.f32 %v8068_v60, %v15706_v0 }
0x175b   :  { %v14986_v26 = vadd.f32 %v8060_v4, %v15705_v13  ;;  %v8063_v24 = vadd.f32 %v14911_v49, %v8062_v31 }
0x175c   :  { %v15001_v36 = vadd.f32 %v8071_v10, %v15708_v11  ;;  %v8154_v32 = vsel %vm825_vm14, %v14991_v46, 0.0 }
0x175d   :  { %v14994_v56 = vadd.f32 %v8063_v24, %v15707_v12  ;;  %v8148_v63 = vsel %vm825_vm14, %v14986_v26, 0.0 }
0x175e   :  { %8149 = vadd.xlane.f32.xlu1 %v8148_v63  ;;  %8146 = vadd.xlane.f32.xlu0 %v8145_v19  ;;  %v8157_v27 = vsel %vm825_vm14, %v15001_v36, 0.0 }
0x175f   :  { %v10641_v33 = vpop.f32.mrb[216].mxu0  ;;  %v8151_v43 = vsel %vm825_vm14, %v14994_v56, 0.0 }
0x1760   :  { %v8075_v15 = vpop.f32.mrb[217].mxu0  ;;  %v8084_v45 = vadd.f32 %v10641_v33, %v14911_v49 }
0x1761   :  { %v8076_v55 = vadd.f32 %v14911_v49, %v8075_v15  ;;  %v10642_v28 = vpop.f32.mrb[218].mxu0 }
0x1762   :  { %v8078_v1 = vpop.f32.mrb[219].mxu0  ;;  %8155 = vadd.xlane.f32.xlu1 %v8154_v32  ;;  %8152 = vadd.xlane.f32.xlu0 %v8151_v43  ;;  %v15016_v5 = vadd.f32 %v8084_v45, %v15710_v8  ;;  %v8087_v54 = vadd.f32 %v10642_v28, %v14911_v49 }
0x1763   :  { %v15010_v14 = vadd.f32 %v8076_v55, %v15709_v59  ;;  %v8079_v61 = vadd.f32 %v14911_v49, %v8078_v1 }
0x1764   :  { %v15025_v25 = vadd.f32 %v8087_v54, %v15712_v50  ;;  %v8166_v17 = vsel %vm825_vm14, %v15016_v5, 0.0 }
0x1765   :  { %v15020_v7 = vadd.f32 %v8079_v61, %v15711_v37  ;;  %v8160_v21 = vsel %vm825_vm14, %v15010_v14, 0.0 }
0x1766   :  { %8161 = vadd.xlane.f32.xlu1 %v8160_v21  ;;  %8158 = vadd.xlane.f32.xlu0 %v8157_v27  ;;  %v8169_v49 = vsel %vm825_vm14, %v15025_v25, 0.0 }
0x1767   :  { %v8163_v48 = vsel %vm825_vm14, %v15020_v7, 0.0 }
0x176a   :  { %8167 = vadd.xlane.f32.xlu1 %v8166_v17  ;;  %8164 = vadd.xlane.f32.xlu0 %v8163_v48 }
0x176e   :  { %8170 = vadd.xlane.f32.xlu0 %v8169_v49 }
0x17d3   :  { %v8114_v20 = vpop.xlane.xlu0 %8113 }
0x17d4   :  { %v8172_v30 = vmul.f32 0.03125, %v8114_v20 }
0x17d5   :  { %v8117_v39 = vpop.xlane.xlu1 %8116 }
0x17d6   :  { %v15034_v57 = vsub.f32 %v14916_v9, %v8172_v30  ;;  %v8173_v38 = vmul.f32 0.03125, %v8117_v39 }
0x17d7   :  { %v8120_v34 = vpop.xlane.xlu0 %8119 }
0x17d8   :  { %v15037_v16 = vsub.f32 %v14924_v40, %v8173_v38  ;;  %v8174_v44 = vmul.f32 0.03125, %v8120_v34  ;;  %v8212_v35 = vmul.f32 %v15034_v57, %v15034_v57 }
0x17da   :  { %v15042_v58 = vsub.f32 %v14920_v51, %v8174_v44  ;;  %v8232_v60 = vsel %vm825_vm14, %v8212_v35, 0.0  ;;  %v8213_v4 = vmul.f32 %v15037_v16, %v15037_v16 }
0x17db   :  { %v8126_v29 = vpop.xlane.xlu1 %8125  ;;  %8233 = vadd.xlane.f32.xlu1 %v8232_v60  ;;  %v8123_v9 = vpop.xlane.xlu0 %8122 }
0x17dc   :  { %v8176_v42 = vmul.f32 0.03125, %v8126_v29  ;;  %v8175_v47 = vmul.f32 0.03125, %v8123_v9  ;;  %v8235_v40 = vsel %vm825_vm14, %v8213_v4, 0.0  ;;  %v8214_v31 = vmul.f32 %v15042_v58, %v15042_v58 }
0x17dd   :  { %8236 = vadd.xlane.f32.xlu0 %v8235_v40 }
0x17de   :  { %v15051_v13 = vsub.f32 %v14938_v2, %v8176_v42  ;;  %v15054_v51 = vsub.f32 %v14931_v52, %v8175_v47  ;;  %v8238_v24 = vsel %vm825_vm14, %v8214_v31, 0.0 }
0x17df   :  { %v8132_v10 = vpop.xlane.xlu1 %8131  ;;  %8239 = vadd.xlane.f32.xlu1 %v8238_v24  ;;  %v8129_v0 = vpop.xlane.xlu0 %8128 }
0x17e0   :  { %v8178_v12 = vmul.f32 0.03125, %v8132_v10  ;;  %v8177_v63 = vmul.f32 0.03125, %v8129_v0  ;;  %v8216_v19 = vmul.f32 %v15051_v13, %v15051_v13  ;;  %v8215_v33 = vmul.f32 %v15054_v51, %v15054_v51 }
0x17e2   :  { %v15062_v11 = vsub.f32 %v14943_v53, %v8178_v12  ;;  %v15065_v2 = vsub.f32 %v14946_v62, %v8177_v63  ;;  %v8244_v52 = vsel %vm825_vm14, %v8216_v19, 0.0  ;;  %v8241_v15 = vsel %vm825_vm14, %v8215_v33, 0.0 }
0x17e3   :  { %v8138_v45 = vpop.xlane.xlu1 %8137  ;;  %8245 = vadd.xlane.f32.xlu1 %v8244_v52  ;;  %8242 = vadd.xlane.f32.xlu0 %v8241_v15  ;;  %v8135_v55 = vpop.xlane.xlu0 %8134 }
0x17e4   :  { %v8180_v28 = vmul.f32 0.03125, %v8138_v45  ;;  %v8179_v32 = vmul.f32 0.03125, %v8135_v55  ;;  %v8218_v43 = vmul.f32 %v15062_v11, %v15062_v11  ;;  %v8217_v53 = vmul.f32 %v15065_v2, %v15065_v2 }
0x17e6   :  { %v15074_v1 = vsub.f32 %v14962_v3, %v8180_v28  ;;  %v15077_v62 = vsub.f32 %v14953_v6, %v8179_v32  ;;  %v8250_v59 = vsel %vm825_vm14, %v8218_v43, 0.0  ;;  %v8247_v61 = vsel %vm825_vm14, %v8217_v53, 0.0 }
0x17e7   :  { %v8144_v27 = vpop.xlane.xlu1 %8143  ;;  %8251 = vadd.xlane.f32.xlu1 %v8250_v59  ;;  %8248 = vadd.xlane.f32.xlu0 %v8247_v61  ;;  %v8141_v8 = vpop.xlane.xlu0 %8140 }
0x17e8   :  { %v8182_v54 = vmul.f32 0.03125, %v8144_v27  ;;  %v8181_v37 = vmul.f32 0.03125, %v8141_v8  ;;  %v8220_v21 = vmul.f32 %v15074_v1, %v15074_v1  ;;  %v8219_v3 = vmul.f32 %v15077_v62, %v15077_v62 }
0x17ea   :  { %v15086_v50 = vsub.f32 %v14967_v18, %v8182_v54  ;;  %v15089_v6 = vsub.f32 %v14970_v23, %v8181_v37  ;;  %v8256_v17 = vsel %vm825_vm14, %v8220_v21, 0.0  ;;  %v8253_v48 = vsel %vm825_vm14, %v8219_v3, 0.0 }
0x17eb   :  { %v8150_v49 = vpop.xlane.xlu1 %8149  ;;  %8257 = vadd.xlane.f32.xlu1 %v8256_v17  ;;  %8254 = vadd.xlane.f32.xlu0 %v8253_v48  ;;  %v8147_v20 = vpop.xlane.xlu0 %8146  ;;  %v10892_v17 = vld [vmem:[%s15572_s10 + $0x10] sm:$0xff]  }
0x17ec   :  { %v8184_v30 = vmul.f32 0.03125, %v8150_v49  ;;  %v8183_v39 = vmul.f32 0.03125, %v8147_v20  ;;  %v8222_v38 = vmul.f32 %v15086_v50, %v15086_v50  ;;  %v8221_v18 = vmul.f32 %v15089_v6, %v15089_v6  ;;  %10643 = vmatprep.subr.bf16.mxu1 %v10892_v17 }
0x17ed   :  { %10644 = vmatpush3.bf16.msra.mxu1 %v10892_v17 }
0x17ee   :  { %v15098_v34 = vsub.f32 %v14986_v26, %v8184_v30  ;;  %v15101_v23 = vsub.f32 %v14977_v41, %v8183_v39  ;;  %v8262_v44 = vsel %vm825_vm14, %v8222_v38, 0.0  ;;  %v8259_v35 = vsel %vm825_vm14, %v8221_v18, 0.0 }
0x17ef   :  { %v8156_v60 = vpop.xlane.xlu1 %8155  ;;  %8263 = vadd.xlane.f32.xlu1 %v8262_v44  ;;  %8260 = vadd.xlane.f32.xlu0 %v8259_v35  ;;  %v8153_v4 = vpop.xlane.xlu0 %8152 }
0x17f0   :  { %v8186_v29 = vmul.f32 0.03125, %v8156_v60  ;;  %v8185_v9 = vmul.f32 0.03125, %v8153_v4  ;;  %v8224_v42 = vmul.f32 %v15098_v34, %v15098_v34  ;;  %v8223_v26 = vmul.f32 %v15101_v23, %v15101_v23 }
0x17f2   :  { %v15110_v47 = vsub.f32 %v14991_v46, %v8186_v29  ;;  %v15113_v41 = vsub.f32 %v14994_v56, %v8185_v9  ;;  %v8268_v40 = vsel %vm825_vm14, %v8224_v42, 0.0  ;;  %v8265_v31 = vsel %vm825_vm14, %v8223_v26, 0.0  ;;  %v9539_v42 = vld [vmem:[%s15573_s9 + $0x2] sm:$0x3] }
0x17f3   :  { %v8162_v24 = vpop.xlane.xlu1 %8161  ;;  %8269 = vadd.xlane.f32.xlu1 %v8268_v40  ;;  %8266 = vadd.xlane.f32.xlu0 %v8265_v31  ;;  %v8159_v10 = vpop.xlane.xlu0 %8158 }
0x17f4   :  { %v8188_v0 = vmul.f32 0.03125, %v8162_v24  ;;  %v8187_v12 = vmul.f32 0.03125, %v8159_v10  ;;  %v8226_v63 = vmul.f32 %v15110_v47, %v15110_v47  ;;  %v8225_v46 = vmul.f32 %v15113_v41, %v15113_v41 }
0x17f6   :  { %v15122_v19 = vsub.f32 %v15010_v14, %v8188_v0  ;;  %v15125_v56 = vsub.f32 %v15001_v36, %v8187_v12  ;;  %v8274_v33 = vsel %vm825_vm14, %v8226_v63, 0.0  ;;  %v8271_v52 = vsel %vm825_vm14, %v8225_v46, 0.0  ;;  %v15713_v12 = vld [vmem:[#allocation3_spill] sm:$0xff] }
0x17f7   :  { %v8168_v15 = vpop.xlane.xlu1 %8167  ;;  %8275 = vadd.xlane.f32.xlu1 %v8274_v33  ;;  %8272 = vadd.xlane.f32.xlu0 %v8271_v52  ;;  %v8165_v45 = vpop.xlane.xlu0 %8164  ;;  %v15164_v63 = vrot.slane %v9539_v42, %v15713_v12 }
0x17f8   :  { %v8190_v55 = vmul.f32 0.03125, %v8168_v15  ;;  %v8189_v28 = vmul.f32 0.03125, %v8165_v45  ;;  %v8228_v32 = vmul.f32 %v15122_v19, %v15122_v19  ;;  %v8227_v14 = vmul.f32 %v15125_v56, %v15125_v56 }
0x17fa   :  { %v15134_v43 = vsub.f32 %v15016_v5, %v8190_v55  ;;  %v15137_v36 = vsub.f32 %v15020_v7, %v8189_v28  ;;  %v8280_v53 = vsel %vm825_vm14, %v8228_v32, 0.0  ;;  %v8277_v59 = vsel %vm825_vm14, %v8227_v14, 0.0 }
0x17fb   :  { %8281 = vadd.xlane.f32.xlu1 %v8280_v53  ;;  %8278 = vadd.xlane.f32.xlu0 %v8277_v59  ;;  %v8171_v61 = vpop.xlane.xlu0 %8170 }
0x17fc   :  { %v8191_v27 = vmul.f32 0.03125, %v8171_v61  ;;  %v8230_v8 = vmul.f32 %v15134_v43, %v15134_v43  ;;  %v8229_v54 = vmul.f32 %v15137_v36, %v15137_v36  ;;  %v15714_v61 = vld [vmem:[#allocation4_spill] sm:$0xff] }
0x17fe   :  { %v15146_v5 = vsub.f32 %v15025_v25, %v8191_v27  ;;  %v8286_v7 = vsel %vm825_vm14, %v8230_v8, 0.0  ;;  %v8283_v37 = vsel %vm825_vm14, %v8229_v54, 0.0  ;;  %v10893_v25 = vld [vmem:[%s15572_s10 + $0x18] sm:$0xff]   ;;  %v15170_v27 = vrot.slane %v9539_v42, %v15714_v61 }
0x17ff   :  { %8287 = vadd.xlane.f32.xlu1 %v8286_v7  ;;  %8284 = vadd.xlane.f32.xlu0 %v8283_v37 }
0x1800   :  { %v8231_v21 = vmul.f32 %v15146_v5, %v15146_v5  ;;  %10645 = vmatprep.subr.bf16.mxu1 %v10893_v25 }
0x1801   :  { %10646 = vmatpush3.bf16.msra.mxu1 %v10893_v25 }
0x1802   :  { %v8289_v3 = vsel %vm825_vm14, %v8231_v21, 0.0  ;;  %10695 = vmatprep.subr.bf16.mxu1 %v15657_v22 }
0x1803   :  { %8290 = vadd.xlane.f32.xlu0 %v8289_v3 }
0x1868   :  { %v8234_v48 = vpop.xlane.xlu1 %8233 }
0x1869   :  { %v8292_v49 = vmul.f32 0.03125, %v8234_v48 }
0x186a   :  { %v8237_v20 = vpop.xlane.xlu0 %8236 }
0x186b   :  { %v8312_v30 = vadd.f32 1e-12, %v8292_v49  ;;  %v8293_v39 = vmul.f32 0.03125, %v8237_v20 }
0x186c   :  { %v8240_v38 = vpop.xlane.xlu1 %8239 }
0x186d   :  { %11380 = vrsqrt.f32 %v8312_v30  ;;  %v8313_v18 = vadd.f32 1e-12, %v8293_v39  ;;  %v8294_v44 = vmul.f32 0.03125, %v8240_v38 }
0x186f   :  { %11382 = vrsqrt.f32 %v8313_v18  ;;  %v8314_v35 = vadd.f32 1e-12, %v8294_v44 }
0x1870   :  { %v8246_v60 = vpop.xlane.xlu1 %8245  ;;  %v8243_v4 = vpop.xlane.xlu0 %8242 }
0x1871   :  { %11384 = vrsqrt.f32 %v8314_v35  ;;  %v8296_v29 = vmul.f32 0.03125, %v8246_v60  ;;  %v8295_v9 = vmul.f32 0.03125, %v8243_v4 }
0x1873   :  { %v8316_v26 = vadd.f32 1e-12, %v8296_v29  ;;  %v8315_v40 = vadd.f32 1e-12, %v8295_v9 }
0x1874   :  { %v8252_v31 = vpop.xlane.xlu1 %8251  ;;  %v8249_v24 = vpop.xlane.xlu0 %8248 }
0x1875   :  { %11386 = vrsqrt.f32 %v8316_v26  ;;  %v8298_v10 = vmul.f32 0.03125, %v8252_v31  ;;  %v8297_v0 = vmul.f32 0.03125, %v8249_v24 }
0x1876   :  { %11388 = vrsqrt.f32 %v8315_v40 }
0x1877   :  { %v11381_v46 = vpop.eup %11380  ;;  %v8318_v33 = vadd.f32 1e-12, %v8298_v10  ;;  %v8317_v52 = vadd.f32 1e-12, %v8297_v0 }
0x1878   :  { %v8352_v15 = vmul.f32 %v11381_v46, %v15034_v57  ;;  %v8258_v45 = vpop.xlane.xlu1 %8257  ;;  %v8255_v55 = vpop.xlane.xlu0 %8254 }
0x1879   :  { %v11383_v28 = vpop.eup %11382  ;;  %11390 = vrsqrt.f32 %v8318_v33  ;;  %v8300_v32 = vmul.f32 0.03125, %v8258_v45  ;;  %v8299_v14 = vmul.f32 0.03125, %v8255_v55 }
0x187a   :  { %v8353_v53 = vmul.f32 %v11383_v28, %v15037_v16  ;;  %11392 = vrsqrt.f32 %v8317_v52  ;;  %v8376_v59 = vmul.f32 %v15164_v63, %v8352_v15 }
0x187b   :  { %v11385_v8 = vpop.eup %11384  ;;  %v8320_v54 = vadd.f32 1e-12, %v8300_v32  ;;  %v8319_v7 = vadd.f32 1e-12, %v8299_v14 }
0x187c   :  { %v8354_v37 = vmul.f32 %v11385_v8, %v15042_v58  ;;  %v8264_v57 = vpop.xlane.xlu1 %8263  ;;  %v8261_v21 = vpop.xlane.xlu0 %8260  ;;  %v8377_v3 = vmul.f32 %v15164_v63, %v8353_v53  ;;  %v15175_v16 = vadd.f32 %v15170_v27, %v8376_v59 }
0x187d   :  { %11394 = vrsqrt.f32 %v8320_v54  ;;  %v8302_v17 = vmul.f32 0.03125, %v8264_v57  ;;  %v8301_v25 = vmul.f32 0.03125, %v8261_v21 }
0x187e   :  { %11396 = vrsqrt.f32 %v8319_v7  ;;  %v8401_v48 = vadd.f32 %v15170_v27, %v8377_v3  ;;  %v8378_v38 = vmul.f32 %v15164_v63, %v8354_v37 }
0x187f   :  { %v11387_v49 = vpop.eup %11386  ;;  %v8322_v20 = vadd.f32 1e-12, %v8302_v17  ;;  %v8321_v30 = vadd.f32 1e-12, %v8301_v25 }
0x1880   :  { %v11389_v39 = vpop.eup %11388  ;;  %v8270_v58 = vpop.xlane.xlu1 %8269  ;;  %v8420_v44 = vpack.c.bf16 %v8401_v48, %v15175_v16  ;;  %v8356_v29 = vmul.f32 %v11387_v49, %v15051_v13  ;;  %v15185_v0 = vadd.f32 %v15170_v27, %v8378_v38 }
0x1881   :  { %v8267_v18 = vpop.xlane.xlu0 %8266  ;;  %v8355_v35 = vmul.f32 %v11389_v39, %v15054_v51  ;;  %11398 = vrsqrt.f32 %v8322_v20  ;;  %v8304_v60 = vmul.f32 0.03125, %v8270_v58 }
0x1882   :  { %v8303_v4 = vmul.f32 0.03125, %v8267_v18  ;;  %11400 = vrsqrt.f32 %v8321_v30  ;;  %10647 = vmatprep.mubr.msk.bf16.mxu1 %vm825_vm14, %v8420_v44  ;;  %v8380_v15 = vmul.f32 %v15164_v63, %v8356_v29 }
0x1883   :  { %v11391_v9 = vpop.eup %11390  ;;  %v8379_v42 = vmul.f32 %v15164_v63, %v8355_v35  ;;  %v8324_v26 = vadd.f32 1e-12, %v8304_v60 }
0x1884   :  { %v8323_v40 = vadd.f32 1e-12, %v8303_v4  ;;  %v11393_v31 = vpop.eup %11392  ;;  %v8276_v24 = vpop.xlane.xlu1 %8275  ;;  %v8358_v13 = vmul.f32 %v11391_v9, %v15062_v11  ;;  %v15197_v37 = vadd.f32 %v15170_v27, %v8380_v15 }
0x1885   :  { %v8273_v10 = vpop.xlane.xlu0 %8272  ;;  %v8357_v51 = vmul.f32 %v11393_v31, %v15065_v2  ;;  %11402 = vrsqrt.f32 %v8324_v26  ;;  %v8306_v46 = vmul.f32 0.03125, %v8276_v24  ;;  %v8403_v52 = vadd.f32 %v15170_v27, %v8379_v42 }
0x1886   :  { %v8305_v33 = vmul.f32 0.03125, %v8273_v10  ;;  %11404 = vrsqrt.f32 %v8323_v40  ;;  %v8382_v21 = vmul.f32 %v15164_v63, %v8358_v13 }
0x1887   :  { %v11395_v45 = vpop.eup %11394  ;;  %v8326_v55 = vadd.f32 1e-12, %v8306_v46  ;;  %v8381_v32 = vmul.f32 %v15164_v63, %v8357_v51  ;;  %v8421_v2 = vpack.c.bf16 %v8403_v52, %v15185_v0 }
0x1888   :  { %v8325_v28 = vadd.f32 1e-12, %v8305_v33  ;;  %v11397_v14 = vpop.eup %11396  ;;  %v8360_v53 = vmul.f32 %v11395_v45, %v15074_v1  ;;  %v8282_v59 = vpop.xlane.xlu1 %8281  ;;  %v15208_v44 = vadd.f32 %v15170_v27, %v8382_v21 }
0x1889   :  { %v8279_v8 = vpop.xlane.xlu0 %8278  ;;  %v8359_v54 = vmul.f32 %v11397_v14, %v15077_v62  ;;  %11406 = vrsqrt.f32 %v8326_v55  ;;  %v8308_v11 = vmul.f32 0.03125, %v8282_v59  ;;  %10648 = vmatmul.mubr.msk.bf16.vlgmr.msra.gmra.mrb[240].mxu1 %vm825_vm14, %v8421_v2  ;;  %v8405_v57 = vadd.f32 %v15170_v27, %v8381_v32 }
0x188a   :  { %v8307_v7 = vmul.f32 0.03125, %v8279_v8  ;;  %11408 = vrsqrt.f32 %v8325_v28  ;;  %v8384_v39 = vmul.f32 %v15164_v63, %v8360_v53 }
0x188b   :  { %v11399_v1 = vpop.eup %11398  ;;  %v8328_v3 = vadd.f32 1e-12, %v8308_v11  ;;  %v8383_v25 = vmul.f32 %v15164_v63, %v8359_v54  ;;  %v8422_v20 = vpack.c.bf16 %v8405_v57, %v15197_v37 }
0x188c   :  { %v8327_v17 = vadd.f32 1e-12, %v8307_v7  ;;  %v11401_v48 = vpop.eup %11400  ;;  %v8362_v62 = vmul.f32 %v11399_v1, %v15086_v50  ;;  %v8288_v49 = vpop.xlane.xlu1 %8287  ;;  %v15215_v40 = vadd.f32 %v15170_v27, %v8384_v39 }
0x188d   :  { %v8285_v30 = vpop.xlane.xlu0 %8284  ;;  %v8361_v38 = vmul.f32 %v11401_v48, %v15089_v6  ;;  %11410 = vrsqrt.f32 %v8328_v3  ;;  %v8310_v58 = vmul.f32 0.03125, %v8288_v49  ;;  %10651 = vmatprep.mubr.msk.bf16.mxu1 %vm825_vm14, %v8422_v20  ;;  %v8407_v35 = vadd.f32 %v15170_v27, %v8383_v25 }
0x188e   :  { %v8309_v18 = vmul.f32 0.03125, %v8285_v30  ;;  %11412 = vrsqrt.f32 %v8327_v17  ;;  %v8386_v31 = vmul.f32 %v15164_v63, %v8362_v62 }
0x188f   :  { %v11403_v50 = vpop.eup %11402  ;;  %v8330_v60 = vadd.f32 1e-12, %v8310_v58  ;;  %v8385_v29 = vmul.f32 %v15164_v63, %v8361_v38  ;;  %v8423_v6 = vpack.c.bf16 %v8407_v35, %v15208_v44  ;;  %v10897_v35 = vld [vmem:[%s15574_s12 + $0x38] sm:$0xff]  }
0x1890   :  { %v8329_v4 = vadd.f32 1e-12, %v8309_v18  ;;  %v11405_v9 = vpop.eup %11404  ;;  %v8364_v42 = vmul.f32 %v11403_v50, %v15098_v34  ;;  %v15224_v15 = vadd.f32 %v15170_v27, %v8386_v31  ;;  %v10895_v18 = vld [vmem:[%s15574_s12 + $0x28] sm:$0xff]   ;;  %v15286_v50 = vld [vmem:[%s15575_s11 + $0x1] ss:$0 sm:$0xff] }
0x1891   :  { %v8291_v26 = vpop.xlane.xlu0 %8290  ;;  %v8363_v24 = vmul.f32 %v11405_v9, %v15101_v23  ;;  %11414 = vrsqrt.f32 %v8330_v60  ;;  %v8409_v51 = vadd.f32 %v15170_v27, %v8385_v29  ;;  %10652 = vmatmul.mubr.msk.bf16.gmra.mrb[244].mxu1 %vm825_vm14, %v8423_v6 }
0x1892   :  { %v8311_v10 = vmul.f32 0.03125, %v8291_v26  ;;  %11416 = vrsqrt.f32 %v8329_v4  ;;  %v8388_v45 = vmul.f32 %v15164_v63, %v8364_v42 }
0x1893   :  { %v11407_v46 = vpop.eup %11406  ;;  %v8424_v34 = vpack.c.bf16 %v8409_v51, %v15215_v40  ;;  %v8387_v13 = vmul.f32 %v15164_v63, %v8363_v24 }
0x1894   :  { %v8331_v33 = vadd.f32 1e-12, %v8311_v10  ;;  %v11409_v52 = vpop.eup %11408  ;;  %v8366_v23 = vmul.f32 %v11407_v46, %v15110_v47  ;;  %v15234_v2 = vadd.f32 %v15170_v27, %v8388_v45 }
0x1895   :  { %v8365_v55 = vmul.f32 %v11409_v52, %v15113_v41  ;;  %10655 = vmatprep.mubr.msk.bf16.mxu1 %vm825_vm14, %v8424_v34  ;;  %v8411_v28 = vadd.f32 %v15170_v27, %v8387_v13 }
0x1896   :  { %11418 = vrsqrt.f32 %v8331_v33  ;;  %v8390_v54 = vmul.f32 %v15164_v63, %v8366_v23 }
0x1897   :  { %v11411_v32 = vpop.eup %11410  ;;  %v8425_v14 = vpack.c.bf16 %v8411_v28, %v15224_v15  ;;  %v8389_v53 = vmul.f32 %v15164_v63, %v8365_v55 }
0x1898   :  { %v11413_v59 = vpop.eup %11412  ;;  %v8368_v8 = vmul.f32 %v11411_v32, %v15122_v19  ;;  %v15247_v19 = vadd.f32 %v15170_v27, %v8390_v54 }
0x1899   :  { %v8367_v47 = vmul.f32 %v11413_v59, %v15125_v56  ;;  %v8413_v41 = vadd.f32 %v15170_v27, %v8389_v53  ;;  %10656 = vmatmul.mubr.msk.bf16.gmra.mrb[248].mxu1 %vm825_vm14, %v8425_v14 }
0x189a   :  { %v8392_v17 = vmul.f32 %v15164_v63, %v8368_v8 }
0x189b   :  { %v11415_v11 = vpop.eup %11414  ;;  %v8426_v7 = vpack.c.bf16 %v8413_v41, %v15234_v2  ;;  %v8391_v57 = vmul.f32 %v15164_v63, %v8367_v47 }
0x189c   :  { %v11417_v21 = vpop.eup %11416  ;;  %v8370_v1 = vmul.f32 %v11415_v11, %v15134_v43 }
0x189d   :  { %v8369_v3 = vmul.f32 %v11417_v21, %v15137_v36  ;;  %10659 = vmatprep.mubr.msk.bf16.mxu1 %vm825_vm14, %v8426_v7  ;;  %v8415_v56 = vadd.f32 %v15170_v27, %v8391_v57  ;;  %v15256_v36 = vadd.f32 %v15170_v27, %v8392_v17 }
0x189e   :  { %v8394_v49 = vmul.f32 %v15164_v63, %v8370_v1 }
0x189f   :  { %v8427_v48 = vpack.c.bf16 %v8415_v56, %v15247_v19  ;;  %v8393_v62 = vmul.f32 %v15164_v63, %v8369_v3 }
0x18a0   :  { %v11419_v25 = vpop.eup %11418  ;;  %v15263_v38 = vadd.f32 %v15170_v27, %v8394_v49 }
0x18a1   :  { %v8371_v43 = vmul.f32 %v11419_v25, %v15146_v5  ;;  %v8417_v20 = vadd.f32 %v15170_v27, %v8393_v62  ;;  %10660 = vmatmul.mubr.msk.bf16.gmra.mrb[252].mxu1 %vm825_vm14, %v8427_v48 }
0x18a3   :  { %v8395_v30 = vmul.f32 %v15164_v63, %v8371_v43  ;;  %v8428_v39 = vpack.c.bf16 %v8417_v20, %v15256_v36  ;;  %v10894_v63 = vld [vmem:[%s15574_s12 + $0x20] sm:$0xff]  }
0x18a4   :  { %10667 = vmatprep.subr.bf16.mxu0 %v10894_v63 }
0x18a5   :  { %v8419_v58 = vadd.f32 %v15170_v27, %v8395_v30  ;;  %10663 = vmatprep.mubr.msk.bf16.mxu1 %vm825_vm14, %v8428_v39  ;;  %10668 = vmatpush3.bf16.msra.mxu0 %v10894_v63  ;;  %v10896_v27 = vld [vmem:[%s15574_s12 + $0x30] sm:$0xff]  }
0x18a6   :  { %10669 = vmatprep.subr.bf16.mxu0 %v10895_v18 }
0x18a7   :  { %v8429_v5 = vpack.c.bf16 %v8419_v58, %v15263_v38 }
0x18a9   :  { %10664 = vmatmul.mubr.msk.bf16.gmra.mrb[0].mxu1 %vm825_vm14, %v8429_v5  ;;  %10670 = vmatpush3.bf16.msra.mxu0 %v10895_v18 }
0x18aa   :  { %10699 = vmatprep.mubr.msk.bf16.mxu1 %vm11486_vm8, %v15657_v22  ;;  %10671 = vmatprep.subr.bf16.mxu0 %v10896_v27 }
0x18ad   :  { %10672 = vmatpush3.bf16.msra.mxu0 %v10896_v27 }
0x18ae   :  { %10673 = vmatprep.subr.bf16.mxu0 %v10897_v35 }
0x18b1   :  { %10674 = vmatpush3.bf16.msra.mxu0 %v10897_v35 }
0x195c   :  { %v10649_v60 = vpop.f32.mrb[240].mxu1 }
0x195d   :  { %v8528_v4 = vadd.f32 %v10649_v60, %v15286_v50  ;;  %v8519_v29 = vpop.f32.mrb[241].mxu1 }
0x195e   :  { %v8520_v9 = vadd.f32 %v15286_v50, %v8519_v29  ;;  %v10650_v42 = vpop.f32.mrb[242].mxu1 }
0x195f   :  { %v8620_v6 = vmul.f32 0.044715, %v8528_v4  ;;  %v8531_v26 = vadd.f32 %v10650_v42, %v15286_v50  ;;  %v8522_v31 = vpop.f32.mrb[243].mxu1  ;;  %v15292_v45 = vmul.f32 0.5, %v8528_v4 }
0x1960   :  { %v8618_v24 = vmul.f32 0.044715, %v8520_v9  ;;  %v8523_v10 = vadd.f32 %v15286_v50, %v8522_v31  ;;  %v15294_v32 = vmul.f32 0.5, %v8520_v9 }
0x1961   :  { %v8640_v51 = vmul.f32 %v8620_v6, %v8528_v4  ;;  %v8621_v46 = vmul.f32 0.044715, %v8531_v26  ;;  %v15296_v53 = vmul.f32 0.5, %v8531_v26 }
0x1962   :  { %v8638_v33 = vmul.f32 %v8618_v24, %v8520_v9  ;;  %v8619_v34 = vmul.f32 0.044715, %v8523_v10  ;;  %v15300_v57 = vmul.f32 0.5, %v8523_v10 }
0x1963   :  { %v8660_v13 = vmul.f32 %v8640_v51, %v8528_v4  ;;  %v8641_v52 = vmul.f32 %v8621_v46, %v8531_v26 }
0x1964   :  { %v8658_v23 = vmul.f32 %v8638_v33, %v8520_v9  ;;  %v8639_v55 = vmul.f32 %v8619_v34, %v8523_v10  ;;  %v10653_v28 = vpop.f32.mrb[244].mxu1 }
0x1965   :  { %v8680_v14 = vadd.f32 %v8660_v13, %v8528_v4  ;;  %v8661_v59 = vmul.f32 %v8641_v52, %v8531_v26  ;;  %v8544_v8 = vadd.f32 %v10653_v28, %v15286_v50  ;;  %v8535_v47 = vpop.f32.mrb[245].mxu1 }
0x1966   :  { %v8678_v41 = vadd.f32 %v8658_v23, %v8520_v9  ;;  %v8659_v54 = vmul.f32 %v8639_v55, %v8523_v10  ;;  %v8536_v11 = vadd.f32 %v15286_v50, %v8535_v47  ;;  %v10654_v7 = vpop.f32.mrb[246].mxu1 }
0x1967   :  { %v8700_v21 = vmul.f32 0.7978846, %v8680_v14  ;;  %v8681_v1 = vadd.f32 %v8661_v59, %v8531_v26  ;;  %v8624_v3 = vmul.f32 0.044715, %v8544_v8  ;;  %v8547_v56 = vadd.f32 %v10654_v7, %v15286_v50  ;;  %v8538_v17 = vpop.f32.mrb[247].mxu1 }
0x1968   :  { %v8698_v25 = vmul.f32 0.7978846, %v8678_v41  ;;  %v8679_v48 = vadd.f32 %v8659_v54, %v8523_v10  ;;  %v8622_v62 = vmul.f32 0.044715, %v8536_v11  ;;  %v8539_v49 = vadd.f32 %v15286_v50, %v8538_v17 }
0x1969   :  { %11420 = vtanh.f32 %v8700_v21  ;;  %v8701_v43 = vmul.f32 0.7978846, %v8681_v1  ;;  %v8644_v20 = vmul.f32 %v8624_v3, %v8544_v8  ;;  %v8625_v30 = vmul.f32 0.044715, %v8547_v56 }
0x196a   :  { %11422 = vtanh.f32 %v8698_v25  ;;  %v8699_v39 = vmul.f32 0.7978846, %v8679_v48  ;;  %v8642_v58 = vmul.f32 %v8622_v62, %v8536_v11  ;;  %v8623_v5 = vmul.f32 0.044715, %v8539_v49 }
0x196b   :  { %11424 = vtanh.f32 %v8701_v43  ;;  %v8664_v63 = vmul.f32 %v8644_v20, %v8544_v8  ;;  %v8645_v18 = vmul.f32 %v8625_v30, %v8547_v56  ;;  %v15304_v27 = vmul.f32 0.5, %v8536_v11 }
0x196c   :  { %11426 = vtanh.f32 %v8699_v39  ;;  %v8662_v35 = vmul.f32 %v8642_v58, %v8536_v11  ;;  %v8643_v60 = vmul.f32 %v8623_v5, %v8539_v49  ;;  %v10657_v4 = vpop.f32.mrb[248].mxu1  ;;  %v15306_v29 = vmul.f32 0.5, %v8539_v49 }
0x196d   :  { %v8684_v9 = vadd.f32 %v8664_v63, %v8544_v8  ;;  %v8665_v42 = vmul.f32 %v8645_v18, %v8547_v56  ;;  %v15309_v6 = vadd.f32 %v10657_v4, %v15286_v50  ;;  %v8551_v26 = vpop.f32.mrb[249].mxu1  ;;  %v15311_v31 = vmul.f32 0.5, %v8544_v8 }
0x196e   :  { %v8682_v24 = vadd.f32 %v8662_v35, %v8536_v11  ;;  %v8663_v10 = vmul.f32 %v8643_v60, %v8539_v49  ;;  %v8552_v51 = vadd.f32 %v15286_v50, %v8551_v26  ;;  %v10658_v46 = vpop.f32.mrb[250].mxu1  ;;  %v15314_v33 = vmul.f32 0.5, %v8547_v56 }
0x196f   :  { %v8704_v34 = vmul.f32 0.7978846, %v8684_v9  ;;  %v8685_v13 = vadd.f32 %v8665_v42, %v8547_v56  ;;  %v8628_v52 = vmul.f32 0.044715, %v15309_v6  ;;  %v15318_v23 = vadd.f32 %v10658_v46, %v15286_v50  ;;  %v8554_v55 = vpop.f32.mrb[251].mxu1 }
0x1970   :  { %v8702_v28 = vmul.f32 0.7978846, %v8682_v24  ;;  %v8683_v14 = vadd.f32 %v8663_v10, %v8539_v49  ;;  %v8626_v59 = vmul.f32 0.044715, %v8552_v51  ;;  %v15321_v8 = vadd.f32 %v15286_v50, %v8554_v55 }
0x1971   :  { %11428 = vtanh.f32 %v8704_v34  ;;  %v8705_v47 = vmul.f32 0.7978846, %v8685_v13  ;;  %v8648_v41 = vmul.f32 %v8628_v52, %v15309_v6  ;;  %v8629_v54 = vmul.f32 0.044715, %v15318_v23 }
0x1972   :  { %11430 = vtanh.f32 %v8702_v28  ;;  %v8703_v11 = vmul.f32 0.7978846, %v8683_v14  ;;  %v8646_v7 = vmul.f32 %v8626_v59, %v8552_v51  ;;  %v8627_v21 = vmul.f32 0.044715, %v15321_v8 }
0x1973   :  { %v11421_v1 = vpop.eup %11420  ;;  %11432 = vtanh.f32 %v8705_v47  ;;  %v8668_v3 = vmul.f32 %v8648_v41, %v15309_v6  ;;  %v8649_v56 = vmul.f32 %v8629_v54, %v15318_v23  ;;  %v15328_v17 = vmul.f32 0.5, %v8552_v51 }
0x1974   :  { %v11423_v25 = vpop.eup %11422  ;;  %v8740_v48 = vadd.f32 1.0, %v11421_v1  ;;  %11434 = vtanh.f32 %v8703_v11  ;;  %v8666_v62 = vmul.f32 %v8646_v7, %v8552_v51  ;;  %v8647_v49 = vmul.f32 %v8627_v21, %v15321_v8  ;;  %v10661_v43 = vpop.f32.mrb[252].mxu1 }
0x1975   :  { %v11425_v20 = vpop.eup %11424  ;;  %v8688_v30 = vadd.f32 %v8668_v3, %v15309_v6  ;;  %v8669_v39 = vmul.f32 %v8649_v56, %v15318_v23  ;;  %v15334_v58 = vadd.f32 %v10661_v43, %v15286_v50  ;;  %v8567_v5 = vpop.f32.mrb[253].mxu1  ;;  %v8738_v63 = vadd.f32 1.0, %v11423_v25 }
0x1976   :  { %v11427_v18 = vpop.eup %11426  ;;  %v15337_v35 = vmul.f32 %v8740_v48, %v15292_v45  ;;  %v8741_v60 = vadd.f32 1.0, %v11425_v20  ;;  %v8686_v4 = vadd.f32 %v8666_v62, %v8552_v51  ;;  %v8667_v9 = vmul.f32 %v8647_v49, %v15321_v8  ;;  %v10662_v42 = vpop.f32.mrb[254].mxu1 }
0x1977   :  { %v8708_v26 = vmul.f32 0.7978846, %v8688_v30  ;;  %v8689_v24 = vadd.f32 %v8669_v39, %v15318_v23  ;;  %v8632_v10 = vmul.f32 0.044715, %v15334_v58  ;;  %v15343_v46 = vadd.f32 %v15286_v50, %v8567_v5  ;;  %v8570_v34 = vpop.f32.mrb[255].mxu1 }
0x1978   :  { %v8761_v13 = vmul.f32 %v8741_v60, %v15296_v53  ;;  %v8706_v52 = vmul.f32 0.7978846, %v8686_v4  ;;  %v8687_v45 = vadd.f32 %v8667_v9, %v15321_v8  ;;  %v15348_v55 = vadd.f32 %v10662_v42, %v15286_v50 }
0x1979   :  { %11436 = vtanh.f32 %v8708_v26  ;;  %v8709_v51 = vmul.f32 0.7978846, %v8689_v24  ;;  %v8652_v28 = vmul.f32 %v8632_v10, %v15334_v58  ;;  %v8630_v14 = vmul.f32 0.044715, %v15343_v46 }
0x197a   :  { %v8779_v59 = vpack.c.bf16 %v8761_v13, %v15337_v35  ;;  %11438 = vtanh.f32 %v8706_v52  ;;  %v8707_v47 = vmul.f32 0.7978846, %v8687_v45  ;;  %v8633_v41 = vmul.f32 0.044715, %v15348_v55 }
0x197b   :  { %v11429_v54 = vpop.eup %11428  ;;  %11440 = vtanh.f32 %v8709_v51  ;;  %v8672_v53 = vmul.f32 %v8652_v28, %v15334_v58  ;;  %v8650_v11 = vmul.f32 %v8630_v14, %v15343_v46  ;;  %v15357_v7 = vadd.f32 %v15286_v50, %v8570_v34 }
0x197c   :  { %v11431_v21 = vpop.eup %11430  ;;  %11442 = vtanh.f32 %v8707_v47  ;;  %v8653_v1 = vmul.f32 %v8633_v41, %v15348_v55  ;;  %v10665_v3 = vpop.f32.mrb[0].mxu1  ;;  %v8739_v56 = vadd.f32 1.0, %v11427_v18  ;;  %v8758_v25 = vmul.f32 %v8738_v63, %v15294_v32 }
0x197d   :  { %v11433_v48 = vpop.eup %11432  ;;  %v8692_v62 = vadd.f32 %v8672_v53, %v15334_v58  ;;  %v8670_v49 = vmul.f32 %v8650_v11, %v15343_v46  ;;  %v8631_v43 = vmul.f32 0.044715, %v15357_v7  ;;  %v15365_v20 = vadd.f32 %v10665_v3, %v15286_v50  ;;  %v8583_v30 = vpop.f32.mrb[1].mxu1 }
0x197e   :  { %v11435_v39 = vpop.eup %11434  ;;  %v8673_v5 = vmul.f32 %v8653_v1, %v15348_v55  ;;  %v15369_v35 = vadd.f32 %v15286_v50, %v8583_v30  ;;  %v8759_v18 = vmul.f32 %v8739_v56, %v15300_v57  ;;  %v10666_v32 = vpop.f32.mrb[2].mxu1  ;;  %v8742_v63 = vadd.f32 1.0, %v11431_v21 }
0x197f   :  { %v8712_v60 = vmul.f32 0.7978846, %v8692_v62  ;;  %v8690_v4 = vadd.f32 %v8670_v49, %v15343_v46  ;;  %v8651_v9 = vmul.f32 %v8631_v43, %v15357_v7  ;;  %v8636_v42 = vmul.f32 0.044715, %v15365_v20  ;;  %v8586_v26 = vpop.f32.mrb[3].mxu1 }
0x1980   :  { %v8693_v24 = vadd.f32 %v8673_v5, %v15348_v55  ;;  %v8634_v10 = vmul.f32 0.044715, %v15369_v35  ;;  %v8778_v34 = vpack.c.bf16 %v8759_v18, %v8758_v25  ;;  %v15378_v13 = vadd.f32 %v10666_v32, %v15286_v50 }
0x1981   :  { %11444 = vtanh.f32 %v8712_v60  ;;  %v8710_v57 = vmul.f32 0.7978846, %v8690_v4  ;;  %v8671_v52 = vmul.f32 %v8651_v9, %v15357_v7  ;;  %v8656_v45 = vmul.f32 %v8636_v42, %v15365_v20 }
0x1982   :  { %v8713_v51 = vmul.f32 0.7978846, %v8693_v24  ;;  %v8654_v28 = vmul.f32 %v8634_v10, %v15369_v35  ;;  %10675 = vmatprep.mubr.msk.bf16.mxu0 %vm368_vm0, %v8778_v34  ;;  %v8637_v14 = vmul.f32 0.044715, %v15378_v13  ;;  %v15386_v47 = vadd.f32 %v15286_v50, %v8586_v26 }
0x1983   :  { %v11437_v41 = vpop.eup %11436  ;;  %11446 = vtanh.f32 %v8710_v57  ;;  %v8691_v53 = vadd.f32 %v8671_v52, %v15357_v7  ;;  %v8676_v11 = vmul.f32 %v8656_v45, %v15365_v20  ;;  %10676 = vmatmul.mubr.msk.bf16.vlgmr.msra.gmra.mrb[220].mxu0 %vm368_vm0, %v8779_v59  ;;  %v8743_v21 = vadd.f32 1.0, %v11435_v39 }
0x1984   :  { %v11439_v1 = vpop.eup %11438  ;;  %11448 = vtanh.f32 %v8713_v51  ;;  %v8674_v3 = vmul.f32 %v8654_v28, %v15369_v35  ;;  %v8657_v56 = vmul.f32 %v8637_v14, %v15378_v13  ;;  %v8635_v25 = vmul.f32 0.044715, %v15386_v47 }
0x1985   :  { %v11441_v62 = vpop.eup %11440  ;;  %v8711_v50 = vmul.f32 0.7978846, %v8691_v53  ;;  %v8696_v49 = vadd.f32 %v8676_v11, %v15365_v20  ;;  %v8762_v43 = vmul.f32 %v8742_v63, %v15304_v27  ;;  %v8763_v30 = vmul.f32 %v8743_v21, %v15306_v29 }
0x1986   :  { %v11443_v5 = vpop.eup %11442  ;;  %v8694_v59 = vadd.f32 %v8674_v3, %v15369_v35  ;;  %v8677_v39 = vmul.f32 %v8657_v56, %v15378_v13  ;;  %v8655_v18 = vmul.f32 %v8635_v25, %v15386_v47  ;;  %v8744_v32 = vadd.f32 1.0, %v11429_v54 }
0x1987   :  { %11450 = vtanh.f32 %v8711_v50  ;;  %v8716_v60 = vmul.f32 0.7978846, %v8696_v49  ;;  %v8780_v4 = vpack.c.bf16 %v8763_v30, %v8762_v43  ;;  %v8745_v9 = vadd.f32 1.0, %v11433_v48 }
0x1988   :  { %v8714_v42 = vmul.f32 0.7978846, %v8694_v59  ;;  %v8697_v26 = vadd.f32 %v8677_v39, %v15378_v13  ;;  %v8675_v24 = vmul.f32 %v8655_v18, %v15386_v47  ;;  %v8764_v27 = vmul.f32 %v8744_v32, %v15311_v31 }
0x1989   :  { %11452 = vtanh.f32 %v8716_v60  ;;  %10679 = vmatprep.mubr.msk.bf16.mxu0 %vm368_vm0, %v8780_v4  ;;  %v8765_v29 = vmul.f32 %v8745_v9, %v15314_v33  ;;  %v8607_v63 = vmul.f32 0.5, %v15321_v8  ;;  %v8746_v10 = vadd.f32 1.0, %v11439_v1 }
0x198a   :  { %11454 = vtanh.f32 %v8714_v42  ;;  %v8717_v54 = vmul.f32 0.7978846, %v8697_v26  ;;  %v8695_v34 = vadd.f32 %v8675_v24, %v15386_v47  ;;  %v8747_v48 = vadd.f32 1.0, %v11443_v5 }
0x198b   :  { %v11445_v57 = vpop.eup %11444  ;;  %v8781_v52 = vpack.c.bf16 %v8765_v29, %v8764_v27  ;;  %v8766_v45 = vmul.f32 %v8746_v10, %v15328_v17  ;;  %v8608_v51 = vmul.f32 0.5, %v15309_v6  ;;  %v8748_v14 = vadd.f32 1.0, %v11437_v41 }
0x198c   :  { %11456 = vtanh.f32 %v8717_v54  ;;  %v8715_v31 = vmul.f32 0.7978846, %v8695_v34  ;;  %v8767_v28 = vmul.f32 %v8747_v48, %v8607_v63  ;;  %v8609_v33 = vmul.f32 0.5, %v15318_v23 }
0x198d   :  { %v11447_v53 = vpop.eup %11446  ;;  %10680 = vmatmul.mubr.msk.bf16.gmra.mrb[224].mxu0 %vm368_vm0, %v8781_v52  ;;  %v8749_v8 = vadd.f32 1.0, %v11441_v62  ;;  %v8768_v1 = vmul.f32 %v8748_v14, %v8608_v51  ;;  %v8612_v3 = vmul.f32 0.5, %v15334_v58  ;;  %v8613_v17 = vmul.f32 0.5, %v15348_v55 }
0x198e   :  { %v11449_v11 = vpop.eup %11448  ;;  %11458 = vtanh.f32 %v8715_v31  ;;  %v8782_v21 = vpack.c.bf16 %v8767_v28, %v8766_v45  ;;  %v8752_v6 = vadd.f32 1.0, %v11445_v57  ;;  %v8750_v41 = vadd.f32 1.0, %v11447_v53 }
0x198f   :  { %v8769_v56 = vmul.f32 %v8749_v8, %v8609_v33  ;;  %v8753_v25 = vadd.f32 1.0, %v11449_v11  ;;  %v8610_v23 = vmul.f32 0.5, %v15343_v46  ;;  %v8611_v62 = vmul.f32 0.5, %v15357_v7 }
0x1990   :  { %10683 = vmatprep.mubr.msk.bf16.mxu0 %vm368_vm0, %v8782_v21  ;;  %v8772_v43 = vmul.f32 %v8752_v6, %v8612_v3  ;;  %v8616_v42 = vmul.f32 0.5, %v15365_v20  ;;  %v8617_v26 = vmul.f32 0.5, %v15378_v13  ;;  %v8614_v7 = vmul.f32 0.5, %v15369_v35  ;;  %v9567_v20 = vld [vmem:[%s15576_s13 + $0x1] ss:$0 sm:$0xff] }
0x1991   :  { %v11451_v50 = vpop.eup %11450  ;;  %v8783_v49 = vpack.c.bf16 %v8769_v56, %v8768_v1  ;;  %v8773_v30 = vmul.f32 %v8753_v25, %v8613_v17  ;;  %v8770_v18 = vmul.f32 %v8750_v41, %v8610_v23  ;;  %v8615_v27 = vmul.f32 0.5, %v15386_v47 }
0x1992   :  { %v8751_v5 = vadd.f32 1.0, %v11451_v50 }
0x1993   :  { %v11453_v59 = vpop.eup %11452  ;;  %v8785_v39 = vpack.c.bf16 %v8773_v30, %v8772_v43 }
0x1994   :  { %v11455_v58 = vpop.eup %11454  ;;  %v8771_v32 = vmul.f32 %v8751_v5, %v8611_v62  ;;  %v8756_v55 = vadd.f32 1.0, %v11453_v59 }
0x1995   :  { %10684 = vmatmul.mubr.msk.bf16.gmra.mrb[228].mxu0 %vm368_vm0, %v8783_v49  ;;  %v8754_v9 = vadd.f32 1.0, %v11455_v58 }
0x1996   :  { %v11457_v60 = vpop.eup %11456  ;;  %v8784_v4 = vpack.c.bf16 %v8771_v32, %v8770_v18  ;;  %v8776_v63 = vmul.f32 %v8756_v55, %v8616_v42 }
0x1997   :  { %v8757_v24 = vadd.f32 1.0, %v11457_v60  ;;  %v8774_v54 = vmul.f32 %v8754_v9, %v8614_v7 }
0x1998   :  { %v11459_v46 = vpop.eup %11458  ;;  %10687 = vmatprep.mubr.msk.bf16.mxu0 %vm368_vm0, %v8784_v4 }
0x1999   :  { %v8755_v29 = vadd.f32 1.0, %v11459_v46  ;;  %v8777_v10 = vmul.f32 %v8757_v24, %v8617_v26 }
0x199b   :  { %v8775_v34 = vmul.f32 %v8755_v29, %v8615_v27  ;;  %v8787_v48 = vpack.c.bf16 %v8777_v10, %v8776_v63 }
0x199d   :  { %10688 = vmatmul.mubr.msk.bf16.gmra.mrb[232].mxu0 %vm368_vm0, %v8785_v39  ;;  %v8786_v57 = vpack.c.bf16 %v8775_v34, %v8774_v54 }
0x199f   :  { %10691 = vmatprep.mubr.msk.bf16.mxu0 %vm368_vm0, %v8786_v57 }
0x19a5   :  { %10692 = vmatmul.mubr.msk.bf16.gmra.mrb[236].mxu0 %vm368_vm0, %v8787_v48  ;;  %vm9174_vm0 = vcmask 1041409  }
0x1a56   :  { %v10677_v35 = vpop.f32.mrb[220].mxu0 }
0x1a57   :  { %v8901_v13 = vadd.f32 %v10677_v35, %v9567_v20  ;;  %v8893_v47 = vpop.f32.mrb[221].mxu0 }
0x1a58   :  { %v8894_v52 = vadd.f32 %v9567_v20, %v8893_v47  ;;  %v10678_v45 = vpop.f32.mrb[222].mxu0 }
0x1a59   :  { %v8965_v51 = vadd.f32 %v8901_v13, %v15185_v0  ;;  %v8896_v31 = vpop.f32.mrb[223].mxu0 }
0x1a5a   :  { %v8964_v28 = vadd.f32 %v8894_v52, %v15175_v16 }
0x1a5b   :  { %v8977_v14 = vsel %vm825_vm14, %v8965_v51, 0.0 }
0x1a5c   :  { %8978 = vadd.xlane.f32.xlu1 %v8977_v14  ;;  %v8974_v53 = vsel %vm825_vm14, %v8964_v28, 0.0 }
0x1a60   :  { %v10681_v33 = vpop.f32.mrb[224].mxu0  ;;  %8975 = vadd.xlane.f32.xlu1 %v8974_v53 }
0x1a61   :  { %v8915_v8 = vadd.f32 %v10681_v33, %v9567_v20  ;;  %v8907_v11 = vpop.f32.mrb[225].mxu0 }
0x1a62   :  { %v8908_v21 = vadd.f32 %v9567_v20, %v8907_v11  ;;  %v10682_v1 = vpop.f32.mrb[226].mxu0 }
0x1a63   :  { %v8967_v3 = vadd.f32 %v8915_v8, %v15208_v44  ;;  %v8910_v56 = vpop.f32.mrb[227].mxu0 }
0x1a64   :  { %v8966_v17 = vadd.f32 %v8908_v21, %v15197_v37 }
0x1a65   :  { %v8983_v0 = vsel %vm825_vm14, %v8967_v3, 0.0 }
0x1a66   :  { %8984 = vadd.xlane.f32.xlu0 %v8983_v0  ;;  %v8980_v41 = vsel %vm825_vm14, %v8966_v17, 0.0 }
0x1a68   :  { %v10685_v16 = vpop.f32.mrb[228].mxu0 }
0x1a69   :  { %v8929_v6 = vadd.f32 %v10685_v16, %v9567_v20  ;;  %v8921_v25 = vpop.f32.mrb[229].mxu0 }
0x1a6a   :  { %v8922_v50 = vadd.f32 %v9567_v20, %v8921_v25  ;;  %8981 = vadd.xlane.f32.xlu0 %v8980_v41  ;;  %v10686_v49 = vpop.f32.mrb[230].mxu0 }
0x1a6b   :  { %v8969_v43 = vadd.f32 %v8929_v6, %v15224_v15  ;;  %v8924_v30 = vpop.f32.mrb[231].mxu0 }
0x1a6c   :  { %v8968_v23 = vadd.f32 %v8922_v50, %v15215_v40 }
0x1a6d   :  { %v8989_v44 = vsel %vm825_vm14, %v8969_v43, 0.0 }
0x1a6e   :  { %8990 = vadd.xlane.f32.xlu0 %v8989_v44  ;;  %v8986_v37 = vsel %vm825_vm14, %v8968_v23, 0.0 }
0x1a6f   :  { %8987 = vadd.xlane.f32.xlu1 %v8986_v37 }
0x1a70   :  { %v10689_v62 = vpop.f32.mrb[232].mxu0 }
0x1a71   :  { %v8943_v5 = vadd.f32 %v10689_v62, %v9567_v20  ;;  %v8935_v59 = vpop.f32.mrb[233].mxu0 }
0x1a72   :  { %v8936_v39 = vadd.f32 %v9567_v20, %v8935_v59  ;;  %v10690_v58 = vpop.f32.mrb[234].mxu0 }
0x1a73   :  { %v8971_v18 = vadd.f32 %v8943_v5, %v15247_v19  ;;  %v8938_v32 = vpop.f32.mrb[235].mxu0 }
0x1a74   :  { %v8970_v55 = vadd.f32 %v8936_v39, %v15234_v2 }
0x1a75   :  { %v8995_v15 = vsel %vm825_vm14, %v8971_v18, 0.0 }
0x1a76   :  { %8996 = vadd.xlane.f32.xlu0 %v8995_v15  ;;  %v8992_v40 = vsel %vm825_vm14, %v8970_v55, 0.0 }
0x1a77   :  { %8993 = vadd.xlane.f32.xlu1 %v8992_v40  ;;  %v10898_v40 = vld [vmem:[%s15578_s15] sm:$0xff]  }
0x1a78   :  { %v10693_v60 = vpop.f32.mrb[236].mxu0  ;;  %10696 = vmatpush3.bf16.msra.mxu1 %v10898_v40 }
0x1a79   :  { %v8957_v4 = vadd.f32 %v10693_v60, %v9567_v20  ;;  %v8949_v9 = vpop.f32.mrb[237].mxu0  ;;  %v10899_v60 = vld [vmem:[%s15578_s15 + $0x8] sm:$0xff]   ;;  %10697 = vmatprep.subr.bf16.mxu1 %v15657_v22 }
0x1a7a   :  { %v8950_v42 = vadd.f32 %v9567_v20, %v8949_v9  ;;  %v10694_v26 = vpop.f32.mrb[238].mxu0 }
0x1a7b   :  { %v8973_v24 = vadd.f32 %v8957_v4, %v15263_v38  ;;  %v8952_v46 = vpop.f32.mrb[239].mxu0 }
0x1a7c   :  { %v8972_v7 = vadd.f32 %v8950_v42, %v15256_v36  ;;  %10698 = vmatpush3.bf16.msra.mxu1 %v10899_v60 }
0x1a7d   :  { %v9001_v19 = vsel %vm825_vm14, %v8973_v24, 0.0 }
0x1a7e   :  { %9002 = vadd.xlane.f32.xlu1 %v9001_v19  ;;  %v8998_v2 = vsel %vm825_vm14, %v8972_v7, 0.0 }
0x1a7f   :  { %8999 = vadd.xlane.f32.xlu0 %v8998_v2 }
0x1ae9   :  { %v8979_v27 = vpop.xlane.xlu1 %8978 }
0x1aea   :  { %v9005_v29 = vmul.f32 0.03125, %v8979_v27 }
0x1aec   :  { %v15448_v63 = vsub.f32 %v8965_v51, %v9005_v29 }
0x1aed   :  { %v8976_v10 = vpop.xlane.xlu1 %8975 }
0x1aee   :  { %v9004_v54 = vmul.f32 0.03125, %v8976_v10  ;;  %v9025_v34 = vmul.f32 %v15448_v63, %v15448_v63 }
0x1af0   :  { %v15452_v48 = vsub.f32 %v8964_v28, %v9004_v54  ;;  %v9037_v38 = vsel %vm825_vm14, %v9025_v34, 0.0 }
0x1af1   :  { %9038 = vadd.xlane.f32.xlu1 %v9037_v38 }
0x1af2   :  { %v9024_v36 = vmul.f32 %v15452_v48, %v15452_v48 }
0x1af3   :  { %v8985_v57 = vpop.xlane.xlu0 %8984 }
0x1af4   :  { %v9007_v20 = vmul.f32 0.03125, %v8985_v57  ;;  %v9034_v35 = vsel %vm825_vm14, %v9024_v36, 0.0 }
0x1af5   :  { %9035 = vadd.xlane.f32.xlu1 %v9034_v35  ;;  %v9582_v35 = vld [vmem:[%s15577_s14 + $0x2] sm:$0x3] }
0x1af6   :  { %v15458_v13 = vsub.f32 %v8967_v3, %v9007_v20 }
0x1af7   :  { %v8982_v47 = vpop.xlane.xlu0 %8981 }
0x1af8   :  { %v9006_v52 = vmul.f32 0.03125, %v8982_v47  ;;  %v9027_v45 = vmul.f32 %v15458_v13, %v15458_v13 }
0x1afa   :  { %v15462_v51 = vsub.f32 %v8966_v17, %v9006_v52  ;;  %v9043_v31 = vsel %vm825_vm14, %v9027_v45, 0.0 }
0x1afb   :  { %9044 = vadd.xlane.f32.xlu0 %v9043_v31  ;;  %v8991_v28 = vpop.xlane.xlu0 %8990 }
0x1afc   :  { %v9009_v14 = vmul.f32 0.03125, %v8991_v28  ;;  %v8988_v53 = vpop.xlane.xlu1 %8987  ;;  %v9026_v33 = vmul.f32 %v15462_v51, %v15462_v51 }
0x1afd   :  { %v9008_v8 = vmul.f32 0.03125, %v8988_v53 }
0x1afe   :  { %v15467_v11 = vsub.f32 %v8969_v43, %v9009_v14  ;;  %v9040_v21 = vsel %vm825_vm14, %v9026_v33, 0.0  ;;  %v15509_v14 = vrot.slane %v9582_v35, %v15713_v12 }
0x1aff   :  { %v15470_v1 = vsub.f32 %v8968_v23, %v9008_v8  ;;  %9041 = vadd.xlane.f32.xlu0 %v9040_v21 }
0x1b00   :  { %v9029_v3 = vmul.f32 %v15467_v11, %v15467_v11 }
0x1b01   :  { %v9028_v56 = vmul.f32 %v15470_v1, %v15470_v1 }
0x1b02   :  { %v9049_v17 = vsel %vm825_vm14, %v9029_v3, 0.0 }
0x1b03   :  { %9050 = vadd.xlane.f32.xlu0 %v9049_v17  ;;  %v8997_v0 = vpop.xlane.xlu0 %8996  ;;  %v9046_v16 = vsel %vm825_vm14, %v9028_v56, 0.0 }
0x1b04   :  { %v9011_v6 = vmul.f32 0.03125, %v8997_v0  ;;  %v8994_v25 = vpop.xlane.xlu1 %8993  ;;  %9047 = vadd.xlane.f32.xlu1 %v9046_v16  ;;  %v15515_v0 = vrot.slane %v9582_v35, %v15714_v61 }
0x1b05   :  { %v9010_v41 = vmul.f32 0.03125, %v8994_v25 }
0x1b06   :  { %v15478_v50 = vsub.f32 %v8971_v18, %v9011_v6 }
0x1b07   :  { %v15480_v49 = vsub.f32 %v8970_v55, %v9010_v41 }
0x1b08   :  { %v9031_v43 = vmul.f32 %v15478_v50, %v15478_v50 }
0x1b09   :  { %v9030_v30 = vmul.f32 %v15480_v49, %v15480_v49 }
0x1b0a   :  { %v9055_v23 = vsel %vm825_vm14, %v9031_v43, 0.0 }
0x1b0b   :  { %v9003_v44 = vpop.xlane.xlu1 %9002  ;;  %9056 = vadd.xlane.f32.xlu0 %v9055_v23  ;;  %v9052_v37 = vsel %vm825_vm14, %v9030_v30, 0.0 }
0x1b0c   :  { %v9013_v62 = vmul.f32 0.03125, %v9003_v44  ;;  %9053 = vadd.xlane.f32.xlu1 %v9052_v37  ;;  %v9000_v5 = vpop.xlane.xlu0 %8999 }
0x1b0d   :  { %v9012_v59 = vmul.f32 0.03125, %v9000_v5 }
0x1b0e   :  { %v15488_v39 = vsub.f32 %v8973_v24, %v9013_v62 }
0x1b0f   :  { %v15490_v58 = vsub.f32 %v8972_v7, %v9012_v59 }
0x1b10   :  { %v9033_v18 = vmul.f32 %v15488_v39, %v15488_v39 }
0x1b11   :  { %v9032_v32 = vmul.f32 %v15490_v58, %v15490_v58 }
0x1b12   :  { %v9061_v55 = vsel %vm825_vm14, %v9033_v18, 0.0 }
0x1b13   :  { %9062 = vadd.xlane.f32.xlu1 %v9061_v55  ;;  %v9058_v15 = vsel %vm825_vm14, %v9032_v32, 0.0 }
0x1b14   :  { %9059 = vadd.xlane.f32.xlu0 %v9058_v15 }
0x1b7e   :  { %v9039_v4 = vpop.xlane.xlu1 %9038 }
0x1b7f   :  { %v9065_v42 = vmul.f32 0.03125, %v9039_v4 }
0x1b81   :  { %v9075_v46 = vadd.f32 1e-12, %v9065_v42 }
0x1b82   :  { %v9036_v9 = vpop.xlane.xlu1 %9035 }
0x1b83   :  { %v9064_v26 = vmul.f32 0.03125, %v9036_v9  ;;  %11460 = vrsqrt.f32 %v9075_v46 }
0x1b85   :  { %v9074_v19 = vadd.f32 1e-12, %v9064_v26 }
0x1b87   :  { %11462 = vrsqrt.f32 %v9074_v19 }
0x1b88   :  { %v9045_v24 = vpop.xlane.xlu0 %9044 }
0x1b89   :  { %v9067_v7 = vmul.f32 0.03125, %v9045_v24 }
0x1b8b   :  { %v9077_v2 = vadd.f32 1e-12, %v9067_v7 }
0x1b8c   :  { %v9042_v27 = vpop.xlane.xlu0 %9041 }
0x1b8d   :  { %v9066_v29 = vmul.f32 0.03125, %v9042_v27  ;;  %11464 = vrsqrt.f32 %v9077_v2  ;;  %v11461_v20 = vpop.eup %11460 }
0x1b8e   :  { %v9095_v53 = vmul.f32 %v11461_v20, %v15448_v63 }
0x1b8f   :  { %v9076_v10 = vadd.f32 1e-12, %v9066_v29 }
0x1b90   :  { %v9051_v54 = vpop.xlane.xlu0 %9050  ;;  %v9109_v16 = vmul.f32 %v15509_v14, %v9095_v53 }
0x1b91   :  { %11466 = vrsqrt.f32 %v9076_v10  ;;  %v9069_v34 = vmul.f32 0.03125, %v9051_v54  ;;  %v9048_v22 = vpop.xlane.xlu1 %9047  ;;  %v11463_v52 = vpop.eup %11462 }
0x1b92   :  { %v9068_v38 = vmul.f32 0.03125, %v9048_v22  ;;  %v9094_v3 = vmul.f32 %v11463_v52, %v15452_v48  ;;  %v9123_v23 = vadd.f32 %v15515_v0, %v9109_v16 }
0x1b93   :  { %v9079_v36 = vadd.f32 1e-12, %v9069_v34 }
0x1b94   :  { %v9078_v57 = vadd.f32 1e-12, %v9068_v38  ;;  %v9108_v41 = vmul.f32 %v15509_v14, %v9094_v3 }
0x1b95   :  { %11468 = vrsqrt.f32 %v9079_v36 }
0x1b96   :  { %11470 = vrsqrt.f32 %v9078_v57  ;;  %v9122_v59 = vadd.f32 %v15515_v0, %v9108_v41 }
0x1b97   :  { %v11465_v28 = vpop.eup %11464 }
0x1b98   :  { %v9057_v47 = vpop.xlane.xlu0 %9056  ;;  %v9097_v6 = vmul.f32 %v11465_v28, %v15458_v13 }
0x1b99   :  { %v9071_v45 = vmul.f32 0.03125, %v9057_v47  ;;  %v9054_v31 = vpop.xlane.xlu1 %9053 }
0x1b9a   :  { %v9070_v33 = vmul.f32 0.03125, %v9054_v31  ;;  %v9111_v44 = vmul.f32 %v15509_v14, %v9097_v6 }
0x1b9b   :  { %v11467_v8 = vpop.eup %11466  ;;  %v9081_v21 = vadd.f32 1e-12, %v9071_v45 }
0x1b9c   :  { %v9096_v56 = vmul.f32 %v11467_v8, %v15462_v51  ;;  %v9080_v17 = vadd.f32 1e-12, %v9070_v33  ;;  %v9125_v15 = vadd.f32 %v15515_v0, %v9111_v44 }
0x1b9d   :  { %11472 = vrsqrt.f32 %v9081_v21 }
0x1b9e   :  { %v9110_v12 = vmul.f32 %v15509_v14, %v9096_v56  ;;  %11474 = vrsqrt.f32 %v9080_v17  ;;  %v9135_v7 = vpack.c.bf16 %v9125_v15, %v9125_v15 }
0x1b9f   :  { %v11469_v63 = vpop.eup %11468 }
0x1ba0   :  { %v11471_v25 = vpop.eup %11470  ;;  %v9063_v43 = vpop.xlane.xlu1 %9062  ;;  %v9124_v48 = vadd.f32 %v15515_v0, %v9110_v12  ;;  %v9099_v13 = vmul.f32 %v11469_v63, %v15467_v11  ;;  %v9132_v11 = vpack.c.bf16 %v9122_v59, %v9122_v59  ;;  %v9166_v22 = vunpack.c.l.b16 %v9135_v7 }
0x1ba1   :  { %v9098_v51 = vmul.f32 %v11471_v25, %v15470_v1  ;;  %v9073_v30 = vmul.f32 0.03125, %v9063_v43  ;;  %v9060_v61 = vpop.xlane.xlu0 %9059  ;;  %v9133_v1 = vpack.c.bf16 %v9123_v23, %v9123_v23 }
0x1ba2   :  { %v9072_v37 = vmul.f32 0.03125, %v9060_v61  ;;  %v9134_v32 = vpack.c.bf16 %v9124_v48, %v9124_v48  ;;  %v9113_v40 = vmul.f32 %v15509_v14, %v9099_v13  ;;  %v9163_v29 = vunpack.c.l.b16 %v9132_v11  ;;  %v9583_v13 = vld [vmem:[%s15580_s16] ss:$0 sm:$0xff] }
0x1ba3   :  { %v9112_v62 = vmul.f32 %v15509_v14, %v9098_v51  ;;  %v9083_v5 = vadd.f32 1e-12, %v9073_v30  ;;  %v9164_v46 = vunpack.c.l.b16 %v9133_v1  ;;  %v9179_v53 = vrot.slane %v9166_v22, 5 }
0x1ba4   :  { %v9082_v18 = vadd.f32 1e-12, %v9072_v37  ;;  %v9165_v42 = vunpack.c.l.b16 %v9134_v32  ;;  %v9127_v19 = vadd.f32 %v15515_v0, %v9113_v40 }
0x1ba5   :  { %v9126_v55 = vadd.f32 %v15515_v0, %v9112_v62  ;;  %11476 = vrsqrt.f32 %v9083_v5 }
0x1ba6   :  { %11478 = vrsqrt.f32 %v9082_v18  ;;  %v9176_v10 = vrot.slane %v9165_v42, 6  ;;  %v9137_v38 = vpack.c.bf16 %v9127_v19, %v9127_v19 }
0x1ba7   :  { %v11473_v60 = vpop.eup %11472  ;;  %v9136_v26 = vpack.c.bf16 %v9126_v55, %v9126_v55  ;;  %v9587_v55 = vld [vmem:[%s15581_s17] ss:$0 sm:$0xff] }
0x1ba8   :  { %v11475_v4 = vpop.eup %11474  ;;  %v9101_v9 = vmul.f32 %v11473_v60, %v15478_v50  ;;  %v9173_v50 = vrot.slane %v9164_v46, 7  ;;  %v9168_v33 = vunpack.c.l.b16 %v9137_v38 }
0x1ba9   :  { %v9100_v24 = vmul.f32 %v11475_v4, %v15480_v49  ;;  %v9167_v54 = vunpack.c.l.b16 %v9136_v26 }
0x1baa   :  { %v9115_v2 = vmul.f32 %v15509_v14, %v9101_v9  ;;  %v9175_v35 = vsel %vm9174_vm0, %v9173_v50, %v9163_v29  ;;  %v9185_v12 = vrot.slane %v9168_v33, 3 }
0x1bab   :  { %v9114_v27 = vmul.f32 %v15509_v14, %v9100_v24  ;;  %v9178_v52 = vsel %vm9177_vm1, %v9176_v10, %v9175_v35  ;;  %v9182_v45 = vrot.slane %v9167_v54, 4 }
0x1bac   :  { %v9129_v49 = vadd.f32 %v15515_v0, %v9115_v2  ;;  %v9181_v56 = vsel %vm9180_vm2, %v9179_v53, %v9178_v52 }
0x1bad   :  { %v9128_v34 = vadd.f32 %v15515_v0, %v9114_v27  ;;  %v9184_v16 = vsel %vm9183_vm3, %v9182_v45, %v9181_v56 }
0x1bae   :  { %v9139_v8 = vpack.c.bf16 %v9129_v49, %v9129_v49  ;;  %v9187_v41 = vsel %vm9186_vm4, %v9185_v12, %v9184_v16 }
0x1baf   :  { %v11477_v36 = vpop.eup %11476  ;;  %v9138_v57 = vpack.c.bf16 %v9128_v34, %v9128_v34 }
0x1bb0   :  { %v11479_v20 = vpop.eup %11478  ;;  %v9103_v47 = vmul.f32 %v11477_v36, %v15488_v39  ;;  %v9170_v63 = vunpack.c.l.b16 %v9139_v8 }
0x1bb1   :  { %v9169_v31 = vunpack.c.l.b16 %v9138_v57  ;;  %v9102_v28 = vmul.f32 %v11479_v20, %v15490_v58 }
0x1bb2   :  { %v9117_v21 = vmul.f32 %v15509_v14, %v9103_v47  ;;  %v9191_v30 = vrot.slane %v9170_v63, 1 }
0x1bb3   :  { %v9116_v3 = vmul.f32 %v15509_v14, %v9102_v28  ;;  %v9188_v6 = vrot.slane %v9169_v31, 2 }
0x1bb4   :  { %v9131_v17 = vadd.f32 %v15515_v0, %v9117_v21 }
0x1bb5   :  { %v9130_v39 = vadd.f32 %v15515_v0, %v9116_v3  ;;  %v9190_v48 = vsel %vm9189_vm5, %v9188_v6, %v9187_v41  ;;  %v24_v0 = vstv %s15579_s18 }
0x1bb6   :  { %v9141_v25 = vpack.c.bf16 %v9131_v17, %v9131_v17  ;;  %v9193_v61 = vsel %vm9192_vm6, %v9191_v30, %v9190_v48  ;;  %25 = vst [vmem:[#allocation2] sm:$0x1] %v24_v0 }
0x1bb7   :  { %v9140_v58 = vpack.c.bf16 %v9130_v39, %v9130_v39 }
0x1bb8   :  { %v9172_v43 = vunpack.c.l.b16 %v9141_v25 }
0x1bb9   :  { %v9171_v51 = vunpack.c.l.b16 %v9140_v58 }
0x1bba   :  { %v9194_v14 = vrot.slane %v9172_v43, 7 }
0x1bbc   :  { %v9195_v23 = vsel %vm9174_vm0, %v9194_v14, %v9171_v51 }
0x1bbd   :  { %v9196_v44 = vpack.c.b16 %v9195_v23, %v9193_v61  ;;  %v9588_v9 = vld [vmem:[#allocation2] ss:$0 sm:$0xff] }
0x1bbf   :  { %10700 = vmatmul.mubr.msk.bf16.vlgmr.msra.gmra.mrb[4].mxu1 %vm825_vm14, %v9196_v44 }
0x1c92   :  { %v9246_v37 = vpop.f32.mrb[4].mxu1 }
0x1c93   :  { %v9247_v62 = vadd.f32 %v9583_v13, %v9246_v37  ;;  %v10701_v5 = vpop.f32.mrb[5].mxu1 }
0x1c94   :  { %v9249_v59 = vpop.f32.mrb[6].mxu1 }
0x1c95   :  { %11480 = vtanh.f32 %v9247_v62  ;;  %v9250_v18 = vadd.f32 %v9583_v13, %v9249_v59  ;;  %v10702_v32 = vpop.f32.mrb[7].mxu1 }
0x1c97   :  { %11482 = vtanh.f32 %v9250_v18 }
0x1c9f   :  { %v11481_v1 = vpop.eup %11480 }
0x1ca0   :  { %v9262_v15 = vmul.f32 %v11481_v1, %v9587_v55 }
0x1ca1   :  { %v11483_v40 = vpop.eup %11482 }
0x1ca2   :  { %v9264_v60 = vsel %vm825_vm14, %v9262_v15, 0.0  ;;  %v9263_v4 = vmul.f32 %v11483_v40, %v9587_v55 }
0x1ca3   :  { %9265 = vadd.xlane.f32.xlu1 %v9264_v60 }
0x1ca4   :  { %v9268_v11 = vsel %vm9267_vm7, %v9263_v4, 0.0 }
0x1ca5   :  { %9269 = vadd.xlane.f32.xlu0 %v9268_v11 }
0x1d30   :  { %v9266_v42 = vpop.xlane.xlu1 %9265 }
0x1d31   :  { %v9278_v26 = vadd.f32 %v9588_v9, %v9266_v42 }
0x1d32   :  { %v9270_v24 = vpop.xlane.xlu0 %9269 }
0x1d33   :  { %9281 = vst.msk [vmem:[%s15582_s19] sm:$0xff] %vm9280_vm9, %v9278_v26  ;;  %v9279_v46 = vadd.f32 %v9588_v9, %v9270_v24 }
0x1d35   :  { %9283 = vst.msk [vmem:[%s15582_s19 + $0x8] sm:$0x3] %vm9282_vm10, %v9279_v46 }

</bundles_post_ra>
